<compile_context>
chip_gen: v7x
topology: tpu7x:2x2x1
jax: 0.10.0
libtpu: 0.0.40
codegen_flags: <defaults>
</compile_context>

<pallas_src>
import jax
import jax.numpy as jnp
from jax import lax
from jax.experimental import pallas as pl
from jax.experimental.pallas import tpu as pltpu

# ---------------- configuration ----------------
EMB = 16
HEADS = 2
SEQ = 200
VOCAB = 50            # token_embedding has VOCAB + 1 rows
NUM_NUMERICAL = 33    # LocationEncoder numerical columns
LOC_VOCAB, LOC_EMB = 796, 8
LN_EPS = 1e-5
BN_EPS = 1e-5
BATCH = 2
X_WIDTH = 34 + 2 + SEQ  # 236 input columns

# slab16 row offsets (8-aligned so static ref slices don't straddle (8,128) tiles)
OFF_TOK = 0           # token_embedding          (51, 16)
OFF_POS = 56          # pos_embedding            (200, 16)
OFF_WU = 256          # attention unify weight   (32, 16)
OFF_W2 = 288          # FF second Linear weight  (64, 16)
OFF_VEC = 352         # [bu,ln1g,ln1b,b2,ln2g,ln2b,be]  (7, 16)
OFF_WE = 360          # embed Linear(20,16)      (20, 16)
OFF_S2 = 384          # 2-wide params, lanes 0:2 (48, 16)  [wl1f(41); wl2f;wag(4); bl1f;bl2f;bag(3)]
SLAB_ROWS = 432


# ---------------- fused per-batch Pallas kernel (one grid step = one batch) ----------------
def stn_kernel(cat_ref,                      # scalar-prefetch (SMEM), used only by index_maps
               tok_idx_ref,                  # (1, T, 1) int32
               xfeat_ref,                    # (1, 1, 35) f32   [33 numerical | age/gender 2]
               loc_ref,                      # (1, 1, 8)  f32   gathered location-embedding row
               slab_ref,                     # (432, 16)  f32   packed 16-lane params
               wqkv_ref,                     # (16, 96)   f32   fused q/k/v weight
               w1b_ref,                      # (17, 64)   f32   FF Linear1 weight (16 rows) + bias row
               out_ref):                     # (1, 1, 16) f32
    del cat_ref
    T, E, H = SEQ, EMB, HEADS
    V = VOCAB + 1
    HE = H * E
    scale = float(E) ** -0.25                # pbloem scales q and k each by e**(-1/4)

    # ---- patient encoder: token embedding gather as exact one-hot matmul ----
    idx_col = tok_idx_ref[0]                                          # (T, 1) int32
    onehot = (lax.broadcasted_iota(jnp.int32, (T, V), 1) == idx_col
              ).astype(jnp.float32)                                   # (T, V)
    tok_tbl = slab_ref[OFF_TOK:OFF_TOK + V, :]                        # (V, E)
    tokens = jnp.dot(onehot, tok_tbl, preferred_element_type=jnp.float32,
                     precision=lax.Precision.HIGHEST)                 # exact f32 gather
    xseq = tokens + slab_ref[OFF_POS:OFF_POS + T, :]                  # (T, E)

    # ---- wide self-attention (fused QKV, default MXU precision) ----
    qkv = jnp.dot(xseq, wqkv_ref[...], preferred_element_type=jnp.float32)   # (T, 3*H*E)
    wu = slab_ref[OFF_WU:OFF_WU + HE, :]                              # (H*E, E)

    att = None
    for h in range(H):                       # H=2 static unroll, head-unify accumulated
        c0 = h * E
        qh = qkv[:, c0:c0 + E] * scale
        kh = qkv[:, HE + c0:HE + c0 + E] * scale
        vh = qkv[:, 2 * HE + c0:2 * HE + c0 + E]
        # q @ k^T without materializing the transpose
        scores = lax.dot_general(qh, kh, (((1,), (1,)), ((), ())),
                                 preferred_element_type=jnp.float32)  # (T, T)
        scores = scores - jnp.max(scores, axis=-1, keepdims=True)
        p = jnp.exp(scores)
        p = p * pl.reciprocal(jnp.sum(p, axis=-1, keepdims=True), approx=True)
        ctx = jnp.dot(p, vh, preferred_element_type=jnp.float32)      # (T, E)
        contrib = jnp.dot(ctx, wu[c0:c0 + E, :],
                          preferred_element_type=jnp.float32)         # (T, E)
        att = contrib if att is None else att + contrib

    vec = slab_ref[OFF_VEC:OFF_VEC + 7, :]                            # (7, 16)
    bu, ln1g, ln1b = vec[0:1, :], vec[1:2, :], vec[2:3, :]
    b2, ln2g, ln2b, be = vec[3:4, :], vec[4:5, :], vec[5:6, :], vec[6:7, :]

    # residual + LayerNorm1
    y = att + bu + xseq
    mu = jnp.mean(y, axis=-1, keepdims=True)
    var = jnp.mean((y - mu) ** 2, axis=-1, keepdims=True)
    y = (y - mu) * lax.rsqrt(var + LN_EPS) * ln1g + ln1b

    # feed-forward (Linear(E,4E) -> ReLU -> Linear(4E,E)) + residual + LN2
    w1 = w1b_ref[0:E, :]
    b1 = w1b_ref[E:E + 1, :]
    hdn = jnp.maximum(jnp.dot(y, w1, preferred_element_type=jnp.float32) + b1, 0.0)
    w2 = slab_ref[OFF_W2:OFF_W2 + 4 * E, :]
    z = jnp.dot(hdn, w2, preferred_element_type=jnp.float32) + b2 + y
    mu2 = jnp.mean(z, axis=-1, keepdims=True)
    var2 = jnp.mean((z - mu2) ** 2, axis=-1, keepdims=True)
    z = (z - mu2) * lax.rsqrt(var2 + LN_EPS) * ln2g + ln2b            # (T, E)

    # max_pool=True -> max over the sequence
    h_pat = jnp.max(z, axis=0, keepdims=True)                         # (1, E)

    # ---- location encoder (eval-mode BNs pre-folded) + fc_age_gender + embed ----
    xrow = xfeat_ref[0]                                               # (1, 35)
    x_num = xrow[:, 0:NUM_NUMERICAL]                                  # (1, 33)
    x_ag = xrow[:, NUM_NUMERICAL:NUM_NUMERICAL + 2]                   # (1, 2)
    cat_emb = loc_ref[0]                                              # (1, 8)  gathered row

    wl1f = slab_ref[OFF_S2:OFF_S2 + 41, 0:2]                          # (41, 2)
    w22 = slab_ref[OFF_S2 + 41:OFF_S2 + 45, 0:2]                      # (4, 2)  [wl2f; wag]
    vec2 = slab_ref[OFF_S2 + 45:OFF_S2 + 48, 0:2]                     # (3, 2)  [bl1f; bl2f; bag]

    # Linear(41, 2) over cat([cat_emb, bn(x_num)]) -> split matmuls, BN(33) folded
    h1 = (jnp.dot(cat_emb, wl1f[0:LOC_EMB, :], preferred_element_type=jnp.float32)
          + jnp.dot(x_num, wl1f[LOC_EMB:, :], preferred_element_type=jnp.float32)
          + vec2[0:1, :])
    h1 = jnp.maximum(h1, 0.0)                                         # ReLU
    # (BatchNorm1d(2) folded) Linear(2, 2)
    h_loc = jnp.dot(h1, w22[0:2, :], preferred_element_type=jnp.float32) + vec2[1:2, :]
    # fc_age_gender: Linear(2, 2)
    out2 = jnp.dot(x_ag, w22[2:4, :], preferred_element_type=jnp.float32) + vec2[2:3, :]

    # embed: Linear(20, 16) over cat([h_loc, h_pat, out2]) as split matmuls
    we = slab_ref[OFF_WE:OFF_WE + 20, :]                              # (20, 16)
    emb = (jnp.dot(h_loc, we[0:2, :], preferred_element_type=jnp.float32)
           + jnp.dot(h_pat, we[2:2 + E, :], preferred_element_type=jnp.float32)
           + jnp.dot(out2, we[2 + E:4 + E, :], preferred_element_type=jnp.float32)
           + be)
    out_ref[0] = emb                                                  # (1, E)
    # classifier Linear(16,2) skipped: dic_model_conf['embed'] = True


# ---------------- parameter init (deterministic, synthetic) ----------------
def init_params(key):
    ks = list(jax.random.split(key, 40))
    nk = iter(ks)
    n = lambda shape, s=0.1: s * jax.random.normal(next(nk), shape, jnp.float32)
    p = {}
    # CTransformer_embed embeddings
    p['tok_emb'] = n((VOCAB + 1, EMB))
    p['pos_emb'] = n((SEQ, EMB))
    # TransformerBlock (wide): q/k/v Linear(E, H*E, bias=False), unify Linear(H*E, E)
    p['wq'] = n((EMB, HEADS * EMB))
    p['wk'] = n((EMB, HEADS * EMB))
    p['wv'] = n((EMB, HEADS * EMB))
    p['wu'] = n((HEADS * EMB, EMB))
    p['bu'] = n((1, EMB), 0.01)
    p['ln1g'] = 1.0 + n((1, EMB), 0.05)
    p['ln1b'] = n((1, EMB), 0.05)
    p['w1'] = n((EMB, 4 * EMB))
    p['b1'] = n((1, 4 * EMB), 0.01)
    p['w2'] = n((4 * EMB, EMB))
    p['b2'] = n((1, EMB), 0.01)
    p['ln2g'] = 1.0 + n((1, EMB), 0.05)
    p['ln2b'] = n((1, EMB), 0.05)
    # LocationEncoder
    p['loc_emb'] = n((LOC_VOCAB, LOC_EMB))
    p['bn33_g'] = 1.0 + n((1, NUM_NUMERICAL), 0.05)
    p['bn33_b'] = n((1, NUM_NUMERICAL), 0.05)
    p['bn33_m'] = n((1, NUM_NUMERICAL), 0.1)
    p['bn33_v'] = 0.8 + 0.4 * jax.random.uniform(next(nk), (1, NUM_NUMERICAL), jnp.float32)
    p['wl1'] = n((LOC_EMB + NUM_NUMERICAL, 2))
    p['bl1'] = n((1, 2), 0.01)
    p['bn2_g'] = 1.0 + n((1, 2), 0.05)
    p['bn2_b'] = n((1, 2), 0.05)
    p['bn2_m'] = n((1, 2), 0.1)
    p['bn2_v'] = 0.8 + 0.4 * jax.random.uniform(next(nk), (1, 2), jnp.float32)
    p['wl2'] = n((2, 2))
    p['bl2'] = n((1, 2), 0.01)
    # fc_age_gender, embed, classifier
    p['wag'] = n((2, 2))
    p['bag'] = n((1, 2), 0.01)
    p['we'] = n((2 + EMB + 2, EMB))
    p['be'] = n((1, EMB), 0.01)
    p['wcls'] = n((EMB, 2))     # unused (embed flag True), kept for shape parity
    p['bcls'] = n((1, 2), 0.01)
    return p


# ---------------- one-time host-side fold & pack (outside the per-call jit) ----------------
def fold_and_pack_params(p):
    """Fold eval-mode BatchNorms into the adjacent Linears and pack all the small
    parameters into a few lane-aligned slabs. Runs once at model-load time."""
    # BatchNorm1d(33) sits directly on x_num before Linear(41,2): fold into its numerical rows.
    s33 = p['bn33_g'] * lax.rsqrt(p['bn33_v'] + BN_EPS)               # (1, 33)
    t33 = p['bn33_b'] - p['bn33_m'] * s33                             # (1, 33)
    wl1f = jnp.concatenate(
        [p['wl1'][:LOC_EMB, :], p['wl1'][LOC_EMB:, :] * s33.T], axis=0)  # (41, 2)
    bl1f = p['bl1'] + t33 @ p['wl1'][LOC_EMB:, :]                     # (1, 2)
    # Linear(41,2) -> ReLU -> BatchNorm1d(2) -> Linear(2,2): fold BN(2) into Linear(2,2).
    s2 = p['bn2_g'] * lax.rsqrt(p['bn2_v'] + BN_EPS)                  # (1, 2)
    t2 = p['bn2_b'] - p['bn2_m'] * s2
    wl2f = p['wl2'] * s2.T                                            # (2, 2)
    bl2f = p['bl2'] + t2 @ p['wl2']                                   # (1, 2)

    wqkv = jnp.concatenate([p['wq'], p['wk'], p['wv']], axis=1)       # (16, 96)
    w1b = jnp.concatenate([p['w1'], p['b1']], axis=0)                 # (17, 64)

    vec16 = jnp.concatenate([p['bu'], p['ln1g'], p['ln1b'],
                             p['b2'], p['ln2g'], p['ln2b'], p['be']], axis=0)      # (7, 16)
    small2 = jnp.concatenate([wl1f, wl2f, p['wag'], bl1f, bl2f, p['bag']], axis=0)  # (48, 2)
    small2_16 = jnp.pad(small2, ((0, 0), (0, EMB - 2)))               # (48, 16), lanes 0:2 valid

    def seg(a, rows):
        return jnp.pad(a, ((0, rows - a.shape[0]), (0, 0)))

    slab16 = jnp.concatenate([
        seg(p['tok_emb'], 56),     # OFF_TOK = 0
        p['pos_emb'],              # OFF_POS = 56
        p['wu'],                   # OFF_WU  = 256
        p['w2'],                   # OFF_W2  = 288
        seg(vec16, 8),             # OFF_VEC = 352
        seg(p['we'], 24),          # OFF_WE  = 360
        small2_16,                 # OFF_S2  = 384
    ], axis=0)                     # (432, 16)
    assert slab16.shape == (SLAB_ROWS, EMB)

    loc_emb3 = p['loc_emb'].reshape(LOC_VOCAB, 1, LOC_EMB)            # row-gatherable table
    return {'slab16': slab16, 'wqkv': wqkv, 'w1b': w1b, 'loc_emb3': loc_emb3}


# ---------------- wrapper = STN_embed.forward (eval mode) ----------------
@jax.jit
def stn_embed_forward(x, packed):
    # x: (B, 236) float32; integer-valued col 0 (location id) and last 200 cols (token ids)
    B = x.shape[0]
    cat_idx = x[:, 0].astype(jnp.int32)                               # (B,)  -> SMEM scalar prefetch
    xfeat = x[:, 1:36].reshape(B, 1, 35)                              # 33 numerical + age/gender
    tok_idx = x[:, -SEQ:].astype(jnp.int32).reshape(B, SEQ, 1)        # (B, T, 1)

    grid_spec = pltpu.PrefetchScalarGridSpec(
        num_scalar_prefetch=1,
        grid=(B,),
        in_specs=[
            pl.BlockSpec((1, SEQ, 1), lambda b, cat: (b, 0, 0)),            # tok_idx
            pl.BlockSpec((1, 1, 35), lambda b, cat: (b, 0, 0)),             # xfeat
            pl.BlockSpec((1, 1, LOC_EMB), lambda b, cat: (cat[b], 0, 0)),   # loc row gather
            pl.BlockSpec((SLAB_ROWS, EMB), lambda b, cat: (0, 0)),          # slab16 (resident)
            pl.BlockSpec((EMB, 3 * HEADS * EMB), lambda b, cat: (0, 0)),    # wqkv   (resident)
            pl.BlockSpec((EMB + 1, 4 * EMB), lambda b, cat: (0, 0)),        # w1b    (resident)
        ],
        out_specs=pl.BlockSpec((1, 1, EMB), lambda b, cat: (b, 0, 0)),
    )

    out = pl.pallas_call(
        stn_kernel,
        out_shape=jax.ShapeDtypeStruct((B, 1, EMB), jnp.float32),
        grid_spec=grid_spec,
        compiler_params=pltpu.CompilerParams(
            dimension_semantics=("parallel",)),   # v7x: one batch per TensorCore
    )(cat_idx, tok_idx, xfeat, packed['loc_emb3'],
      packed['slab16'], packed['wqkv'], packed['w1b'])

    return out.reshape(B, EMB)   # (B, 16); classifier skipped since embed flag is True


if __name__ == "__main__":
    key = jax.random.PRNGKey(0)
    pk, k_cat, k_num, k_ag, k_tok = jax.random.split(key, 5)
    params = init_params(pk)
    packed = fold_and_pack_params(params)           # one-time, model-load-time packing
    packed = jax.tree_util.tree_map(jax.block_until_ready, packed)

    # build input x: (B, 236) float32 with integer-valued categorical/token cols
    cat = jax.random.randint(k_cat, (BATCH, 1), 0, LOC_VOCAB).astype(jnp.float32)
    num = jax.random.normal(k_num, (BATCH, NUM_NUMERICAL), jnp.float32)
    ag = jax.random.normal(k_ag, (BATCH, 2), jnp.float32)
    toks = jax.random.randint(k_tok, (BATCH, SEQ), 0, VOCAB + 1).astype(jnp.float32)
    x = jnp.concatenate([cat, num, ag, toks], axis=1)
    assert x.shape == (BATCH, X_WIDTH)

    out = stn_embed_forward(x, packed)
    out = jax.block_until_ready(out)
    assert out.shape == (BATCH, EMB) and out.dtype == jnp.float32
    assert bool(jnp.all(jnp.isfinite(out)))
    print("KERNEL_OK")
</pallas_src>

<mosaic_0001>
module attributes {stable_mosaic.version = 11 : i64} {
  func.func @stn_kernel(%arg0: i32, %arg1: memref<2xi32, #tpu.memory_space<smem>>, %arg2: memref<1x200x1xi32, #tpu.memory_space<vmem>>, %arg3: memref<1x1x35xf32, #tpu.memory_space<vmem>>, %arg4: memref<1x1x8xf32, #tpu.memory_space<vmem>>, %arg5: memref<432x16xf32, #tpu.memory_space<vmem>>, %arg6: memref<16x96xf32, #tpu.memory_space<vmem>>, %arg7: memref<17x64xf32, #tpu.memory_space<vmem>>, %arg8: memref<1x1x16xf32, #tpu.memory_space<vmem>>) attributes {dimension_semantics = [#tpu.dimension_semantics<parallel>], iteration_bounds = array<i64: 2>, scalar_prefetch = 1 : i64, scratch_operands = 0 : i64, tpu.core_type = #tpu.core_type<tc>, window_params = [{transform_indices = @transform_0, window_bounds = array<i64: 1, 200, 1>}, {transform_indices = @transform_1, window_bounds = array<i64: 1, 1, 35>}, {transform_indices = @transform_2, window_bounds = array<i64: 1, 1, 8>}, {pipeline_mode = #tpu.pipeline_mode<synchronous>, transform_indices = @transform_3, window_bounds = array<i64: 432, 16>}, {pipeline_mode = #tpu.pipeline_mode<synchronous>, transform_indices = @transform_4, window_bounds = array<i64: 16, 96>}, {pipeline_mode = #tpu.pipeline_mode<synchronous>, transform_indices = @transform_5, window_bounds = array<i64: 17, 64>}, {transform_indices = @transform_6, window_bounds = array<i64: 1, 1, 16>}]} {
    %c0 = arith.constant 0 : index
    %c0_0 = arith.constant 0 : index
    %c0_1 = arith.constant 0 : index
    %0 = vector.load %arg2[%c0, %c0_0, %c0_1] : memref<1x200x1xi32, #tpu.memory_space<vmem>>, vector<1x200x1xi32>
    %1 = vector.shape_cast %0 : vector<1x200x1xi32> to vector<200x1xi32>
    %2 = tpu.iota {dimensions = array<i32: 1>} : vector<200x51xi32>
    %3 = vector.broadcast %1 : vector<200x1xi32> to vector<200x51xi32>
    %4 = arith.cmpi eq, %2, %3 : vector<200x51xi32>
    %5 = arith.extui %4 : vector<200x51xi1> to vector<200x51xi32>
    %6 = arith.sitofp %5 : vector<200x51xi32> to vector<200x51xf32>
    %c0_2 = arith.constant 0 : index
    %c0_3 = arith.constant 0 : index
    %7 = vector.load %arg5[%c0_2, %c0_3] : memref<432x16xf32, #tpu.memory_space<vmem>>, vector<51x16xf32>
    %cst = arith.constant dense<0.000000e+00> : vector<200x16xf32>
    %8 = tpu.matmul %6, %7, %cst {dimension_numbers = #tpu.dot_dimension_numbers<[1], [0], [0], [1], [0, 0, 1, 1], [], []>, precision = #tpu.contract_precision<fp32>} : vector<200x51xf32>, vector<51x16xf32>, vector<200x16xf32> -> vector<200x16xf32>
    %c56 = arith.constant 56 : index
    %c0_4 = arith.constant 0 : index
    %9 = vector.load %arg5[%c56, %c0_4] : memref<432x16xf32, #tpu.memory_space<vmem>>, vector<200x16xf32>
    %10 = arith.addf %8, %9 : vector<200x16xf32>
    %c0_5 = arith.constant 0 : index
    %c0_6 = arith.constant 0 : index
    %11 = vector.load %arg6[%c0_5, %c0_6] : memref<16x96xf32, #tpu.memory_space<vmem>>, vector<16x96xf32>
    %cst_7 = arith.constant dense<0.000000e+00> : vector<200x96xf32>
    %12 = tpu.matmul %10, %11, %cst_7 {dimension_numbers = #tpu.dot_dimension_numbers<[1], [0], [0], [1], [0, 0, 1, 1], [], []>} : vector<200x16xf32>, vector<16x96xf32>, vector<200x96xf32> -> vector<200x96xf32>
    %c256 = arith.constant 256 : index
    %c0_8 = arith.constant 0 : index
    %13 = vector.load %arg5[%c256, %c0_8] : memref<432x16xf32, #tpu.memory_space<vmem>>, vector<32x16xf32>
    %14 = vector.extract_strided_slice %12 {offsets = [0, 0], sizes = [200, 16], strides = [1, 1]} : vector<200x96xf32> to vector<200x16xf32>
    %cst_9 = arith.constant 5.000000e-01 : f32
    %15 = vector.broadcast %cst_9 : f32 to vector<200x16xf32>
    %16 = arith.mulf %14, %15 : vector<200x16xf32>
    %17 = vector.extract_strided_slice %12 {offsets = [0, 32], sizes = [200, 16], strides = [1, 1]} : vector<200x96xf32> to vector<200x16xf32>
    %cst_10 = arith.constant 5.000000e-01 : f32
    %18 = vector.broadcast %cst_10 : f32 to vector<200x16xf32>
    %19 = arith.mulf %17, %18 : vector<200x16xf32>
    %20 = vector.extract_strided_slice %12 {offsets = [0, 64], sizes = [200, 16], strides = [1, 1]} : vector<200x96xf32> to vector<200x16xf32>
    %cst_11 = arith.constant dense<0.000000e+00> : vector<200x200xf32>
    %21 = tpu.matmul %16, %19, %cst_11 {dimension_numbers = #tpu.dot_dimension_numbers<[1], [1], [0], [0], [0, 0, 1, 0], [], []>} : vector<200x16xf32>, vector<200x16xf32>, vector<200x200xf32> -> vector<200x200xf32>
    %cst_12 = arith.constant dense<0xFF800000> : vector<200xf32>
    %22 = vector.multi_reduction <maximumf>, %21, %cst_12 [1] : vector<200x200xf32> to vector<200xf32>
    %23 = vector.shape_cast %22 : vector<200xf32> to vector<200x1xf32>
    %24 = vector.broadcast %23 : vector<200x1xf32> to vector<200x200xf32>
    %25 = arith.subf %21, %24 : vector<200x200xf32>
    %26 = math.exp %25 : vector<200x200xf32>
    %cst_13 = arith.constant dense<0.000000e+00> : vector<200xf32>
    %27 = vector.multi_reduction <add>, %26, %cst_13 [1] : vector<200x200xf32> to vector<200xf32>
    %28 = vector.shape_cast %27 : vector<200xf32> to vector<200x1xf32>
    %29 = tpu.reciprocal %28 {approx = true} : vector<200x1xf32> -> vector<200x1xf32>
    %30 = vector.broadcast %29 : vector<200x1xf32> to vector<200x200xf32>
    %31 = arith.mulf %26, %30 : vector<200x200xf32>
    %cst_14 = arith.constant dense<0.000000e+00> : vector<200x16xf32>
    %32 = tpu.matmul %31, %20, %cst_14 {dimension_numbers = #tpu.dot_dimension_numbers<[1], [0], [0], [1], [0, 0, 1, 1], [], []>} : vector<200x200xf32>, vector<200x16xf32>, vector<200x16xf32> -> vector<200x16xf32>
    %33 = vector.extract_strided_slice %13 {offsets = [0, 0], sizes = [16, 16], strides = [1, 1]} : vector<32x16xf32> to vector<16x16xf32>
    %cst_15 = arith.constant dense<0.000000e+00> : vector<200x16xf32>
    %34 = tpu.matmul %32, %33, %cst_15 {dimension_numbers = #tpu.dot_dimension_numbers<[1], [0], [0], [1], [0, 0, 1, 1], [], []>} : vector<200x16xf32>, vector<16x16xf32>, vector<200x16xf32> -> vector<200x16xf32>
    %35 = vector.extract_strided_slice %12 {offsets = [0, 16], sizes = [200, 16], strides = [1, 1]} : vector<200x96xf32> to vector<200x16xf32>
    %cst_16 = arith.constant 5.000000e-01 : f32
    %36 = vector.broadcast %cst_16 : f32 to vector<200x16xf32>
    %37 = arith.mulf %35, %36 : vector<200x16xf32>
    %38 = vector.extract_strided_slice %12 {offsets = [0, 48], sizes = [200, 16], strides = [1, 1]} : vector<200x96xf32> to vector<200x16xf32>
    %cst_17 = arith.constant 5.000000e-01 : f32
    %39 = vector.broadcast %cst_17 : f32 to vector<200x16xf32>
    %40 = arith.mulf %38, %39 : vector<200x16xf32>
    %41 = vector.extract_strided_slice %12 {offsets = [0, 80], sizes = [200, 16], strides = [1, 1]} : vector<200x96xf32> to vector<200x16xf32>
    %cst_18 = arith.constant dense<0.000000e+00> : vector<200x200xf32>
    %42 = tpu.matmul %37, %40, %cst_18 {dimension_numbers = #tpu.dot_dimension_numbers<[1], [1], [0], [0], [0, 0, 1, 0], [], []>} : vector<200x16xf32>, vector<200x16xf32>, vector<200x200xf32> -> vector<200x200xf32>
    %cst_19 = arith.constant dense<0xFF800000> : vector<200xf32>
    %43 = vector.multi_reduction <maximumf>, %42, %cst_19 [1] : vector<200x200xf32> to vector<200xf32>
    %44 = vector.shape_cast %43 : vector<200xf32> to vector<200x1xf32>
    %45 = vector.broadcast %44 : vector<200x1xf32> to vector<200x200xf32>
    %46 = arith.subf %42, %45 : vector<200x200xf32>
    %47 = math.exp %46 : vector<200x200xf32>
    %cst_20 = arith.constant dense<0.000000e+00> : vector<200xf32>
    %48 = vector.multi_reduction <add>, %47, %cst_20 [1] : vector<200x200xf32> to vector<200xf32>
    %49 = vector.shape_cast %48 : vector<200xf32> to vector<200x1xf32>
    %50 = tpu.reciprocal %49 {approx = true} : vector<200x1xf32> -> vector<200x1xf32>
    %51 = vector.broadcast %50 : vector<200x1xf32> to vector<200x200xf32>
    %52 = arith.mulf %47, %51 : vector<200x200xf32>
    %cst_21 = arith.constant dense<0.000000e+00> : vector<200x16xf32>
    %53 = tpu.matmul %52, %41, %cst_21 {dimension_numbers = #tpu.dot_dimension_numbers<[1], [0], [0], [1], [0, 0, 1, 1], [], []>} : vector<200x200xf32>, vector<200x16xf32>, vector<200x16xf32> -> vector<200x16xf32>
    %54 = vector.extract_strided_slice %13 {offsets = [16, 0], sizes = [16, 16], strides = [1, 1]} : vector<32x16xf32> to vector<16x16xf32>
    %cst_22 = arith.constant dense<0.000000e+00> : vector<200x16xf32>
    %55 = tpu.matmul %53, %54, %cst_22 {dimension_numbers = #tpu.dot_dimension_numbers<[1], [0], [0], [1], [0, 0, 1, 1], [], []>} : vector<200x16xf32>, vector<16x16xf32>, vector<200x16xf32> -> vector<200x16xf32>
    %56 = arith.addf %34, %55 : vector<200x16xf32>
    %c352 = arith.constant 352 : index
    %c0_23 = arith.constant 0 : index
    %57 = vector.load %arg5[%c352, %c0_23] : memref<432x16xf32, #tpu.memory_space<vmem>>, vector<7x16xf32>
    %58 = vector.extract_strided_slice %57 {offsets = [0, 0], sizes = [1, 16], strides = [1, 1]} : vector<7x16xf32> to vector<1x16xf32>
    %59 = vector.extract_strided_slice %57 {offsets = [1, 0], sizes = [1, 16], strides = [1, 1]} : vector<7x16xf32> to vector<1x16xf32>
    %60 = vector.extract_strided_slice %57 {offsets = [2, 0], sizes = [1, 16], strides = [1, 1]} : vector<7x16xf32> to vector<1x16xf32>
    %61 = vector.extract_strided_slice %57 {offsets = [3, 0], sizes = [1, 16], strides = [1, 1]} : vector<7x16xf32> to vector<1x16xf32>
    %62 = vector.extract_strided_slice %57 {offsets = [4, 0], sizes = [1, 16], strides = [1, 1]} : vector<7x16xf32> to vector<1x16xf32>
    %63 = vector.extract_strided_slice %57 {offsets = [5, 0], sizes = [1, 16], strides = [1, 1]} : vector<7x16xf32> to vector<1x16xf32>
    %64 = vector.extract_strided_slice %57 {offsets = [6, 0], sizes = [1, 16], strides = [1, 1]} : vector<7x16xf32> to vector<1x16xf32>
    %65 = vector.broadcast %58 : vector<1x16xf32> to vector<200x16xf32>
    %66 = arith.addf %56, %65 : vector<200x16xf32>
    %67 = arith.addf %66, %10 : vector<200x16xf32>
    %cst_24 = arith.constant dense<0.000000e+00> : vector<200xf32>
    %68 = vector.multi_reduction <add>, %67, %cst_24 [1] : vector<200x16xf32> to vector<200xf32>
    %69 = vector.shape_cast %68 : vector<200xf32> to vector<200x1xf32>
    %cst_25 = arith.constant 1.600000e+01 : f32
    %70 = vector.broadcast %cst_25 : f32 to vector<200x1xf32>
    %71 = arith.divf %69, %70 : vector<200x1xf32>
    %72 = vector.broadcast %71 : vector<200x1xf32> to vector<200x16xf32>
    %73 = arith.subf %67, %72 : vector<200x16xf32>
    %74 = arith.mulf %73, %73 : vector<200x16xf32>
    %cst_26 = arith.constant dense<0.000000e+00> : vector<200xf32>
    %75 = vector.multi_reduction <add>, %74, %cst_26 [1] : vector<200x16xf32> to vector<200xf32>
    %76 = vector.shape_cast %75 : vector<200xf32> to vector<200x1xf32>
    %cst_27 = arith.constant 1.600000e+01 : f32
    %77 = vector.broadcast %cst_27 : f32 to vector<200x1xf32>
    %78 = arith.divf %76, %77 : vector<200x1xf32>
    %79 = vector.broadcast %71 : vector<200x1xf32> to vector<200x16xf32>
    %80 = arith.subf %67, %79 : vector<200x16xf32>
    %cst_28 = arith.constant 9.99999974E-6 : f32
    %81 = vector.broadcast %cst_28 : f32 to vector<200x1xf32>
    %82 = arith.addf %78, %81 : vector<200x1xf32>
    %83 = math.rsqrt %82 : vector<200x1xf32>
    %84 = vector.broadcast %83 : vector<200x1xf32> to vector<200x16xf32>
    %85 = arith.mulf %80, %84 : vector<200x16xf32>
    %86 = vector.broadcast %59 : vector<1x16xf32> to vector<200x16xf32>
    %87 = arith.mulf %85, %86 : vector<200x16xf32>
    %88 = vector.broadcast %60 : vector<1x16xf32> to vector<200x16xf32>
    %89 = arith.addf %87, %88 : vector<200x16xf32>
    %c0_29 = arith.constant 0 : index
    %c0_30 = arith.constant 0 : index
    %90 = vector.load %arg7[%c0_29, %c0_30] : memref<17x64xf32, #tpu.memory_space<vmem>>, vector<16x64xf32>
    %c16 = arith.constant 16 : index
    %c0_31 = arith.constant 0 : index
    %91 = vector.load %arg7[%c16, %c0_31] : memref<17x64xf32, #tpu.memory_space<vmem>>, vector<1x64xf32>
    %cst_32 = arith.constant dense<0.000000e+00> : vector<200x64xf32>
    %92 = tpu.matmul %89, %90, %cst_32 {dimension_numbers = #tpu.dot_dimension_numbers<[1], [0], [0], [1], [0, 0, 1, 1], [], []>} : vector<200x16xf32>, vector<16x64xf32>, vector<200x64xf32> -> vector<200x64xf32>
    %93 = vector.broadcast %91 : vector<1x64xf32> to vector<200x64xf32>
    %94 = arith.addf %92, %93 : vector<200x64xf32>
    %cst_33 = arith.constant 0.000000e+00 : f32
    %95 = vector.broadcast %cst_33 : f32 to vector<200x64xf32>
    %96 = arith.maximumf %94, %95 : vector<200x64xf32>
    %c288 = arith.constant 288 : index
    %c0_34 = arith.constant 0 : index
    %97 = vector.load %arg5[%c288, %c0_34] : memref<432x16xf32, #tpu.memory_space<vmem>>, vector<64x16xf32>
    %cst_35 = arith.constant dense<0.000000e+00> : vector<200x16xf32>
    %98 = tpu.matmul %96, %97, %cst_35 {dimension_numbers = #tpu.dot_dimension_numbers<[1], [0], [0], [1], [0, 0, 1, 1], [], []>} : vector<200x64xf32>, vector<64x16xf32>, vector<200x16xf32> -> vector<200x16xf32>
    %99 = vector.broadcast %61 : vector<1x16xf32> to vector<200x16xf32>
    %100 = arith.addf %98, %99 : vector<200x16xf32>
    %101 = arith.addf %100, %89 : vector<200x16xf32>
    %cst_36 = arith.constant dense<0.000000e+00> : vector<200xf32>
    %102 = vector.multi_reduction <add>, %101, %cst_36 [1] : vector<200x16xf32> to vector<200xf32>
    %103 = vector.shape_cast %102 : vector<200xf32> to vector<200x1xf32>
    %cst_37 = arith.constant 1.600000e+01 : f32
    %104 = vector.broadcast %cst_37 : f32 to vector<200x1xf32>
    %105 = arith.divf %103, %104 : vector<200x1xf32>
    %106 = vector.broadcast %105 : vector<200x1xf32> to vector<200x16xf32>
    %107 = arith.subf %101, %106 : vector<200x16xf32>
    %108 = arith.mulf %107, %107 : vector<200x16xf32>
    %cst_38 = arith.constant dense<0.000000e+00> : vector<200xf32>
    %109 = vector.multi_reduction <add>, %108, %cst_38 [1] : vector<200x16xf32> to vector<200xf32>
    %110 = vector.shape_cast %109 : vector<200xf32> to vector<200x1xf32>
    %cst_39 = arith.constant 1.600000e+01 : f32
    %111 = vector.broadcast %cst_39 : f32 to vector<200x1xf32>
    %112 = arith.divf %110, %111 : vector<200x1xf32>
    %113 = vector.broadcast %105 : vector<200x1xf32> to vector<200x16xf32>
    %114 = arith.subf %101, %113 : vector<200x16xf32>
    %cst_40 = arith.constant 9.99999974E-6 : f32
    %115 = vector.broadcast %cst_40 : f32 to vector<200x1xf32>
    %116 = arith.addf %112, %115 : vector<200x1xf32>
    %117 = math.rsqrt %116 : vector<200x1xf32>
    %118 = vector.broadcast %117 : vector<200x1xf32> to vector<200x16xf32>
    %119 = arith.mulf %114, %118 : vector<200x16xf32>
    %120 = vector.broadcast %62 : vector<1x16xf32> to vector<200x16xf32>
    %121 = arith.mulf %119, %120 : vector<200x16xf32>
    %122 = vector.broadcast %63 : vector<1x16xf32> to vector<200x16xf32>
    %123 = arith.addf %121, %122 : vector<200x16xf32>
    %cst_41 = arith.constant dense<0xFF800000> : vector<16xf32>
    %124 = vector.multi_reduction <maximumf>, %123, %cst_41 [0] : vector<200x16xf32> to vector<16xf32>
    %125 = vector.shape_cast %124 : vector<16xf32> to vector<1x16xf32>
    %c0_42 = arith.constant 0 : index
    %c0_43 = arith.constant 0 : index
    %c0_44 = arith.constant 0 : index
    %126 = vector.load %arg3[%c0_42, %c0_43, %c0_44] : memref<1x1x35xf32, #tpu.memory_space<vmem>>, vector<1x1x35xf32>
    %127 = vector.shape_cast %126 : vector<1x1x35xf32> to vector<1x35xf32>
    %128 = vector.extract_strided_slice %127 {offsets = [0, 0], sizes = [1, 33], strides = [1, 1]} : vector<1x35xf32> to vector<1x33xf32>
    %129 = vector.extract_strided_slice %127 {offsets = [0, 33], sizes = [1, 2], strides = [1, 1]} : vector<1x35xf32> to vector<1x2xf32>
    %c0_45 = arith.constant 0 : index
    %c0_46 = arith.constant 0 : index
    %c0_47 = arith.constant 0 : index
    %130 = vector.load %arg4[%c0_45, %c0_46, %c0_47] : memref<1x1x8xf32, #tpu.memory_space<vmem>>, vector<1x1x8xf32>
    %131 = vector.shape_cast %130 : vector<1x1x8xf32> to vector<1x8xf32>
    %c384 = arith.constant 384 : index
    %c0_48 = arith.constant 0 : index
    %132 = vector.load %arg5[%c384, %c0_48] : memref<432x16xf32, #tpu.memory_space<vmem>>, vector<41x2xf32>
    %c425 = arith.constant 425 : index
    %c0_49 = arith.constant 0 : index
    %133 = vector.load %arg5[%c425, %c0_49] : memref<432x16xf32, #tpu.memory_space<vmem>>, vector<4x2xf32>
    %c429 = arith.constant 429 : index
    %c0_50 = arith.constant 0 : index
    %134 = vector.load %arg5[%c429, %c0_50] : memref<432x16xf32, #tpu.memory_space<vmem>>, vector<3x2xf32>
    %135 = vector.extract_strided_slice %132 {offsets = [0, 0], sizes = [8, 2], strides = [1, 1]} : vector<41x2xf32> to vector<8x2xf32>
    %cst_51 = arith.constant dense<0.000000e+00> : vector<1x2xf32>
    %136 = tpu.matmul %131, %135, %cst_51 {dimension_numbers = #tpu.dot_dimension_numbers<[1], [0], [0], [1], [0, 0, 1, 1], [], []>} : vector<1x8xf32>, vector<8x2xf32>, vector<1x2xf32> -> vector<1x2xf32>
    %137 = vector.extract_strided_slice %132 {offsets = [8, 0], sizes = [33, 2], strides = [1, 1]} : vector<41x2xf32> to vector<33x2xf32>
    %cst_52 = arith.constant dense<0.000000e+00> : vector<1x2xf32>
    %138 = tpu.matmul %128, %137, %cst_52 {dimension_numbers = #tpu.dot_dimension_numbers<[1], [0], [0], [1], [0, 0, 1, 1], [], []>} : vector<1x33xf32>, vector<33x2xf32>, vector<1x2xf32> -> vector<1x2xf32>
    %139 = arith.addf %136, %138 : vector<1x2xf32>
    %140 = vector.extract_strided_slice %134 {offsets = [0, 0], sizes = [1, 2], strides = [1, 1]} : vector<3x2xf32> to vector<1x2xf32>
    %141 = arith.addf %139, %140 : vector<1x2xf32>
    %cst_53 = arith.constant 0.000000e+00 : f32
    %142 = vector.broadcast %cst_53 : f32 to vector<1x2xf32>
    %143 = arith.maximumf %141, %142 : vector<1x2xf32>
    %144 = vector.extract_strided_slice %133 {offsets = [0, 0], sizes = [2, 2], strides = [1, 1]} : vector<4x2xf32> to vector<2x2xf32>
    %cst_54 = arith.constant dense<0.000000e+00> : vector<1x2xf32>
    %145 = tpu.matmul %143, %144, %cst_54 {dimension_numbers = #tpu.dot_dimension_numbers<[1], [0], [0], [1], [0, 0, 1, 1], [], []>} : vector<1x2xf32>, vector<2x2xf32>, vector<1x2xf32> -> vector<1x2xf32>
    %146 = vector.extract_strided_slice %134 {offsets = [1, 0], sizes = [1, 2], strides = [1, 1]} : vector<3x2xf32> to vector<1x2xf32>
    %147 = arith.addf %145, %146 : vector<1x2xf32>
    %148 = vector.extract_strided_slice %133 {offsets = [2, 0], sizes = [2, 2], strides = [1, 1]} : vector<4x2xf32> to vector<2x2xf32>
    %cst_55 = arith.constant dense<0.000000e+00> : vector<1x2xf32>
    %149 = tpu.matmul %129, %148, %cst_55 {dimension_numbers = #tpu.dot_dimension_numbers<[1], [0], [0], [1], [0, 0, 1, 1], [], []>} : vector<1x2xf32>, vector<2x2xf32>, vector<1x2xf32> -> vector<1x2xf32>
    %150 = vector.extract_strided_slice %134 {offsets = [2, 0], sizes = [1, 2], strides = [1, 1]} : vector<3x2xf32> to vector<1x2xf32>
    %151 = arith.addf %149, %150 : vector<1x2xf32>
    %c360 = arith.constant 360 : index
    %c0_56 = arith.constant 0 : index
    %152 = vector.load %arg5[%c360, %c0_56] : memref<432x16xf32, #tpu.memory_space<vmem>>, vector<20x16xf32>
    %153 = vector.extract_strided_slice %152 {offsets = [0, 0], sizes = [2, 16], strides = [1, 1]} : vector<20x16xf32> to vector<2x16xf32>
    %cst_57 = arith.constant dense<0.000000e+00> : vector<1x16xf32>
    %154 = tpu.matmul %147, %153, %cst_57 {dimension_numbers = #tpu.dot_dimension_numbers<[1], [0], [0], [1], [0, 0, 1, 1], [], []>} : vector<1x2xf32>, vector<2x16xf32>, vector<1x16xf32> -> vector<1x16xf32>
    %155 = vector.extract_strided_slice %152 {offsets = [2, 0], sizes = [16, 16], strides = [1, 1]} : vector<20x16xf32> to vector<16x16xf32>
    %cst_58 = arith.constant dense<0.000000e+00> : vector<1x16xf32>
    %156 = tpu.matmul %125, %155, %cst_58 {dimension_numbers = #tpu.dot_dimension_numbers<[1], [0], [0], [1], [0, 0, 1, 1], [], []>} : vector<1x16xf32>, vector<16x16xf32>, vector<1x16xf32> -> vector<1x16xf32>
    %157 = arith.addf %154, %156 : vector<1x16xf32>
    %158 = vector.extract_strided_slice %152 {offsets = [18, 0], sizes = [2, 16], strides = [1, 1]} : vector<20x16xf32> to vector<2x16xf32>
    %cst_59 = arith.constant dense<0.000000e+00> : vector<1x16xf32>
    %159 = tpu.matmul %151, %158, %cst_59 {dimension_numbers = #tpu.dot_dimension_numbers<[1], [0], [0], [1], [0, 0, 1, 1], [], []>} : vector<1x2xf32>, vector<2x16xf32>, vector<1x16xf32> -> vector<1x16xf32>
    %160 = arith.addf %157, %159 : vector<1x16xf32>
    %161 = arith.addf %160, %64 : vector<1x16xf32>
    %c0_60 = arith.constant 0 : index
    %c0_61 = arith.constant 0 : index
    %c0_62 = arith.constant 0 : index
    %162 = vector.load %arg8[%c0_60, %c0_61, %c0_62] : memref<1x1x16xf32, #tpu.memory_space<vmem>>, vector<1x1x16xf32>
    %163 = vector.shape_cast %162 : vector<1x1x16xf32> to vector<1x16xf32>
    %164 = vector.shape_cast %161 : vector<1x16xf32> to vector<1x1x16xf32>
    tpu.vector_store %arg8[%c0_60, %c0_61, %c0_62], %164 {strides = array<i32>} : memref<1x1x16xf32, #tpu.memory_space<vmem>>, vector<1x1x16xf32>,
    return
  }
  func.func @transform_0(%arg0: i32, %arg1: memref<2xi32, #tpu.memory_space<smem>>) -> (i32, i32, i32) {
    %c0_i32 = arith.constant 0 : i32
    %c0_i32_0 = arith.constant 0 : i32
    %c0_i32_1 = arith.constant 0 : i32
    return %arg0, %c0_i32, %c0_i32_0 : i32, i32, i32
  }
  func.func @transform_1(%arg0: i32, %arg1: memref<2xi32, #tpu.memory_space<smem>>) -> (i32, i32, i32) {
    %c0_i32 = arith.constant 0 : i32
    %c0_i32_0 = arith.constant 0 : i32
    %c0_i32_1 = arith.constant 0 : i32
    return %arg0, %c0_i32, %c0_i32_0 : i32, i32, i32
  }
  func.func @transform_2(%arg0: i32, %arg1: memref<2xi32, #tpu.memory_space<smem>>) -> (i32, i32, i32) {
    %0 = arith.index_cast %arg0 : i32 to index
    %1 = memref.load %arg1[%0] : memref<2xi32, #tpu.memory_space<smem>>
    %c0_i32 = arith.constant 0 : i32
    %c0_i32_0 = arith.constant 0 : i32
    %c0_i32_1 = arith.constant 0 : i32
    return %1, %c0_i32, %c0_i32_0 : i32, i32, i32
  }
  func.func @transform_3(%arg0: i32, %arg1: memref<2xi32, #tpu.memory_space<smem>>) -> (i32, i32) {
    %c0_i32 = arith.constant 0 : i32
    %c0_i32_0 = arith.constant 0 : i32
    %c0_i32_1 = arith.constant 0 : i32
    return %c0_i32, %c0_i32_0 : i32, i32
  }
  func.func @transform_4(%arg0: i32, %arg1: memref<2xi32, #tpu.memory_space<smem>>) -> (i32, i32) {
    %c0_i32 = arith.constant 0 : i32
    %c0_i32_0 = arith.constant 0 : i32
    %c0_i32_1 = arith.constant 0 : i32
    return %c0_i32, %c0_i32_0 : i32, i32
  }
  func.func @transform_5(%arg0: i32, %arg1: memref<2xi32, #tpu.memory_space<smem>>) -> (i32, i32) {
    %c0_i32 = arith.constant 0 : i32
    %c0_i32_0 = arith.constant 0 : i32
    %c0_i32_1 = arith.constant 0 : i32
    return %c0_i32, %c0_i32_0 : i32, i32
  }
  func.func @transform_6(%arg0: i32, %arg1: memref<2xi32, #tpu.memory_space<smem>>) -> (i32, i32, i32) {
    %c0_i32 = arith.constant 0 : i32
    %c0_i32_0 = arith.constant 0 : i32
    %c0_i32_1 = arith.constant 0 : i32
    return %arg0, %c0_i32, %c0_i32_0 : i32, i32, i32
  }
}

</mosaic_0001>

<bundles_post_ra>
// kernel: stn_embed_forward.1
= control target key start
LH: loop header
LB: loop body
LE: loop exit
PB: predicated region body
PF: predicated region fallthrough
CT: control target
= control target key end

     0   :  { %s15013_s0 = inlined_call_operand.vmem [shape: s32[2], index: 0, kind: input, shape index: {}]   ;;  %s15014_s1 = inlined_call_operand.vmem [shape: s32[2,200,1], index: 1, kind: input, shape index: {}]   ;;  %s15015_s2 = inlined_call_operand.vmem [shape: f32[2,1,35], index: 2, kind: input, shape index: {}]   ;;  %s15016_s3 = inlined_call_operand.vmem [shape: f32[796,1,8], index: 3, kind: input, shape index: {}]   ;;  %s15017_s4 = inlined_call_operand.vmem [shape: f32[432,16], index: 4, kind: input, shape index: {}]   ;;  %s15018_s5 = inlined_call_operand.vmem [shape: f32[16,96], index: 5, kind: input, shape index: {}]   ;;  %s15019_s6 = inlined_call_operand.vmem [shape: f32[17,64], index: 6, kind: input, shape index: {}]   ;;  %s15020_s7 = inlined_call_operand.hbm [shape: f32[2,1,16], index: 7, kind: output, shape index: {}]  }
   0x1   :  { %s12_s26 = sshll.u32 %s15013_s0, 4  ;;  %s13_s26 = int_to_ptr.vmem [resolvable:$true] %s12_s26 }
   0x2   :  { %s10445_s27 = scalar_lea.vmem %s13_s26, 16  ;;  %p10450_p1 = scmp.lt.s32.totalorder %s13_s26, %s13_s26 }
   0x3   :  { %p10446_p0 = scmp.ne.s32.totalorder %s13_s26, %s10445_s27  ;;  %p10451_p2 = scmp.lt.s32.totalorder %s10445_s27, %s10445_s27 }
   0x5   :  { %p10452_p3 = por %p10451_p2, %p10450_p1 }
   0x7   :  { %p10453_p4 = pnand %p10452_p3, %p10446_p0 }
   0x9   :  { %10456 = shalt.err (!%p10453_p4)  }
   0xa   :  { %s10523_s28 = smov [#allocation3]  }
   0xb   :  { %15 = dma.vmem_to_smem %s13_s26, 16, %s10523_s28, [#allocation2] }
   0xc   :  { %10501 = dma.done.wait [#allocation2], 16 }
   0xd   :  { %10502 = vsyncadd [#allocation2], 4294967280 }
   0xe   :  { %17 = sfence }
   0xf   :  { %18 = vsyncpa [#allocation5], 0 }
  0x10   :  { %20 = vsyncpa [#allocation5 + $0x1], 0  ;;  %s10578_s29 = smov 0   ;;  %s10580_s30 = smov 0  }
  0x11   :  { %s10582_s0 = smov 0   ;;  %s10584_s8 = smov 0  }
  0x12 LB: > { %s10599_s9 = sadd.s32 4294967295, %s10521_s8   ;;  %s7459_s10 = sadd.s32 4294967294, %s10521_s8   ;;  %s10521_s8 = sphi %s10584_s8, %s15460_s8   ;;  %s10517_s0 = sphi %s10582_s0, %s15459_s0   ;;  %s10513_s30 = sphi %s10580_s30, %s15458_s30   ;;  %s10509_s29 = sphi %s10578_s29, %s15457_s29  }
  0x13   : > { %s10603_s11 = sadd.s32 1, %s10521_s8   ;;  %s176_s12 = sadd.s32 1, %s10517_s0 }
  0x14   : > { %s173_s13 = ssub.s32 %s10521_s8, %s10603_s11  ;;  %p186_p5 = scmp.ne.s32.totalorder %s10517_s0, %s10513_s30 }
  0x15   : > { %p174_p6 = scmp.eq.s32.totalorder %s173_s13, 0  ;;  %p187_p7 = scmp.eq.s32.totalorder %s10599_s9, 1 }
  0x16   : > { %p192_p8 = scmp.ne.s32.totalorder %s10513_s30, %s10509_s29  ;;  %p193_p9 = scmp.eq.s32.totalorder %s7459_s10, 1 }
  0x17   : > { %s10614_s14 = scalar_select %p174_p6, %s10517_s0, %s176_s12  }
  0x18   : > { %p10616_p10 = por %p187_p7, %p186_p5  ;;  %p10620_p11 = por %p193_p9, %p192_p8 }
  0x19   : > { %p7462_p12 = scmp.ge.s32.totalorder %s10521_s8, 1  ;;  %p242_p13 = scmp.lt.s32.totalorder %s10521_s8, 3 }
  0x1b   : > { %p243_p0 = pnand %p7462_p12, %p242_p13 }
  0x1d   : > { %246 = sbr.rel (%p243_p0) target bundleno = 4594 (0x11f2), region = 44 }
  0x24   : > { %p278_p1 = scmp.lt.s32.totalorder %s10599_s9, 1  ;;  %v468_v0 = vld [vmem:[%s15017_s4] sm:$0xff]  ;;  %v469_v1 = vld [vmem:[%s15017_s4 + $0x8] sm:$0xff]  ;;  %v10524_v2 = vmov 0   ;;  %v15046_v5 = vmov 0.0|0.0   ;;  %v470_v9 = vld [vmem:[%s15017_s4 + $0x10] sm:$0xff]  ;;  %v15021_v52 = vlaneseq }
  0x25   : > { %9801 = vset.pattern.permute.xlu1 %v10524_v2  ;;  %9800 = vset.pattern.permute.xlu0 %v10524_v2  ;;  %v581_v3 = vand.u32 4294901760, %v468_v0  ;;  %v584_v4 = vand.u32 4294901760, %v469_v1  ;;  %v471_v10 = vld [vmem:[%s15017_s4 + $0x18] sm:$0xff]  ;;  %v587_v11 = vand.u32 4294901760, %v470_v9  ;;  %v472_v22 = vld [vmem:[%s15017_s4 + $0x20] sm:$0xff]  ;;  %v473_v23 = vld [vmem:[%s15017_s4 + $0x28] sm:$0xff] }
  0x26   : > { %s10634_s21 = scalar_select %p278_p1, %s10599_s9, 1  ;;  %9193 = vmatprep.subr.bf16.mxu0 %v15046_v5  ;;  %9247 = vmatprep.subr.bf16.mxu1 %v15046_v5  ;;  %v590_v12 = vand.u32 4294901760, %v471_v10  ;;  %vm576_vm0 = vcmask 1042432   ;;  %v593_v24 = vand.u32 4294901760, %v472_v22  ;;  %v596_v25 = vand.u32 4294901760, %v473_v23 }
  0x27   : > { %v10638_v6 = vpack.c.bf16 %v584_v4, %v581_v3  ;;  %v10640_v7 = vsub.f32 %v468_v0, %v581_v3  ;;  %v10642_v8 = vsub.f32 %v469_v1, %v584_v4  ;;  %v10665_v18 = vsub.f32 %v470_v9, %v587_v11  ;;  %v474_v26 = vld [vmem:[%s15017_s4 + $0x30] sm:$0x7]  ;;  %s10528_s19 = smov 96   ;;  %s10529_s20 = smov 64  }
  0x28   : > { %s9749_s22 = smul.u32 200, %s10634_s21  ;;  %v10660_v15 = vpack.c.bf16 %v590_v12, %v587_v11  ;;  %v10667_v19 = vsub.f32 %v471_v10, %v590_v12  ;;  %v10683_v29 = vpack.c.bf16 %v596_v25, %v593_v24  ;;  %v10685_v30 = vsub.f32 %v472_v22, %v593_v24  ;;  %s10531_s23 = smov 112  }
  0x29   : > { %9195 = vmatpush3.bf16.msra.mxu0 %v10638_v6  ;;  %v10687_v31 = vsub.f32 %v473_v23, %v596_v25  ;;  %v10689_v32 = vsel %vm576_vm0, %v474_v26, 0  ;;  %vm10526_vm1 = vmmov 0   ;;  %v15084_v33 = vmov 0.0   ;;  %s10532_s24 = smov 48   ;;  %s10533_s25 = smov 95  }
  0x2a   : > { %s10655_s10 = scalar_lea.vmem %s15014_s1, %s9749_s22  ;;  %9196 = vmatprep.subr.bf16.mxu0 %v15046_v5  ;;  %8221 = vmatprep.mubr.msk.f32.mxu0 %vm10526_vm1, %v15084_v33  ;;  %v10699_v36 = vand.u32 4294901760, %v10689_v32  ;;  %v15045_v53 = vand.u32 4294901760, %v10640_v7  ;;  %v15043_v54 = vand.u32 4294901760, %v10642_v8  ;;  %v10722_v55 = vand.u32 127, %v15021_v52  ;;  %s10530_s22 = smov 80  }
  0x2b   : > { %v293_v13 = vld [vmem:[%s10655_s10 + $0x10] sm:$0xff]  ;;  %v291_v14 = vld [vmem:[%s10655_s10] sm:$0xff]  ;;  %v294_v16 = vld [vmem:[%s10655_s10 + $0x18] sm:$0xff]  ;;  %8745 = vmatprep.mubr.msk.f32.mxu1 %vm10526_vm1, %v15084_v33  ;;  %v15040_v58 = vand.u32 4294901760, %v10665_v18  ;;  %vm500_vm2 = vcmask 416768   ;;  %v15039_v61 = vand.u32 4294901760, %v10667_v19 }
  0x2c   : > { %325 = vperm.xlu1 %9801, %v293_v13   ;;  %319 = vperm.xlu0 %9800, %v291_v14   ;;  %v292_v17 = vld [vmem:[%s10655_s10 + $0x8] sm:$0xff]  ;;  %v295_v21 = vld [vmem:[%s10655_s10 + $0x20] sm:$0xff]  ;;  %v298_v27 = vld [vmem:[%s10655_s10 + $0x38] sm:$0xff]  ;;  %v906_v56 = vsub.f32 %v10640_v7, %v15045_v53  ;;  %v913_v57 = vsub.f32 %v10642_v8, %v15043_v54  ;;  %v15036_v13 = vand.u32 4294901760, %v10685_v30  ;;  %s276_s18 = sand.u32 1, %s10513_s30  }
  0x2d   : > { %9198 = vmatpush3.bf16.msra.mxu0 %v10660_v15  ;;  %v296_v20 = vld [vmem:[%s10655_s10 + $0x28] sm:$0xff]  ;;  %v297_v28 = vld [vmem:[%s10655_s10 + $0x30] sm:$0xff]  ;;  %v299_v35 = vld [vmem:[%s10655_s10 + $0x40] sm:$0xff]  ;;  %v920_v4 = vsub.f32 %v10665_v18, %v15040_v58  ;;  %v927_v12 = vsub.f32 %v10667_v19, %v15039_v61  ;;  %s7374_s27 = scalar_lea.sflag [#allocation5], %s276_s18 }
  0x2e   : > { %9199 = vmatprep.subr.bf16.mxu0 %v15046_v5  ;;  %v300_v34 = vld [vmem:[%s10655_s10 + $0x48] sm:$0xff]  ;;  %v302_v37 = vld [vmem:[%s10655_s10 + $0x58] sm:$0xff]  ;;  %v301_v38 = vld [vmem:[%s10655_s10 + $0x50] sm:$0xff]  ;;  %v907_v0 = vand.u32 4294901760, %v906_v56  ;;  %v914_v3 = vand.u32 4294901760, %v913_v57 }
  0x2f   : > { %v304_v39 = vld [vmem:[%s10655_s10 + $0x68] sm:$0xff]  ;;  %v303_v40 = vld [vmem:[%s10655_s10 + $0x60] sm:$0xff]  ;;  %v306_v41 = vld [vmem:[%s10655_s10 + $0x78] sm:$0xff]  ;;  %v921_v26 = vand.u32 4294901760, %v920_v4 }
  0x30   : > { %328 = vperm.xlu1 %9801, %v294_v16   ;;  %322 = vperm.xlu0 %9800, %v292_v17   ;;  %v305_v42 = vld [vmem:[%s10655_s10 + $0x70] sm:$0xff]  ;;  %v308_v43 = vld [vmem:[%s10655_s10 + $0x88] sm:$0xff]  ;;  %v307_v44 = vld [vmem:[%s10655_s10 + $0x80] sm:$0xff]  ;;  %v15034_v16 = vand.u32 4294901760, %v10687_v31  ;;  %v9203_v25 = vpack.c.bf16 %v914_v3, %v907_v0 }
  0x31   : > { %9201 = vmatpush3.bf16.msra.mxu0 %v10683_v29  ;;  %v310_v45 = vld [vmem:[%s10655_s10 + $0x98] sm:$0xff]  ;;  %v309_v46 = vld [vmem:[%s10655_s10 + $0x90] sm:$0xff]  ;;  %v312_v47 = vld [vmem:[%s10655_s10 + $0xa8] sm:$0xff] }
  0x32   : > { %8219 = vmatprep.subr.mxu0 %v15084_v33  ;;  %v311_v48 = vld [vmem:[%s10655_s10 + $0xa0] sm:$0xff]  ;;  %v314_v49 = vld [vmem:[%s10655_s10 + $0xb8] sm:$0xff]  ;;  %v313_v50 = vld [vmem:[%s10655_s10 + $0xb0] sm:$0xff] }
  0x33   : > { %v315_v51 = vld [vmem:[%s10655_s10 + $0xc0] sm:$0xff] }
  0x34   : > { %334 = vperm.xlu1 %9801, %v296_v20   ;;  %331 = vperm.xlu0 %9800, %v295_v21   ;;  %v10766_v21 = vsub.f32 %v10689_v32, %v10699_v36  ;;  %v928_v32 = vand.u32 4294901760, %v927_v12 }
  0x35   : > { %8220 = vmatpush3.msra.mxu0 %v10699_v36 }
  0x36   : > { %9202 = vmatprep.subr.bf16.mxu0 %v15046_v5 }
  0x38   : > { %340 = vperm.xlu1 %9801, %v298_v27   ;;  %337 = vperm.xlu0 %9800, %v297_v28  }
  0x3c   : > { %346 = vperm.xlu1 %9801, %v300_v34   ;;  %343 = vperm.xlu0 %9800, %v299_v35  }
  0x40   : > { %352 = vperm.xlu1 %9801, %v302_v37   ;;  %349 = vperm.xlu0 %9800, %v301_v38   ;;  %v934_v37 = vsub.f32 %v10685_v30, %v15036_v13 }
  0x44   : > { %358 = vperm.xlu1 %9801, %v304_v39   ;;  %355 = vperm.xlu0 %9800, %v303_v40   ;;  %v941_v39 = vsub.f32 %v10687_v31, %v15034_v16 }
  0x48   : > { %364 = vperm.xlu1 %9801, %v306_v41   ;;  %361 = vperm.xlu0 %9800, %v305_v42  }
  0x4c   : > { %370 = vperm.xlu1 %9801, %v308_v43   ;;  %367 = vperm.xlu0 %9800, %v307_v44  }
  0x50   : > { %376 = vperm.xlu1 %9801, %v310_v45   ;;  %373 = vperm.xlu0 %9800, %v309_v46  }
  0x54   : > { %382 = vperm.xlu1 %9801, %v312_v47   ;;  %379 = vperm.xlu0 %9800, %v311_v48   ;;  %v9206_v48 = vpack.c.bf16 %v928_v32, %v921_v26 }
  0x58   : > { %388 = vperm.xlu1 %9801, %v314_v49   ;;  %385 = vperm.xlu0 %9800, %v313_v50   ;;  %v935_v49 = vand.u32 4294901760, %v934_v37  ;;  %v942_v50 = vand.u32 4294901760, %v941_v39 }
  0x5a   : > { %v9209_v3 = vpack.c.bf16 %v942_v50, %v935_v49 }
  0x5c   : > { %391 = vperm.xlu0 %9800, %v315_v51   ;;  %v15030_v51 = vand.u32 4294901760, %v10766_v21 }
  0x5e   : > { %v948_v4 = vsub.f32 %v10766_v21, %v15030_v51 }
  0xab   : > { %v326_v59 = vpop.permute.xlu1 %325  ;;  %v320_v60 = vpop.permute.xlu0 %319 }
  0xac   : > { %vm395_vm3 = vcmp.eq.s32.totalorder %v10722_v55, %v326_v59  ;;  %vm393_vm4 = vcmp.eq.s32.totalorder %v10722_v55, %v320_v60 }
  0xad   : > { %v10735_v62 = vsel %vm395_vm3, 1.0, %v15084_v33  ;;  %v10738_v63 = vsel %vm393_vm4, 1.0, %v15084_v33 }
  0xae   : > { %v508_v1 = vsel %vm500_vm2, %v10735_v62, 0  ;;  %v502_v2 = vsel %vm500_vm2, %v10738_v63, 0 }
  0xaf   : > { %v10747_v9 = vsub.f32 %v502_v2, %v502_v2  ;;  %v329_v10 = vpop.permute.xlu1 %328  ;;  %v323_v11 = vpop.permute.xlu0 %322  ;;  %v10753_v14 = vsub.f32 %v508_v1, %v508_v1 }
  0xb0   : > { %vm396_vm5 = vcmp.eq.s32.totalorder %v10722_v55, %v329_v10  ;;  %vm394_vm6 = vcmp.eq.s32.totalorder %v10722_v55, %v323_v11 }
  0xb1   : > { %v10759_v17 = vsel %vm396_vm5, 1.0, %v15084_v33  ;;  %v10762_v20 = vsel %vm394_vm6, 1.0, %v15084_v33  ;;  %v15042_v22 = vand.u32 4294901760, %v10747_v9  ;;  %v15033_v38 = vand.u32 4294901760, %v10753_v14 }
  0xb2   : > { %v511_v23 = vsel %vm500_vm2, %v10759_v17, 0  ;;  %v505_v24 = vsel %vm500_vm2, %v10762_v20, 0 }
  0xb3   : > { %v10773_v27 = vsub.f32 %v505_v24, %v505_v24  ;;  %v335_v28 = vpop.permute.xlu1 %334  ;;  %v332_v34 = vpop.permute.xlu0 %331  ;;  %v655_v35 = vsub.f32 %v10747_v9, %v15042_v22  ;;  %v10787_v40 = vsub.f32 %v511_v23, %v511_v23  ;;  %v675_v60 = vsub.f32 %v10753_v14, %v15033_v38 }
  0xb4   : > { %vm398_vm7 = vcmp.eq.s32.totalorder %v10722_v55, %v335_v28  ;;  %vm397_vm8 = vcmp.eq.s32.totalorder %v10722_v55, %v332_v34  ;;  %v949_v28 = vand.u32 4294901760, %v948_v4 }
  0xb5   : > { %v10790_v41 = vsel %vm397_vm8, 1.0, %v15084_v33  ;;  %v656_v42 = vand.u32 4294901760, %v655_v35  ;;  %v15037_v43 = vand.u32 4294901760, %v10773_v27  ;;  %v10796_v45 = vsel %vm398_vm7, 1.0, %v15084_v33 }
  0xb6   : > { %v514_v44 = vsel %vm500_vm2, %v10790_v41, 0  ;;  %v15031_v0 = vand.u32 4294901760, %v10787_v40  ;;  %v517_v1 = vsel %vm500_vm2, %v10796_v45, 0  ;;  %v676_v12 = vand.u32 4294901760, %v675_v60 }
  0xb7   : > { %8222 = vmatmul.mubr.f32.vlgmr.msra.gmra.mrb[0].mxu0 %v656_v42  ;;  %v338_v46 = vpop.permute.xlu0 %337  ;;  %v665_v47 = vsub.f32 %v10773_v27, %v15037_v43  ;;  %v10805_v56 = vsub.f32 %v514_v44, %v514_v44  ;;  %v341_v57 = vpop.permute.xlu1 %340  ;;  %v10823_v10 = vsub.f32 %v517_v1, %v517_v1 }
  0xb8   : > { %vm399_vm9 = vcmp.eq.s32.totalorder %v10722_v55, %v338_v46  ;;  %8224 = vmatprep.mubr.msk.f32.mxu0 %vm10526_vm1, %v15084_v33  ;;  %9204 = vmatpush3.bf16.msra.mxu0 %v9203_v25  ;;  %vm400_vm10 = vcmp.eq.s32.totalorder %v10722_v55, %v341_v57  ;;  %v685_v23 = vsub.f32 %v10787_v40, %v15031_v0 }
  0xb9   : > { %v666_v59 = vand.u32 4294901760, %v665_v47  ;;  %9205 = vmatprep.subr.bf16.mxu0 %v15046_v5  ;;  %v10815_v2 = vsel %vm399_vm9, 1.0, %v15084_v33  ;;  %v15028_v24 = vand.u32 4294901760, %v10805_v56  ;;  %v10833_v26 = vsel %vm400_vm10, 1.0, %v15084_v33 }
  0xba   : > { %v520_v25 = vsel %vm500_vm2, %v10815_v2, 0  ;;  %v686_v32 = vand.u32 4294901760, %v685_v23  ;;  %v15027_v39 = vand.u32 4294901760, %v10823_v10  ;;  %v523_v42 = vsel %vm500_vm2, %v10833_v26, 0 }
  0xbb   : > { %8225 = vmatmul.mubr.f32.gmra.mrb[2].mxu0 %v666_v59  ;;  %v344_v11 = vpop.permute.xlu0 %343  ;;  %v10838_v34 = vsub.f32 %v520_v25, %v520_v25  ;;  %v347_v35 = vpop.permute.xlu1 %346  ;;  %v695_v37 = vsub.f32 %v10805_v56, %v15028_v24  ;;  %v10853_v46 = vsub.f32 %v523_v42, %v523_v42 }
  0xbc   : > { %8227 = vmatprep.mubr.msk.f32.mxu0 %vm10526_vm1, %v15084_v33  ;;  %9207 = vmatpush3.bf16.msra.mxu0 %v9206_v48  ;;  %vm401_vm11 = vcmp.eq.s32.totalorder %v10722_v55, %v344_v11  ;;  %vm402_vm12 = vcmp.eq.s32.totalorder %v10722_v55, %v347_v35  ;;  %v705_v49 = vsub.f32 %v10823_v10, %v15027_v39 }
  0xbd   : > { %9208 = vmatprep.subr.bf16.mxu0 %v15046_v5  ;;  %v10848_v44 = vsel %vm401_vm11, 1.0, %v15084_v33  ;;  %v696_v48 = vand.u32 4294901760, %v695_v37  ;;  %v15025_v50 = vand.u32 4294901760, %v10838_v34  ;;  %v10863_v59 = vsel %vm402_vm12, 1.0, %v15084_v33 }
  0xbe   : > { %v526_v57 = vsel %vm500_vm2, %v10848_v44, 0  ;;  %v15024_v11 = vand.u32 4294901760, %v10853_v46 }
  0xbf   : > { %8228 = vmatmul.mubr.f32.gmra.mrb[4].mxu0 %v676_v12  ;;  %v350_v47 = vpop.permute.xlu0 %349  ;;  %v10868_v60 = vsub.f32 %v526_v57, %v526_v57  ;;  %v353_v1 = vpop.permute.xlu1 %352  ;;  %v715_v4 = vsub.f32 %v10838_v34, %v15025_v50  ;;  %v529_v12 = vsel %vm500_vm2, %v10863_v59, 0 }
  0xc0   : > { %8230 = vmatprep.mubr.msk.f32.mxu0 %vm10526_vm1, %v15084_v33  ;;  %9210 = vmatpush3.bf16.msra.mxu0 %v9209_v3  ;;  %vm403_vm13 = vcmp.eq.s32.totalorder %v10722_v55, %v350_v47  ;;  %v706_v3 = vand.u32 4294901760, %v705_v49  ;;  %vm404_vm14 = vcmp.eq.s32.totalorder %v10722_v55, %v353_v1  ;;  %v10882_v25 = vsub.f32 %v529_v12, %v529_v12 }
  0xc1   : > { %8308 = vmatprep.subr.mxu0 %v15084_v33  ;;  %v10877_v23 = vsel %vm403_vm13, 1.0, %v15084_v33  ;;  %v716_v35 = vand.u32 4294901760, %v715_v4  ;;  %v15022_v37 = vand.u32 4294901760, %v10868_v60  ;;  %v10891_v47 = vsel %vm404_vm14, 1.0, %v15084_v33 }
  0xc2   : > { %v532_v42 = vsel %vm500_vm2, %v10877_v23, 0  ;;  %v535_v4 = vsel %vm500_vm2, %v10891_v47, 0  ;;  %vm2138_vm14 = vcmask 130048  }
  0xc3   : > { %8231 = vmatmul.mubr.f32.gmra.mrb[6].mxu0 %v686_v32  ;;  %v725_v32 = vsub.f32 %v10853_v46, %v15024_v11  ;;  %v359_v49 = vpop.permute.xlu1 %358  ;;  %v735_v1 = vsub.f32 %v10868_v60, %v15022_v37 }
  0xc4   : > { %8233 = vmatprep.mubr.msk.f32.mxu0 %vm10526_vm1, %v15084_v33  ;;  %8309 = vmatpush3.msra.mxu0 %v949_v28  ;;  %v356_v28 = vpop.permute.xlu0 %355  ;;  %vm406_vm0 = vcmp.eq.s32.totalorder %v10722_v55, %v359_v49 }
  0xc5   : > { %9211 = vmatprep.subr.bf16.mxu0 %v15046_v5  ;;  %vm405_vm15 = vcmp.eq.s32.totalorder %v10722_v55, %v356_v28  ;;  %v726_v57 = vand.u32 4294901760, %v725_v32  ;;  %v10910_v28 = vsub.f32 %v535_v4, %v535_v4  ;;  %v736_v32 = vand.u32 4294901760, %v735_v1 }
  0xc6   : > { %v10905_v12 = vsel %vm405_vm15, 1.0, %v15084_v33  ;;  %vm2823_vm15 = vcmask 588800  }
  0xc7   : > { %8234 = vmatmul.mubr.f32.gmra.mrb[8].mxu0 %v696_v48  ;;  %v10896_v48 = vsub.f32 %v532_v42, %v532_v42  ;;  %v538_v37 = vsel %vm500_vm2, %v10905_v12, 0  ;;  %v365_v1 = vpop.permute.xlu1 %364  ;;  %v15029_v11 = vand.u32 4294901760, %v10910_v28 }
  0xc8   : > { %8236 = vmatprep.mubr.msk.f32.mxu0 %vm10526_vm1, %v15084_v33  ;;  %v10924_v49 = vsub.f32 %v538_v37, %v538_v37  ;;  %vm408_vm4 = vcmp.eq.s32.totalorder %v10722_v55, %v365_v1 }
  0xc9   : > { %v15026_v52 = vand.u32 4294901760, %v10896_v48 }
  0xca   : > { %v15032_v39 = vand.u32 4294901760, %v10924_v49 }
  0xcb   : > { %8237 = vmatmul.mubr.f32.gmra.mrb[10].mxu0 %v706_v3  ;;  %v15023_v3 = vand.u32 4294901760, %v10882_v25 }
  0xcc   : > { %8239 = vmatprep.mubr.msk.f32.mxu0 %vm10526_vm1, %v15084_v33 }
  0xcd   : > { %v745_v42 = vsub.f32 %v10882_v25, %v15023_v3  ;;  %v755_v3 = vsub.f32 %v10896_v48, %v15026_v52  ;;  %v765_v52 = vsub.f32 %v10910_v28, %v15029_v11  ;;  %v775_v11 = vsub.f32 %v10924_v49, %v15032_v39 }
  0xcf   : > { %8240 = vmatmul.mubr.f32.gmra.mrb[12].mxu0 %v716_v35  ;;  %v362_v35 = vpop.permute.xlu0 %361  ;;  %v746_v4 = vand.u32 4294901760, %v745_v42  ;;  %v756_v42 = vand.u32 4294901760, %v755_v3  ;;  %v371_v3 = vpop.permute.xlu1 %370  ;;  %v766_v1 = vand.u32 4294901760, %v765_v52 }
  0xd0   : > { %8242 = vmatprep.mubr.msk.f32.mxu0 %vm10526_vm1, %v15084_v33  ;;  %vm407_vm3 = vcmp.eq.s32.totalorder %v10722_v55, %v362_v35  ;;  %vm410_vm6 = vcmp.eq.s32.totalorder %v10722_v55, %v371_v3 }
  0xd3   : > { %8243 = vmatmul.mubr.f32.gmra.mrb[14].mxu0 %v726_v57  ;;  %v10919_v57 = vsel %vm406_vm0, 1.0, %v15084_v33  ;;  %v368_v35 = vpop.permute.xlu0 %367  ;;  %vm6815_vm0 = vcmask 1040384  }
  0xd4   : > { %8245 = vmatprep.mubr.msk.f32.mxu0 %vm10526_vm1, %v15084_v33  ;;  %v541_v50 = vsel %vm500_vm2, %v10919_v57, 0  ;;  %vm409_vm5 = vcmp.eq.s32.totalorder %v10722_v55, %v368_v35  ;;  %v776_v35 = vand.u32 4294901760, %v775_v11  ;;  %v377_v11 = vpop.permute.xlu1 %376 }
  0xd5   : > { %v10938_v37 = vsub.f32 %v541_v50, %v541_v50  ;;  %vm412_vm8 = vcmp.eq.s32.totalorder %v10722_v55, %v377_v11 }
  0xd7   : > { %8246 = vmatmul.mubr.f32.gmra.mrb[16].mxu0 %v736_v32  ;;  %v10933_v32 = vsel %vm407_vm3, 1.0, %v15084_v33  ;;  %v15035_v51 = vand.u32 4294901760, %v10938_v37  ;;  %v374_v52 = vpop.permute.xlu0 %373  ;;  %vm6811_vm3 = vcmask 269312  }
  0xd8   : > { %8248 = vmatprep.mubr.msk.f32.mxu0 %vm10526_vm1, %v15084_v33  ;;  %v544_v24 = vsel %vm500_vm2, %v10933_v32, 0  ;;  %vm411_vm7 = vcmp.eq.s32.totalorder %v10722_v55, %v374_v52 }
  0xd9   : > { %v10952_v50 = vsub.f32 %v544_v24, %v544_v24  ;;  %v785_v39 = vsub.f32 %v10938_v37, %v15035_v51 }
  0xdb   : > { %8249 = vmatmul.mubr.f32.gmra.mrb[18].mxu0 %v746_v4  ;;  %v10947_v4 = vsel %vm408_vm4, 1.0, %v15084_v33  ;;  %15175 = vst [vmem:[#allocation8_spill] sm:$0xff] %v10952_v50  ;;  %v15038_v38 = vand.u32 4294901760, %v10952_v50  ;;  %v786_v3 = vand.u32 4294901760, %v785_v39  ;;  %v380_v39 = vpop.permute.xlu0 %379  ;;  %vm6889_vm4 = vcmask 64512  }
  0xdc   : > { %8251 = vmatprep.mubr.msk.f32.mxu0 %vm10526_vm1, %v15084_v33  ;;  %v547_v0 = vsel %vm500_vm2, %v10947_v4, 0  ;;  %vm413_vm9 = vcmp.eq.s32.totalorder %v10722_v55, %v380_v39 }
  0xdd   : > { %v10966_v24 = vsub.f32 %v547_v0, %v547_v0  ;;  %v795_v51 = vsub.f32 %v10952_v50, %v15038_v38 }
  0xdf   : > { %8252 = vmatmul.mubr.f32.gmra.mrb[20].mxu0 %v756_v42  ;;  %v10961_v42 = vsel %vm409_vm5, 1.0, %v15084_v33  ;;  %15176 = vst [vmem:[#allocation9_spill] sm:$0xff] %v10966_v24  ;;  %v15041_v13 = vand.u32 4294901760, %v10966_v24  ;;  %v796_v52 = vand.u32 4294901760, %v795_v51  ;;  %v383_v51 = vpop.permute.xlu1 %382  ;;  %vm6072_vm5 = vcmask 523264  }
  0xe0   : > { %8254 = vmatprep.mubr.msk.f32.mxu0 %vm10526_vm1, %v15084_v33  ;;  %v550_v16 = vsel %vm500_vm2, %v10961_v42, 0  ;;  %vm414_vm10 = vcmp.eq.s32.totalorder %v10722_v55, %v383_v51 }
  0xe1   : > { %v10980_v0 = vsub.f32 %v550_v16, %v550_v16  ;;  %v805_v38 = vsub.f32 %v10966_v24, %v15041_v13 }
  0xe3   : > { %8255 = vmatmul.mubr.f32.gmra.mrb[22].mxu0 %v766_v1  ;;  %v10975_v1 = vsel %vm410_vm6, 1.0, %v15084_v33  ;;  %15177 = vst [vmem:[#allocation10_spill] sm:$0xff] %v10980_v0  ;;  %v15044_v61 = vand.u32 4294901760, %v10980_v0  ;;  %v806_v11 = vand.u32 4294901760, %v805_v38  ;;  %v386_v38 = vpop.permute.xlu0 %385  ;;  %vm6972_vm6 = vcmask 1041408  }
  0xe4   : > { %8257 = vmatprep.mubr.msk.f32.mxu0 %vm10526_vm1, %v15084_v33  ;;  %v553_v43 = vsel %vm500_vm2, %v10975_v1, 0  ;;  %vm415_vm11 = vcmp.eq.s32.totalorder %v10722_v55, %v386_v38 }
  0xe5   : > { %v10994_v16 = vsub.f32 %v553_v43, %v553_v43  ;;  %v815_v13 = vsub.f32 %v10980_v0, %v15044_v61 }
  0xe7   : > { %8258 = vmatmul.mubr.f32.gmra.mrb[24].mxu0 %v776_v35  ;;  %v10989_v35 = vsel %vm411_vm7, 1.0, %v15084_v33  ;;  %15179 = vst [vmem:[#allocation12_spill] sm:$0xff] %v10994_v16  ;;  %v15048_v22 = vand.u32 4294901760, %v10994_v16  ;;  %v816_v39 = vand.u32 4294901760, %v815_v13  ;;  %v389_v13 = vpop.permute.xlu1 %388  ;;  %vm6968_vm7 = vcmask 15360  }
  0xe8   : > { %8260 = vmatprep.mubr.msk.f32.mxu0 %vm10526_vm1, %v15084_v33  ;;  %15178 = vst [vmem:[#allocation11_spill] sm:$0xff] %v10989_v35  ;;  %v556_v58 = vsel %vm500_vm2, %v10989_v35, 0  ;;  %vm416_vm12 = vcmp.eq.s32.totalorder %v10722_v55, %v389_v13 }
  0xe9   : > { %v11008_v43 = vsub.f32 %v556_v58, %v556_v58  ;;  %v825_v61 = vsub.f32 %v10994_v16, %v15048_v22 }
  0xeb   : > { %8261 = vmatmul.mubr.f32.gmra.mrb[26].mxu0 %v786_v3  ;;  %v11003_v3 = vsel %vm412_vm8, 1.0, %v15084_v33  ;;  %15181 = vst [vmem:[#allocation14_spill] sm:$0xff] %v11008_v43  ;;  %v15053_v53 = vand.u32 4294901760, %v11008_v43  ;;  %v826_v51 = vand.u32 4294901760, %v825_v61  ;;  %v392_v61 = vpop.permute.xlu0 %391  ;;  %vm7135_vm8 = vcmask 1045504  }
  0xec   : > { %8263 = vmatprep.mubr.msk.f32.mxu0 %vm10526_vm1, %v15084_v33  ;;  %15180 = vst [vmem:[#allocation13_spill] sm:$0xff] %v11003_v3  ;;  %v559_v54 = vsel %vm500_vm2, %v11003_v3, 0  ;;  %vm417_vm13 = vcmp.eq.s32.totalorder %v10722_v55, %v392_v61 }
  0xed   : > { %v11022_v58 = vsub.f32 %v559_v54, %v559_v54  ;;  %v835_v22 = vsub.f32 %v11008_v43, %v15053_v53  ;;  %v11073_v50 = vsel %vm417_vm13, 1.0, %v15084_v33 }
  0xee   : > { %15188 = vst [vmem:[#allocation21_spill] sm:$0xff] %v11073_v50 }
  0xef   : > { %8264 = vmatmul.mubr.f32.gmra.mrb[28].mxu0 %v796_v52  ;;  %v11017_v52 = vsel %vm413_vm9, 1.0, %v15084_v33  ;;  %15183 = vst [vmem:[#allocation16_spill] sm:$0xff] %v11022_v58  ;;  %v15058_v16 = vand.u32 4294901760, %v11022_v58  ;;  %v836_v38 = vand.u32 4294901760, %v835_v22 }
  0xf0   : > { %8266 = vmatprep.mubr.msk.f32.mxu0 %vm10526_vm1, %v15084_v33  ;;  %15182 = vst [vmem:[#allocation15_spill] sm:$0xff] %v11017_v52  ;;  %v562_v5 = vsel %vm500_vm2, %v11017_v52, 0 }
  0xf1   : > { %v11036_v54 = vsub.f32 %v562_v5, %v562_v5  ;;  %v845_v53 = vsub.f32 %v11022_v58, %v15058_v16 }
  0xf3   : > { %8267 = vmatmul.mubr.f32.gmra.mrb[30].mxu0 %v806_v11  ;;  %v11031_v11 = vsel %vm414_vm10, 1.0, %v15084_v33  ;;  %v15063_v43 = vand.u32 4294901760, %v11036_v54  ;;  %v846_v22 = vand.u32 4294901760, %v845_v53 }
  0xf4   : > { %8269 = vmatprep.mubr.msk.f32.mxu0 %vm10526_vm1, %v15084_v33  ;;  %15184 = vst [vmem:[#allocation17_spill] sm:$0xff] %v11031_v11  ;;  %v565_v0 = vsel %vm500_vm2, %v11031_v11, 0 }
  0xf5   : > { %v11050_v5 = vsub.f32 %v565_v0, %v565_v0  ;;  %v855_v13 = vsub.f32 %v11036_v54, %v15063_v43 }
  0xf7   : > { %8270 = vmatmul.mubr.f32.gmra.mrb[32].mxu0 %v816_v39  ;;  %v11045_v39 = vsel %vm415_vm11, 1.0, %v15084_v33  ;;  %15186 = vst [vmem:[#allocation19_spill] sm:$0xff] %v11050_v5  ;;  %v15064_v16 = vand.u32 4294901760, %v11050_v5 }
  0xf8   : > { %8272 = vmatprep.mubr.msk.f32.mxu0 %vm10526_vm1, %v15084_v33  ;;  %15185 = vst [vmem:[#allocation18_spill] sm:$0xff] %v11045_v39  ;;  %v568_v24 = vsel %vm500_vm2, %v11045_v39, 0 }
  0xf9   : > { %v11064_v0 = vsub.f32 %v568_v24, %v568_v24  ;;  %v856_v24 = vand.u32 4294901760, %v855_v13  ;;  %v865_v53 = vsub.f32 %v11050_v5, %v15064_v16 }
  0xfb   : > { %8273 = vmatmul.mubr.f32.gmra.mrb[34].mxu0 %v826_v51  ;;  %v11059_v51 = vsel %vm416_vm12, 1.0, %v15084_v33  ;;  %v15069_v61 = vand.u32 4294901760, %v11064_v0  ;;  %v866_v43 = vand.u32 4294901760, %v865_v53 }
  0xfc   : > { %8275 = vmatprep.mubr.msk.f32.mxu0 %vm10526_vm1, %v15084_v33  ;;  %15187 = vst [vmem:[#allocation20_spill] sm:$0xff] %v11059_v51  ;;  %v571_v58 = vsel %vm500_vm2, %v11059_v51, 0 }
  0xfd   : > { %v11077_v55 = vsub.f32 %v571_v58, %v571_v58  ;;  %v875_v58 = vsub.f32 %v11064_v0, %v15069_v61  ;;  %v15197_v61 = vand.u32 4294901760, %v10640_v7 }
  0xff   : > { %8276 = vmatmul.mubr.f32.gmra.mrb[36].mxu0 %v836_v38  ;;  %v574_v38 = vsel %vm500_vm2, %v11073_v50, 0  ;;  %v15068_v13 = vand.u32 4294901760, %v11077_v55  ;;  %v876_v16 = vand.u32 4294901760, %v875_v58  ;;  %v9215_v58 = vpack.c.bf16 %v10667_v19, %v10665_v18 }
 0x100   : > { %8278 = vmatprep.mubr.msk.f32.mxu0 %vm10526_vm1, %v15084_v33 }
 0x103   : > { %8279 = vmatmul.mubr.f32.gmra.mrb[38].mxu0 %v846_v22  ;;  %v11087_v22 = vsub.f32 %v574_v38, %v574_v38 }
 0x104   : > { %8281 = vmatprep.mubr.msk.f32.mxu0 %vm10526_vm1, %v15084_v33 }
 0x105   : > { %v15067_v5 = vand.u32 4294901760, %v11087_v22 }
 0x107   : > { %8282 = vmatmul.mubr.f32.gmra.mrb[40].mxu0 %v856_v24  ;;  %v885_v24 = vsub.f32 %v11077_v55, %v15068_v13  ;;  %v895_v38 = vsub.f32 %v11087_v22, %v15067_v5  ;;  %v15195_v5 = vld [vmem:[#allocation16_spill] sm:$0xff]  ;;  %v15196_v13 = vld [vmem:[#allocation19_spill] sm:$0xff] }
 0x108   : > { %8284 = vmatprep.mubr.msk.f32.mxu0 %vm10526_vm1, %v15084_v33 }
 0x109   : > { %v886_v53 = vand.u32 4294901760, %v885_v24  ;;  %v15189_v24 = vmov 0.0|0.0  }
 0x10b   : > { %8285 = vmatmul.mubr.f32.gmra.mrb[42].mxu0 %v866_v43  ;;  %v896_v43 = vand.u32 4294901760, %v895_v38  ;;  %v15190_v38 = vld [vmem:[#allocation8_spill] sm:$0xff] }
 0x10c   : > { %8287 = vmatprep.mubr.msk.f32.mxu0 %vm10526_vm1, %v15084_v33 }
 0x10f   : > { %8288 = vmatmul.mubr.f32.gmra.mrb[44].mxu0 %v876_v16  ;;  %v9212_v16 = vpack.c.bf16 %v10642_v8, %v10640_v7  ;;  %v15203_v7 = vand.u32 4294901760, %v10685_v30 }
 0x110   : > { %8290 = vmatprep.mubr.msk.f32.mxu0 %vm10526_vm1, %v15084_v33 }
 0x113   : > { %8291 = vmatmul.mubr.f32.gmra.mrb[46].mxu0 %v886_v53  ;;  %v9218_v53 = vpack.c.bf16 %v10687_v31, %v10685_v30  ;;  %v15207_v30 = vand.u32 4294901760, %v10766_v21 }
 0x114   : > { %8293 = vmatprep.mubr.msk.f32.mxu0 %vm10526_vm1, %v15084_v33 }
 0x117   : > { %8294 = vmatmul.mubr.f32.gmra.mrb[48].mxu0 %v896_v43  ;;  %v15191_v43 = vld [vmem:[#allocation9_spill] sm:$0xff] }
 0x118   : > { %8310 = vmatprep.mubr.msk.f32.mxu0 %vm10526_vm1, %v15084_v33 }
 0x11b   : > { %8311 = vmatmul.mubr.msk.f32.vlgmr.msra.gmra.mrb[0].mxu0 %vm500_vm2, %v10738_v63 }
 0x11c   : > { %8313 = vmatprep.mubr.msk.f32.mxu0 %vm10526_vm1, %v15084_v33  ;;  %9213 = vmatpush3.bf16.msra.mxu0 %v9212_v16  ;;  %v15192_v16 = vld [vmem:[#allocation10_spill] sm:$0xff] }
 0x11d   : > { %9214 = vmatprep.subr.bf16.mxu0 %v15189_v24 }
 0x11f   : > { %8314 = vmatmul.mubr.msk.f32.gmra.mrb[2].mxu0 %vm500_vm2, %v10762_v20 }
 0x120   : > { %8316 = vmatprep.mubr.msk.f32.mxu0 %vm10526_vm1, %v15084_v33  ;;  %9216 = vmatpush3.bf16.msra.mxu0 %v9215_v58  ;;  %v15193_v58 = vld [vmem:[#allocation12_spill] sm:$0xff] }
 0x121   : > { %9217 = vmatprep.subr.bf16.mxu0 %v15189_v24 }
 0x123   : > { %8317 = vmatmul.mubr.msk.f32.gmra.mrb[4].mxu0 %vm500_vm2, %v10735_v62 }
 0x124   : > { %8319 = vmatprep.mubr.msk.f32.mxu0 %vm10526_vm1, %v15084_v33  ;;  %9219 = vmatpush3.bf16.msra.mxu0 %v9218_v53  ;;  %v15194_v53 = vld [vmem:[#allocation14_spill] sm:$0xff] }
 0x125   : > { %8397 = vmatprep.subr.mxu0 %v15084_v33 }
 0x127   : > { %8320 = vmatmul.mubr.msk.f32.gmra.mrb[6].mxu0 %vm500_vm2, %v10759_v17 }
 0x128   : > { %8322 = vmatprep.mubr.msk.f32.mxu0 %vm10526_vm1, %v15084_v33  ;;  %8398 = vmatpush3.msra.mxu0 %v10766_v21  ;;  %v15211_v21 = vand.u32 4294901760, %v10853_v46 }
 0x129   : > { %9220 = vmatprep.subr.bf16.mxu0 %v15189_v24 }
 0x12b   : > { %8323 = vmatmul.mubr.msk.f32.gmra.mrb[8].mxu0 %vm500_vm2, %v10790_v41 }
 0x12c   : > { %8325 = vmatprep.mubr.msk.f32.mxu0 %vm10526_vm1, %v15084_v33 }
 0x12f   : > { %8326 = vmatmul.mubr.msk.f32.gmra.mrb[10].mxu0 %vm500_vm2, %v10796_v45 }
 0x130   : > { %8328 = vmatprep.mubr.msk.f32.mxu0 %vm10526_vm1, %v15084_v33 }
 0x133   : > { %8329 = vmatmul.mubr.msk.f32.gmra.mrb[12].mxu0 %vm500_vm2, %v10815_v2 }
 0x134   : > { %8331 = vmatprep.mubr.msk.f32.mxu0 %vm10526_vm1, %v15084_v33 }
 0x137   : > { %8332 = vmatmul.mubr.msk.f32.gmra.mrb[14].mxu0 %vm500_vm2, %v10833_v26 }
 0x138   : > { %8334 = vmatprep.mubr.msk.f32.mxu0 %vm10526_vm1, %v15084_v33 }
 0x13b   : > { %8335 = vmatmul.mubr.msk.f32.gmra.mrb[16].mxu0 %vm500_vm2, %v10848_v44 }
 0x13c   : > { %8337 = vmatprep.mubr.msk.f32.mxu0 %vm10526_vm1, %v15084_v33 }
 0x13f   : > { %8338 = vmatmul.mubr.msk.f32.gmra.mrb[18].mxu0 %vm500_vm2, %v10863_v59 }
 0x140   : > { %8340 = vmatprep.mubr.msk.f32.mxu0 %vm10526_vm1, %v15084_v33 }
 0x143   : > { %8341 = vmatmul.mubr.msk.f32.gmra.mrb[20].mxu0 %vm500_vm2, %v10877_v23 }
 0x144   : > { %8343 = vmatprep.mubr.msk.f32.mxu0 %vm10526_vm1, %v15084_v33 }
 0x147   : > { %8344 = vmatmul.mubr.msk.f32.gmra.mrb[22].mxu0 %vm500_vm2, %v10891_v47 }
 0x148   : > { %8346 = vmatprep.mubr.msk.f32.mxu0 %vm10526_vm1, %v15084_v33 }
 0x14b   : > { %8347 = vmatmul.mubr.msk.f32.gmra.mrb[24].mxu0 %vm500_vm2, %v10905_v12 }
 0x14c   : > { %8349 = vmatprep.mubr.msk.f32.mxu0 %vm10526_vm1, %v15084_v33 }
 0x14f   : > { %8350 = vmatmul.mubr.msk.f32.gmra.mrb[26].mxu0 %vm500_vm2, %v10919_v57 }
 0x150   : > { %8352 = vmatprep.mubr.msk.f32.mxu0 %vm10526_vm1, %v15084_v33 }
 0x153   : > { %8353 = vmatmul.mubr.msk.f32.gmra.mrb[28].mxu0 %vm500_vm2, %v10933_v32 }
 0x154   : > { %8355 = vmatprep.mubr.msk.f32.mxu0 %vm10526_vm1, %v15084_v33 }
 0x157   : > { %8356 = vmatmul.mubr.msk.f32.gmra.mrb[30].mxu0 %vm500_vm2, %v10947_v4 }
 0x158   : > { %8358 = vmatprep.mubr.msk.f32.mxu0 %vm10526_vm1, %v15084_v33 }
 0x15b   : > { %8359 = vmatmul.mubr.msk.f32.gmra.mrb[32].mxu0 %vm500_vm2, %v10961_v42 }
 0x15c   : > { %8361 = vmatprep.mubr.msk.f32.mxu0 %vm10526_vm1, %v15084_v33 }
 0x15f   : > { %8362 = vmatmul.mubr.msk.f32.gmra.mrb[34].mxu0 %vm500_vm2, %v10975_v1 }
 0x160   : > { %8364 = vmatprep.mubr.msk.f32.mxu0 %vm10526_vm1, %v15084_v33 }
 0x163   : > { %8365 = vmatmul.mubr.msk.f32.gmra.mrb[36].mxu0 %vm500_vm2, %v10989_v35  ;;  %v15202_v35 = vand.u32 4294901760, %v10773_v27 }
 0x164   : > { %8367 = vmatprep.mubr.msk.f32.mxu0 %vm10526_vm1, %v15084_v33 }
 0x167   : > { %8368 = vmatmul.mubr.msk.f32.gmra.mrb[38].mxu0 %vm500_vm2, %v11003_v3 }
 0x168   : > { %8370 = vmatprep.mubr.msk.f32.mxu0 %vm10526_vm1, %v15084_v33 }
 0x16b   : > { %8371 = vmatmul.mubr.msk.f32.gmra.mrb[40].mxu0 %vm500_vm2, %v11017_v52  ;;  %v15201_v52 = vand.u32 4294901760, %v10667_v19  ;;  %v15206_v19 = vand.u32 4294901760, %v10787_v40 }
 0x16c   : > { %8373 = vmatprep.mubr.msk.f32.mxu0 %vm10526_vm1, %v15084_v33 }
 0x16f   : > { %8374 = vmatmul.mubr.msk.f32.gmra.mrb[42].mxu0 %vm500_vm2, %v11031_v11  ;;  %v15200_v11 = vand.u32 4294901760, %v10665_v18  ;;  %v15205_v18 = vand.u32 4294901760, %v10753_v14 }
 0x170   : > { %8376 = vmatprep.mubr.msk.f32.mxu0 %vm10526_vm1, %v15084_v33 }
 0x171   : > { %v9233_v3 = vpack.c.bf16 %v15201_v52, %v15200_v11  ;;  %v15226_v52 = vand.u32 4294901760, %v11064_v0  ;;  %v15227_v11 = vand.u32 4294901760, %v11077_v55 }
 0x173   : > { %8377 = vmatmul.mubr.msk.f32.gmra.mrb[44].mxu0 %vm500_vm2, %v11045_v39  ;;  %v15199_v39 = vand.u32 4294901760, %v10747_v9 }
 0x174   : > { %8379 = vmatprep.mubr.msk.f32.mxu0 %vm10526_vm1, %v15084_v33 }
 0x177   : > { %8380 = vmatmul.mubr.msk.f32.gmra.mrb[46].mxu0 %vm500_vm2, %v11059_v51 }
 0x178   : > { %8382 = vmatprep.mubr.msk.f32.mxu0 %vm10526_vm1, %v15084_v33 }
 0x17b   : > { %8383 = vmatmul.mubr.msk.f32.gmra.mrb[48].mxu0 %vm500_vm2, %v11073_v50  ;;  %v15198_v50 = vand.u32 4294901760, %v10642_v8  ;;  %v15204_v8 = vand.u32 4294901760, %v10687_v31  ;;  %v15208_v31 = vand.u32 4294901760, %v10805_v56 }
 0x17c   : > { %8399 = vmatprep.mubr.msk.f32.mxu0 %vm10526_vm1, %v15084_v33 }
 0x17d   : > { %v9230_v51 = vpack.c.bf16 %v15198_v50, %v15197_v61  ;;  %v15223_v50 = vand.u32 4294901760, %v15195_v5 }
 0x17f   : > { %8400 = vmatmul.mubr.f32.vlgmr.msra.gmra.mrb[0].mxu0 %v10747_v9  ;;  %v9236_v9 = vpack.c.bf16 %v15204_v8, %v15203_v7 }
 0x180   : > { %8402 = vmatprep.mubr.msk.f32.mxu0 %vm10526_vm1, %v15084_v33  ;;  %9222 = vmatpush3.bf16.msra.mxu0 %v10638_v6 }
 0x181   : > { %9223 = vmatprep.subr.bf16.mxu0 %v15189_v24 }
 0x183   : > { %8403 = vmatmul.mubr.f32.gmra.mrb[2].mxu0 %v10773_v27  ;;  %v15210_v27 = vand.u32 4294901760, %v10838_v34 }
 0x184   : > { %8405 = vmatprep.mubr.msk.f32.mxu0 %vm10526_vm1, %v15084_v33  ;;  %9225 = vmatpush3.bf16.msra.mxu0 %v10660_v15 }
 0x185   : > { %9226 = vmatprep.subr.bf16.mxu0 %v15189_v24 }
 0x187   : > { %8406 = vmatmul.mubr.f32.gmra.mrb[4].mxu0 %v10753_v14  ;;  %v15209_v14 = vand.u32 4294901760, %v10823_v10 }
 0x188   : > { %8408 = vmatprep.mubr.msk.f32.mxu0 %vm10526_vm1, %v15084_v33  ;;  %9228 = vmatpush3.bf16.msra.mxu0 %v10683_v29 }
 0x189   : > { %8486 = vmatprep.subr.mxu0 %v15084_v33 }
 0x18b   : > { %8409 = vmatmul.mubr.f32.gmra.mrb[6].mxu0 %v10787_v40  ;;  %v15212_v40 = vand.u32 4294901760, %v10868_v60 }
 0x18c   : > { %8411 = vmatprep.mubr.msk.f32.mxu0 %vm10526_vm1, %v15084_v33  ;;  %8487 = vmatpush3.msra.mxu0 %v10699_v36 }
 0x18d   : > { %9229 = vmatprep.subr.bf16.mxu0 %v15189_v24 }
 0x18f   : > { %8412 = vmatmul.mubr.f32.gmra.mrb[8].mxu0 %v10805_v56  ;;  %v15213_v56 = vand.u32 4294901760, %v10882_v25 }
 0x190   : > { %8414 = vmatprep.mubr.msk.f32.mxu0 %vm10526_vm1, %v15084_v33 }
 0x193   : > { %8415 = vmatmul.mubr.f32.gmra.mrb[10].mxu0 %v10823_v10  ;;  %v15214_v10 = vand.u32 4294901760, %v10896_v48 }
 0x194   : > { %8417 = vmatprep.mubr.msk.f32.mxu0 %vm10526_vm1, %v15084_v33 }
 0x197   : > { %8418 = vmatmul.mubr.f32.gmra.mrb[12].mxu0 %v10838_v34  ;;  %v15215_v34 = vand.u32 4294901760, %v10910_v28 }
 0x198   : > { %8420 = vmatprep.mubr.msk.f32.mxu0 %vm10526_vm1, %v15084_v33 }
 0x19b   : > { %8421 = vmatmul.mubr.f32.gmra.mrb[14].mxu0 %v10853_v46  ;;  %v15216_v46 = vand.u32 4294901760, %v10924_v49 }
 0x19c   : > { %8423 = vmatprep.mubr.msk.f32.mxu0 %vm10526_vm1, %v15084_v33 }
 0x19f   : > { %8424 = vmatmul.mubr.f32.gmra.mrb[16].mxu0 %v10868_v60  ;;  %v15217_v60 = vand.u32 4294901760, %v10938_v37 }
 0x1a0   : > { %8426 = vmatprep.mubr.msk.f32.mxu0 %vm10526_vm1, %v15084_v33 }
 0x1a3   : > { %8427 = vmatmul.mubr.f32.gmra.mrb[18].mxu0 %v10882_v25  ;;  %v15218_v25 = vand.u32 4294901760, %v15190_v38 }
 0x1a4   : > { %8429 = vmatprep.mubr.msk.f32.mxu0 %vm10526_vm1, %v15084_v33 }
 0x1a7   : > { %8430 = vmatmul.mubr.f32.gmra.mrb[20].mxu0 %v10896_v48  ;;  %v15219_v48 = vand.u32 4294901760, %v15191_v43 }
 0x1a8   : > { %8432 = vmatprep.mubr.msk.f32.mxu0 %vm10526_vm1, %v15084_v33 }
 0x1ab   : > { %8433 = vmatmul.mubr.f32.gmra.mrb[22].mxu0 %v10910_v28  ;;  %v15220_v28 = vand.u32 4294901760, %v15192_v16 }
 0x1ac   : > { %8435 = vmatprep.mubr.msk.f32.mxu0 %vm10526_vm1, %v15084_v33 }
 0x1af   : > { %8436 = vmatmul.mubr.f32.gmra.mrb[24].mxu0 %v10924_v49  ;;  %v15221_v49 = vand.u32 4294901760, %v15193_v58 }
 0x1b0   : > { %8438 = vmatprep.mubr.msk.f32.mxu0 %vm10526_vm1, %v15084_v33 }
 0x1b3   : > { %8439 = vmatmul.mubr.f32.gmra.mrb[26].mxu0 %v10938_v37  ;;  %v15222_v37 = vand.u32 4294901760, %v15194_v53 }
 0x1b4   : > { %8441 = vmatprep.mubr.msk.f32.mxu0 %vm10526_vm1, %v15084_v33 }
 0x1b7   : > { %8442 = vmatmul.mubr.f32.gmra.mrb[28].mxu0 %v15190_v38  ;;  %v480_v38 = vld [vmem:[%s15017_s4 + $0x60] sm:$0xff] }
 0x1b8   : > { %8444 = vmatprep.mubr.msk.f32.mxu0 %vm10526_vm1, %v15084_v33 }
 0x1bb   : > { %8445 = vmatmul.mubr.f32.gmra.mrb[30].mxu0 %v15191_v43 }
 0x1bc   : > { %8447 = vmatprep.mubr.msk.f32.mxu0 %vm10526_vm1, %v15084_v33 }
 0x1bf   : > { %8448 = vmatmul.mubr.f32.gmra.mrb[32].mxu0 %v15192_v16 }
 0x1c0   : > { %8450 = vmatprep.mubr.msk.f32.mxu0 %vm10526_vm1, %v15084_v33 }
 0x1c3   : > { %8451 = vmatmul.mubr.f32.gmra.mrb[34].mxu0 %v15193_v58 }
 0x1c4   : > { %8453 = vmatprep.mubr.msk.f32.mxu0 %vm10526_vm1, %v15084_v33 }
 0x1c7   : > { %8454 = vmatmul.mubr.f32.gmra.mrb[36].mxu0 %v15194_v53  ;;  %v481_v53 = vld [vmem:[%s15017_s4 + $0x68] sm:$0xff] }
 0x1c8   : > { %8456 = vmatprep.mubr.msk.f32.mxu0 %vm10526_vm1, %v15084_v33 }
 0x1cb   : > { %8457 = vmatmul.mubr.f32.gmra.mrb[38].mxu0 %v15195_v5  ;;  %v15234_v5 = vld [vmem:[#allocation20_spill] sm:$0xff] }
 0x1cc   : > { %8459 = vmatprep.mubr.msk.f32.mxu0 %vm10526_vm1, %v15084_v33 }
 0x1cf   : > { %8460 = vmatmul.mubr.f32.gmra.mrb[40].mxu0 %v11036_v54 }
 0x1d0   : > { %8462 = vmatprep.mubr.msk.f32.mxu0 %vm10526_vm1, %v15084_v33 }
 0x1d3   : > { %8463 = vmatmul.mubr.f32.gmra.mrb[42].mxu0 %v15196_v13 }
 0x1d4   : > { %8465 = vmatprep.mubr.msk.f32.mxu0 %vm10526_vm1, %v15084_v33 }
 0x1d7   : > { %8466 = vmatmul.mubr.f32.gmra.mrb[44].mxu0 %v11064_v0 }
 0x1d8   : > { %8468 = vmatprep.mubr.msk.f32.mxu0 %vm10526_vm1, %v15084_v33 }
 0x1db   : > { %8469 = vmatmul.mubr.f32.gmra.mrb[46].mxu0 %v11077_v55  ;;  %v479_v55 = vld [vmem:[%s15017_s4 + $0x58] sm:$0xff] }
 0x1dc   : > { %8471 = vmatprep.mubr.msk.f32.mxu0 %vm10526_vm1, %v15084_v33 }
 0x1df   : > { %8472 = vmatmul.mubr.f32.gmra.mrb[48].mxu0 %v11087_v22 }
 0x1e0   : > { %8488 = vmatprep.mubr.msk.f32.mxu0 %vm10526_vm1, %v15084_v33 }
 0x1e3   : > { %8489 = vmatmul.mubr.f32.vlgmr.msra.gmra.mrb[0].mxu0 %v15199_v39  ;;  %v15233_v39 = vld [vmem:[#allocation18_spill] sm:$0xff] }
 0x1e4   : > { %8491 = vmatprep.mubr.msk.f32.mxu0 %vm10526_vm1, %v15084_v33  ;;  %9231 = vmatpush3.bf16.msra.mxu0 %v9230_v51  ;;  %v15235_v51 = vld [vmem:[#allocation21_spill] sm:$0xff] }
 0x1e5   : > { %9232 = vmatprep.subr.bf16.mxu0 %v15189_v24 }
 0x1e7   : > { %8492 = vmatmul.mubr.f32.gmra.mrb[2].mxu0 %v15202_v35  ;;  %v15224_v35 = vand.u32 4294901760, %v11036_v54  ;;  %v15228_v54 = vand.u32 4294901760, %v11087_v22 }
 0x1e8   : > { %8494 = vmatprep.mubr.msk.f32.mxu0 %vm10526_vm1, %v15084_v33  ;;  %9234 = vmatpush3.bf16.msra.mxu0 %v9233_v3  ;;  %v15225_v3 = vand.u32 4294901760, %v15196_v13 }
 0x1e9   : > { %9235 = vmatprep.subr.bf16.mxu0 %v15189_v24 }
 0x1eb   : > { %8495 = vmatmul.mubr.f32.gmra.mrb[4].mxu0 %v15205_v18  ;;  %v482_v18 = vld [vmem:[%s15017_s4 + $0x70] sm:$0xff] }
 0x1ec   : > { %8497 = vmatprep.mubr.msk.f32.mxu0 %vm10526_vm1, %v15084_v33  ;;  %9237 = vmatpush3.bf16.msra.mxu0 %v9236_v9 }
 0x1ed   : > { %8575 = vmatprep.subr.mxu0 %v15084_v33 }
 0x1ef   : > { %8498 = vmatmul.mubr.f32.gmra.mrb[6].mxu0 %v15206_v19 }
 0x1f0   : > { %8500 = vmatprep.mubr.msk.f32.mxu0 %vm10526_vm1, %v15084_v33  ;;  %8576 = vmatpush3.msra.mxu0 %v15207_v30 }
 0x1f1   : > { %9238 = vmatprep.subr.bf16.mxu0 %v15189_v24 }
 0x1f3   : > { %8501 = vmatmul.mubr.f32.gmra.mrb[8].mxu0 %v15208_v31 }
 0x1f4   : > { %8503 = vmatprep.mubr.msk.f32.mxu0 %vm10526_vm1, %v15084_v33 }
 0x1f7   : > { %8504 = vmatmul.mubr.f32.gmra.mrb[10].mxu0 %v15209_v14  ;;  %v483_v14 = vld [vmem:[%s15017_s4 + $0x78] sm:$0xff] }
 0x1f8   : > { %8506 = vmatprep.mubr.msk.f32.mxu0 %vm10526_vm1, %v15084_v33 }
 0x1fb   : > { %8507 = vmatmul.mubr.f32.gmra.mrb[12].mxu0 %v15210_v27 }
 0x1fc   : > { %8509 = vmatprep.mubr.msk.f32.mxu0 %vm10526_vm1, %v15084_v33 }
 0x1ff   : > { %8510 = vmatmul.mubr.f32.gmra.mrb[14].mxu0 %v15211_v21 }
 0x200   : > { %8512 = vmatprep.mubr.msk.f32.mxu0 %vm10526_vm1, %v15084_v33 }
 0x203   : > { %8513 = vmatmul.mubr.f32.gmra.mrb[16].mxu0 %v15212_v40 }
 0x204   : > { %8515 = vmatprep.mubr.msk.f32.mxu0 %vm10526_vm1, %v15084_v33 }
 0x207   : > { %8516 = vmatmul.mubr.f32.gmra.mrb[18].mxu0 %v15213_v56  ;;  %v484_v56 = vld [vmem:[%s15017_s4 + $0x80] sm:$0xff] }
 0x208   : > { %8518 = vmatprep.mubr.msk.f32.mxu0 %vm10526_vm1, %v15084_v33 }
 0x20b   : > { %8519 = vmatmul.mubr.f32.gmra.mrb[20].mxu0 %v15214_v10 }
 0x20c   : > { %8521 = vmatprep.mubr.msk.f32.mxu0 %vm10526_vm1, %v15084_v33 }
 0x20f   : > { %8522 = vmatmul.mubr.f32.gmra.mrb[22].mxu0 %v15215_v34 }
 0x210   : > { %8524 = vmatprep.mubr.msk.f32.mxu0 %vm10526_vm1, %v15084_v33 }
 0x213   : > { %8525 = vmatmul.mubr.f32.gmra.mrb[24].mxu0 %v15216_v46 }
 0x214   : > { %8527 = vmatprep.mubr.msk.f32.mxu0 %vm10526_vm1, %v15084_v33 }
 0x217   : > { %8528 = vmatmul.mubr.f32.gmra.mrb[26].mxu0 %v15217_v60  ;;  %v485_v60 = vld [vmem:[%s15017_s4 + $0x88] sm:$0xff] }
 0x218   : > { %8530 = vmatprep.mubr.msk.f32.mxu0 %vm10526_vm1, %v15084_v33 }
 0x21b   : > { %8531 = vmatmul.mubr.f32.gmra.mrb[28].mxu0 %v15218_v25 }
 0x21c   : > { %8533 = vmatprep.mubr.msk.f32.mxu0 %vm10526_vm1, %v15084_v33 }
 0x21f   : > { %8534 = vmatmul.mubr.f32.gmra.mrb[30].mxu0 %v15219_v48 }
 0x220   : > { %8536 = vmatprep.mubr.msk.f32.mxu0 %vm10526_vm1, %v15084_v33 }
 0x223   : > { %8537 = vmatmul.mubr.f32.gmra.mrb[32].mxu0 %v15220_v28 }
 0x224   : > { %8539 = vmatprep.mubr.msk.f32.mxu0 %vm10526_vm1, %v15084_v33 }
 0x227   : > { %8540 = vmatmul.mubr.f32.gmra.mrb[34].mxu0 %v15221_v49  ;;  %v486_v49 = vld [vmem:[%s15017_s4 + $0x90] sm:$0xff] }
 0x228   : > { %8542 = vmatprep.mubr.msk.f32.mxu0 %vm10526_vm1, %v15084_v33 }
 0x22b   : > { %8543 = vmatmul.mubr.f32.gmra.mrb[36].mxu0 %v15222_v37 }
 0x22c   : > { %8545 = vmatprep.mubr.msk.f32.mxu0 %vm10526_vm1, %v15084_v33 }
 0x22f   : > { %8546 = vmatmul.mubr.f32.gmra.mrb[38].mxu0 %v15223_v50 }
 0x230   : > { %8548 = vmatprep.mubr.msk.f32.mxu0 %vm10526_vm1, %v15084_v33 }
 0x233   : > { %8549 = vmatmul.mubr.f32.gmra.mrb[40].mxu0 %v15224_v35 }
 0x234   : > { %8551 = vmatprep.mubr.msk.f32.mxu0 %vm10526_vm1, %v15084_v33 }
 0x237   : > { %8552 = vmatmul.mubr.f32.gmra.mrb[42].mxu0 %v15225_v3  ;;  %v487_v3 = vld [vmem:[%s15017_s4 + $0x98] sm:$0xff] }
 0x238   : > { %8554 = vmatprep.mubr.msk.f32.mxu0 %vm10526_vm1, %v15084_v33 }
 0x23b   : > { %8555 = vmatmul.mubr.f32.gmra.mrb[44].mxu0 %v15226_v52 }
 0x23c   : > { %8557 = vmatprep.mubr.msk.f32.mxu0 %vm10526_vm1, %v15084_v33 }
 0x23f   : > { %8558 = vmatmul.mubr.f32.gmra.mrb[46].mxu0 %v15227_v11 }
 0x240   : > { %8560 = vmatprep.mubr.msk.f32.mxu0 %vm10526_vm1, %v15084_v33 }
 0x243   : > { %8561 = vmatmul.mubr.f32.gmra.mrb[48].mxu0 %v15228_v54 }
 0x244   : > { %8577 = vmatprep.mubr.msk.f32.mxu0 %vm10526_vm1, %v15084_v33 }
 0x247   : > { %8578 = vmatmul.mubr.msk.f32.vlgmr.msra.gmra.mrb[0].mxu0 %vm500_vm2, %v10738_v63 }
 0x248   : > { %8580 = vmatprep.mubr.msk.f32.mxu0 %vm10526_vm1, %v15084_v33  ;;  %9240 = vmatpush3.bf16.msra.mxu0 %v10638_v6  ;;  %v15229_v6 = vld [vmem:[#allocation11_spill] sm:$0xff] }
 0x249   : > { %9241 = vmatprep.subr.bf16.mxu0 %v15189_v24 }
 0x24b   : > { %8581 = vmatmul.mubr.msk.f32.gmra.mrb[2].mxu0 %vm500_vm2, %v10762_v20 }
 0x24c   : > { %8583 = vmatprep.mubr.msk.f32.mxu0 %vm10526_vm1, %v15084_v33  ;;  %9243 = vmatpush3.bf16.msra.mxu0 %v10660_v15  ;;  %v15230_v15 = vld [vmem:[#allocation13_spill] sm:$0xff] }
 0x24d   : > { %9244 = vmatprep.subr.bf16.mxu0 %v15189_v24 }
 0x24f   : > { %8584 = vmatmul.mubr.msk.f32.gmra.mrb[4].mxu0 %vm500_vm2, %v10735_v62 }
 0x250   : > { %8586 = vmatprep.mubr.msk.f32.mxu0 %vm10526_vm1, %v15084_v33  ;;  %9246 = vmatpush3.bf16.msra.mxu0 %v10683_v29  ;;  %v15231_v29 = vld [vmem:[#allocation15_spill] sm:$0xff] }
 0x251   : > { %8664 = vmatprep.subr.mxu0 %v15084_v33 }
 0x253   : > { %8587 = vmatmul.mubr.msk.f32.gmra.mrb[6].mxu0 %vm500_vm2, %v10759_v17 }
 0x254   : > { %8589 = vmatprep.mubr.msk.f32.mxu0 %vm10526_vm1, %v15084_v33  ;;  %8665 = vmatpush3.msra.mxu0 %v10699_v36  ;;  %v15232_v36 = vld [vmem:[#allocation17_spill] sm:$0xff] }
 0x255   : > { %9250 = vmatprep.subr.bf16.mxu0 %v15189_v24 }
 0x257   : > { %8590 = vmatmul.mubr.msk.f32.gmra.mrb[8].mxu0 %vm500_vm2, %v10790_v41 }
 0x258   : > { %8592 = vmatprep.mubr.msk.f32.mxu0 %vm10526_vm1, %v15084_v33 }
 0x25b   : > { %8593 = vmatmul.mubr.msk.f32.gmra.mrb[10].mxu0 %vm500_vm2, %v10796_v45 }
 0x25c   : > { %8595 = vmatprep.mubr.msk.f32.mxu0 %vm10526_vm1, %v15084_v33 }
 0x25f   : > { %8596 = vmatmul.mubr.msk.f32.gmra.mrb[12].mxu0 %vm500_vm2, %v10815_v2 }
 0x260   : > { %8598 = vmatprep.mubr.msk.f32.mxu0 %vm10526_vm1, %v15084_v33 }
 0x263   : > { %8599 = vmatmul.mubr.msk.f32.gmra.mrb[14].mxu0 %vm500_vm2, %v10833_v26 }
 0x264   : > { %8601 = vmatprep.mubr.msk.f32.mxu0 %vm10526_vm1, %v15084_v33 }
 0x267   : > { %8602 = vmatmul.mubr.msk.f32.gmra.mrb[16].mxu0 %vm500_vm2, %v10848_v44 }
 0x268   : > { %8604 = vmatprep.mubr.msk.f32.mxu0 %vm10526_vm1, %v15084_v33 }
 0x26b   : > { %8605 = vmatmul.mubr.msk.f32.gmra.mrb[18].mxu0 %vm500_vm2, %v10863_v59 }
 0x26c   : > { %8607 = vmatprep.mubr.msk.f32.mxu0 %vm10526_vm1, %v15084_v33 }
 0x26f   : > { %8608 = vmatmul.mubr.msk.f32.gmra.mrb[20].mxu0 %vm500_vm2, %v10877_v23 }
 0x270   : > { %8610 = vmatprep.mubr.msk.f32.mxu0 %vm10526_vm1, %v15084_v33 }
 0x273   : > { %8611 = vmatmul.mubr.msk.f32.gmra.mrb[22].mxu0 %vm500_vm2, %v10891_v47 }
 0x274   : > { %8613 = vmatprep.mubr.msk.f32.mxu0 %vm10526_vm1, %v15084_v33 }
 0x277   : > { %8614 = vmatmul.mubr.msk.f32.gmra.mrb[24].mxu0 %vm500_vm2, %v10905_v12 }
 0x278   : > { %8616 = vmatprep.mubr.msk.f32.mxu0 %vm10526_vm1, %v15084_v33 }
 0x27b   : > { %8617 = vmatmul.mubr.msk.f32.gmra.mrb[26].mxu0 %vm500_vm2, %v10919_v57 }
 0x27c   : > { %8619 = vmatprep.mubr.msk.f32.mxu0 %vm10526_vm1, %v15084_v33 }
 0x27f   : > { %8620 = vmatmul.mubr.msk.f32.gmra.mrb[28].mxu0 %vm500_vm2, %v10933_v32 }
 0x280   : > { %8622 = vmatprep.mubr.msk.f32.mxu0 %vm10526_vm1, %v15084_v33 }
 0x283   : > { %8623 = vmatmul.mubr.msk.f32.gmra.mrb[30].mxu0 %vm500_vm2, %v10947_v4 }
 0x284   : > { %8625 = vmatprep.mubr.msk.f32.mxu0 %vm10526_vm1, %v15084_v33 }
 0x287   : > { %8626 = vmatmul.mubr.msk.f32.gmra.mrb[32].mxu0 %vm500_vm2, %v10961_v42 }
 0x288   : > { %8628 = vmatprep.mubr.msk.f32.mxu0 %vm10526_vm1, %v15084_v33 }
 0x28b   : > { %8629 = vmatmul.mubr.msk.f32.gmra.mrb[34].mxu0 %vm500_vm2, %v10975_v1 }
 0x28c   : > { %8631 = vmatprep.mubr.msk.f32.mxu0 %vm10526_vm1, %v15084_v33 }
 0x28f   : > { %8632 = vmatmul.mubr.msk.f32.gmra.mrb[36].mxu0 %vm500_vm2, %v15229_v6 }
 0x290   : > { %8634 = vmatprep.mubr.msk.f32.mxu0 %vm10526_vm1, %v15084_v33 }
 0x293   : > { %8635 = vmatmul.mubr.msk.f32.gmra.mrb[38].mxu0 %vm500_vm2, %v15230_v15 }
 0x294   : > { %8637 = vmatprep.mubr.msk.f32.mxu0 %vm10526_vm1, %v15084_v33 }
 0x297   : > { %8638 = vmatmul.mubr.msk.f32.gmra.mrb[40].mxu0 %vm500_vm2, %v15231_v29 }
 0x298   : > { %8640 = vmatprep.mubr.msk.f32.mxu0 %vm10526_vm1, %v15084_v33 }
 0x29b   : > { %8641 = vmatmul.mubr.msk.f32.gmra.mrb[42].mxu0 %vm500_vm2, %v15232_v36 }
 0x29c   : > { %8643 = vmatprep.mubr.msk.f32.mxu0 %vm10526_vm1, %v15084_v33 }
 0x29f   : > { %8644 = vmatmul.mubr.msk.f32.gmra.mrb[44].mxu0 %vm500_vm2, %v15233_v39 }
 0x2a0   : > { %8646 = vmatprep.mubr.msk.f32.mxu0 %vm10526_vm1, %v15084_v33 }
 0x2a3   : > { %8647 = vmatmul.mubr.msk.f32.gmra.mrb[46].mxu0 %vm500_vm2, %v15234_v5 }
 0x2a4   : > { %8649 = vmatprep.mubr.msk.f32.mxu0 %vm10526_vm1, %v15084_v33 }
 0x2a7   : > { %8650 = vmatmul.mubr.msk.f32.gmra.mrb[48].mxu0 %vm500_vm2, %v15235_v51 }
 0x2a8   : > { %8666 = vmatprep.mubr.msk.f32.mxu0 %vm10526_vm1, %v15084_v33 }
 0x2ab   : > { %8667 = vmatmul.mubr.msk.f32.vlgmr.msra.gmra.mrb[0].mxu0 %vm500_vm2, %v10738_v63  ;;  %v2137_v63 = vld [vmem:[%s15018_s5 + $0x8] sm:$0xff] }
 0x2ac   : > { %8669 = vmatprep.mubr.msk.f32.mxu0 %vm10526_vm1, %v15084_v33 }
 0x2af   : > { %8670 = vmatmul.mubr.msk.f32.gmra.mrb[2].mxu0 %vm500_vm2, %v10762_v20  ;;  %v475_v20 = vld [vmem:[%s15017_s4 + $0x38] sm:$0xff] }
 0x2b0   : > { %8672 = vmatprep.mubr.msk.f32.mxu0 %vm10526_vm1, %v15084_v33 }
 0x2b3   : > { %8673 = vmatmul.mubr.msk.f32.gmra.mrb[4].mxu0 %vm500_vm2, %v10735_v62  ;;  %v2136_v62 = vld [vmem:[%s15018_s5] sm:$0xff] }
 0x2b4   : > { %8675 = vmatprep.mubr.msk.f32.mxu0 %vm10526_vm1, %v15084_v33 }
 0x2b7   : > { %8676 = vmatmul.mubr.msk.f32.gmra.mrb[6].mxu0 %vm500_vm2, %v10759_v17  ;;  %v9248_v17 = vpack.c.bf16 %v2137_v63, %v2136_v62  ;;  %v490_v63 = vld [vmem:[%s15017_s4 + $0xb0] sm:$0xff] }
 0x2b8   : > { %8678 = vmatprep.mubr.msk.f32.mxu0 %vm10526_vm1, %v15084_v33 }
 0x2b9   : > { %9249 = vmatpush3.bf16.msra.mxu1 %v9248_v17 }
 0x2ba   : > { %9448 = vmatprep.subr.bf16.mxu1 %v15189_v24 }
 0x2bb   : > { %8679 = vmatmul.mubr.msk.f32.gmra.mrb[8].mxu0 %vm500_vm2, %v10790_v41 }
 0x2bc   : > { %8681 = vmatprep.mubr.msk.f32.mxu0 %vm10526_vm1, %v15084_v33 }
 0x2bf   : > { %8682 = vmatmul.mubr.msk.f32.gmra.mrb[10].mxu0 %vm500_vm2, %v10796_v45 }
 0x2c0   : > { %8684 = vmatprep.mubr.msk.f32.mxu0 %vm10526_vm1, %v15084_v33 }
 0x2c3   : > { %8685 = vmatmul.mubr.msk.f32.gmra.mrb[12].mxu0 %vm500_vm2, %v10815_v2 }
 0x2c4   : > { %8687 = vmatprep.mubr.msk.f32.mxu0 %vm10526_vm1, %v15084_v33 }
 0x2c7   : > { %8688 = vmatmul.mubr.msk.f32.gmra.mrb[14].mxu0 %vm500_vm2, %v10833_v26  ;;  %v476_v26 = vld [vmem:[%s15017_s4 + $0x40] sm:$0xff] }
 0x2c8   : > { %8690 = vmatprep.mubr.msk.f32.mxu0 %vm10526_vm1, %v15084_v33 }
 0x2cb   : > { %8691 = vmatmul.mubr.msk.f32.gmra.mrb[16].mxu0 %vm500_vm2, %v10848_v44 }
 0x2cc   : > { %8693 = vmatprep.mubr.msk.f32.mxu0 %vm10526_vm1, %v15084_v33 }
 0x2cf   : > { %8694 = vmatmul.mubr.msk.f32.gmra.mrb[18].mxu0 %vm500_vm2, %v10863_v59 }
 0x2d0   : > { %8696 = vmatprep.mubr.msk.f32.mxu0 %vm10526_vm1, %v15084_v33 }
 0x2d3   : > { %8697 = vmatmul.mubr.msk.f32.gmra.mrb[20].mxu0 %vm500_vm2, %v10877_v23 }
 0x2d4   : > { %8699 = vmatprep.mubr.msk.f32.mxu0 %vm10526_vm1, %v15084_v33 }
 0x2d7   : > { %8700 = vmatmul.mubr.msk.f32.gmra.mrb[22].mxu0 %vm500_vm2, %v10891_v47  ;;  %v477_v47 = vld [vmem:[%s15017_s4 + $0x48] sm:$0xff] }
 0x2d8   : > { %8702 = vmatprep.mubr.msk.f32.mxu0 %vm10526_vm1, %v15084_v33 }
 0x2db   : > { %8703 = vmatmul.mubr.msk.f32.gmra.mrb[24].mxu0 %vm500_vm2, %v10905_v12 }
 0x2dc   : > { %8705 = vmatprep.mubr.msk.f32.mxu0 %vm10526_vm1, %v15084_v33 }
 0x2df   : > { %8706 = vmatmul.mubr.msk.f32.gmra.mrb[26].mxu0 %vm500_vm2, %v10919_v57 }
 0x2e0   : > { %8708 = vmatprep.mubr.msk.f32.mxu0 %vm10526_vm1, %v15084_v33 }
 0x2e3   : > { %8709 = vmatmul.mubr.msk.f32.gmra.mrb[28].mxu0 %vm500_vm2, %v10933_v32 }
 0x2e4   : > { %8711 = vmatprep.mubr.msk.f32.mxu0 %vm10526_vm1, %v15084_v33 }
 0x2e7   : > { %8712 = vmatmul.mubr.msk.f32.gmra.mrb[30].mxu0 %vm500_vm2, %v10947_v4  ;;  %v478_v4 = vld [vmem:[%s15017_s4 + $0x50] sm:$0xff] }
 0x2e8   : > { %8714 = vmatprep.mubr.msk.f32.mxu0 %vm10526_vm1, %v15084_v33 }
 0x2eb   : > { %8715 = vmatmul.mubr.msk.f32.gmra.mrb[32].mxu0 %vm500_vm2, %v10961_v42 }
 0x2ec   : > { %8717 = vmatprep.mubr.msk.f32.mxu0 %vm10526_vm1, %v15084_v33 }
 0x2ef   : > { %8718 = vmatmul.mubr.msk.f32.gmra.mrb[34].mxu0 %vm500_vm2, %v10975_v1 }
 0x2f0   : > { %8720 = vmatprep.mubr.msk.f32.mxu0 %vm10526_vm1, %v15084_v33 }
 0x2f3   : > { %8721 = vmatmul.mubr.msk.f32.gmra.mrb[36].mxu0 %vm500_vm2, %v15229_v6  ;;  %v488_v6 = vld [vmem:[%s15017_s4 + $0xa0] sm:$0xff] }
 0x2f4   : > { %8723 = vmatprep.mubr.msk.f32.mxu0 %vm10526_vm1, %v15084_v33 }
 0x2f7   : > { %8724 = vmatmul.mubr.msk.f32.gmra.mrb[38].mxu0 %vm500_vm2, %v15230_v15 }
 0x2f8   : > { %8726 = vmatprep.mubr.msk.f32.mxu0 %vm10526_vm1, %v15084_v33 }
 0x2fb   : > { %8727 = vmatmul.mubr.msk.f32.gmra.mrb[40].mxu0 %vm500_vm2, %v15231_v29 }
 0x2fc   : > { %8729 = vmatprep.mubr.msk.f32.mxu0 %vm10526_vm1, %v15084_v33 }
 0x2ff   : > { %8730 = vmatmul.mubr.msk.f32.gmra.mrb[42].mxu0 %vm500_vm2, %v15232_v36 }
 0x300   : > { %8732 = vmatprep.mubr.msk.f32.mxu0 %vm10526_vm1, %v15084_v33 }
 0x303   : > { %8733 = vmatmul.mubr.msk.f32.gmra.mrb[44].mxu0 %vm500_vm2, %v15233_v39  ;;  %v489_v39 = vld [vmem:[%s15017_s4 + $0xa8] sm:$0xff] }
 0x304   : > { %8735 = vmatprep.mubr.msk.f32.mxu0 %vm10526_vm1, %v15084_v33 }
 0x307   : > { %8736 = vmatmul.mubr.msk.f32.gmra.mrb[46].mxu0 %vm500_vm2, %v15234_v5 }
 0x308   : > { %8738 = vmatprep.mubr.msk.f32.mxu0 %vm10526_vm1, %v15084_v33 }
 0x30b   : > { %8739 = vmatmul.mubr.msk.f32.gmra.mrb[48].mxu0 %vm500_vm2, %v15235_v51  ;;  %vm12024_vm2 = vmpackc.low %vm2138_vm14, %vm2138_vm14 }
 0x30c   : > { %2672 = vmatprep.mubr.f32.mxu0 %v15084_v33 }
 0x37e   : > { %v1988_v41 = vpop.f32.mrb[0].mxu0 }
 0x37f   : > { %v11637_v45 = vadd.f32 %v1988_v41, %v475_v20  ;;  %v8668_v2 = vpop.f32.mrb[1].mxu0 }
 0x380   : > { %v491_v2 = vld [vmem:[%s15017_s4 + $0xb8] sm:$0xff] }
 0x381   : > { %15236 = vst [vmem:[#allocation8_spill] sm:$0xff] %v11637_v45  ;;  %8746 = vmatmul.mubr.msk.f32.vlgmr.msra.gmra.mrb[0].mxu1 %vm2138_vm14, %v11637_v45 }
 0x382   : > { %v1994_v44 = vpop.f32.mrb[2].mxu0  ;;  %8748 = vmatprep.mubr.msk.f32.mxu1 %vm10526_vm1, %v15084_v33 }
 0x383   : > { %v11646_v59 = vadd.f32 %v1994_v44, %v476_v26  ;;  %v8671_v23 = vpop.f32.mrb[3].mxu0 }
 0x385   : > { %15237 = vst [vmem:[#allocation9_spill] sm:$0xff] %v11646_v59  ;;  %8749 = vmatmul.mubr.msk.f32.gmra.mrb[2].mxu1 %vm2138_vm14, %v11646_v59 }
 0x386   : > { %v2000_v12 = vpop.f32.mrb[4].mxu0  ;;  %8751 = vmatprep.mubr.msk.f32.mxu1 %vm10526_vm1, %v15084_v33 }
 0x387   : > { %v11655_v57 = vadd.f32 %v2000_v12, %v477_v47  ;;  %v8674_v32 = vpop.f32.mrb[5].mxu0  ;;  %v492_v47 = vld [vmem:[%s15017_s4 + $0xc0] sm:$0xff] }
 0x389   : > { %15238 = vst [vmem:[#allocation10_spill] sm:$0xff] %v11655_v57  ;;  %8752 = vmatmul.mubr.msk.f32.gmra.mrb[4].mxu1 %vm2138_vm14, %v11655_v57 }
 0x38a   : > { %v2006_v42 = vpop.f32.mrb[6].mxu0  ;;  %8754 = vmatprep.mubr.msk.f32.mxu1 %vm10526_vm1, %v15084_v33 }
 0x38b   : > { %v11664_v1 = vadd.f32 %v2006_v42, %v478_v4  ;;  %v8677_v0 = vpop.f32.mrb[7].mxu0  ;;  %v493_v42 = vld [vmem:[%s15017_s4 + $0xc8] sm:$0xff] }
 0x38d   : > { %15239 = vst [vmem:[#allocation12_spill] sm:$0xff] %v11664_v1  ;;  %8755 = vmatmul.mubr.msk.f32.gmra.mrb[6].mxu1 %vm2138_vm14, %v11664_v1 }
 0x38e   : > { %v2012_v61 = vpop.f32.mrb[8].mxu0  ;;  %8757 = vmatprep.mubr.msk.f32.mxu1 %vm10526_vm1, %v15084_v33 }
 0x38f   : > { %v11673_v22 = vadd.f32 %v2012_v61, %v479_v55  ;;  %v8680_v13 = vpop.f32.mrb[9].mxu0 }
 0x390   : > { %v494_v13 = vld [vmem:[%s15017_s4 + $0xd0] sm:$0xff] }
 0x391   : > { %15240 = vst [vmem:[#allocation14_spill] sm:$0xff] %v11673_v22  ;;  %8758 = vmatmul.mubr.msk.f32.gmra.mrb[8].mxu1 %vm2138_vm14, %v11673_v22 }
 0x392   : > { %v2018_v43 = vpop.f32.mrb[10].mxu0  ;;  %8760 = vmatprep.mubr.msk.f32.mxu1 %vm10526_vm1, %v15084_v33 }
 0x393   : > { %v11682_v16 = vadd.f32 %v2018_v43, %v480_v38  ;;  %v8683_v58 = vpop.f32.mrb[11].mxu0 }
 0x395   : > { %15241 = vst [vmem:[#allocation16_spill] sm:$0xff] %v11682_v16  ;;  %8761 = vmatmul.mubr.msk.f32.gmra.mrb[10].mxu1 %vm2138_vm14, %v11682_v16 }
 0x396   : > { %v2024_v7 = vpop.f32.mrb[12].mxu0  ;;  %8763 = vmatprep.mubr.msk.f32.mxu1 %vm10526_vm1, %v15084_v33 }
 0x397   : > { %v11691_v8 = vadd.f32 %v2024_v7, %v481_v53  ;;  %v8686_v9 = vpop.f32.mrb[13].mxu0  ;;  %v495_v53 = vld [vmem:[%s15017_s4 + $0xd8] sm:$0xff] }
 0x399   : > { %15242 = vst [vmem:[#allocation19_spill] sm:$0xff] %v11691_v8  ;;  %8764 = vmatmul.mubr.msk.f32.gmra.mrb[12].mxu1 %vm2138_vm14, %v11691_v8 }
 0x39a   : > { %v2030_v19 = vpop.f32.mrb[14].mxu0  ;;  %8766 = vmatprep.mubr.msk.f32.mxu1 %vm10526_vm1, %v15084_v33 }
 0x39b   : > { %v11700_v30 = vadd.f32 %v2030_v19, %v482_v18  ;;  %v8689_v31 = vpop.f32.mrb[15].mxu0  ;;  %v496_v19 = vld [vmem:[%s15017_s4 + $0xe0] sm:$0xff] }
 0x39d   : > { %15243 = vst [vmem:[#allocation11_spill] sm:$0xff] %v11700_v30  ;;  %8767 = vmatmul.mubr.msk.f32.gmra.mrb[14].mxu1 %vm2138_vm14, %v11700_v30 }
 0x39e   : > { %v2036_v27 = vpop.f32.mrb[16].mxu0  ;;  %8769 = vmatprep.mubr.msk.f32.mxu1 %vm10526_vm1, %v15084_v33 }
 0x39f   : > { %v11709_v21 = vadd.f32 %v2036_v27, %v483_v14  ;;  %v8692_v40 = vpop.f32.mrb[17].mxu0 }
 0x3a0   : > { %v497_v40 = vld [vmem:[%s15017_s4 + $0xe8] sm:$0xff] }
 0x3a1   : > { %15244 = vst [vmem:[#allocation13_spill] sm:$0xff] %v11709_v21  ;;  %8770 = vmatmul.mubr.msk.f32.gmra.mrb[16].mxu1 %vm2138_vm14, %v11709_v21 }
 0x3a2   : > { %v2042_v10 = vpop.f32.mrb[18].mxu0  ;;  %8772 = vmatprep.mubr.msk.f32.mxu1 %vm10526_vm1, %v15084_v33 }
 0x3a3   : > { %v11718_v34 = vadd.f32 %v2042_v10, %v484_v56  ;;  %v8695_v46 = vpop.f32.mrb[19].mxu0 }
 0x3a5   : > { %15245 = vst [vmem:[#allocation15_spill] sm:$0xff] %v11718_v34  ;;  %8773 = vmatmul.mubr.msk.f32.gmra.mrb[18].mxu1 %vm2138_vm14, %v11718_v34 }
 0x3a6   : > { %v2048_v25 = vpop.f32.mrb[20].mxu0  ;;  %8775 = vmatprep.mubr.msk.f32.mxu1 %vm10526_vm1, %v15084_v33 }
 0x3a7   : > { %v11727_v48 = vadd.f32 %v2048_v25, %v485_v60  ;;  %v8698_v28 = vpop.f32.mrb[21].mxu0  ;;  %v498_v60 = vld [vmem:[%s15017_s4 + $0xf0] sm:$0xff] }
 0x3a9   : > { %15246 = vst [vmem:[#allocation17_spill] sm:$0xff] %v11727_v48  ;;  %8776 = vmatmul.mubr.msk.f32.gmra.mrb[20].mxu1 %vm2138_vm14, %v11727_v48 }
 0x3aa   : > { %v2054_v37 = vpop.f32.mrb[22].mxu0  ;;  %8778 = vmatprep.mubr.msk.f32.mxu1 %vm10526_vm1, %v15084_v33 }
 0x3ab   : > { %v11736_v50 = vadd.f32 %v2054_v37, %v486_v49  ;;  %v8701_v35 = vpop.f32.mrb[23].mxu0  ;;  %v499_v37 = vld [vmem:[%s15017_s4 + $0xf8] sm:$0xff] }
 0x3ad   : > { %15247 = vst [vmem:[#allocation18_spill] sm:$0xff] %v11736_v50  ;;  %8779 = vmatmul.mubr.msk.f32.gmra.mrb[22].mxu1 %vm2138_vm14, %v11736_v50 }
 0x3ae   : > { %v2060_v52 = vpop.f32.mrb[24].mxu0  ;;  %8781 = vmatprep.mubr.msk.f32.mxu1 %vm10526_vm1, %v15084_v33 }
 0x3af   : > { %v11745_v11 = vadd.f32 %v2060_v52, %v487_v3  ;;  %v8704_v54 = vpop.f32.mrb[25].mxu0 }
 0x3b1   : > { %15248 = vst [vmem:[#allocation20_spill] sm:$0xff] %v11745_v11  ;;  %8782 = vmatmul.mubr.msk.f32.gmra.mrb[24].mxu1 %vm2138_vm14, %v11745_v11 }
 0x3b2   : > { %v2066_v15 = vpop.f32.mrb[26].mxu0  ;;  %8784 = vmatprep.mubr.msk.f32.mxu1 %vm10526_vm1, %v15084_v33 }
 0x3b3   : > { %v11754_v29 = vadd.f32 %v2066_v15, %v488_v6  ;;  %v8707_v36 = vpop.f32.mrb[27].mxu0 }
 0x3b5   : > { %15249 = vst [vmem:[#allocation21_spill] sm:$0xff] %v11754_v29  ;;  %8785 = vmatmul.mubr.msk.f32.gmra.mrb[26].mxu1 %vm2138_vm14, %v11754_v29 }
 0x3b6   : > { %v2072_v5 = vpop.f32.mrb[28].mxu0  ;;  %8787 = vmatprep.mubr.msk.f32.mxu1 %vm10526_vm1, %v15084_v33 }
 0x3b7   : > { %v11763_v51 = vadd.f32 %v2072_v5, %v489_v39  ;;  %v8710_v62 = vpop.f32.mrb[29].mxu0 }
 0x3b9   : > { %15250 = vst [vmem:[#allocation22_spill] sm:$0xff] %v11763_v51  ;;  %8788 = vmatmul.mubr.msk.f32.gmra.mrb[28].mxu1 %vm2138_vm14, %v11763_v51 }
 0x3ba   : > { %v2078_v17 = vpop.f32.mrb[30].mxu0  ;;  %8790 = vmatprep.mubr.msk.f32.mxu1 %vm10526_vm1, %v15084_v33 }
 0x3bb   : > { %v11772_v20 = vadd.f32 %v2078_v17, %v490_v63  ;;  %v8713_v41 = vpop.f32.mrb[31].mxu0 }
 0x3bd   : > { %15251 = vst [vmem:[#allocation23_spill] sm:$0xff] %v11772_v20  ;;  %8791 = vmatmul.mubr.msk.f32.gmra.mrb[30].mxu1 %vm2138_vm14, %v11772_v20 }
 0x3be   : > { %v2084_v26 = vpop.f32.mrb[32].mxu0  ;;  %8793 = vmatprep.mubr.msk.f32.mxu1 %vm10526_vm1, %v15084_v33 }
 0x3bf   : > { %v11781_v44 = vadd.f32 %v2084_v26, %v491_v2  ;;  %v8716_v23 = vpop.f32.mrb[33].mxu0 }
 0x3c1   : > { %15252 = vst [vmem:[#allocation24_spill] sm:$0xff] %v11781_v44  ;;  %8794 = vmatmul.mubr.msk.f32.gmra.mrb[32].mxu1 %vm2138_vm14, %v11781_v44 }
 0x3c2   : > { %v2090_v12 = vpop.f32.mrb[34].mxu0  ;;  %8796 = vmatprep.mubr.msk.f32.mxu1 %vm10526_vm1, %v15084_v33 }
 0x3c3   : > { %v11790_v32 = vadd.f32 %v2090_v12, %v492_v47  ;;  %v8719_v4 = vpop.f32.mrb[35].mxu0 }
 0x3c5   : > { %15253 = vst [vmem:[#allocation25_spill] sm:$0xff] %v11790_v32  ;;  %8797 = vmatmul.mubr.msk.f32.gmra.mrb[34].mxu1 %vm2138_vm14, %v11790_v32 }
 0x3c6   : > { %v2096_v0 = vpop.f32.mrb[36].mxu0  ;;  %8799 = vmatprep.mubr.msk.f32.mxu1 %vm10526_vm1, %v15084_v33 }
 0x3c7   : > { %v11799_v55 = vadd.f32 %v2096_v0, %v493_v42  ;;  %v8722_v61 = vpop.f32.mrb[37].mxu0 }
 0x3c9   : > { %15254 = vst [vmem:[#allocation26_spill] sm:$0xff] %v11799_v55  ;;  %8800 = vmatmul.mubr.msk.f32.gmra.mrb[36].mxu1 %vm2138_vm14, %v11799_v55 }
 0x3ca   : > { %v2102_v38 = vpop.f32.mrb[38].mxu0  ;;  %8802 = vmatprep.mubr.msk.f32.mxu1 %vm10526_vm1, %v15084_v33 }
 0x3cb   : > { %v11808_v43 = vadd.f32 %v2102_v38, %v494_v13  ;;  %v8725_v58 = vpop.f32.mrb[39].mxu0 }
 0x3cd   : > { %15255 = vst [vmem:[#allocation27_spill] sm:$0xff] %v11808_v43  ;;  %8803 = vmatmul.mubr.msk.f32.gmra.mrb[38].mxu1 %vm2138_vm14, %v11808_v43 }
 0x3ce   : > { %v2108_v7 = vpop.f32.mrb[40].mxu0  ;;  %8805 = vmatprep.mubr.msk.f32.mxu1 %vm10526_vm1, %v15084_v33 }
 0x3cf   : > { %v11817_v9 = vadd.f32 %v2108_v7, %v495_v53  ;;  %v8728_v18 = vpop.f32.mrb[41].mxu0 }
 0x3d1   : > { %15256 = vst [vmem:[#allocation28_spill] sm:$0xff] %v11817_v9  ;;  %8806 = vmatmul.mubr.msk.f32.gmra.mrb[40].mxu1 %vm2138_vm14, %v11817_v9 }
 0x3d2   : > { %v2114_v31 = vpop.f32.mrb[42].mxu0  ;;  %8808 = vmatprep.mubr.msk.f32.mxu1 %vm10526_vm1, %v15084_v33 }
 0x3d3   : > { %v11826_v14 = vadd.f32 %v2114_v31, %v496_v19  ;;  %v8731_v27 = vpop.f32.mrb[43].mxu0 }
 0x3d5   : > { %15257 = vst [vmem:[#allocation29_spill] sm:$0xff] %v11826_v14  ;;  %8809 = vmatmul.mubr.msk.f32.gmra.mrb[42].mxu1 %vm2138_vm14, %v11826_v14 }
 0x3d6   : > { %v2120_v56 = vpop.f32.mrb[44].mxu0  ;;  %8811 = vmatprep.mubr.msk.f32.mxu1 %vm10526_vm1, %v15084_v33 }
 0x3d7   : > { %v11835_v10 = vadd.f32 %v2120_v56, %v497_v40  ;;  %v8734_v46 = vpop.f32.mrb[45].mxu0 }
 0x3d9   : > { %15258 = vst [vmem:[#allocation30_spill] sm:$0xff] %v11835_v10  ;;  %8812 = vmatmul.mubr.msk.f32.gmra.mrb[44].mxu1 %vm2138_vm14, %v11835_v10 }
 0x3da   : > { %v2126_v25 = vpop.f32.mrb[46].mxu0  ;;  %8814 = vmatprep.mubr.msk.f32.mxu1 %vm10526_vm1, %v15084_v33 }
 0x3db   : > { %v11844_v28 = vadd.f32 %v2126_v25, %v498_v60  ;;  %v8737_v49 = vpop.f32.mrb[47].mxu0 }
 0x3dd   : > { %15259 = vst [vmem:[#allocation31_spill] sm:$0xff] %v11844_v28  ;;  %8815 = vmatmul.mubr.msk.f32.gmra.mrb[46].mxu1 %vm2138_vm14, %v11844_v28 }
 0x3de   : > { %v2132_v35 = vpop.f32.mrb[48].mxu0  ;;  %8817 = vmatprep.mubr.msk.f32.mxu1 %vm10526_vm1, %v15084_v33 }
 0x3df   : > { %v11853_v3 = vadd.f32 %v2132_v35, %v499_v37  ;;  %v8740_v52 = vpop.f32.mrb[49].mxu0 }
 0x3e1   : > { %15260 = vst [vmem:[#allocation32_spill] sm:$0xff] %v11853_v3  ;;  %8818 = vmatmul.mubr.msk.f32.gmra.mrb[48].mxu1 %vm2138_vm14, %v11853_v3 }
 0x3e2   : > { %2714 = vmatprep.mubr.f32.mxu1 %v15084_v33 }
 0x454   : > { %v2280_v54 = vpop.f32.mrb[0].mxu1 }
 0x455   : > { %v8747_v6 = vpop.f32.mrb[1].mxu1  ;;  %v11858_v36 = vmul.f32 0.5, %v2280_v54 }
 0x457   : > { %15261 = vst [vmem:[#allocation33_spill] sm:$0xff] %v11858_v36 }
 0x458   : > { %v2285_v15 = vpop.f32.mrb[2].mxu1 }
 0x459   : > { %v11860_v39 = vmul.f32 0.5, %v2285_v15  ;;  %v8750_v5 = vpop.f32.mrb[3].mxu1  ;;  %v11862_v62 = vpack.i.bf16 %v2285_v15, %v2280_v54 }
 0x45b   : > { %15262 = vst [vmem:[#allocation34_spill] sm:$0xff] %v11860_v39  ;;  %15263 = vst [vmem:[#allocation35_spill] sm:$0xff] %v11862_v62  ;;  %v11866_v63 = vpack.i.bf16 %v11860_v39, %v11858_v36 }
 0x45c   : > { %v2290_v17 = vpop.f32.mrb[4].mxu1 }
 0x45d   : > { %9803 = vrot.lane.b32.xlu1 %v11866_v63, %s10528_s19  ;;  %v8753_v41 = vpop.f32.mrb[5].mxu1  ;;  %v11870_v26 = vmul.f32 0.5, %v2290_v17 }
 0x45f   : > { %15264 = vst [vmem:[#allocation36_spill] sm:$0xff] %v11870_v26 }
 0x460   : > { %v2295_v2 = vpop.f32.mrb[6].mxu1 }
 0x461   : > { %v11872_v23 = vmul.f32 0.5, %v2295_v2  ;;  %v8756_v47 = vpop.f32.mrb[7].mxu1  ;;  %v11874_v12 = vpack.i.bf16 %v2295_v2, %v2290_v17 }
 0x463   : > { %15265 = vst [vmem:[#allocation37_spill] sm:$0xff] %v11872_v23  ;;  %15266 = vst [vmem:[#allocation38_spill] sm:$0xff] %v11874_v12  ;;  %v11878_v4 = vpack.i.bf16 %v11872_v23, %v11870_v26 }
 0x464   : > { %v2300_v42 = vpop.f32.mrb[8].mxu1 }
 0x465   : > { %9808 = vrot.lane.b32.xlu0 %v11878_v4, %s10528_s19  ;;  %v8759_v0 = vpop.f32.mrb[9].mxu1  ;;  %v11882_v13 = vmul.f32 0.5, %v2300_v42 }
 0x467   : > { %15267 = vst [vmem:[#allocation39_spill] sm:$0xff] %v11882_v13 }
 0x468   : > { %v2305_v61 = vpop.f32.mrb[10].mxu1 }
 0x469   : > { %v11884_v38 = vmul.f32 0.5, %v2305_v61  ;;  %v8762_v58 = vpop.f32.mrb[11].mxu1  ;;  %v11886_v53 = vpack.i.bf16 %v2305_v61, %v2300_v42 }
 0x46b   : > { %15268 = vst [vmem:[#allocation40_spill] sm:$0xff] %v11884_v38  ;;  %15269 = vst [vmem:[#allocation41_spill] sm:$0xff] %v11886_v53  ;;  %v11890_v7 = vpack.i.bf16 %v11884_v38, %v11882_v13 }
 0x46c   : > { %v2310_v18 = vpop.f32.mrb[12].mxu1 }
 0x46d   : > { %9813 = vrot.lane.b32.xlu1 %v11890_v7, %s10528_s19  ;;  %v8765_v19 = vpop.f32.mrb[13].mxu1  ;;  %v11894_v27 = vmul.f32 0.5, %v2310_v18 }
 0x46f   : > { %15270 = vst [vmem:[#allocation42_spill] sm:$0xff] %v11894_v27 }
 0x470   : > { %v2315_v31 = vpop.f32.mrb[14].mxu1 }
 0x471   : > { %v11896_v40 = vmul.f32 0.5, %v2315_v31  ;;  %v8768_v56 = vpop.f32.mrb[15].mxu1  ;;  %v11898_v46 = vpack.i.bf16 %v2315_v31, %v2310_v18 }
 0x473   : > { %15271 = vst [vmem:[#allocation43_spill] sm:$0xff] %v11896_v40  ;;  %15272 = vst [vmem:[#allocation44_spill] sm:$0xff] %v11898_v46  ;;  %v11902_v60 = vpack.i.bf16 %v11896_v40, %v11894_v27 }
 0x474   : > { %v2320_v25 = vpop.f32.mrb[16].mxu1 }
 0x475   : > { %9818 = vrot.lane.b32.xlu0 %v11902_v60, %s10528_s19  ;;  %v8771_v49 = vpop.f32.mrb[17].mxu1  ;;  %v11906_v35 = vmul.f32 0.5, %v2320_v25 }
 0x477   : > { %15273 = vst [vmem:[#allocation45_spill] sm:$0xff] %v11906_v35 }
 0x478   : > { %v2325_v37 = vpop.f32.mrb[18].mxu1 }
 0x479   : > { %v11908_v52 = vmul.f32 0.5, %v2325_v37  ;;  %v8774_v54 = vpop.f32.mrb[19].mxu1  ;;  %v11910_v6 = vpack.i.bf16 %v2325_v37, %v2320_v25 }
 0x47b   : > { %15274 = vst [vmem:[#allocation46_spill] sm:$0xff] %v11908_v52  ;;  %15275 = vst [vmem:[#allocation47_spill] sm:$0xff] %v11910_v6  ;;  %v11914_v15 = vpack.i.bf16 %v11908_v52, %v11906_v35 }
 0x47c   : > { %v2330_v5 = vpop.f32.mrb[20].mxu1 }
 0x47d   : > { %9823 = vrot.lane.b32.xlu1 %v11914_v15, %s10528_s19  ;;  %v8777_v17 = vpop.f32.mrb[21].mxu1  ;;  %v11918_v2 = vmul.f32 0.5, %v2330_v5 }
 0x47f   : > { %15276 = vst [vmem:[#allocation48_spill] sm:$0xff] %v11918_v2 }
 0x480   : > { %v2335_v41 = vpop.f32.mrb[22].mxu1 }
 0x481   : > { %v11920_v47 = vmul.f32 0.5, %v2335_v41  ;;  %v8780_v42 = vpop.f32.mrb[23].mxu1  ;;  %v11922_v0 = vpack.i.bf16 %v2335_v41, %v2330_v5 }
 0x483   : > { %15277 = vst [vmem:[#allocation49_spill] sm:$0xff] %v11920_v47  ;;  %15278 = vst [vmem:[#allocation50_spill] sm:$0xff] %v11922_v0  ;;  %v11926_v61 = vpack.i.bf16 %v11920_v47, %v11918_v2 }
 0x484   : > { %v2340_v58 = vpop.f32.mrb[24].mxu1 }
 0x485   : > { %9828 = vrot.lane.b32.xlu0 %v11926_v61, %s10528_s19  ;;  %v8783_v18 = vpop.f32.mrb[25].mxu1  ;;  %v11930_v31 = vmul.f32 0.5, %v2340_v58 }
 0x487   : > { %15279 = vst [vmem:[#allocation51_spill] sm:$0xff] %v11930_v31 }
 0x488   : > { %v2345_v19 = vpop.f32.mrb[26].mxu1 }
 0x489   : > { %v11932_v56 = vmul.f32 0.5, %v2345_v19  ;;  %v8786_v25 = vpop.f32.mrb[27].mxu1  ;;  %v11934_v49 = vpack.i.bf16 %v2345_v19, %v2340_v58 }
 0x48b   : > { %15280 = vst [vmem:[#allocation52_spill] sm:$0xff] %v11932_v56  ;;  %15281 = vst [vmem:[#allocation53_spill] sm:$0xff] %v11934_v49  ;;  %v11938_v37 = vpack.i.bf16 %v11932_v56, %v11930_v31 }
 0x48c   : > { %v2350_v54 = vpop.f32.mrb[28].mxu1 }
 0x48d   : > { %9833 = vrot.lane.b32.xlu1 %v11938_v37, %s10528_s19  ;;  %v8789_v5 = vpop.f32.mrb[29].mxu1  ;;  %v11942_v41 = vmul.f32 0.5, %v2350_v54 }
 0x48f   : > { %15282 = vst [vmem:[#allocation54_spill] sm:$0xff] %v11942_v41 }
 0x490   : > { %v2355_v17 = vpop.f32.mrb[30].mxu1 }
 0x491   : > { %v11944_v42 = vmul.f32 0.5, %v2355_v17  ;;  %v8792_v18 = vpop.f32.mrb[31].mxu1  ;;  %v11946_v33 = vpack.i.bf16 %v2355_v17, %v2350_v54 }
 0x493   : > { %15283 = vst [vmem:[#allocation55_spill] sm:$0xff] %v11944_v42  ;;  %15284 = vst [vmem:[#allocation56_spill] sm:$0xff] %v11946_v33  ;;  %v11950_v58 = vpack.i.bf16 %v11944_v42, %v11942_v41 }
 0x494   : > { %v2360_v19 = vpop.f32.mrb[32].mxu1 }
 0x495   : > { %9838 = vrot.lane.b32.xlu0 %v11950_v58, %s10528_s19  ;;  %v8795_v25 = vpop.f32.mrb[33].mxu1  ;;  %v11954_v28 = vmul.f32 0.5, %v2360_v19 }
 0x497   : > { %15285 = vst [vmem:[#allocation57_spill] sm:$0xff] %v11954_v28 }
 0x498   : > { %v2365_v3 = vpop.f32.mrb[34].mxu1 }
 0x499   : > { %v11956_v5 = vmul.f32 0.5, %v2365_v3  ;;  %v8798_v10 = vpop.f32.mrb[35].mxu1  ;;  %v11958_v14 = vpack.i.bf16 %v2365_v3, %v2360_v19 }
 0x49b   : > { %15286 = vst [vmem:[#allocation58_spill] sm:$0xff] %v11956_v5  ;;  %15287 = vst [vmem:[#allocation59_spill] sm:$0xff] %v11958_v14  ;;  %v11962_v54 = vpack.i.bf16 %v11956_v5, %v11954_v28 }
 0x49c   : > { %v2370_v17 = vpop.f32.mrb[36].mxu1 }
 0x49d   : > { %9843 = vrot.lane.b32.xlu1 %v11962_v54, %s10528_s19  ;;  %v8801_v18 = vpop.f32.mrb[37].mxu1  ;;  %v11966_v43 = vmul.f32 0.5, %v2370_v17 }
 0x49f   : > { %15288 = vst [vmem:[#allocation60_spill] sm:$0xff] %v11966_v43 }
 0x4a0   : > { %v2375_v9 = vpop.f32.mrb[38].mxu1 }
 0x4a1   : > { %v11968_v25 = vmul.f32 0.5, %v2375_v9  ;;  %v8804_v55 = vpop.f32.mrb[39].mxu1  ;;  %v11970_v32 = vpack.i.bf16 %v2375_v9, %v2370_v17 }
 0x4a3   : > { %15289 = vst [vmem:[#allocation61_spill] sm:$0xff] %v11968_v25  ;;  %15290 = vst [vmem:[#allocation62_spill] sm:$0xff] %v11970_v32  ;;  %v11974_v10 = vpack.i.bf16 %v11968_v25, %v11966_v43 }
 0x4a4   : > { %v2380_v3 = vpop.f32.mrb[40].mxu1 }
 0x4a5   : > { %9848 = vrot.lane.b32.xlu0 %v11974_v10, %s10528_s19  ;;  %v8807_v19 = vpop.f32.mrb[41].mxu1  ;;  %v11978_v20 = vmul.f32 0.5, %v2380_v3 }
 0x4a7   : > { %15291 = vst [vmem:[#allocation63_spill] sm:$0xff] %v11978_v20 }
 0x4a8   : > { %v2385_v44 = vpop.f32.mrb[42].mxu1 }
 0x4a9   : > { %v11980_v18 = vmul.f32 0.5, %v2385_v44  ;;  %v8810_v51 = vpop.f32.mrb[43].mxu1  ;;  %v11982_v29 = vpack.i.bf16 %v2385_v44, %v2380_v3 }
 0x4ab   : > { %15292 = vst [vmem:[#allocation64_spill] sm:$0xff] %v11980_v18  ;;  %15293 = vst [vmem:[#allocation65_spill] sm:$0xff] %v11982_v29  ;;  %v11986_v55 = vpack.i.bf16 %v11980_v18, %v11978_v20 }
 0x4ac   : > { %v2390_v9 = vpop.f32.mrb[44].mxu1 }
 0x4ad   : > { %9853 = vrot.lane.b32.xlu1 %v11986_v55, %s10528_s19  ;;  %v8813_v17 = vpop.f32.mrb[45].mxu1  ;;  %v11990_v50 = vmul.f32 0.5, %v2390_v9 }
 0x4af   : > { %15294 = vst [vmem:[#allocation66_spill] sm:$0xff] %v11990_v50 }
 0x4b0   : > { %v2395_v11 = vpop.f32.mrb[46].mxu1 }
 0x4b1   : > { %v11992_v19 = vmul.f32 0.5, %v2395_v11  ;;  %v8816_v48 = vpop.f32.mrb[47].mxu1  ;;  %v11994_v34 = vpack.i.bf16 %v2395_v11, %v2390_v9 }
 0x4b3   : > { %15295 = vst [vmem:[#allocation67_spill] sm:$0xff] %v11992_v19  ;;  %15296 = vst [vmem:[#allocation68_spill] sm:$0xff] %v11994_v34  ;;  %v11998_v51 = vpack.i.bf16 %v11992_v19, %v11990_v50 }
 0x4b4   : > { %v12000_v44 = vpop.f32.mrb[48].mxu1 }
 0x4b5   : > { %15297 = vst [vmem:[#allocation69_spill] sm:$0xff] %v11998_v51  ;;  %15298 = vst [vmem:[#allocation70_spill] sm:$0xff] %v12000_v44  ;;  %9858 = vrot.lane.b32.xlu0 %v11998_v51, %s10528_s19  ;;  %v8819_v3 = vpop.f32.mrb[49].mxu1  ;;  %v12005_v17 = vmul.f32 0.5, %v12000_v44 }
 0x4b6   : > { %v15300_v3 = vmov 0 }
 0x4b7   : > { %15299 = vst [vmem:[#allocation71_spill] sm:$0xff] %v12005_v17  ;;  %2506 = vrot.lane.b32.xlu1 %v12005_v17, %s10528_s19  ;;  %v15301_v3 = vsel %vm12024_vm2, 4294967295, %v15300_v3 }
 0x4b8   : > { %15302 = vst [vmem:[#allocation72_spill] sm:$0xff] %v15301_v3 }
 0x4b9   : > { %9868 = vrot.lane.b32.xlu0 %v11874_v12, %s10529_s20 }
 0x4bb   : > { %9863 = vrot.lane.b32.xlu1 %v11862_v62, %s10529_s20 }
 0x4bd   : > { %9873 = vrot.lane.b32.xlu0 %v11886_v53, %s10529_s20 }
 0x4bf   : > { %9878 = vrot.lane.b32.xlu1 %v11898_v46, %s10529_s20 }
 0x4c1   : > { %9883 = vrot.lane.b32.xlu0 %v11910_v6, %s10529_s20 }
 0x4c3   : > { %9893 = vrot.lane.b32.xlu1 %v11934_v49, %s10529_s20 }
 0x4c5   : > { %9888 = vrot.lane.b32.xlu0 %v11922_v0, %s10529_s20 }
 0x4c7   : > { %9903 = vrot.lane.b32.xlu1 %v11958_v14, %s10529_s20 }
 0x4c9   : > { %9898 = vrot.lane.b32.xlu0 %v11946_v33, %s10529_s20 }
 0x4cb   : > { %9913 = vrot.lane.b32.xlu1 %v11982_v29, %s10529_s20 }
 0x4cd   : > { %9908 = vrot.lane.b32.xlu0 %v11970_v32, %s10529_s20 }
 0x4cf   : > { %v9804_v48 = vpop.permute.xlu1 %9803  ;;  %3322 = vrot.lane.b32.xlu1 %v12000_v44, %s10529_s20 }
 0x4d0   : > { %v9806_v11 = vunpack.i.h.bf16 %v9804_v48  ;;  %v9805_v9 = vunpack.i.l.bf16 %v9804_v48 }
 0x4d1   : > { %9918 = vrot.lane.b32.xlu0 %v11994_v34, %s10529_s20  ;;  %s285_s20 = scalar_lea.vmem %s15015_s2, %s10634_s21 }
 0x4d2   : > { %v9251_v21 = vpack.c.bf16 %v9806_v11, %v9805_v9 }
 0x4d3   : > { %9928 = vrot.lane.b32.xlu1 %v11878_v4, %s10530_s22 }
 0x4d4   : > { %9253 = vmatpush1.bf16.xpose.msk.msra.mxu0 %vm12024_vm2, %v9251_v21  ;;  %9461 = vmatpush1.bf16.xpose.msk.msra.mxu1 %vm12024_vm2, %v9251_v21 }
 0x4d5   : > { %9923 = vrot.lane.b32.xlu0 %v11866_v63, %s10530_s22  ;;  %9254 = vmatprep.subr.bf16.mxu0 %v15189_v24 }
 0x4d6   : > { %9449 = vmatprep.subr.bf16.mxu1 %v15189_v24 }
 0x4d7   : > { %v9809_v48 = vpop.permute.xlu0 %9808  ;;  %9938 = vrot.lane.b32.xlu1 %v11902_v60, %s10530_s22 }
 0x4d8   : > { %v9811_v11 = vunpack.i.h.bf16 %v9809_v48  ;;  %v9810_v9 = vunpack.i.l.bf16 %v9809_v48 }
 0x4d9   : > { %9933 = vrot.lane.b32.xlu0 %v11890_v7, %s10530_s22 }
 0x4da   : > { %v9255_v4 = vpack.c.bf16 %v9811_v11, %v9810_v9 }
 0x4db   : > { %9948 = vrot.lane.b32.xlu1 %v11926_v61, %s10530_s22 }
 0x4dc   : > { %9257 = vmatpush1.bf16.xpose.msk.msra.mxu0 %vm12024_vm2, %v9255_v4  ;;  %9462 = vmatpush1.bf16.xpose.msk.msra.mxu1 %vm12024_vm2, %v9255_v4 }
 0x4dd   : > { %9943 = vrot.lane.b32.xlu0 %v11914_v15, %s10530_s22  ;;  %9258 = vmatprep.subr.bf16.mxu0 %v15189_v24 }
 0x4de   : > { %9450 = vmatprep.subr.bf16.mxu1 %v15189_v24 }
 0x4df   : > { %v9814_v21 = vpop.permute.xlu1 %9813 }
 0x4e0   : > { %v9816_v63 = vunpack.i.h.bf16 %v9814_v21  ;;  %v9815_v7 = vunpack.i.l.bf16 %v9814_v21 }
 0x4e2   : > { %v9259_v60 = vpack.c.bf16 %v9816_v63, %v9815_v7 }
 0x4e4   : > { %9261 = vmatpush1.bf16.xpose.msk.msra.mxu0 %vm12024_vm2, %v9259_v60  ;;  %9463 = vmatpush1.bf16.xpose.msk.msra.mxu1 %vm12024_vm2, %v9259_v60 }
 0x4e5   : > { %9262 = vmatprep.subr.bf16.mxu0 %v15189_v24  ;;  %9451 = vmatprep.subr.bf16.mxu1 %v15189_v24 }
 0x4e7   : > { %v9819_v61 = vpop.permute.xlu0 %9818 }
 0x4e8   : > { %v9821_v15 = vunpack.i.h.bf16 %v9819_v61  ;;  %v9820_v48 = vunpack.i.l.bf16 %v9819_v61 }
 0x4ea   : > { %v9263_v11 = vpack.c.bf16 %v9821_v15, %v9820_v48 }
 0x4ec   : > { %9265 = vmatpush1.bf16.xpose.msk.msra.mxu0 %vm12024_vm2, %v9263_v11  ;;  %9464 = vmatpush1.bf16.xpose.msk.msra.mxu1 %vm12024_vm2, %v9263_v11 }
 0x4ed   : > { %9266 = vmatprep.subr.bf16.mxu0 %v15189_v24  ;;  %9452 = vmatprep.subr.bf16.mxu1 %v15189_v24 }
 0x4ef   : > { %v9824_v9 = vpop.permute.xlu1 %9823 }
 0x4f0   : > { %v9826_v4 = vunpack.i.h.bf16 %v9824_v9  ;;  %v9825_v21 = vunpack.i.l.bf16 %v9824_v9 }
 0x4f2   : > { %v9267_v63 = vpack.c.bf16 %v9826_v4, %v9825_v21 }
 0x4f4   : > { %9269 = vmatpush1.bf16.xpose.msk.msra.mxu0 %vm12024_vm2, %v9267_v63  ;;  %9465 = vmatpush1.bf16.xpose.msk.msra.mxu1 %vm12024_vm2, %v9267_v63 }
 0x4f5   : > { %9270 = vmatprep.subr.bf16.mxu0 %v15189_v24  ;;  %9453 = vmatprep.subr.bf16.mxu1 %v15189_v24 }
 0x4f7   : > { %v9829_v7 = vpop.permute.xlu0 %9828 }
 0x4f8   : > { %v9831_v60 = vunpack.i.h.bf16 %v9829_v7  ;;  %v9830_v61 = vunpack.i.l.bf16 %v9829_v7 }
 0x4fa   : > { %v9271_v15 = vpack.c.bf16 %v9831_v60, %v9830_v61 }
 0x4fc   : > { %9273 = vmatpush1.bf16.xpose.msk.msra.mxu0 %vm12024_vm2, %v9271_v15  ;;  %9466 = vmatpush1.bf16.xpose.msk.msra.mxu1 %vm12024_vm2, %v9271_v15 }
 0x4fd   : > { %9274 = vmatprep.subr.bf16.mxu0 %v15189_v24  ;;  %9454 = vmatprep.subr.bf16.mxu1 %v15189_v24 }
 0x4ff   : > { %v9834_v48 = vpop.permute.xlu1 %9833 }
 0x500   : > { %v9836_v11 = vunpack.i.h.bf16 %v9834_v48  ;;  %v9835_v9 = vunpack.i.l.bf16 %v9834_v48 }
 0x502   : > { %v9275_v4 = vpack.c.bf16 %v9836_v11, %v9835_v9 }
 0x504   : > { %9277 = vmatpush1.bf16.xpose.msk.msra.mxu0 %vm12024_vm2, %v9275_v4  ;;  %9467 = vmatpush1.bf16.xpose.msk.msra.mxu1 %vm12024_vm2, %v9275_v4 }
 0x505   : > { %9278 = vmatprep.subr.bf16.mxu0 %v15189_v24  ;;  %9455 = vmatprep.subr.bf16.mxu1 %v15189_v24 }
 0x507   : > { %v9839_v21 = vpop.permute.xlu0 %9838 }
 0x508   : > { %v9841_v63 = vunpack.i.h.bf16 %v9839_v21  ;;  %v9840_v7 = vunpack.i.l.bf16 %v9839_v21 }
 0x50a   : > { %v9279_v60 = vpack.c.bf16 %v9841_v63, %v9840_v7 }
 0x50c   : > { %9281 = vmatpush1.bf16.xpose.msk.msra.mxu0 %vm12024_vm2, %v9279_v60  ;;  %9468 = vmatpush1.bf16.xpose.msk.msra.mxu1 %vm12024_vm2, %v9279_v60 }
 0x50d   : > { %9282 = vmatprep.subr.bf16.mxu0 %v15189_v24  ;;  %9456 = vmatprep.subr.bf16.mxu1 %v15189_v24 }
 0x50f   : > { %v9844_v61 = vpop.permute.xlu1 %9843 }
 0x510   : > { %v9846_v15 = vunpack.i.h.bf16 %v9844_v61  ;;  %v9845_v48 = vunpack.i.l.bf16 %v9844_v61 }
 0x512   : > { %v9283_v11 = vpack.c.bf16 %v9846_v15, %v9845_v48 }
 0x514   : > { %9285 = vmatpush1.bf16.xpose.msk.msra.mxu0 %vm12024_vm2, %v9283_v11  ;;  %9469 = vmatpush1.bf16.xpose.msk.msra.mxu1 %vm12024_vm2, %v9283_v11 }
 0x515   : > { %9286 = vmatprep.subr.bf16.mxu0 %v15189_v24  ;;  %9457 = vmatprep.subr.bf16.mxu1 %v15189_v24 }
 0x517   : > { %v9849_v9 = vpop.permute.xlu0 %9848 }
 0x518   : > { %v9851_v4 = vunpack.i.h.bf16 %v9849_v9  ;;  %v9850_v21 = vunpack.i.l.bf16 %v9849_v9 }
 0x51a   : > { %v9287_v63 = vpack.c.bf16 %v9851_v4, %v9850_v21 }
 0x51c   : > { %9289 = vmatpush1.bf16.xpose.msk.msra.mxu0 %vm12024_vm2, %v9287_v63  ;;  %9470 = vmatpush1.bf16.xpose.msk.msra.mxu1 %vm12024_vm2, %v9287_v63  ;;  %v15303_v63 = vmov 0.0  }
 0x51d   : > { %9290 = vmatprep.subr.bf16.mxu0 %v15189_v24  ;;  %9458 = vmatprep.subr.bf16.mxu1 %v15189_v24 }
 0x51f   : > { %v9854_v7 = vpop.permute.xlu1 %9853 }
 0x520   : > { %v9856_v60 = vunpack.i.h.bf16 %v9854_v7  ;;  %v9855_v61 = vunpack.i.l.bf16 %v9854_v7 }
 0x522   : > { %v9291_v15 = vpack.c.bf16 %v9856_v60, %v9855_v61 }
 0x524   : > { %9293 = vmatpush1.bf16.xpose.msk.msra.mxu0 %vm12024_vm2, %v9291_v15  ;;  %9471 = vmatpush1.bf16.xpose.msk.msra.mxu1 %vm12024_vm2, %v9291_v15 }
 0x525   : > { %9294 = vmatprep.subr.bf16.mxu0 %v15189_v24  ;;  %9459 = vmatprep.subr.bf16.mxu1 %v15189_v24 }
 0x527   : > { %v9859_v48 = vpop.permute.xlu0 %9858 }
 0x528   : > { %v9861_v11 = vunpack.i.h.bf16 %v9859_v48  ;;  %v9860_v9 = vunpack.i.l.bf16 %v9859_v48 }
 0x529   : > { %v2507_v4 = vpop.permute.xlu1 %2506 }
 0x52a   : > { %v9295_v21 = vpack.c.bf16 %v9861_v11, %v9860_v9 }
 0x52b   : > { %v9869_v60 = vpop.permute.xlu0 %9868 }
 0x52c   : > { %9297 = vmatpush1.bf16.xpose.msk.msra.mxu0 %vm12024_vm2, %v9295_v21  ;;  %9472 = vmatpush1.bf16.xpose.msk.msra.mxu1 %vm12024_vm2, %v9295_v21  ;;  %v9871_v48 = vunpack.i.h.bf16 %v9869_v60  ;;  %v9870_v11 = vunpack.i.l.bf16 %v9869_v60 }
 0x52d   : > { %2656 = vmatprep.subr.mxu0 %v15303_v63  ;;  %9460 = vmatprep.subr.mxu1 %v15303_v63  ;;  %v9864_v7 = vpop.permute.xlu1 %9863 }
 0x52e   : > { %v9866_v61 = vunpack.i.h.bf16 %v9864_v7  ;;  %v9865_v15 = vunpack.i.l.bf16 %v9864_v7 }
 0x52f   : > { %v9874_v21 = vpop.permute.xlu0 %9873 }
 0x530   : > { %v9299_v9 = vpack.c.bf16 %v9866_v61, %v9865_v15  ;;  %v9876_v7 = vunpack.i.h.bf16 %v9874_v21  ;;  %v9875_v30 = vunpack.i.l.bf16 %v9874_v21 }
 0x531   : > { %v9879_v8 = vpop.permute.xlu1 %9878 }
 0x532   : > { %v9305_v61 = vpack.c.bf16 %v9876_v7, %v9875_v30  ;;  %v9881_v15 = vunpack.i.h.bf16 %v9879_v8 }
 0x533   : > { %v9884_v60 = vpop.permute.xlu0 %9883 }
 0x534   : > { %7613 = vmatpush1.xpose.msk.msra.mxu0 %vm2138_vm14, %v2507_v4  ;;  %9473 = vmatpush1.xpose.msk.msra.mxu1 %vm2138_vm14, %v2507_v4  ;;  %v9302_v4 = vpack.c.bf16 %v9871_v48, %v9870_v11  ;;  %v9880_v48 = vunpack.i.l.bf16 %v9879_v8  ;;  %v9885_v21 = vunpack.i.l.bf16 %v9884_v60 }
 0x535   : > { %9298 = vmatprep.subr.bf16.mxu1 %v15189_v24  ;;  %9424 = vmatprep.subr.bf16.mxu0 %v15189_v24 }
 0x536   : > { %v9308_v11 = vpack.c.bf16 %v9881_v15, %v9880_v48 }
 0x537   : > { %7614 = vmatmul.mubr.msk.f32.vlgmr.msra.gmra.mrb[50].mxu0 %vm2138_vm14, %v11858_v36  ;;  %7621 = vmatmul.mubr.msk.f32.vlgmr.msra.gmra.mrb[50].mxu1 %vm2138_vm14, %v11896_v40 }
 0x538   : > { %9300 = vmatpush1.bf16.msra.mxu1 %v9299_v9  ;;  %2678 = vmatprep.mubr.f32.mxu0 %v15303_v63  ;;  %v9886_v9 = vunpack.i.h.bf16 %v9884_v60 }
 0x539   : > { %2720 = vmatprep.mubr.f32.mxu1 %v15303_v63  ;;  %9301 = vmatprep.subr.bf16.mxu1 %v15189_v24 }
 0x53a   : > { %v9311_v8 = vpack.c.bf16 %v9886_v9, %v9885_v21 }
 0x53b   : > { %7615 = vmatmul.mubr.msk.f32.gmra.mrb[52].mxu0 %vm2138_vm14, %v11860_v39  ;;  %7622 = vmatmul.mubr.msk.f32.gmra.mrb[52].mxu1 %vm2138_vm14, %v11906_v35 }
 0x53c   : > { %9303 = vmatpush1.bf16.msra.mxu1 %v9302_v4  ;;  %2684 = vmatprep.mubr.f32.mxu0 %v15303_v63  ;;  %v9889_v4 = vpop.permute.xlu0 %9888 }
 0x53d   : > { %2726 = vmatprep.mubr.f32.mxu1 %v15303_v63  ;;  %9304 = vmatprep.subr.bf16.mxu1 %v15189_v24  ;;  %v9891_v30 = vunpack.i.h.bf16 %v9889_v4  ;;  %v9890_v7 = vunpack.i.l.bf16 %v9889_v4 }
 0x53f   : > { %7616 = vmatmul.mubr.msk.f32.gmra.mrb[54].mxu0 %vm2138_vm14, %v11870_v26  ;;  %7623 = vmatmul.mubr.msk.f32.gmra.mrb[54].mxu1 %vm2138_vm14, %v11908_v52  ;;  %v9314_v48 = vpack.c.bf16 %v9891_v30, %v9890_v7 }
 0x540   : > { %9306 = vmatpush1.bf16.msra.mxu1 %v9305_v61  ;;  %2690 = vmatprep.mubr.f32.mxu0 %v15303_v63  ;;  %v9894_v61 = vpop.permute.xlu1 %9893 }
 0x541   : > { %2732 = vmatprep.mubr.f32.mxu1 %v15303_v63  ;;  %9307 = vmatprep.subr.bf16.mxu1 %v15189_v24  ;;  %v9896_v60 = vunpack.i.h.bf16 %v9894_v61  ;;  %v9895_v15 = vunpack.i.l.bf16 %v9894_v61 }
 0x543   : > { %7617 = vmatmul.mubr.msk.f32.gmra.mrb[56].mxu0 %vm2138_vm14, %v11872_v23  ;;  %7624 = vmatmul.mubr.msk.f32.gmra.mrb[56].mxu1 %vm2138_vm14, %v11918_v2  ;;  %v9317_v9 = vpack.c.bf16 %v9896_v60, %v9895_v15 }
 0x544   : > { %9309 = vmatpush1.bf16.msra.mxu1 %v9308_v11  ;;  %2696 = vmatprep.mubr.f32.mxu0 %v15303_v63  ;;  %v9899_v11 = vpop.permute.xlu0 %9898 }
 0x545   : > { %2738 = vmatprep.mubr.f32.mxu1 %v15303_v63  ;;  %9310 = vmatprep.subr.bf16.mxu1 %v15189_v24  ;;  %v9901_v21 = vunpack.i.h.bf16 %v9899_v11  ;;  %v9900_v4 = vunpack.i.l.bf16 %v9899_v11 }
 0x547   : > { %7618 = vmatmul.mubr.msk.f32.gmra.mrb[58].mxu0 %vm2138_vm14, %v11882_v13  ;;  %7625 = vmatmul.mubr.msk.f32.gmra.mrb[58].mxu1 %vm2138_vm14, %v11920_v47  ;;  %v9320_v61 = vpack.c.bf16 %v9901_v21, %v9900_v4 }
 0x548   : > { %9312 = vmatpush1.bf16.msra.mxu1 %v9311_v8  ;;  %2702 = vmatprep.mubr.f32.mxu0 %v15303_v63  ;;  %v9904_v8 = vpop.permute.xlu1 %9903  ;;  %v9909_v60 = vpop.permute.xlu0 %9908 }
 0x549   : > { %2744 = vmatprep.mubr.f32.mxu1 %v15303_v63  ;;  %9313 = vmatprep.subr.bf16.mxu1 %v15189_v24  ;;  %v9906_v30 = vunpack.i.h.bf16 %v9904_v8  ;;  %v9905_v7 = vunpack.i.l.bf16 %v9904_v8  ;;  %v9910_v11 = vunpack.i.l.bf16 %v9909_v60 }
 0x54b   : > { %7619 = vmatmul.mubr.msk.f32.gmra.mrb[60].mxu0 %vm2138_vm14, %v11884_v38  ;;  %7626 = vmatmul.mubr.msk.f32.gmra.mrb[60].mxu1 %vm2138_vm14, %v11930_v31  ;;  %v9323_v15 = vpack.c.bf16 %v9906_v30, %v9905_v7 }
 0x54c   : > { %9315 = vmatpush1.bf16.msra.mxu1 %v9314_v48  ;;  %2708 = vmatprep.mubr.f32.mxu0 %v15303_v63  ;;  %v9911_v48 = vunpack.i.h.bf16 %v9909_v60 }
 0x54d   : > { %2750 = vmatprep.mubr.f32.mxu1 %v15303_v63  ;;  %9316 = vmatprep.subr.bf16.mxu1 %v15189_v24 }
 0x54e   : > { %v9326_v8 = vpack.c.bf16 %v9911_v48, %v9910_v11 }
 0x54f   : > { %7620 = vmatmul.mubr.msk.f32.gmra.mrb[62].mxu0 %vm2138_vm14, %v11894_v27  ;;  %7627 = vmatmul.mubr.msk.f32.gmra.mrb[62].mxu1 %vm2138_vm14, %v11932_v56 }
 0x550   : > { %9318 = vmatpush1.bf16.msra.mxu1 %v9317_v9  ;;  %2756 = vmatprep.mubr.f32.mxu1 %v15303_v63  ;;  %v9914_v9 = vpop.permute.xlu1 %9913 }
 0x551   : > { %9319 = vmatprep.subr.bf16.mxu1 %v15189_v24  ;;  %8982 = vmatprep.mubr.msk.f32.mxu0 %vm10526_vm1, %v15303_v63  ;;  %v9916_v21 = vunpack.i.h.bf16 %v9914_v9  ;;  %v9915_v4 = vunpack.i.l.bf16 %v9914_v9 }
 0x553   : > { %7628 = vmatmul.mubr.msk.f32.gmra.mrb[64].mxu1 %vm2138_vm14, %v11942_v41  ;;  %v9329_v30 = vpack.c.bf16 %v9916_v21, %v9915_v4 }
 0x554   : > { %9321 = vmatpush1.bf16.msra.mxu1 %v9320_v61  ;;  %2762 = vmatprep.mubr.f32.mxu1 %v15303_v63  ;;  %v9919_v61 = vpop.permute.xlu0 %9918  ;;  %v3323_v48 = vpop.permute.xlu1 %3322 }
 0x555   : > { %9322 = vmatprep.subr.bf16.mxu1 %v15189_v24  ;;  %v9921_v7 = vunpack.i.h.bf16 %v9919_v61  ;;  %v9920_v60 = vunpack.i.l.bf16 %v9919_v61 }
 0x557   : > { %7629 = vmatmul.mubr.msk.f32.gmra.mrb[66].mxu1 %vm2138_vm14, %v11944_v42 }
 0x558   : > { %9324 = vmatpush1.bf16.msra.mxu1 %v9323_v15  ;;  %2768 = vmatprep.mubr.f32.mxu1 %v15303_v63  ;;  %v9332_v15 = vpack.c.bf16 %v9921_v7, %v9920_v60 }
 0x559   : > { %9325 = vmatprep.subr.bf16.mxu1 %v15189_v24 }
 0x55b   : > { %7630 = vmatmul.mubr.msk.f32.gmra.mrb[68].mxu1 %vm2138_vm14, %v11954_v28 }
 0x55c   : > { %9327 = vmatpush1.bf16.msra.mxu1 %v9326_v8  ;;  %2774 = vmatprep.mubr.f32.mxu1 %v15303_v63 }
 0x55d   : > { %9328 = vmatprep.subr.bf16.mxu1 %v15189_v24 }
 0x55f   : > { %7631 = vmatmul.mubr.msk.f32.gmra.mrb[70].mxu1 %vm2138_vm14, %v11956_v5 }
 0x560   : > { %9330 = vmatpush1.bf16.msra.mxu1 %v9329_v30  ;;  %2780 = vmatprep.mubr.f32.mxu1 %v15303_v63 }
 0x561   : > { %9331 = vmatprep.subr.bf16.mxu1 %v15189_v24 }
 0x563   : > { %7632 = vmatmul.mubr.msk.f32.gmra.mrb[72].mxu1 %vm2138_vm14, %v11966_v43 }
 0x564   : > { %9333 = vmatpush1.bf16.msra.mxu1 %v9332_v15  ;;  %2786 = vmatprep.mubr.f32.mxu1 %v15303_v63 }
 0x565   : > { %3472 = vmatprep.subr.mxu1 %v15303_v63 }
 0x567   : > { %7633 = vmatmul.mubr.msk.f32.gmra.mrb[74].mxu1 %vm2138_vm14, %v11968_v25 }
 0x568   : > { %3473 = vmatpush1.msra.mxu1 %v3323_v48  ;;  %2792 = vmatprep.mubr.f32.mxu1 %v15303_v63 }
 0x569   : > { %9334 = vmatprep.subr.bf16.mxu1 %v15189_v24 }
 0x56b   : > { %7634 = vmatmul.mubr.msk.f32.gmra.mrb[76].mxu1 %vm2138_vm14, %v11978_v20 }
 0x56c   : > { %2798 = vmatprep.mubr.f32.mxu1 %v15303_v63 }
 0x56f   : > { %7635 = vmatmul.mubr.msk.f32.gmra.mrb[78].mxu1 %vm2138_vm14, %v11980_v18 }
 0x570   : > { %2804 = vmatprep.mubr.f32.mxu1 %v15303_v63 }
 0x573   : > { %7636 = vmatmul.mubr.msk.f32.gmra.mrb[80].mxu1 %vm2138_vm14, %v11990_v50 }
 0x574   : > { %2810 = vmatprep.mubr.f32.mxu1 %v15303_v63 }
 0x577   : > { %7637 = vmatmul.mubr.msk.f32.gmra.mrb[82].mxu1 %vm2138_vm14, %v11992_v19 }
 0x578   : > { %2816 = vmatprep.mubr.f32.mxu1 %v15303_v63 }
 0x57b   : > { %7638 = vmatmul.mubr.msk.f32.gmra.mrb[84].mxu1 %vm2138_vm14, %v12005_v17 }
 0x60a   : > { %v12204_v11 = vpop.f32.mrb[50].mxu0  ;;  %v12206_v9 = vpop.f32.mrb[50].mxu1 }
 0x60b   : > { %v12208_v21 = vpop.f32.mrb[51].mxu0  ;;  %v12210_v4 = vpop.f32.mrb[51].mxu1 }
 0x60c   : > { %v2824_v8 = vsel %vm2823_vm15, %v12208_v21, -inf  ;;  %v2852_v61 = vsel %vm2823_vm15, %v12210_v4, -inf }
 0x60d   : > { %v2825_v30 = vmax.f32 %v12204_v11, %v2824_v8  ;;  %v2853_v7 = vmax.f32 %v12206_v9, %v2852_v61 }
 0x60e   : > { %v12218_v60 = vpop.f32.mrb[52].mxu0  ;;  %v12220_v15 = vpop.f32.mrb[52].mxu1 }
 0x60f   : > { %v12222_v48 = vpop.f32.mrb[53].mxu1  ;;  %2826 = vmax.xlane.f32.xlu0 %v2825_v30  ;;  %v12224_v16 = vpop.f32.mrb[53].mxu0 }
 0x610   : > { %v2828_v22 = vsel %vm2823_vm15, %v12224_v16, -inf  ;;  %v2856_v1 = vsel %vm2823_vm15, %v12222_v48, -inf }
 0x611   : > { %v2829_v57 = vmax.f32 %v12218_v60, %v2828_v22  ;;  %v2857_v8 = vmax.f32 %v12220_v15, %v2856_v1 }
 0x612   : > { %v12232_v61 = vpop.f32.mrb[54].mxu0  ;;  %v12234_v59 = vpop.f32.mrb[54].mxu1 }
 0x613   : > { %v12236_v45 = vpop.f32.mrb[55].mxu1  ;;  %2854 = vmax.xlane.f32.xlu0 %v2853_v7  ;;  %2830 = vmax.xlane.f32.xlu1 %v2829_v57  ;;  %v12238_v30 = vpop.f32.mrb[55].mxu0 }
 0x614   : > { %v2832_v44 = vsel %vm2823_vm15, %v12238_v30, -inf  ;;  %v2860_v34 = vsel %vm2823_vm15, %v12236_v45, -inf }
 0x615   : > { %v2833_v22 = vmax.f32 %v12232_v61, %v2832_v44  ;;  %v2861_v1 = vmax.f32 %v12234_v59, %v2860_v34 }
 0x616   : > { %v12246_v29 = vpop.f32.mrb[56].mxu0  ;;  %v12248_v32 = vpop.f32.mrb[56].mxu1 }
 0x617   : > { %v12250_v33 = vpop.f32.mrb[57].mxu1  ;;  %2858 = vmax.xlane.f32.xlu1 %v2857_v8  ;;  %2834 = vmax.xlane.f32.xlu0 %v2833_v22  ;;  %v12252_v57 = vpop.f32.mrb[57].mxu0 }
 0x618   : > { %v2836_v7 = vsel %vm2823_vm15, %v12252_v57, -inf  ;;  %v2864_v14 = vsel %vm2823_vm15, %v12250_v33, -inf }
 0x619   : > { %v2865_v44 = vmax.f32 %v12248_v32, %v2864_v14  ;;  %v2837_v34 = vmax.f32 %v12246_v29, %v2836_v7 }
 0x61a   : > { %v12260_v63 = vpop.f32.mrb[58].mxu0  ;;  %v12262_v49 = vpop.f32.mrb[58].mxu1 }
 0x61b   : > { %v12264_v46 = vpop.f32.mrb[59].mxu1  ;;  %2866 = vmax.xlane.f32.xlu1 %v2865_v44  ;;  %2862 = vmax.xlane.f32.xlu0 %v2861_v1  ;;  %v12266_v8 = vpop.f32.mrb[59].mxu0 }
 0x61c   : > { %v2840_v22 = vsel %vm2823_vm15, %v12266_v8, -inf  ;;  %v2868_v62 = vsel %vm2823_vm15, %v12264_v46, -inf }
 0x61d   : > { %v2841_v14 = vmax.f32 %v12260_v63, %v2840_v22  ;;  %v2869_v7 = vmax.f32 %v12262_v49, %v2868_v62 }
 0x61e   : > { %v12274_v19 = vpop.f32.mrb[60].mxu0  ;;  %v12276_v18 = vpop.f32.mrb[60].mxu1 }
 0x61f   : > { %v12278_v25 = vpop.f32.mrb[61].mxu1  ;;  %2838 = vmax.xlane.f32.xlu0 %v2837_v34  ;;  %2842 = vmax.xlane.f32.xlu1 %v2841_v14  ;;  %v12280_v1 = vpop.f32.mrb[61].mxu0 }
 0x620   : > { %v2844_v44 = vsel %vm2823_vm15, %v12280_v1, -inf  ;;  %v2872_v5 = vsel %vm2823_vm15, %v12278_v25, -inf }
 0x621   : > { %v2845_v22 = vmax.f32 %v12274_v19, %v2844_v44  ;;  %v2873_v62 = vmax.f32 %v12276_v18, %v2872_v5 }
 0x622   : > { %v12288_v42 = vpop.f32.mrb[62].mxu0  ;;  %v12290_v56 = vpop.f32.mrb[62].mxu1 }
 0x623   : > { %v12292_v47 = vpop.f32.mrb[63].mxu1  ;;  %2870 = vmax.xlane.f32.xlu0 %v2869_v7  ;;  %v12294_v34 = vpop.f32.mrb[63].mxu0 }
 0x624   : > { %v2848_v14 = vsel %vm2823_vm15, %v12294_v34, -inf  ;;  %v2876_v52 = vsel %vm2823_vm15, %v12292_v47, -inf }
 0x625   : > { %v2849_v40 = vmax.f32 %v12288_v42, %v2848_v14  ;;  %v2877_v44 = vmax.f32 %v12290_v56, %v2876_v52 }
 0x626   : > { %v12302_v5 = vpop.f32.mrb[64].mxu1 }
 0x627   : > { %v12304_v38 = vpop.f32.mrb[65].mxu1  ;;  %2846 = vmax.xlane.f32.xlu0 %v2845_v22 }
 0x628   : > { %v2880_v7 = vsel %vm2823_vm15, %v12304_v38, -inf }
 0x629   : > { %v2881_v0 = vmax.f32 %v12302_v5, %v2880_v7 }
 0x62a   : > { %v12309_v23 = vpop.f32.mrb[66].mxu1 }
 0x62b   : > { %v12311_v6 = vpop.f32.mrb[67].mxu1 }
 0x62c   : > { %v2884_v26 = vsel %vm2823_vm15, %v12311_v6, -inf }
 0x62d   : > { %v2885_v14 = vmax.f32 %v12309_v23, %v2884_v26 }
 0x62e   : > { %v12316_v52 = vpop.f32.mrb[68].mxu1 }
 0x62f   : > { %v12318_v53 = vpop.f32.mrb[69].mxu1 }
 0x630   : > { %9958 = vrot.lane.b32.xlu1 %v11950_v58, %s10530_s22  ;;  %v2888_v22 = vsel %vm2823_vm15, %v12318_v53, -inf }
 0x631   : > { %v2889_v7 = vmax.f32 %v12316_v52, %v2888_v22 }
 0x632   : > { %v12325_v39 = vpop.f32.mrb[70].mxu1 }
 0x633   : > { %v12327_v12 = vpop.f32.mrb[71].mxu1 }
 0x634   : > { %v2892_v50 = vsel %vm2823_vm15, %v12327_v12, -inf }
 0x635   : > { %v2893_v26 = vmax.f32 %v12325_v39, %v2892_v50 }
 0x636   : > { %v12332_v20 = vpop.f32.mrb[72].mxu1 }
 0x637   : > { %v12334_v43 = vpop.f32.mrb[73].mxu1 }
 0x638   : > { %v2896_v58 = vsel %vm2823_vm15, %v12334_v43, -inf }
 0x639   : > { %v2897_v28 = vmax.f32 %v12332_v20, %v2896_v58 }
 0x63a   : > { %v12339_v41 = vpop.f32.mrb[74].mxu1 }
 0x63b   : > { %15304 = vst [vmem:[#allocation73_spill] sm:$0xff] %v12339_v41  ;;  %v12341_v22 = vpop.f32.mrb[75].mxu1 }
 0x63c   : > { %v2900_v31 = vsel %vm2823_vm15, %v12341_v22, -inf }
 0x63d   : > { %9953 = vrot.lane.b32.xlu0 %v11938_v37, %s10530_s22  ;;  %v2901_v50 = vmax.f32 %v12339_v41, %v2900_v31 }
 0x63e   : > { %v12348_v2 = vpop.f32.mrb[76].mxu1 }
 0x63f   : > { %15305 = vst [vmem:[#allocation74_spill] sm:$0xff] %v12348_v2  ;;  %v12350_v35 = vpop.f32.mrb[77].mxu1 }
 0x640   : > { %15306 = vst [vmem:[#allocation75_spill] sm:$0xff] %v12350_v35  ;;  %v2904_v27 = vsel %vm2823_vm15, %v12350_v35, -inf }
 0x641   : > { %v2905_v58 = vmax.f32 %v12348_v2, %v2904_v27 }
 0x642   : > { %v12355_v13 = vpop.f32.mrb[78].mxu1 }
 0x643   : > { %15307 = vst [vmem:[#allocation76_spill] sm:$0xff] %v12355_v13  ;;  %v12357_v51 = vpop.f32.mrb[79].mxu1 }
 0x644   : > { %15308 = vst [vmem:[#allocation77_spill] sm:$0xff] %v12357_v51  ;;  %v2908_v36 = vsel %vm2823_vm15, %v12357_v51, -inf }
 0x645   : > { %v2909_v37 = vmax.f32 %v12355_v13, %v2908_v36 }
 0x646   : > { %v12362_v17 = vpop.f32.mrb[80].mxu1 }
 0x647   : > { %v12364_v31 = vpop.f32.mrb[81].mxu1 }
 0x648   : > { %15309 = vst [vmem:[#allocation78_spill] sm:$0xff] %v12364_v31  ;;  %v2912_v24 = vsel %vm2823_vm15, %v12364_v31, -inf }
 0x649   : > { %v2913_v3 = vmax.f32 %v12362_v17, %v2912_v24  ;;  %v12383_v24 = vpop.permute.xlu0 %9923 }
 0x64a   : > { %v12369_v41 = vpop.f32.mrb[82].mxu1 }
 0x64b   : > { %v12371_v27 = vpop.f32.mrb[83].mxu1 }
 0x64c   : > { %v2916_v2 = vsel %vm2823_vm15, %v12371_v27, -inf }
 0x64d   : > { %v2917_v51 = vmax.f32 %v12369_v41, %v2916_v2  ;;  %v12385_v2 = vpop.permute.xlu1 %9928 }
 0x64e   : > { %v12376_v35 = vpop.f32.mrb[84].mxu1 }
 0x64f   : > { %15310 = vst [vmem:[#allocation79_spill] sm:$0xff] %v12376_v35  ;;  %v12378_v36 = vpop.f32.mrb[85].mxu1 }
 0x650   : > { %15311 = vst [vmem:[#allocation80_spill] sm:$0xff] %v12378_v36  ;;  %v2920_v13 = vsel %vm2823_vm15, %v12378_v36, -inf  ;;  %v12387_v36 = vpop.permute.xlu0 %9933 }
 0x651   : > { %v2921_v31 = vmax.f32 %v12376_v35, %v2920_v13  ;;  %v12389_v13 = vpop.permute.xlu1 %9938 }
 0x654   : > { %2874 = vmax.xlane.f32.xlu1 %v2873_v62 }
 0x658   : > { %2850 = vmax.xlane.f32.xlu1 %v2849_v40  ;;  %v12391_v40 = vpop.permute.xlu0 %9943 }
 0x659   : > { %15312 = vst [vmem:[#allocation81_spill] sm:$0xff] %v12391_v40 }
 0x65c   : > { %2878 = vmax.xlane.f32.xlu0 %v2877_v44  ;;  %2882 = vmax.xlane.f32.xlu1 %v2881_v0  ;;  %v12393_v0 = vpop.permute.xlu1 %9948 }
 0x65d   : > { %15313 = vst [vmem:[#allocation82_spill] sm:$0xff] %v12393_v0 }
 0x660   : > { %2886 = vmax.xlane.f32.xlu0 %v2885_v14  ;;  %2894 = vmax.xlane.f32.xlu1 %v2893_v26 }
 0x664   : > { %2890 = vmax.xlane.f32.xlu0 %v2889_v7  ;;  %2906 = vmax.xlane.f32.xlu1 %v2905_v58 }
 0x668   : > { %2898 = vmax.xlane.f32.xlu0 %v2897_v28  ;;  %2914 = vmax.xlane.f32.xlu1 %v2913_v3 }
 0x66c   : > { %2902 = vmax.xlane.f32.xlu0 %v2901_v50  ;;  %2922 = vmax.xlane.f32.xlu1 %v2921_v31 }
 0x670   : > { %2910 = vmax.xlane.f32.xlu0 %v2909_v37 }
 0x674   : > { %2918 = vmax.xlane.f32.xlu0 %v2917_v51 }
 0x69c   : > { %v2827_v62 = vpop.xlane.xlu0 %2826 }
 0x69d   : > { %v2924_v28 = vsub.f32 %v12204_v11, %v2827_v62  ;;  %v2925_v3 = vsub.f32 %v12208_v21, %v2827_v62 }
 0x69f   : > { %v2974_v44 = vmul.f32 1.442695, %v2924_v28  ;;  %v2976_v14 = vmul.f32 1.442695, %v2925_v3 }
 0x6a0   : > { %v2855_v51 = vpop.xlane.xlu0 %2854  ;;  %v2831_v7 = vpop.xlane.xlu1 %2830 }
 0x6a1   : > { %v2938_v26 = vsub.f32 %v12206_v9, %v2855_v51  ;;  %v2939_v50 = vsub.f32 %v12210_v4, %v2855_v51  ;;  %v2926_v58 = vsub.f32 %v12218_v60, %v2831_v7  ;;  %10042 = vpow2.f32 %v2976_v14 }
 0x6a2   : > { %v2927_v37 = vsub.f32 %v12224_v16, %v2831_v7  ;;  %10044 = vpow2.f32 %v2974_v44 }
 0x6a3   : > { %v3002_v31 = vmul.f32 1.442695, %v2938_v26  ;;  %v3004_v0 = vmul.f32 1.442695, %v2939_v50  ;;  %v2978_v40 = vmul.f32 1.442695, %v2926_v58 }
 0x6a4   : > { %v2980_v11 = vmul.f32 1.442695, %v2927_v37  ;;  %v2859_v35 = vpop.xlane.xlu1 %2858  ;;  %v2835_v21 = vpop.xlane.xlu0 %2834 }
 0x6a5   : > { %10046 = vpow2.f32 %v3002_v31  ;;  %v2940_v62 = vsub.f32 %v12220_v15, %v2859_v35  ;;  %v2941_v28 = vsub.f32 %v12222_v48, %v2859_v35  ;;  %v2928_v9 = vsub.f32 %v12232_v61, %v2835_v21 }
 0x6a6   : > { %10048 = vpow2.f32 %v3004_v0  ;;  %v2929_v4 = vsub.f32 %v12238_v30, %v2835_v21 }
 0x6a7   : > { %10050 = vpow2.f32 %v2978_v40  ;;  %v3006_v60 = vmul.f32 1.442695, %v2940_v62  ;;  %v3008_v16 = vmul.f32 1.442695, %v2941_v28  ;;  %v2982_v3 = vmul.f32 1.442695, %v2928_v9 }
 0x6a8   : > { %10052 = vpow2.f32 %v2980_v11  ;;  %v2984_v44 = vmul.f32 1.442695, %v2929_v4  ;;  %v2867_v14 = vpop.xlane.xlu1 %2866  ;;  %v2863_v51 = vpop.xlane.xlu0 %2862 }
 0x6a9   : > { %10054 = vpow2.f32 %v3006_v60  ;;  %v2944_v7 = vsub.f32 %v12248_v32, %v2867_v14  ;;  %v2945_v15 = vsub.f32 %v12250_v33, %v2867_v14  ;;  %v2942_v35 = vsub.f32 %v12234_v59, %v2863_v51 }
 0x6aa   : > { %10056 = vpow2.f32 %v3008_v16  ;;  %v2943_v48 = vsub.f32 %v12236_v45, %v2863_v51 }
 0x6ab   : > { %10058 = vpow2.f32 %v2982_v3  ;;  %v3014_v61 = vmul.f32 1.442695, %v2944_v7  ;;  %v3016_v30 = vmul.f32 1.442695, %v2945_v15  ;;  %v3010_v40 = vmul.f32 1.442695, %v2942_v35  ;;  %v12409_v0 = vpop.eup %10042 }
 0x6ac   : > { %10060 = vpow2.f32 %v2984_v44  ;;  %v3012_v26 = vmul.f32 1.442695, %v2943_v48  ;;  %v2839_v50 = vpop.xlane.xlu0 %2838  ;;  %v2843_v58 = vpop.xlane.xlu1 %2842  ;;  %v3074_v31 = vsel %vm2823_vm15, %v12409_v0, 0.0 }
 0x6ad   : > { %v12411_v37 = vpop.eup %10044  ;;  %10062 = vpow2.f32 %v3014_v61  ;;  %v2930_v33 = vsub.f32 %v12246_v29, %v2839_v50  ;;  %v2931_v59 = vsub.f32 %v12252_v57, %v2839_v50  ;;  %v2932_v32 = vsub.f32 %v12260_v63, %v2843_v58 }
 0x6ae   : > { %10064 = vpow2.f32 %v3016_v30  ;;  %v2933_v45 = vsub.f32 %v12266_v8, %v2843_v58  ;;  %v3075_v57 = vadd.f32 %v12411_v37, %v3074_v31 }
 0x6af   : > { %v12419_v11 = vpop.eup %10046  ;;  %10066 = vpow2.f32 %v3010_v40  ;;  %v2986_v21 = vmul.f32 1.442695, %v2930_v33  ;;  %v2988_v62 = vmul.f32 1.442695, %v2931_v59  ;;  %v2990_v28 = vmul.f32 1.442695, %v2932_v32 }
 0x6b0   : > { %v12421_v9 = vpop.eup %10048  ;;  %10068 = vpow2.f32 %v3012_v26  ;;  %v2992_v29 = vmul.f32 1.442695, %v2933_v45  ;;  %v2871_v4 = vpop.xlane.xlu0 %2870  ;;  %3076 = vadd.xlane.f32.xlu0 %v3075_v57 }
 0x6b1   : > { %v12424_v63 = vpop.eup %10050  ;;  %10070 = vpow2.f32 %v2986_v21  ;;  %v2946_v8 = vsub.f32 %v12262_v49, %v2871_v4  ;;  %v2947_v60 = vsub.f32 %v12264_v46, %v2871_v4  ;;  %v3102_v3 = vsel %vm2823_vm15, %v12421_v9, 0.0 }
 0x6b2   : > { %v12428_v16 = vpop.eup %10052  ;;  %10072 = vpow2.f32 %v2988_v62  ;;  %v3103_v51 = vadd.f32 %v12419_v11, %v3102_v3 }
 0x6b3   : > { %v12432_v44 = vpop.eup %10054  ;;  %10074 = vpow2.f32 %v2990_v28  ;;  %v3020_v14 = vmul.f32 1.442695, %v2947_v60  ;;  %v3078_v49 = vsel %vm2823_vm15, %v12428_v16, 0.0  ;;  %v3018_v35 = vmul.f32 1.442695, %v2946_v8 }
 0x6b4   : > { %v12435_v7 = vpop.eup %10056  ;;  %10076 = vpow2.f32 %v2992_v29  ;;  %v2847_v46 = vpop.xlane.xlu0 %2846  ;;  %v3079_v48 = vadd.f32 %v12424_v63, %v3078_v49  ;;  %3104 = vadd.xlane.f32.xlu0 %v3103_v51 }
 0x6b5   : > { %v12439_v15 = vpop.eup %10058  ;;  %v2934_v61 = vsub.f32 %v12274_v19, %v2847_v46  ;;  %v2935_v30 = vsub.f32 %v12280_v1, %v2847_v46  ;;  %10078 = vpow2.f32 %v3020_v14  ;;  %v3106_v26 = vsel %vm2823_vm15, %v12435_v7, 0.0 }
 0x6b6   : > { %v12444_v40 = vpop.eup %10060  ;;  %3080 = vadd.xlane.f32.xlu1 %v3079_v48  ;;  %v3107_v59 = vadd.f32 %v12432_v44, %v3106_v26  ;;  %10080 = vpow2.f32 %v3018_v35 }
 0x6b7   : > { %v12448_v50 = vpop.eup %10062  ;;  %v2996_v58 = vmul.f32 1.442695, %v2935_v30  ;;  %v3082_v33 = vsel %vm2823_vm15, %v12444_v40, 0.0  ;;  %v2994_v45 = vmul.f32 1.442695, %v2934_v61 }
 0x6b8   : > { %v12453_v32 = vpop.eup %10064  ;;  %v3083_v19 = vadd.f32 %v12439_v15, %v3082_v33 }
 0x6b9   : > { %v12456_v1 = vpop.eup %10066  ;;  %10082 = vpow2.f32 %v2996_v58  ;;  %v3114_v14 = vsel %vm2823_vm15, %v12453_v32, 0.0 }
 0x6ba   : > { %v12458_v31 = vpop.eup %10068  ;;  %3084 = vadd.xlane.f32.xlu0 %v3083_v19  ;;  %3108 = vadd.xlane.f32.xlu1 %v3107_v59  ;;  %10084 = vpow2.f32 %v2994_v45  ;;  %v3115_v46 = vadd.f32 %v12448_v50, %v3114_v14  ;;  %v12494_v59 = vpop.permute.xlu1 %9958 }
 0x6bb   : > { %v12460_v21 = vpop.eup %10070  ;;  %v3110_v62 = vsel %vm2823_vm15, %v12458_v31, 0.0 }
 0x6bc   : > { %v12464_v28 = vpop.eup %10072  ;;  %v3111_v29 = vadd.f32 %v12456_v1, %v3110_v62 }
 0x6bd   : > { %v12467_v57 = vpop.eup %10074  ;;  %v3086_v4 = vsel %vm2823_vm15, %v12464_v28, 0.0 }
 0x6be   : > { %v12471_v8 = vpop.eup %10076  ;;  %v3087_v60 = vadd.f32 %v12460_v21, %v3086_v4  ;;  %3112 = vadd.xlane.f32.xlu1 %v3111_v29 }
 0x6bf   : > { %v3090_v3 = vsel %vm2823_vm15, %v12471_v8, 0.0  ;;  %v12478_v51 = vpop.eup %10078 }
 0x6c0   : > { %3088 = vadd.xlane.f32.xlu0 %v3087_v60  ;;  %v3091_v49 = vadd.f32 %v12467_v57, %v3090_v3  ;;  %v12482_v35 = vpop.eup %10080  ;;  %v3118_v48 = vsel %vm2823_vm15, %v12478_v51, 0.0  ;;  %v12498_v60 = vpop.permute.xlu0 %9953 }
 0x6c1   : > { %v3119_v30 = vadd.f32 %v12482_v35, %v3118_v48 }
 0x6c2   : > { %3092 = vadd.xlane.f32.xlu1 %v3091_v49 }
 0x6c3   : > { %v12486_v61 = vpop.eup %10082 }
 0x6c4   : > { %3116 = vadd.xlane.f32.xlu0 %v3115_v46  ;;  %v12489_v26 = vpop.eup %10084  ;;  %v3094_v58 = vsel %vm2823_vm15, %v12486_v61, 0.0 }
 0x6c5   : > { %v3095_v33 = vadd.f32 %v12489_v26, %v3094_v58 }
 0x6c8   : > { %3120 = vadd.xlane.f32.xlu0 %v3119_v30 }
 0x6cc   : > { %3096 = vadd.xlane.f32.xlu0 %v3095_v33 }
 0x6e1   : > { %v2875_v19 = vpop.xlane.xlu1 %2874 }
 0x6e2   : > { %v2948_v45 = vsub.f32 %v12276_v18, %v2875_v19  ;;  %v2949_v62 = vsub.f32 %v12278_v25, %v2875_v19 }
 0x6e4   : > { %v3022_v29 = vmul.f32 1.442695, %v2948_v45  ;;  %v3024_v4 = vmul.f32 1.442695, %v2949_v62 }
 0x6e5   : > { %v2851_v3 = vpop.xlane.xlu1 %2850 }
 0x6e6   : > { %v2936_v14 = vsub.f32 %v12288_v42, %v2851_v3  ;;  %v2937_v49 = vsub.f32 %v12294_v34, %v2851_v3  ;;  %10086 = vpow2.f32 %v3024_v4 }
 0x6e7   : > { %10088 = vpow2.f32 %v3022_v29 }
 0x6e8   : > { %v2998_v46 = vmul.f32 1.442695, %v2936_v14  ;;  %v3000_v48 = vmul.f32 1.442695, %v2937_v49 }
 0x6e9   : > { %v2879_v30 = vpop.xlane.xlu0 %2878  ;;  %v2883_v58 = vpop.xlane.xlu1 %2882 }
 0x6ea   : > { %v2950_v33 = vsub.f32 %v12290_v56, %v2879_v30  ;;  %v2951_v18 = vsub.f32 %v12292_v47, %v2879_v30  ;;  %v2952_v25 = vsub.f32 %v12302_v5, %v2883_v58  ;;  %10090 = vpow2.f32 %v3000_v48 }
 0x6eb   : > { %v2953_v19 = vsub.f32 %v12304_v38, %v2883_v58  ;;  %10092 = vpow2.f32 %v2998_v46 }
 0x6ec   : > { %v3026_v45 = vmul.f32 1.442695, %v2950_v33  ;;  %v3028_v42 = vmul.f32 1.442695, %v2951_v18  ;;  %v3030_v62 = vmul.f32 1.442695, %v2952_v25 }
 0x6ed   : > { %v3032_v34 = vmul.f32 1.442695, %v2953_v19  ;;  %v2887_v4 = vpop.xlane.xlu0 %2886 }
 0x6ee   : > { %10094 = vpow2.f32 %v3026_v45  ;;  %v2954_v29 = vsub.f32 %v12309_v23, %v2887_v4  ;;  %v2955_v3 = vsub.f32 %v12311_v6, %v2887_v4 }
 0x6ef   : > { %10096 = vpow2.f32 %v3028_v42 }
 0x6f0   : > { %10098 = vpow2.f32 %v3030_v62  ;;  %v3034_v56 = vmul.f32 1.442695, %v2954_v29  ;;  %v3036_v47 = vmul.f32 1.442695, %v2955_v3  ;;  %v12508_v14 = vpop.eup %10086 }
 0x6f1   : > { %10100 = vpow2.f32 %v3032_v34  ;;  %v12510_v5 = vpop.eup %10088  ;;  %v3122_v38 = vsel %vm2823_vm15, %v12508_v14, 0.0  ;;  %v2891_v3 = vpop.xlane.xlu0 %2890 }
 0x6f2   : > { %10102 = vpow2.f32 %v3034_v56  ;;  %v3123_v23 = vadd.f32 %v12510_v5, %v3122_v38 }
 0x6f3   : > { %10104 = vpow2.f32 %v3036_v47  ;;  %v2895_v47 = vpop.xlane.xlu1 %2894 }
 0x6f4   : > { %v12514_v49 = vpop.eup %10090  ;;  %3124 = vadd.xlane.f32.xlu1 %v3123_v23  ;;  %v2957_v23 = vsub.f32 %v12318_v53, %v2891_v3  ;;  %v15318_v53 = vld [vmem:[#allocation75_spill] sm:$0xff] }
 0x6f5   : > { %v12517_v46 = vpop.eup %10092  ;;  %v3098_v6 = vsel %vm2823_vm15, %v12514_v49, 0.0  ;;  %v2899_v56 = vpop.xlane.xlu0 %2898 }
 0x6f6   : > { %v3099_v58 = vadd.f32 %v12517_v46, %v3098_v6 }
 0x6f7   : > { %v2907_v6 = vpop.xlane.xlu1 %2906 }
 0x6f8   : > { %v12521_v48 = vpop.eup %10094  ;;  %3100 = vadd.xlane.f32.xlu1 %v3099_v58  ;;  %v2961_v58 = vsub.f32 %v12334_v43, %v2899_v56 }
 0x6f9   : > { %v12523_v30 = vpop.eup %10096  ;;  %v2903_v38 = vpop.xlane.xlu0 %2902 }
 0x6fa   : > { %v12526_v33 = vpop.eup %10098  ;;  %v3126_v25 = vsel %vm2823_vm15, %v12523_v30, 0.0 }
 0x6fb   : > { %15314 = vst [vmem:[#allocation83_spill] sm:$0xff] %v12526_v33  ;;  %v12528_v18 = vpop.eup %10100  ;;  %v3127_v42 = vadd.f32 %v12521_v48, %v3126_v25  ;;  %v2959_v25 = vsub.f32 %v12327_v12, %v2895_v47 }
 0x6fc   : > { %15315 = vst [vmem:[#allocation84_spill] sm:$0xff] %v12528_v18  ;;  %v12532_v19 = vpop.eup %10102  ;;  %v3130_v62 = vsel %vm2823_vm15, %v12528_v18, 0.0  ;;  %v15319_v18 = vld [vmem:[#allocation73_spill] sm:$0xff] }
 0x6fd   : > { %15316 = vst [vmem:[#allocation85_spill] sm:$0xff] %v12532_v19  ;;  %v12534_v45 = vpop.eup %10104  ;;  %v3131_v34 = vadd.f32 %v12526_v33, %v3130_v62  ;;  %3128 = vadd.xlane.f32.xlu1 %v3127_v42  ;;  %v2956_v42 = vsub.f32 %v12316_v52, %v2891_v3  ;;  %v3040_v62 = vmul.f32 1.442695, %v2957_v23  ;;  %v2965_v33 = vsub.f32 %v15318_v53, %v2907_v6  ;;  %v15320_v52 = vld [vmem:[#allocation78_spill] sm:$0xff] }
 0x6fe   : > { %15317 = vst [vmem:[#allocation86_spill] sm:$0xff] %v12534_v45  ;;  %v3134_v4 = vsel %vm2823_vm15, %v12534_v45, 0.0  ;;  %v2962_v12 = vsub.f32 %v15319_v18, %v2903_v38 }
 0x6ff   : > { %3132 = vadd.xlane.f32.xlu0 %v3131_v34  ;;  %v3135_v29 = vadd.f32 %v12532_v19, %v3134_v4  ;;  %v2911_v34 = vpop.xlane.xlu0 %2910  ;;  %v2963_v4 = vsub.f32 %v12341_v22, %v2903_v38  ;;  %v2915_v19 = vpop.xlane.xlu1 %2914  ;;  %v3038_v45 = vmul.f32 1.442695, %v2956_v42  ;;  %10106 = vpow2.f32 %v3040_v62  ;;  %v15322_v42 = vld [vmem:[#allocation77_spill] sm:$0xff] }
 0x700   : > { %v2969_v3 = vsub.f32 %v15320_v52, %v2915_v19  ;;  %v2967_v62 = vsub.f32 %v15322_v42, %v2911_v34 }
 0x701   : > { %v3052_v23 = vmul.f32 1.442695, %v2963_v4  ;;  %v15323_v4 = vld [vmem:[#allocation76_spill] sm:$0xff] }
 0x703   : > { %3136 = vadd.xlane.f32.xlu0 %v3135_v29  ;;  %v2958_v29 = vsub.f32 %v12325_v39, %v2895_v47  ;;  %v2919_v22 = vpop.xlane.xlu0 %2918  ;;  %v3056_v39 = vmul.f32 1.442695, %v2965_v33  ;;  %v2968_v47 = vsub.f32 %v12362_v17, %v2915_v19 }
 0x704   : > { %v2971_v18 = vsub.f32 %v12371_v27, %v2919_v22  ;;  %v2970_v33 = vsub.f32 %v12369_v41, %v2919_v22 }
 0x706   : > { %v3068_v17 = vmul.f32 1.442695, %v2971_v18  ;;  %v3066_v53 = vmul.f32 1.442695, %v2970_v33 }
 0x709   : > { %v12565_v19 = vpop.eup %10106 }
 0x70e   : > { %9968 = vrot.lane.b32.xlu1 %v11974_v10, %s10530_s22  ;;  %v2960_v10 = vsub.f32 %v12332_v20, %v2899_v56  ;;  %v3042_v20 = vmul.f32 1.442695, %v2958_v29  ;;  %v15321_v56 = vld [vmem:[#allocation74_spill] sm:$0xff]  ;;  %v2966_v29 = vsub.f32 %v15323_v4, %v2911_v34  ;;  %v3138_v34 = vsel %vm2823_vm15, %v12565_v19, 0.0 }
 0x710   : > { %v3046_v43 = vmul.f32 1.442695, %v2960_v10  ;;  %v3064_v10 = vmul.f32 1.442695, %v2969_v3 }
 0x712   : > { %9973 = vrot.lane.b32.xlu1 %v11986_v55, %s10530_s22  ;;  %v3048_v55 = vmul.f32 1.442695, %v2961_v58  ;;  %v2964_v58 = vsub.f32 %v15321_v56, %v2907_v6  ;;  %v3060_v6 = vmul.f32 1.442695, %v2967_v62 }
 0x714   : > { %10108 = vpow2.f32 %v3048_v55  ;;  %v3054_v38 = vmul.f32 1.442695, %v2964_v58  ;;  %v3062_v55 = vmul.f32 1.442695, %v2968_v47 }
 0x719   : > { %9963 = vrot.lane.b32.xlu0 %v11962_v54, %s10530_s22  ;;  %v3044_v54 = vmul.f32 1.442695, %v2959_v25  ;;  %v3050_v25 = vmul.f32 1.442695, %v2962_v12 }
 0x71b   : > { %10110 = vpow2.f32 %v3044_v54  ;;  %v3058_v54 = vmul.f32 1.442695, %v2966_v29 }
 0x71c   : > { %10112 = vpow2.f32 %v3038_v45 }
 0x71d   : > { %10114 = vpow2.f32 %v3046_v43 }
 0x71e   : > { %10116 = vpow2.f32 %v3052_v23  ;;  %v12567_v45 = vpop.eup %10108 }
 0x71f   : > { %10118 = vpow2.f32 %v3042_v20  ;;  %v3146_v12 = vsel %vm2823_vm15, %v12567_v45, 0.0 }
 0x720   : > { %10120 = vpow2.f32 %v3056_v39 }
 0x721   : > { %10122 = vpow2.f32 %v3050_v25 }
 0x722   : > { %10124 = vpow2.f32 %v3064_v10 }
 0x723   : > { %10126 = vpow2.f32 %v3054_v38 }
 0x724   : > { %10128 = vpow2.f32 %v3062_v55 }
 0x725   : > { %v12569_v27 = vpop.eup %10110  ;;  %10130 = vpow2.f32 %v3060_v6 }
 0x726   : > { %v12571_v43 = vpop.eup %10112  ;;  %10132 = vpow2.f32 %v3068_v17  ;;  %v3142_v58 = vsel %vm2823_vm15, %v12569_v27, 0.0 }
 0x727   : > { %v12575_v41 = vpop.eup %10114  ;;  %10134 = vpow2.f32 %v3058_v54  ;;  %v3139_v23 = vadd.f32 %v12571_v43, %v3138_v34  ;;  %v12617_v34 = vpop.xlane.xlu1 %2922 }
 0x728   : > { %v12579_v52 = vpop.eup %10116  ;;  %10136 = vpow2.f32 %v3066_v53  ;;  %v3147_v56 = vadd.f32 %v12575_v41, %v3146_v12 }
 0x729   : > { %v12581_v3 = vpop.eup %10118  ;;  %v3150_v39 = vsel %vm2823_vm15, %v12579_v52, 0.0 }
 0x72a   : > { %v12584_v20 = vpop.eup %10120  ;;  %v3143_v42 = vadd.f32 %v12581_v3, %v3142_v58 }
 0x72b   : > { %v12589_v22 = vpop.eup %10122  ;;  %v3154_v18 = vsel %vm2823_vm15, %v12584_v20, 0.0 }
 0x72c   : > { %v12593_v47 = vpop.eup %10124  ;;  %v3151_v10 = vadd.f32 %v12589_v22, %v3150_v39 }
 0x72d   : > { %v12595_v25 = vpop.eup %10126  ;;  %v3162_v55 = vsel %vm2823_vm15, %v12593_v47, 0.0 }
 0x72e   : > { %v12598_v62 = vpop.eup %10128  ;;  %v3155_v29 = vadd.f32 %v12595_v25, %v3154_v18  ;;  %v9926_v18 = vunpack.i.h.bf16 %v12383_v24 }
 0x72f   : > { %v12603_v38 = vpop.eup %10130  ;;  %v3163_v17 = vadd.f32 %v12598_v62, %v3162_v55  ;;  %v9925_v55 = vunpack.i.l.bf16 %v12383_v24 }
 0x730   : > { %v12607_v4 = vpop.eup %10132  ;;  %v3158_v54 = vsel %vm2823_vm15, %v12603_v38, 0.0 }
 0x731   : > { %v12610_v6 = vpop.eup %10134  ;;  %v3166_v12 = vsel %vm2823_vm15, %v12607_v4, 0.0 }
 0x732   : > { %v12615_v53 = vpop.eup %10136 }
 0x733   : > { %15324 = vst [vmem:[#allocation75_spill] sm:$0xff] %v12615_v53  ;;  %v3167_v58 = vadd.f32 %v12615_v53, %v3166_v12  ;;  %v9335_v12 = vpack.c.bf16 %v9926_v18, %v9925_v55  ;;  %v9931_v55 = vunpack.i.h.bf16 %v12385_v2 }
 0x736   : > { %3140 = vadd.xlane.f32.xlu1 %v3139_v23  ;;  %v3159_v23 = vadd.f32 %v12610_v6, %v3158_v54 }
 0x738   : > { %3148 = vadd.xlane.f32.xlu0 %v3147_v56 }
 0x73a   : > { %3144 = vadd.xlane.f32.xlu1 %v3143_v42 }
 0x73c   : > { %3152 = vadd.xlane.f32.xlu0 %v3151_v10 }
 0x73d   : > { %v3077_v33 = vpop.xlane.xlu0 %3076 }
 0x73e   : > { %10138 = vrcp.f32 %v3077_v33  ;;  %3156 = vadd.xlane.f32.xlu1 %v3155_v29 }
 0x740   : > { %3164 = vadd.xlane.f32.xlu0 %v3163_v17 }
 0x741   : > { %v12622_v56 = vpop.xlane.xlu0 %3104 }
 0x742   : > { %3160 = vadd.xlane.f32.xlu1 %v3159_v23 }
 0x743   : > { %v3081_v39 = vpop.xlane.xlu1 %3080 }
 0x744   : > { %10140 = vrcp.f32 %v3081_v39  ;;  %3168 = vadd.xlane.f32.xlu0 %v3167_v58 }
 0x747   : > { %v3085_v42 = vpop.xlane.xlu0 %3084  ;;  %v12625_v10 = vpop.xlane.xlu1 %3108 }
 0x748   : > { %10142 = vrcp.f32 %v3085_v42  ;;  %v10139_v29 = vpop.eup %10138 }
 0x749   : > { %v3200_v33 = vmul.f32 %v10139_v29, %v12409_v0  ;;  %v3199_v17 = vmul.f32 %v10139_v29, %v12411_v37  ;;  %v15326_v0 = vmov 0.0|0.0   ;;  %v9930_v29 = vunpack.i.l.bf16 %v12385_v2  ;;  %v15328_v2 = vld [vmem:[#allocation33_spill] sm:$0xff] }
 0x74b   : > { %v12631_v54 = vpop.xlane.xlu1 %3112  ;;  %7639 = vmatprep.mubr.msk.f32.mxu1 %vm2823_vm15, %v3200_v33 }
 0x74c   : > { %3489 = vmatmul.mubr.f32.vlgmr.msra.gmra.mrb[86].mxu1 %v3199_v17 }
 0x74d   : > { %v3089_v23 = vpop.xlane.xlu0 %3088  ;;  %9337 = vmatpush1.bf16.xpose.msk.msra.mxu1 %vm12024_vm2, %v9335_v12  ;;  %v9339_v12 = vpack.c.bf16 %v9931_v55, %v9930_v29 }
 0x74e   : > { %10144 = vrcp.f32 %v3089_v23  ;;  %v10141_v58 = vpop.eup %10140  ;;  %9338 = vmatprep.subr.bf16.mxu1 %v15326_v0 }
 0x74f   : > { %v3093_v42 = vpop.xlane.xlu1 %3092  ;;  %v3202_v24 = vmul.f32 %v10141_v58, %v12428_v16  ;;  %v3201_v53 = vmul.f32 %v10141_v58, %v12424_v63  ;;  %v15327_v16 = vld [vmem:[#allocation71_spill] sm:$0xff]  ;;  %v9936_v58 = vunpack.i.h.bf16 %v12387_v36 }
 0x750   : > { %10146 = vrcp.f32 %v3093_v42  ;;  %v9935_v42 = vunpack.i.l.bf16 %v12387_v36  ;;  %v9941_v36 = vunpack.i.h.bf16 %v12389_v13 }
 0x751   : > { %v12639_v37 = vpop.xlane.xlu0 %3116  ;;  %7640 = vmatprep.mubr.msk.f32.mxu1 %vm2823_vm15, %v3202_v24 }
 0x752   : > { %v10143_v18 = vpop.eup %10142  ;;  %3494 = vmatmul.mubr.f32.gmra.mrb[88].mxu1 %v3201_v53  ;;  %v9343_v29 = vpack.c.bf16 %v9936_v58, %v9935_v42  ;;  %v15334_v42 = vld [vmem:[#allocation45_spill] sm:$0xff] }
 0x753   : > { %v3204_v33 = vmul.f32 %v10143_v18, %v12444_v40  ;;  %v3203_v17 = vmul.f32 %v10143_v18, %v12439_v15  ;;  %3712 = vrot.lane.b32.xlu1 %v15327_v16, %s10530_s22  ;;  %v15329_v18 = vld [vmem:[#allocation69_spill] sm:$0xff] }
 0x755   : > { %7641 = vmatprep.mubr.msk.f32.mxu1 %vm2823_vm15, %v3204_v33  ;;  %v12649_v63 = vpop.xlane.xlu0 %3120  ;;  %9341 = vmatpush1.bf16.xpose.msk.msra.mxu1 %vm12024_vm2, %v9339_v12  ;;  %v9940_v33 = vunpack.i.l.bf16 %v12389_v13  ;;  %v15332_v12 = vld [vmem:[#allocation42_spill] sm:$0xff]  ;;  %v15335_v13 = vld [vmem:[#allocation81_spill] sm:$0xff] }
 0x756   : > { %3499 = vmatmul.mubr.f32.gmra.mrb[90].mxu1 %v3203_v17  ;;  %9342 = vmatprep.subr.bf16.mxu1 %v15326_v0 }
 0x757   : > { %3614 = vrot.lane.b32.xlu1 %v15328_v2, %s10531_s23 }
 0x758   : > { %v10145_v23 = vpop.eup %10144 }
 0x759   : > { %v3097_v40 = vpop.xlane.xlu0 %3096  ;;  %v3206_v15 = vmul.f32 %v10145_v23, %v12464_v28  ;;  %v3205_v53 = vmul.f32 %v10145_v23, %v12460_v21  ;;  %v15330_v28 = vld [vmem:[#allocation39_spill] sm:$0xff] }
 0x75a   : > { %10148 = vrcp.f32 %v3097_v40  ;;  %v10147_v24 = vpop.eup %10146  ;;  %9978 = vrot.lane.b32.xlu0 %v15329_v18, %s10530_s22  ;;  %v9347_v40 = vpack.c.bf16 %v9941_v36, %v9940_v33  ;;  %v15339_v36 = vld [vmem:[#allocation54_spill] sm:$0xff]  ;;  %s286_s22 = sld [smem:[#allocation3 + %s10599_s9]] }
 0x75b   : > { %7642 = vmatprep.mubr.msk.f32.mxu1 %vm2823_vm15, %v3206_v15  ;;  %v3208_v55 = vmul.f32 %v10147_v24, %v12471_v8  ;;  %v3207_v21 = vmul.f32 %v10147_v24, %v12467_v57  ;;  %v15331_v8 = vld [vmem:[#allocation80_spill] sm:$0xff]  ;;  %v15333_v15 = vld [vmem:[#allocation79_spill] sm:$0xff] }
 0x75c   : > { %3504 = vmatmul.mubr.f32.gmra.mrb[92].mxu1 %v3205_v53  ;;  %v2973_v17 = vsub.f32 %v15331_v8, %v12617_v34  ;;  %v2972_v53 = vsub.f32 %v15333_v15, %v12617_v34  ;;  %v15336_v34 = vld [vmem:[#allocation48_spill] sm:$0xff] }
 0x75d   : > { %7643 = vmatprep.mubr.msk.f32.mxu1 %vm2823_vm15, %v3208_v55  ;;  %9345 = vmatpush1.bf16.xpose.msk.msra.mxu1 %vm12024_vm2, %v9343_v29  ;;  %v15337_v55 = vld [vmem:[#allocation51_spill] sm:$0xff]  ;;  %v15338_v29 = vld [vmem:[#allocation82_spill] sm:$0xff] }
 0x75e   : > { %3622 = vrot.lane.b32.xlu0 %v15330_v28, %s10531_s23  ;;  %9346 = vmatprep.subr.bf16.mxu1 %v15326_v0  ;;  %v3072_v58 = vmul.f32 1.442695, %v2973_v17  ;;  %v3070_v24 = vmul.f32 1.442695, %v2972_v53  ;;  %v9951_v28 = vunpack.i.h.bf16 %v15338_v29  ;;  %v15340_v17 = vld [vmem:[#allocation57_spill] sm:$0xff] }
 0x760   : > { %3509 = vmatmul.mubr.f32.gmra.mrb[94].mxu1 %v3207_v21  ;;  %10150 = vpow2.f32 %v3072_v58  ;;  %v9950_v21 = vunpack.i.l.bf16 %v15338_v29  ;;  %v15342_v58 = vld [vmem:[#allocation63_spill] sm:$0xff]  ;;  %v15347_v29 = vld [vmem:[#allocation36_spill] sm:$0xff]  ;;  %p287_p2 = scmp.lt.s32.totalorder %s286_s22, 795 }
 0x761   : > { %10152 = vpow2.f32 %v3070_v24 }
 0x762   : > { %3626 = vrot.lane.b32.xlu0 %v15332_v12, %s10531_s23  ;;  %v9355_v8 = vpack.c.bf16 %v9951_v28, %v9950_v21  ;;  %10154 = vrcp.f32 %v12622_v56  ;;  %s15462_s22 = smov (!%p287_p2, %s286_s22), 795 }
 0x763   : > { %s289_s13 = scalar_lea.vmem %s15016_s3, %s15462_s22  ;;  %s7852_s22 = sshll.u32 %s10599_s9, 4 }
 0x764   : > { %v10149_v23 = vpop.eup %10148  ;;  %s14971_s26 = scalar_lea.hbm %s15020_s7, %s7852_s22  ;;  %s10534_s9 = smov [#allocation4]  }
 0x765   : > { %v3210_v2 = vmul.f32 %v10149_v23, %v12486_v61  ;;  %v3209_v57 = vmul.f32 %v10149_v23, %v12489_v26  ;;  %9349 = vmatpush1.bf16.xpose.msk.msra.mxu1 %vm12024_vm2, %v9347_v40  ;;  %v9946_v61 = vunpack.i.h.bf16 %v15335_v13  ;;  %v9945_v26 = vunpack.i.l.bf16 %v15335_v13  ;;  %v15341_v40 = vld [vmem:[#allocation60_spill] sm:$0xff]  ;;  %s10461_s10 = sshll.u32 %s10534_s9, 4  ;;  %s10462_s10 = int_to_ptr.vmem [resolvable:$false] %s10461_s10 }
 0x766   : > { %3630 = vrot.lane.b32.xlu0 %v15334_v42, %s10531_s23  ;;  %9350 = vmatprep.subr.bf16.mxu1 %v15326_v0  ;;  %v9961_v42 = vunpack.i.h.bf16 %v12494_v59  ;;  %v9960_v13 = vunpack.i.l.bf16 %v12494_v59  ;;  %v15344_v59 = vld [vmem:[#allocation38_spill] sm:$0xff]  ;;  %s10463_s12 = scalar_lea.vmem %s10462_s10, 32 }
 0x767   : > { %7644 = vmatprep.mubr.msk.f32.mxu1 %vm2823_vm15, %v3210_v2  ;;  %v9351_v18 = vpack.c.bf16 %v9946_v61, %v9945_v26  ;;  %v9956_v2 = vunpack.i.h.bf16 %v12498_v60 }
 0x768   : > { %3514 = vmatmul.mubr.f32.gmra.mrb[96].mxu1 %v3209_v57  ;;  %v9955_v57 = vunpack.i.l.bf16 %v12498_v60  ;;  %v15343_v60 = vld [vmem:[#allocation66_spill] sm:$0xff]  ;;  %v9363_v26 = vpack.c.bf16 %v9961_v42, %v9960_v13 }
 0x76a   : > { %3634 = vrot.lane.b32.xlu0 %v15336_v34, %s10531_s23  ;;  %v12700_v33 = vpop.eup %10150  ;;  %v9359_v53 = vpack.c.bf16 %v9956_v2, %v9955_v57 }
 0x76b   : > { %v12704_v12 = vpop.eup %10152  ;;  %v3170_v23 = vsel %vm2823_vm15, %v12700_v33, 0.0 }
 0x76c   : > { %v3171_v15 = vadd.f32 %v12704_v12, %v3170_v23 }
 0x76d   : > { %9353 = vmatpush1.bf16.xpose.msk.msra.mxu1 %vm12024_vm2, %v9351_v18  ;;  %v15345_v18 = vld [vmem:[#allocation34_spill] sm:$0xff] }
 0x76e   : > { %3638 = vrot.lane.b32.xlu0 %v15337_v55, %s10531_s23  ;;  %9354 = vmatprep.subr.bf16.mxu1 %v15326_v0  ;;  %v10155_v55 = vpop.eup %10154 }
 0x76f   : > { %v3214_v57 = vmul.f32 %v10155_v55, %v12421_v9 }
 0x772   : > { %3642 = vrot.lane.b32.xlu0 %v15339_v36, %s10531_s23  ;;  %v15348_v36 = vld [vmem:[#allocation47_spill] sm:$0xff] }
 0x775   : > { %9357 = vmatpush1.bf16.xpose.msk.msra.mxu1 %vm12024_vm2, %v9355_v8 }
 0x776   : > { %3646 = vrot.lane.b32.xlu0 %v15340_v17, %s10531_s23  ;;  %9358 = vmatprep.subr.bf16.mxu1 %v15326_v0 }
 0x77a   : > { %3650 = vrot.lane.b32.xlu0 %v15341_v40, %s10531_s23 }
 0x77b   : > { %3172 = vadd.xlane.f32.xlu1 %v3171_v15  ;;  %v15350_v15 = vld [vmem:[#allocation50_spill] sm:$0xff] }
 0x77d   : > { %9361 = vmatpush1.bf16.xpose.msk.msra.mxu1 %vm12024_vm2, %v9359_v53  ;;  %v15351_v53 = vld [vmem:[#allocation40_spill] sm:$0xff] }
 0x77e   : > { %3654 = vrot.lane.b32.xlu0 %v15342_v58, %s10531_s23  ;;  %9362 = vmatprep.subr.bf16.mxu1 %v15326_v0 }
 0x781   : > { %v3125_v61 = vpop.xlane.xlu1 %3124 }
 0x782   : > { %3658 = vrot.lane.b32.xlu0 %v15343_v60, %s10531_s23 }
 0x785   : > { %9365 = vmatpush1.bf16.xpose.msk.msra.mxu1 %vm12024_vm2, %v9363_v26  ;;  %v3101_v24 = vpop.xlane.xlu1 %3100 }
 0x786   : > { %3662 = vrot.lane.b32.xlu0 %v15327_v16, %s10531_s23  ;;  %10156 = vrcp.f32 %v3101_v24  ;;  %9366 = vmatprep.subr.bf16.mxu1 %v15326_v0  ;;  %v15346_v16 = vld [vmem:[#allocation41_spill] sm:$0xff] }
 0x787   : > { %10158 = vrcp.f32 %v12625_v10 }
 0x788   : > { %10160 = vrcp.f32 %v12631_v54  ;;  %v15349_v54 = vld [vmem:[#allocation37_spill] sm:$0xff] }
 0x789   : > { %10162 = vrcp.f32 %v12639_v37  ;;  %v3213_v37 = vmul.f32 %v10155_v55, %v12419_v11  ;;  %v15352_v11 = vld [vmem:[#allocation43_spill] sm:$0xff] }
 0x78a   : > { %9988 = vrot.lane.b32.xlu0 %v15344_v59, %s10532_s24  ;;  %v3129_v21 = vpop.xlane.xlu1 %3128  ;;  %10164 = vrcp.f32 %v12649_v63 }
 0x78b   : > { %10166 = vrcp.f32 %v3125_v61  ;;  %v15353_v61 = vld [vmem:[#allocation46_spill] sm:$0xff] }
 0x78c   : > { %v3133_v34 = vpop.xlane.xlu0 %3132  ;;  %3616 = vrot.lane.b32.xlu1 %v15345_v18, %s10531_s23  ;;  %10168 = vrcp.f32 %v3129_v21 }
 0x78d   : > { %10170 = vrcp.f32 %v3133_v34  ;;  %v15355_v34 = vld [vmem:[#allocation52_spill] sm:$0xff] }
 0x78e   : > { %9993 = vrot.lane.b32.xlu0 %v15346_v16, %s10532_s24 }
 0x790   : > { %v3137_v56 = vpop.xlane.xlu0 %3136  ;;  %3618 = vrot.lane.b32.xlu1 %v15347_v29, %s10531_s23  ;;  %v10157_v28 = vpop.eup %10156 }
 0x791   : > { %v3212_v10 = vmul.f32 %v10157_v28, %v12514_v49  ;;  %v3211_v8 = vmul.f32 %v10157_v28, %v12517_v46  ;;  %v10159_v40 = vpop.eup %10158  ;;  %v9969_v46 = vpop.permute.xlu1 %9968  ;;  %10172 = vrcp.f32 %v3137_v56  ;;  %v15356_v56 = vld [vmem:[#allocation55_spill] sm:$0xff] }
 0x792   : > { %10003 = vrot.lane.b32.xlu0 %v15348_v36, %s10532_s24  ;;  %v3216_v9 = vmul.f32 %v10159_v40, %v12435_v7  ;;  %v10161_v58 = vpop.eup %10160  ;;  %v9971_v42 = vunpack.i.h.bf16 %v9969_v46  ;;  %v9970_v13 = vunpack.i.l.bf16 %v9969_v46  ;;  %v3215_v63 = vmul.f32 %v10159_v40, %v12432_v44  ;;  %v15364_v46 = vld [vmem:[#allocation67_spill] sm:$0xff] }
 0x793   : > { %7645 = vmatprep.mubr.msk.f32.mxu1 %vm2823_vm15, %v3212_v10  ;;  %v3218_v60 = vmul.f32 %v10161_v58, %v12458_v31  ;;  %v10163_v26 = vpop.eup %10162  ;;  %v3217_v59 = vmul.f32 %v10161_v58, %v12456_v1  ;;  %v15354_v1 = vld [vmem:[#allocation49_spill] sm:$0xff]  ;;  %v15366_v58 = vld [vmem:[#allocation44_spill] sm:$0xff] }
 0x794   : > { %v9964_v17 = vpop.permute.xlu0 %9963  ;;  %3620 = vrot.lane.b32.xlu1 %v15349_v54, %s10531_s23  ;;  %3519 = vmatmul.mubr.f32.gmra.mrb[98].mxu1 %v3211_v8  ;;  %v9371_v24 = vpack.c.bf16 %v9971_v42, %v9970_v13  ;;  %v3220_v44 = vmul.f32 %v10163_v26, %v12453_v32  ;;  %v10165_v18 = vpop.eup %10164  ;;  %v3219_v55 = vmul.f32 %v10163_v26, %v12448_v50 }
 0x795   : > { %v9966_v23 = vunpack.i.h.bf16 %v9964_v17  ;;  %v9965_v2 = vunpack.i.l.bf16 %v9964_v17  ;;  %7646 = vmatprep.mubr.msk.f32.mxu1 %vm2823_vm15, %v3214_v57  ;;  %v9974_v7 = vpop.permute.xlu1 %9973  ;;  %v3222_v29 = vmul.f32 %v10165_v18, %v12478_v51  ;;  %v10167_v28 = vpop.eup %10166  ;;  %v3221_v32 = vmul.f32 %v10165_v18, %v12482_v35  ;;  %v15358_v17 = vld [vmem:[#allocation84_spill] sm:$0xff]  ;;  %v15360_v57 = vld [vmem:[#allocation61_spill] sm:$0xff] }
 0x796   : > { %10008 = vrot.lane.b32.xlu0 %v15350_v15, %s10532_s24  ;;  %v9976_v31 = vunpack.i.h.bf16 %v9974_v7  ;;  %v9975_v16 = vunpack.i.l.bf16 %v9974_v7  ;;  %v3224_v50 = vmul.f32 %v10167_v28, %v12508_v14  ;;  %v10169_v36 = vpop.eup %10168  ;;  %v3223_v51 = vmul.f32 %v10167_v28, %v12510_v5  ;;  %v15357_v14 = vld [vmem:[#allocation58_spill] sm:$0xff]  ;;  %v15359_v5 = vld [vmem:[#allocation83_spill] sm:$0xff] }
 0x797   : > { %v9367_v49 = vpack.c.bf16 %v9966_v23, %v9965_v2  ;;  %v3226_v35 = vmul.f32 %v10169_v36, %v12523_v30  ;;  %v10171_v10 = vpop.eup %10170  ;;  %v3225_v8 = vmul.f32 %v10169_v36, %v12521_v48  ;;  %v15361_v30 = vld [vmem:[#allocation86_spill] sm:$0xff]  ;;  %v15362_v48 = vld [vmem:[#allocation85_spill] sm:$0xff] }
 0x798   : > { %3624 = vrot.lane.b32.xlu1 %v15351_v53, %s10531_s23  ;;  %3524 = vmatmul.mubr.f32.gmra.mrb[100].mxu1 %v3213_v37  ;;  %v9375_v21 = vpack.c.bf16 %v9976_v31, %v9975_v16  ;;  %v3228_v23 = vmul.f32 %v10171_v10, %v15358_v17  ;;  %v3227_v54 = vmul.f32 %v10171_v10, %v15359_v5  ;;  %v15365_v37 = vld [vmem:[#allocation35_spill] sm:$0xff] }
 0x799   : > { %9369 = vmatpush1.bf16.xpose.msk.msra.mxu1 %vm12024_vm2, %v9367_v49  ;;  %7647 = vmatprep.mubr.msk.f32.mxu1 %vm2823_vm15, %v3216_v9  ;;  %v15363_v49 = vld [vmem:[#allocation64_spill] sm:$0xff] }
 0x79a   : > { %9370 = vmatprep.subr.bf16.mxu1 %v15326_v0 }
 0x79b   : > { %v10173_v2 = vpop.eup %10172 }
 0x79c   : > { %3628 = vrot.lane.b32.xlu1 %v15352_v11, %s10531_s23  ;;  %3529 = vmatmul.mubr.f32.gmra.mrb[102].mxu1 %v3215_v63  ;;  %v3230_v40 = vmul.f32 %v10173_v2, %v15361_v30  ;;  %v3229_v15 = vmul.f32 %v10173_v2, %v15362_v48  ;;  %v15367_v63 = vld [vmem:[#allocation53_spill] sm:$0xff] }
 0x79d   : > { %7648 = vmatprep.mubr.msk.f32.mxu1 %vm2823_vm15, %v3218_v60 }
 0x7a0   : > { %3632 = vrot.lane.b32.xlu1 %v15353_v61, %s10531_s23  ;;  %3534 = vmatmul.mubr.f32.gmra.mrb[104].mxu1 %v3217_v59 }
 0x7a1   : > { %9373 = vmatpush1.bf16.xpose.msk.msra.mxu1 %vm12024_vm2, %v9371_v24  ;;  %7649 = vmatprep.mubr.msk.f32.mxu1 %vm2823_vm15, %v3220_v44 }
 0x7a2   : > { %9374 = vmatprep.subr.bf16.mxu1 %v15326_v0 }
 0x7a4   : > { %3636 = vrot.lane.b32.xlu1 %v15354_v1, %s10531_s23  ;;  %3539 = vmatmul.mubr.f32.gmra.mrb[106].mxu1 %v3219_v55 }
 0x7a5   : > { %7650 = vmatprep.mubr.msk.f32.mxu1 %vm2823_vm15, %v3222_v29 }
 0x7a8   : > { %3640 = vrot.lane.b32.xlu1 %v15355_v34, %s10531_s23  ;;  %3544 = vmatmul.mubr.f32.gmra.mrb[108].mxu1 %v3221_v32  ;;  %v15368_v32 = vmov 0.0  }
 0x7a9   : > { %9377 = vmatpush1.bf16.xpose.msk.msra.mxu1 %vm12024_vm2, %v9375_v21  ;;  %7651 = vmatprep.mubr.msk.f32.mxu1 %vm2823_vm15, %v3224_v50 }
 0x7aa   : > { %9378 = vmatprep.subr.bf16.mxu1 %v15326_v0 }
 0x7ac   : > { %3644 = vrot.lane.b32.xlu1 %v15356_v56, %s10531_s23  ;;  %3549 = vmatmul.mubr.f32.gmra.mrb[110].mxu1 %v3223_v51 }
 0x7ad   : > { %7652 = vmatprep.mubr.msk.f32.mxu1 %vm2823_vm15, %v3226_v35 }
 0x7b0   : > { %3648 = vrot.lane.b32.xlu1 %v15357_v14, %s10531_s23  ;;  %3554 = vmatmul.mubr.f32.gmra.mrb[112].mxu1 %v3225_v8 }
 0x7b1   : > { %7653 = vmatprep.mubr.msk.f32.mxu1 %vm2823_vm15, %v3228_v23 }
 0x7b4   : > { %3652 = vrot.lane.b32.xlu1 %v15360_v57, %s10531_s23  ;;  %3559 = vmatmul.mubr.f32.gmra.mrb[114].mxu1 %v3227_v54 }
 0x7b5   : > { %7654 = vmatprep.mubr.msk.f32.mxu1 %vm2823_vm15, %v3230_v40 }
 0x7b8   : > { %3656 = vrot.lane.b32.xlu1 %v15363_v49, %s10531_s23  ;;  %3564 = vmatmul.mubr.f32.gmra.mrb[116].mxu1 %v3229_v15 }
 0x7bc   : > { %3660 = vrot.lane.b32.xlu1 %v15364_v46, %s10531_s23  ;;  %s277_s23 = scalar_lea.vmem [#allocation4], %s276_s18 }
 0x7c0   : > { %9983 = vrot.lane.b32.xlu1 %v15365_v37, %s10532_s24 }
 0x7c3   : > { %v3141_v53 = vpop.xlane.xlu1 %3140 }
 0x7c4   : > { %10174 = vrcp.f32 %v3141_v53  ;;  %9998 = vrot.lane.b32.xlu1 %v15366_v58, %s10532_s24 }
 0x7c5   : > { %v3149_v9 = vpop.xlane.xlu0 %3148 }
 0x7c6   : > { %10176 = vrcp.f32 %v3149_v9 }
 0x7c7   : > { %v3145_v42 = vpop.xlane.xlu1 %3144 }
 0x7c8   : > { %10178 = vrcp.f32 %v3145_v42  ;;  %10013 = vrot.lane.b32.xlu1 %v15367_v63, %s10532_s24 }
 0x7c9   : > { %v3153_v13 = vpop.xlane.xlu0 %3152 }
 0x7ca   : > { %10180 = vrcp.f32 %v3153_v13 }
 0x7cb   : > { %v3157_v11 = vpop.xlane.xlu1 %3156 }
 0x7cc   : > { %10182 = vrcp.f32 %v3157_v11 }
 0x7cd   : > { %v3165_v60 = vpop.xlane.xlu0 %3164 }
 0x7ce   : > { %v10175_v26 = vpop.eup %10174 }
 0x7cf   : > { %v3232_v24 = vmul.f32 %v10175_v26, %v12565_v19  ;;  %v3231_v7 = vmul.f32 %v10175_v26, %v12571_v43  ;;  %v3161_v44 = vpop.xlane.xlu1 %3160 }
 0x7d0   : > { %v10177_v61 = vpop.eup %10176  ;;  %10184 = vrcp.f32 %v3161_v44 }
 0x7d1   : > { %v3169_v59 = vpop.xlane.xlu0 %3168  ;;  %7655 = vmatprep.mubr.msk.f32.mxu1 %vm2823_vm15, %v3232_v24  ;;  %v3236_v19 = vmul.f32 %v10177_v61, %v12567_v45  ;;  %10186 = vrcp.f32 %v3165_v60  ;;  %v3235_v21 = vmul.f32 %v10177_v61, %v12575_v41 }
 0x7d2   : > { %v10179_v18 = vpop.eup %10178  ;;  %3569 = vmatmul.mubr.f32.gmra.mrb[118].mxu1 %v3231_v7  ;;  %10188 = vrcp.f32 %v3169_v59 }
 0x7d3   : > { %v3234_v31 = vmul.f32 %v10179_v18, %v12569_v27  ;;  %v3233_v16 = vmul.f32 %v10179_v18, %v12581_v3  ;;  %v3713_v41 = vpop.permute.xlu1 %3712 }
 0x7d4   : > { %v10181_v43 = vpop.eup %10180 }
 0x7d5   : > { %v9979_v55 = vpop.permute.xlu0 %9978  ;;  %7656 = vmatprep.mubr.msk.f32.mxu1 %vm2823_vm15, %v3234_v31  ;;  %v3238_v27 = vmul.f32 %v10181_v43, %v12579_v52  ;;  %v3237_v45 = vmul.f32 %v10181_v43, %v12589_v22 }
 0x7d6   : > { %v9981_v1 = vunpack.i.h.bf16 %v9979_v55  ;;  %v9980_v29 = vunpack.i.l.bf16 %v9979_v55  ;;  %3574 = vmatmul.mubr.f32.gmra.mrb[120].mxu1 %v3233_v16  ;;  %v10183_v3 = vpop.eup %10182 }
 0x7d7   : > { %7657 = vmatprep.mubr.msk.f32.mxu1 %vm2823_vm15, %v3236_v19  ;;  %v3240_v34 = vmul.f32 %v10183_v3, %v12584_v20  ;;  %v3239_v39 = vmul.f32 %v10183_v3, %v12595_v25  ;;  %v3615_v14 = vpop.permute.xlu1 %3614 }
 0x7d8   : > { %v9379_v28 = vpack.c.bf16 %v9981_v1, %v9980_v29 }
 0x7d9   : > { %v3623_v10 = vpop.permute.xlu0 %3622 }
 0x7da   : > { %9381 = vmatpush1.bf16.xpose.msk.msra.mxu1 %vm12024_vm2, %v9379_v28  ;;  %v10185_v50 = vpop.eup %10184 }
 0x7db   : > { %3579 = vmatmul.mubr.f32.gmra.mrb[122].mxu1 %v3235_v21  ;;  %3862 = vmatprep.subr.mxu1 %v15368_v32  ;;  %v3242_v52 = vmul.f32 %v10185_v50, %v12603_v38  ;;  %v10187_v36 = vpop.eup %10186  ;;  %v3241_v22 = vmul.f32 %v10185_v50, %v12610_v6  ;;  %v15369_v38 = vld [vmem:[#allocation75_spill] sm:$0xff] }
 0x7dc   : > { %7658 = vmatprep.mubr.msk.f32.mxu1 %vm2823_vm15, %v3238_v27  ;;  %v3244_v20 = vmul.f32 %v10187_v36, %v12593_v47  ;;  %v10189_v51 = vpop.eup %10188  ;;  %v3243_v25 = vmul.f32 %v10187_v36, %v12598_v62 }
 0x7dd   : > { %v3246_v56 = vmul.f32 %v10189_v51, %v12607_v4  ;;  %v3245_v35 = vmul.f32 %v10189_v51, %v15369_v38  ;;  %v3627_v8 = vpop.permute.xlu0 %3626 }
 0x7df   : > { %3584 = vmatmul.mubr.f32.gmra.mrb[124].mxu1 %v3237_v45 }
 0x7e0   : > { %7659 = vmatprep.mubr.msk.f32.mxu1 %vm2823_vm15, %v3240_v34 }
 0x7e1   : > { %v3631_v6 = vpop.permute.xlu0 %3630 }
 0x7e2   : > { %7688 = vmatpush1.xpose.msk.msra.mxu1 %vm2138_vm14, %v3713_v41 }
 0x7e3   : > { %3589 = vmatmul.mubr.f32.gmra.mrb[126].mxu1 %v3239_v39  ;;  %9382 = vmatprep.subr.bf16.mxu1 %v15326_v0 }
 0x7e4   : > { %7660 = vmatprep.mubr.msk.f32.mxu1 %vm2823_vm15, %v3242_v52 }
 0x7e5   : > { %v12843_v23 = vpop.permute.xlu0 %3634 }
 0x7e7   : > { %3594 = vmatmul.mubr.f32.gmra.mrb[128].mxu1 %v3241_v22 }
 0x7e8   : > { %7661 = vmatprep.mubr.msk.f32.mxu1 %vm2823_vm15, %v3244_v20 }
 0x7e9   : > { %v12845_v62 = vpop.permute.xlu0 %3638 }
 0x7eb   : > { %3599 = vmatmul.mubr.f32.gmra.mrb[130].mxu1 %v3243_v25 }
 0x7ec   : > { %7662 = vmatprep.mubr.msk.f32.mxu1 %vm2823_vm15, %v3246_v56 }
 0x7ed   : > { %v12851_v40 = vpop.permute.xlu0 %3642 }
 0x7ef   : > { %3604 = vmatmul.mubr.f32.gmra.mrb[132].mxu1 %v3245_v35 }
 0x7f1   : > { %v12855_v15 = vpop.permute.xlu0 %3646 }
 0x7f5   : > { %v12865_v9 = vpop.permute.xlu0 %3650 }
 0x7f9   : > { %v12872_v63 = vpop.permute.xlu0 %3654 }
 0x7fd   : > { %v12883_v7 = vpop.permute.xlu0 %3658 }
 0x801   : > { %v12892_v18 = vpop.permute.xlu0 %3662 }
 0x805   : > { %v9989_v29 = vpop.permute.xlu0 %9988 }
 0x806   : > { %v9991_v21 = vunpack.i.h.bf16 %v9989_v29  ;;  %v9990_v27 = vunpack.i.l.bf16 %v9989_v29 }
 0x808   : > { %v3173_v17 = vpop.xlane.xlu1 %3172  ;;  %v9386_v34 = vpack.c.bf16 %v9991_v21, %v9990_v27 }
 0x809   : > { %10190 = vrcp.f32 %v3173_v17  ;;  %v9994_v45 = vpop.permute.xlu0 %9993 }
 0x80a   : > { %v9996_v50 = vunpack.i.h.bf16 %v9994_v45  ;;  %v9995_v41 = vunpack.i.l.bf16 %v9994_v45 }
 0x80c   : > { %v3617_v47 = vpop.permute.xlu1 %3616  ;;  %v9389_v36 = vpack.c.bf16 %v9996_v50, %v9995_v41 }
 0x80d   : > { %v10004_v52 = vpop.permute.xlu0 %10003 }
 0x80e   : > { %v10006_v51 = vunpack.i.h.bf16 %v10004_v52  ;;  %v10005_v25 = vunpack.i.l.bf16 %v10004_v52 }
 0x810   : > { %v3619_v2 = vpop.permute.xlu1 %3618  ;;  %v9395_v35 = vpack.c.bf16 %v10006_v51, %v10005_v25 }
 0x811   : > { %v10009_v38 = vpop.permute.xlu0 %10008 }
 0x813   : > { %v10191_v5 = vpop.eup %10190 }
 0x814   : > { %v3621_v4 = vpop.permute.xlu1 %3620  ;;  %v3248_v54 = vmul.f32 %v10191_v5, %v12700_v33  ;;  %v3247_v57 = vmul.f32 %v10191_v5, %v12704_v12 }
 0x816   : > { %7663 = vmatprep.mubr.msk.f32.mxu1 %vm2823_vm15, %v3248_v54 }
 0x817   : > { %3609 = vmatmul.mubr.f32.gmra.mrb[134].mxu1 %v3247_v57 }
 0x818   : > { %v3625_v30 = vpop.permute.xlu1 %3624  ;;  %3878 = vmatprep.mubr.f32.mxu1 %v15368_v32 }
 0x81b   : > { %7689 = vmatmul.mubr.msk.f32.vlgmr.msra.gmra.mrb[136].mxu1 %vm2138_vm14, %v3615_v14 }
 0x81c   : > { %v3629_v48 = vpop.permute.xlu1 %3628  ;;  %3884 = vmatprep.mubr.f32.mxu1 %v15368_v32 }
 0x81f   : > { %v12857_v49 = vpop.f32.mrb[86].mxu1  ;;  %7690 = vmatmul.mubr.msk.f32.gmra.mrb[138].mxu1 %vm2138_vm14, %v3617_v47 }
 0x820   : > { %15370 = vst [vmem:[#allocation73_spill] sm:$0xff] %v12857_v49  ;;  %v3492_v33 = vpop.f32.mrb[87].mxu1  ;;  %v3633_v12 = vpop.permute.xlu1 %3632  ;;  %3890 = vmatprep.mubr.f32.mxu1 %v15368_v32 }
 0x823   : > { %7691 = vmatmul.mubr.msk.f32.gmra.mrb[140].mxu1 %vm2138_vm14, %v3619_v2 }
 0x824   : > { %v3637_v37 = vpop.permute.xlu1 %3636  ;;  %3896 = vmatprep.mubr.f32.mxu1 %v15368_v32 }
 0x825   : > { %v12862_v46 = vpop.f32.mrb[88].mxu1 }
 0x826   : > { %15371 = vst [vmem:[#allocation78_spill] sm:$0xff] %v12862_v46  ;;  %v3497_v53 = vpop.f32.mrb[89].mxu1 }
 0x827   : > { %7692 = vmatmul.mubr.msk.f32.gmra.mrb[142].mxu1 %vm2138_vm14, %v3621_v4 }
 0x828   : > { %v3641_v42 = vpop.permute.xlu1 %3640  ;;  %3902 = vmatprep.mubr.f32.mxu1 %v15368_v32 }
 0x829   : > { %v12868_v58 = vpop.f32.mrb[90].mxu1 }
 0x82a   : > { %15372 = vst [vmem:[#allocation74_spill] sm:$0xff] %v12868_v58  ;;  %v3502_v13 = vpop.f32.mrb[91].mxu1 }
 0x82b   : > { %7693 = vmatmul.mubr.msk.f32.gmra.mrb[144].mxu1 %vm2138_vm14, %v3623_v10  ;;  %v10011_v10 = vunpack.i.h.bf16 %v10009_v38 }
 0x82c   : > { %v12874_v11 = vpop.permute.xlu1 %3644  ;;  %3908 = vmatprep.mubr.f32.mxu1 %v15368_v32 }
 0x82f   : > { %v12877_v60 = vpop.f32.mrb[92].mxu1  ;;  %7694 = vmatmul.mubr.msk.f32.gmra.mrb[146].mxu1 %vm2138_vm14, %v3625_v30 }
 0x830   : > { %15373 = vst [vmem:[#allocation77_spill] sm:$0xff] %v12877_v60  ;;  %v3507_v26 = vpop.f32.mrb[93].mxu1  ;;  %v12880_v24 = vpop.permute.xlu1 %3648  ;;  %3914 = vmatprep.mubr.f32.mxu1 %v15368_v32  ;;  %v15401_v60 = vld [vmem:[#allocation68_spill] sm:$0xff] }
 0x833   : > { %v12885_v59 = vpop.f32.mrb[94].mxu1  ;;  %7695 = vmatmul.mubr.msk.f32.gmra.mrb[148].mxu1 %vm2138_vm14, %v3627_v8  ;;  %v10010_v8 = vunpack.i.l.bf16 %v10009_v38 }
 0x834   : > { %15374 = vst [vmem:[#allocation76_spill] sm:$0xff] %v12885_v59  ;;  %v3512_v61 = vpop.f32.mrb[95].mxu1  ;;  %v12888_v44 = vpop.permute.xlu1 %3652  ;;  %3920 = vmatprep.mubr.f32.mxu1 %v15368_v32  ;;  %v15399_v59 = vld [vmem:[#allocation62_spill] sm:$0xff] }
 0x837   : > { %7696 = vmatmul.mubr.msk.f32.gmra.mrb[150].mxu1 %vm2138_vm14, %v3629_v48 }
 0x838   : > { %v12894_v31 = vpop.permute.xlu1 %3656  ;;  %3926 = vmatprep.mubr.f32.mxu1 %v15368_v32 }
 0x83b   : > { %v12897_v16 = vpop.f32.mrb[96].mxu1  ;;  %7697 = vmatmul.mubr.msk.f32.gmra.mrb[152].mxu1 %vm2138_vm14, %v3631_v6  ;;  %v9398_v6 = vpack.c.bf16 %v10011_v10, %v10010_v8 }
 0x83c   : > { %15375 = vst [vmem:[#allocation72_spill] sm:$0xff] %v12897_v16  ;;  %v3517_v55 = vpop.f32.mrb[97].mxu1  ;;  %v12900_v1 = vpop.permute.xlu1 %3660  ;;  %3932 = vmatprep.mubr.f32.mxu1 %v15368_v32  ;;  %v15398_v16 = vld [vmem:[#allocation56_spill] sm:$0xff] }
 0x83f   : > { %7698 = vmatmul.mubr.msk.f32.gmra.mrb[154].mxu1 %vm2138_vm14, %v3633_v12 }
 0x840   : > { %v9984_v19 = vpop.permute.xlu1 %9983  ;;  %3938 = vmatprep.mubr.f32.mxu1 %v15368_v32 }
 0x841   : > { %v9986_v43 = vunpack.i.h.bf16 %v9984_v19  ;;  %v9985_v28 = vunpack.i.l.bf16 %v9984_v19 }
 0x843   : > { %v9383_v3 = vpack.c.bf16 %v9986_v43, %v9985_v28  ;;  %7699 = vmatmul.mubr.msk.f32.gmra.mrb[156].mxu1 %vm2138_vm14, %v12843_v23 }
 0x844   : > { %3944 = vmatprep.mubr.f32.mxu1 %v15368_v32  ;;  %v9999_v39 = vpop.permute.xlu1 %9998 }
 0x845   : > { %9384 = vmatpush1.bf16.msra.mxu1 %v9383_v3  ;;  %v10001_v22 = vunpack.i.h.bf16 %v9999_v39  ;;  %v10000_v20 = vunpack.i.l.bf16 %v9999_v39 }
 0x846   : > { %9385 = vmatprep.subr.bf16.mxu1 %v15326_v0 }
 0x847   : > { %7700 = vmatmul.mubr.msk.f32.gmra.mrb[158].mxu1 %vm2138_vm14, %v3637_v37  ;;  %v9392_v56 = vpack.c.bf16 %v10001_v22, %v10000_v20 }
 0x848   : > { %3950 = vmatprep.mubr.f32.mxu1 %v15368_v32  ;;  %v10014_v14 = vpop.permute.xlu1 %10013 }
 0x849   : > { %9387 = vmatpush1.bf16.msra.mxu1 %v9386_v34  ;;  %v10016_v17 = vunpack.i.h.bf16 %v10014_v14  ;;  %v10015_v47 = vunpack.i.l.bf16 %v10014_v14 }
 0x84a   : > { %9388 = vmatprep.subr.bf16.mxu1 %v15326_v0 }
 0x84b   : > { %7701 = vmatmul.mubr.msk.f32.gmra.mrb[160].mxu1 %vm2138_vm14, %v12845_v62  ;;  %v9401_v23 = vpack.c.bf16 %v10016_v17, %v10015_v47 }
 0x84c   : > { %3956 = vmatprep.mubr.f32.mxu1 %v15368_v32 }
 0x84d   : > { %9390 = vmatpush1.bf16.msra.mxu1 %v9389_v36 }
 0x84e   : > { %9391 = vmatprep.subr.bf16.mxu1 %v15326_v0 }
 0x84f   : > { %7702 = vmatmul.mubr.msk.f32.gmra.mrb[162].mxu1 %vm2138_vm14, %v3641_v42 }
 0x850   : > { %3962 = vmatprep.mubr.f32.mxu1 %v15368_v32 }
 0x851   : > { %9393 = vmatpush1.bf16.msra.mxu1 %v9392_v56 }
 0x852   : > { %9394 = vmatprep.subr.bf16.mxu1 %v15326_v0 }
 0x853   : > { %7703 = vmatmul.mubr.msk.f32.gmra.mrb[164].mxu1 %vm2138_vm14, %v12851_v40 }
 0x854   : > { %3968 = vmatprep.mubr.f32.mxu1 %v15368_v32 }
 0x855   : > { %9396 = vmatpush1.bf16.msra.mxu1 %v9395_v35 }
 0x856   : > { %9397 = vmatprep.subr.bf16.mxu1 %v15326_v0 }
 0x857   : > { %7704 = vmatmul.mubr.msk.f32.gmra.mrb[166].mxu1 %vm2138_vm14, %v12874_v11 }
 0x858   : > { %3974 = vmatprep.mubr.f32.mxu1 %v15368_v32 }
 0x859   : > { %9399 = vmatpush1.bf16.msra.mxu1 %v9398_v6 }
 0x85a   : > { %9400 = vmatprep.subr.bf16.mxu1 %v15326_v0 }
 0x85b   : > { %7705 = vmatmul.mubr.msk.f32.gmra.mrb[168].mxu1 %vm2138_vm14, %v12855_v15 }
 0x85c   : > { %3980 = vmatprep.mubr.f32.mxu1 %v15368_v32 }
 0x85d   : > { %9402 = vmatpush1.bf16.msra.mxu1 %v9401_v23 }
 0x85e   : > { %9403 = vmatprep.subr.bf16.mxu1 %v15326_v0 }
 0x85f   : > { %7706 = vmatmul.mubr.msk.f32.gmra.mrb[170].mxu1 %vm2138_vm14, %v12880_v24 }
 0x860   : > { %3986 = vmatprep.mubr.f32.mxu1 %v15368_v32 }
 0x863   : > { %7707 = vmatmul.mubr.msk.f32.gmra.mrb[172].mxu1 %vm2138_vm14, %v12865_v9 }
 0x864   : > { %3992 = vmatprep.mubr.f32.mxu1 %v15368_v32 }
 0x867   : > { %7708 = vmatmul.mubr.msk.f32.gmra.mrb[174].mxu1 %vm2138_vm14, %v12888_v44  ;;  %v12939_v2 = vpop.f32.mrb[98].mxu1 }
 0x868   : > { %15376 = vst [vmem:[#allocation71_spill] sm:$0xff] %v12939_v2  ;;  %3998 = vmatprep.mubr.f32.mxu1 %v15368_v32  ;;  %v3522_v5 = vpop.f32.mrb[99].mxu1 }
 0x86b   : > { %7709 = vmatmul.mubr.msk.f32.gmra.mrb[176].mxu1 %vm2138_vm14, %v12872_v63  ;;  %v12944_v62 = vpop.f32.mrb[100].mxu1 }
 0x86c   : > { %15377 = vst [vmem:[#allocation33_spill] sm:$0xff] %v12944_v62  ;;  %4004 = vmatprep.mubr.f32.mxu1 %v15368_v32  ;;  %v3527_v4 = vpop.f32.mrb[101].mxu1 }
 0x86f   : > { %7710 = vmatmul.mubr.msk.f32.gmra.mrb[178].mxu1 %vm2138_vm14, %v12894_v31  ;;  %v12949_v54 = vpop.f32.mrb[102].mxu1 }
 0x870   : > { %15378 = vst [vmem:[#allocation69_spill] sm:$0xff] %v12949_v54  ;;  %4010 = vmatprep.mubr.f32.mxu1 %v15368_v32  ;;  %v3532_v57 = vpop.f32.mrb[103].mxu1 }
 0x873   : > { %7711 = vmatmul.mubr.msk.f32.gmra.mrb[180].mxu1 %vm2138_vm14, %v12883_v7  ;;  %v12954_v30 = vpop.f32.mrb[104].mxu1 }
 0x874   : > { %15379 = vst [vmem:[#allocation39_spill] sm:$0xff] %v12954_v30  ;;  %4016 = vmatprep.mubr.f32.mxu1 %v15368_v32  ;;  %v3537_v40 = vpop.f32.mrb[105].mxu1 }
 0x877   : > { %7712 = vmatmul.mubr.msk.f32.gmra.mrb[182].mxu1 %vm2138_vm14, %v12900_v1  ;;  %v12959_v48 = vpop.f32.mrb[106].mxu1 }
 0x878   : > { %15380 = vst [vmem:[#allocation80_spill] sm:$0xff] %v12959_v48  ;;  %4022 = vmatprep.mubr.f32.mxu1 %v15368_v32  ;;  %v3542_v15 = vpop.f32.mrb[107].mxu1 }
 0x87b   : > { %7713 = vmatmul.mubr.msk.f32.gmra.mrb[184].mxu1 %vm2138_vm14, %v12892_v18  ;;  %v12964_v33 = vpop.f32.mrb[108].mxu1 }
 0x87c   : > { %15381 = vst [vmem:[#allocation42_spill] sm:$0xff] %v12964_v33  ;;  %v3547_v12 = vpop.f32.mrb[109].mxu1 }
 0x87f   : > { %v12966_v37 = vpop.f32.mrb[110].mxu1 }
 0x880   : > { %15382 = vst [vmem:[#allocation79_spill] sm:$0xff] %v12966_v37  ;;  %v3552_v53 = vpop.f32.mrb[111].mxu1 }
 0x883   : > { %v12968_v9 = vpop.f32.mrb[112].mxu1 }
 0x884   : > { %15383 = vst [vmem:[#allocation45_spill] sm:$0xff] %v12968_v9  ;;  %v3557_v42 = vpop.f32.mrb[113].mxu1 }
 0x887   : > { %v12970_v13 = vpop.f32.mrb[114].mxu1 }
 0x888   : > { %15384 = vst [vmem:[#allocation81_spill] sm:$0xff] %v12970_v13  ;;  %v3562_v63 = vpop.f32.mrb[115].mxu1 }
 0x88b   : > { %v12972_v11 = vpop.f32.mrb[116].mxu1 }
 0x88c   : > { %15385 = vst [vmem:[#allocation48_spill] sm:$0xff] %v12972_v11  ;;  %v3567_v26 = vpop.f32.mrb[117].mxu1 }
 0x8a5   : > { %v12974_v24 = vpop.f32.mrb[118].mxu1 }
 0x8a6   : > { %15386 = vst [vmem:[#allocation51_spill] sm:$0xff] %v12974_v24  ;;  %v3572_v7 = vpop.f32.mrb[119].mxu1 }
 0x8a9   : > { %v12976_v61 = vpop.f32.mrb[120].mxu1 }
 0x8aa   : > { %15387 = vst [vmem:[#allocation82_spill] sm:$0xff] %v12976_v61  ;;  %v3577_v44 = vpop.f32.mrb[121].mxu1 }
 0x8ae   : > { %v12978_v18 = vpop.f32.mrb[122].mxu1 }
 0x8af   : > { %15388 = vst [vmem:[#allocation54_spill] sm:$0xff] %v12978_v18  ;;  %v3582_v31 = vpop.f32.mrb[123].mxu1 }
 0x8b2   : > { %v12980_v55 = vpop.f32.mrb[124].mxu1 }
 0x8b3   : > { %15389 = vst [vmem:[#allocation57_spill] sm:$0xff] %v12980_v55  ;;  %v3587_v1 = vpop.f32.mrb[125].mxu1 }
 0x8b6   : > { %v12982_v29 = vpop.f32.mrb[126].mxu1 }
 0x8b7   : > { %15390 = vst [vmem:[#allocation60_spill] sm:$0xff] %v12982_v29  ;;  %v3592_v19 = vpop.f32.mrb[127].mxu1 }
 0x8ba   : > { %v12984_v43 = vpop.f32.mrb[128].mxu1 }
 0x8bb   : > { %15391 = vst [vmem:[#allocation63_spill] sm:$0xff] %v12984_v43  ;;  %v3597_v28 = vpop.f32.mrb[129].mxu1 }
 0x8be   : > { %v12986_v21 = vpop.f32.mrb[130].mxu1 }
 0x8bf   : > { %15392 = vst [vmem:[#allocation66_spill] sm:$0xff] %v12986_v21  ;;  %v3602_v27 = vpop.f32.mrb[131].mxu1 }
 0x8c2   : > { %v12988_v3 = vpop.f32.mrb[132].mxu1 }
 0x8c3   : > { %15393 = vst [vmem:[#allocation38_spill] sm:$0xff] %v12988_v3  ;;  %v3607_v45 = vpop.f32.mrb[133].mxu1 }
 0x8ea   : > { %v12990_v34 = vpop.f32.mrb[134].mxu1 }
 0x8eb   : > { %15394 = vst [vmem:[#allocation34_spill] sm:$0xff] %v12990_v34  ;;  %v3612_v50 = vpop.f32.mrb[135].mxu1 }
 0x8ee   : > { %v12992_v41 = vpop.f32.mrb[136].mxu1 }
 0x8ef   : > { %v12994_v39 = vpop.f32.mrb[137].mxu1 }
 0x8f0   : > { %v4029_v52 = vsel %vm2823_vm15, %v12994_v39, -inf }
 0x8f1   : > { %v4030_v36 = vmax.f32 %v12992_v41, %v4029_v52 }
 0x8f2   : > { %v12999_v22 = vpop.f32.mrb[138].mxu1 }
 0x8f3   : > { %4031 = vmax.xlane.f32.xlu1 %v4030_v36  ;;  %v13001_v20 = vpop.f32.mrb[139].mxu1 }
 0x8f4   : > { %v4033_v51 = vsel %vm2823_vm15, %v13001_v20, -inf }
 0x8f5   : > { %v4034_v25 = vmax.f32 %v12999_v22, %v4033_v51 }
 0x8f6   : > { %v13006_v56 = vpop.f32.mrb[140].mxu1 }
 0x8f7   : > { %4035 = vmax.xlane.f32.xlu0 %v4034_v25  ;;  %v13008_v38 = vpop.f32.mrb[141].mxu1 }
 0x8f8   : > { %v4037_v35 = vsel %vm2823_vm15, %v13008_v38, -inf }
 0x8f9   : > { %v4038_v10 = vmax.f32 %v13006_v56, %v4037_v35 }
 0x8fa   : > { %v13013_v8 = vpop.f32.mrb[142].mxu1 }
 0x8fb   : > { %4039 = vmax.xlane.f32.xlu0 %v4038_v10  ;;  %v13015_v14 = vpop.f32.mrb[143].mxu1 }
 0x8fc   : > { %v4041_v6 = vsel %vm2823_vm15, %v13015_v14, -inf }
 0x8fd   : > { %v4042_v17 = vmax.f32 %v13013_v8, %v4041_v6 }
 0x8fe   : > { %v13020_v47 = vpop.f32.mrb[144].mxu1 }
 0x8ff   : > { %4043 = vmax.xlane.f32.xlu1 %v4042_v17  ;;  %v13022_v23 = vpop.f32.mrb[145].mxu1 }
 0x900   : > { %v4045_v5 = vsel %vm2823_vm15, %v13022_v23, -inf }
 0x901   : > { %v4046_v4 = vmax.f32 %v13020_v47, %v4045_v5 }
 0x902   : > { %v13027_v57 = vpop.f32.mrb[146].mxu1 }
 0x903   : > { %4047 = vmax.xlane.f32.xlu0 %v4046_v4  ;;  %v13029_v40 = vpop.f32.mrb[147].mxu1 }
 0x904   : > { %v4049_v15 = vsel %vm2823_vm15, %v13029_v40, -inf }
 0x905   : > { %v4050_v12 = vmax.f32 %v13027_v57, %v4049_v15 }
 0x906   : > { %v13034_v53 = vpop.f32.mrb[148].mxu1 }
 0x907   : > { %4051 = vmax.xlane.f32.xlu1 %v4050_v12  ;;  %v13036_v42 = vpop.f32.mrb[149].mxu1 }
 0x908   : > { %v4053_v63 = vsel %vm2823_vm15, %v13036_v42, -inf }
 0x909   : > { %v4054_v26 = vmax.f32 %v13034_v53, %v4053_v63 }
 0x90a   : > { %v13041_v7 = vpop.f32.mrb[150].mxu1 }
 0x90b   : > { %4055 = vmax.xlane.f32.xlu0 %v4054_v26  ;;  %v13043_v44 = vpop.f32.mrb[151].mxu1 }
 0x90c   : > { %v4057_v31 = vsel %vm2823_vm15, %v13043_v44, -inf }
 0x90d   : > { %v4058_v1 = vmax.f32 %v13041_v7, %v4057_v31 }
 0x90e   : > { %v13048_v19 = vpop.f32.mrb[152].mxu1 }
 0x90f   : > { %4059 = vmax.xlane.f32.xlu1 %v4058_v1  ;;  %v13050_v28 = vpop.f32.mrb[153].mxu1 }
 0x910   : > { %v4061_v27 = vsel %vm2823_vm15, %v13050_v28, -inf }
 0x911   : > { %v4062_v45 = vmax.f32 %v13048_v19, %v4061_v27 }
 0x912   : > { %v13055_v50 = vpop.f32.mrb[154].mxu1 }
 0x913   : > { %4063 = vmax.xlane.f32.xlu0 %v4062_v45  ;;  %v13057_v52 = vpop.f32.mrb[155].mxu1 }
 0x914   : > { %v4065_v36 = vsel %vm2823_vm15, %v13057_v52, -inf }
 0x915   : > { %v4066_v51 = vmax.f32 %v13055_v50, %v4065_v36 }
 0x916   : > { %v13062_v25 = vpop.f32.mrb[156].mxu1 }
 0x917   : > { %4067 = vmax.xlane.f32.xlu1 %v4066_v51  ;;  %v13064_v35 = vpop.f32.mrb[157].mxu1 }
 0x918   : > { %v4069_v10 = vsel %vm2823_vm15, %v13064_v35, -inf }
 0x919   : > { %v4070_v6 = vmax.f32 %v13062_v25, %v4069_v10 }
 0x91a   : > { %v13069_v17 = vpop.f32.mrb[158].mxu1 }
 0x91b   : > { %4071 = vmax.xlane.f32.xlu0 %v4070_v6  ;;  %v13071_v5 = vpop.f32.mrb[159].mxu1 }
 0x91c   : > { %v4073_v4 = vsel %vm2823_vm15, %v13071_v5, -inf }
 0x91d   : > { %v4074_v15 = vmax.f32 %v13069_v17, %v4073_v4 }
 0x91e   : > { %v13076_v12 = vpop.f32.mrb[160].mxu1 }
 0x91f   : > { %4075 = vmax.xlane.f32.xlu1 %v4074_v15  ;;  %v13078_v63 = vpop.f32.mrb[161].mxu1 }
 0x920   : > { %v4077_v26 = vsel %vm2823_vm15, %v13078_v63, -inf }
 0x921   : > { %v4078_v31 = vmax.f32 %v13076_v12, %v4077_v26 }
 0x922   : > { %v13083_v1 = vpop.f32.mrb[162].mxu1 }
 0x923   : > { %4079 = vmax.xlane.f32.xlu0 %v4078_v31  ;;  %v13085_v27 = vpop.f32.mrb[163].mxu1 }
 0x924   : > { %v4081_v45 = vsel %vm2823_vm15, %v13085_v27, -inf }
 0x925   : > { %v4082_v36 = vmax.f32 %v13083_v1, %v4081_v45 }
 0x926   : > { %v13090_v51 = vpop.f32.mrb[164].mxu1 }
 0x927   : > { %4083 = vmax.xlane.f32.xlu1 %v4082_v36  ;;  %v13092_v10 = vpop.f32.mrb[165].mxu1 }
 0x928   : > { %v4085_v6 = vsel %vm2823_vm15, %v13092_v10, -inf }
 0x929   : > { %v4086_v4 = vmax.f32 %v13090_v51, %v4085_v6 }
 0x92a   : > { %v13097_v15 = vpop.f32.mrb[166].mxu1 }
 0x92b   : > { %4087 = vmax.xlane.f32.xlu0 %v4086_v4  ;;  %v13099_v26 = vpop.f32.mrb[167].mxu1 }
 0x92c   : > { %v4089_v31 = vsel %vm2823_vm15, %v13099_v26, -inf }
 0x92d   : > { %v4090_v45 = vmax.f32 %v13097_v15, %v4089_v31 }
 0x92e   : > { %v13104_v34 = vpop.f32.mrb[168].mxu1 }
 0x92f   : > { %4091 = vmax.xlane.f32.xlu1 %v4090_v45  ;;  %v13106_v36 = vpop.f32.mrb[169].mxu1 }
 0x930   : > { %v4093_v3 = vsel %vm2823_vm15, %v13106_v36, -inf }
 0x931   : > { %v4094_v6 = vmax.f32 %v13104_v34, %v4093_v3 }
 0x932   : > { %v13111_v21 = vpop.f32.mrb[170].mxu1 }
 0x933   : > { %4095 = vmax.xlane.f32.xlu0 %v4094_v6  ;;  %v13113_v4 = vpop.f32.mrb[171].mxu1 }
 0x934   : > { %v4097_v43 = vsel %vm2823_vm15, %v13113_v4, -inf }
 0x935   : > { %v4098_v31 = vmax.f32 %v13111_v21, %v4097_v43 }
 0x936   : > { %v13118_v29 = vpop.f32.mrb[172].mxu1 }
 0x937   : > { %4099 = vmax.xlane.f32.xlu0 %v4098_v31  ;;  %v13120_v45 = vpop.f32.mrb[173].mxu1 }
 0x938   : > { %v4101_v55 = vsel %vm2823_vm15, %v13120_v45, -inf }
 0x939   : > { %v4102_v3 = vmax.f32 %v13118_v29, %v4101_v55 }
 0x93a   : > { %v13125_v18 = vpop.f32.mrb[174].mxu1 }
 0x93b   : > { %4103 = vmax.xlane.f32.xlu1 %v4102_v3  ;;  %v13127_v6 = vpop.f32.mrb[175].mxu1 }
 0x93c   : > { %v4105_v61 = vsel %vm2823_vm15, %v13127_v6, -inf }
 0x93d   : > { %v4106_v43 = vmax.f32 %v13125_v18, %v4105_v61 }
 0x93e   : > { %v13132_v24 = vpop.f32.mrb[176].mxu1 }
 0x93f   : > { %4107 = vmax.xlane.f32.xlu0 %v4106_v43  ;;  %v13134_v31 = vpop.f32.mrb[177].mxu1 }
 0x940   : > { %v4109_v11 = vsel %vm2823_vm15, %v13134_v31, -inf }
 0x941   : > { %v4110_v55 = vmax.f32 %v13132_v24, %v4109_v11 }
 0x942   : > { %v13139_v13 = vpop.f32.mrb[178].mxu1 }
 0x943   : > { %4111 = vmax.xlane.f32.xlu0 %v4110_v55  ;;  %v13141_v3 = vpop.f32.mrb[179].mxu1 }
 0x944   : > { %v4113_v9 = vsel %vm2823_vm15, %v13141_v3, -inf }
 0x945   : > { %v4114_v61 = vmax.f32 %v13139_v13, %v4113_v9 }
 0x946   : > { %v13146_v37 = vpop.f32.mrb[180].mxu1 }
 0x947   : > { %4115 = vmax.xlane.f32.xlu1 %v4114_v61  ;;  %v13148_v43 = vpop.f32.mrb[181].mxu1 }
 0x948   : > { %v4117_v33 = vsel %vm2823_vm15, %v13148_v43, -inf }
 0x949   : > { %v4118_v11 = vmax.f32 %v13146_v37, %v4117_v33  ;;  %v15397_v33 = vld [vmem:[#allocation59_spill] sm:$0xff] }
 0x94a   : > { %v13153_v48 = vpop.f32.mrb[182].mxu1 }
 0x94b   : > { %v13155_v55 = vpop.f32.mrb[183].mxu1 }
 0x94c   : > { %v4121_v30 = vsel %vm2823_vm15, %v13155_v55, -inf }
 0x94d   : > { %v4122_v54 = vmax.f32 %v13153_v48, %v4121_v30  ;;  %v15400_v30 = vld [vmem:[#allocation65_spill] sm:$0xff] }
 0x94e   : > { %v13160_v9 = vpop.f32.mrb[184].mxu1 }
 0x94f   : > { %15395 = vst [vmem:[#allocation41_spill] sm:$0xff] %v13160_v9  ;;  %v13162_v62 = vpop.f32.mrb[185].mxu1 }
 0x950   : > { %15396 = vst [vmem:[#allocation36_spill] sm:$0xff] %v13162_v62  ;;  %v4125_v61 = vsel %vm2823_vm15, %v13162_v62, -inf }
 0x951   : > { %v4126_v2 = vmax.f32 %v13160_v9, %v4125_v61 }
 0x958   : > { %10023 = vrot.lane.b32.xlu1 %v15397_v33, %s10532_s24 }
 0x959   : > { %10018 = vrot.lane.b32.xlu0 %v15398_v16, %s10532_s24 }
 0x95c   : > { %10028 = vrot.lane.b32.xlu1 %v15399_v59, %s10532_s24 }
 0x960   : > { %10033 = vrot.lane.b32.xlu1 %v15400_v30, %s10532_s24 }
 0x964   : > { %10038 = vrot.lane.b32.xlu1 %v15401_v60, %s10532_s24 }
 0x978   : > { %4119 = vmax.xlane.f32.xlu0 %v4118_v11 }
 0x97c   : > { %4123 = vmax.xlane.f32.xlu0 %v4122_v54 }
 0x980   : > { %v4032_v58 = vpop.xlane.xlu1 %4031  ;;  %4127 = vmax.xlane.f32.xlu0 %v4126_v2 }
 0x981   : > { %v4129_v61 = vsub.f32 %v12992_v41, %v4032_v58  ;;  %v4130_v33 = vsub.f32 %v12994_v39, %v4032_v58 }
 0x983   : > { %v4179_v46 = vmul.f32 1.442695, %v4129_v61  ;;  %v4181_v49 = vmul.f32 1.442695, %v4130_v33 }
 0x984   : > { %v4036_v16 = vpop.xlane.xlu0 %4035 }
 0x985   : > { %10192 = vpow2.f32 %v4179_v46  ;;  %v4131_v59 = vsub.f32 %v12999_v22, %v4036_v16  ;;  %v4132_v62 = vsub.f32 %v13001_v20, %v4036_v16 }
 0x986   : > { %10194 = vpow2.f32 %v4181_v49 }
 0x987   : > { %v4183_v30 = vmul.f32 1.442695, %v4131_v59  ;;  %v4185_v9 = vmul.f32 1.442695, %v4132_v62 }
 0x988   : > { %v4040_v60 = vpop.xlane.xlu0 %4039 }
 0x989   : > { %10196 = vpow2.f32 %v4183_v30  ;;  %v4133_v54 = vsub.f32 %v13006_v56, %v4040_v60  ;;  %v4134_v2 = vsub.f32 %v13008_v38, %v4040_v60 }
 0x98a   : > { %10198 = vpow2.f32 %v4185_v9 }
 0x98b   : > { %v4187_v41 = vmul.f32 1.442695, %v4133_v54  ;;  %v4189_v58 = vmul.f32 1.442695, %v4134_v2 }
 0x98c   : > { %v4044_v39 = vpop.xlane.xlu1 %4043 }
 0x98d   : > { %10200 = vpow2.f32 %v4187_v41  ;;  %v4135_v46 = vsub.f32 %v13013_v8, %v4044_v39  ;;  %v4136_v22 = vsub.f32 %v13015_v14, %v4044_v39 }
 0x98e   : > { %10202 = vpow2.f32 %v4189_v58 }
 0x98f   : > { %v13185_v20 = vpop.eup %10192  ;;  %v4191_v49 = vmul.f32 1.442695, %v4135_v46  ;;  %v4193_v62 = vmul.f32 1.442695, %v4136_v22 }
 0x990   : > { %v13187_v11 = vpop.eup %10194  ;;  %v4048_v61 = vpop.xlane.xlu0 %4047 }
 0x991   : > { %10204 = vpow2.f32 %v4191_v49  ;;  %v4137_v56 = vsub.f32 %v13020_v47, %v4048_v61  ;;  %v4138_v38 = vsub.f32 %v13022_v23, %v4048_v61  ;;  %v4279_v9 = vsel %vm2823_vm15, %v13187_v11, 0.0 }
 0x992   : > { %10206 = vpow2.f32 %v4193_v62  ;;  %v4280_v8 = vadd.f32 %v13185_v20, %v4279_v9 }
 0x993   : > { %v13194_v14 = vpop.eup %10196  ;;  %v4195_v33 = vmul.f32 1.442695, %v4137_v56  ;;  %v4197_v16 = vmul.f32 1.442695, %v4138_v38 }
 0x994   : > { %v13196_v59 = vpop.eup %10198  ;;  %4281 = vadd.xlane.f32.xlu1 %v4280_v8  ;;  %v4052_v30 = vpop.xlane.xlu1 %4051 }
 0x995   : > { %10208 = vpow2.f32 %v4195_v33  ;;  %v4139_v60 = vsub.f32 %v13027_v57, %v4052_v30  ;;  %v4140_v47 = vsub.f32 %v13029_v40, %v4052_v30  ;;  %v4283_v23 = vsel %vm2823_vm15, %v13196_v59, 0.0 }
 0x996   : > { %10210 = vpow2.f32 %v4197_v16  ;;  %v4284_v54 = vadd.f32 %v13194_v14, %v4283_v23 }
 0x997   : > { %v13203_v2 = vpop.eup %10200  ;;  %v4199_v41 = vmul.f32 1.442695, %v4139_v60  ;;  %v4201_v58 = vmul.f32 1.442695, %v4140_v47 }
 0x998   : > { %v13205_v39 = vpop.eup %10202  ;;  %4285 = vadd.xlane.f32.xlu1 %v4284_v54  ;;  %v4056_v46 = vpop.xlane.xlu0 %4055 }
 0x999   : > { %10212 = vpow2.f32 %v4199_v41  ;;  %v4141_v22 = vsub.f32 %v13034_v53, %v4056_v46  ;;  %v4142_v57 = vsub.f32 %v13036_v42, %v4056_v46  ;;  %v4287_v40 = vsel %vm2823_vm15, %v13205_v39, 0.0 }
 0x99a   : > { %10214 = vpow2.f32 %v4201_v58  ;;  %v4288_v49 = vadd.f32 %v13203_v2, %v4287_v40 }
 0x99b   : > { %v13212_v62 = vpop.eup %10204  ;;  %v4203_v61 = vmul.f32 1.442695, %v4141_v22  ;;  %v4205_v56 = vmul.f32 1.442695, %v4142_v57 }
 0x99c   : > { %v13214_v38 = vpop.eup %10206  ;;  %4289 = vadd.xlane.f32.xlu1 %v4288_v49  ;;  %v4060_v9 = vpop.xlane.xlu1 %4059 }
 0x99d   : > { %10216 = vpow2.f32 %v4203_v61  ;;  %v4143_v8 = vsub.f32 %v13041_v7, %v4060_v9  ;;  %v4144_v53 = vsub.f32 %v13043_v44, %v4060_v9  ;;  %v4291_v42 = vsel %vm2823_vm15, %v13214_v38, 0.0 }
 0x99e   : > { %10218 = vpow2.f32 %v4205_v56  ;;  %v4292_v33 = vadd.f32 %v13212_v62, %v4291_v42 }
 0x99f   : > { %v13221_v16 = vpop.eup %10208  ;;  %v4207_v30 = vmul.f32 1.442695, %v4143_v8  ;;  %v4209_v60 = vmul.f32 1.442695, %v4144_v53 }
 0x9a0   : > { %v13223_v47 = vpop.eup %10210  ;;  %4293 = vadd.xlane.f32.xlu0 %v4292_v33  ;;  %v13232_v41 = vpop.xlane.xlu0 %4063 }
 0x9a1   : > { %10220 = vpow2.f32 %v4207_v30  ;;  %v4295_v23 = vsel %vm2823_vm15, %v13223_v47, 0.0 }
 0x9a2   : > { %10222 = vpow2.f32 %v4209_v60  ;;  %v4296_v7 = vadd.f32 %v13221_v16, %v4295_v23 }
 0x9a3   : > { %v13228_v44 = vpop.eup %10212 }
 0x9a4   : > { %v13230_v54 = vpop.eup %10214  ;;  %4297 = vadd.xlane.f32.xlu0 %v4296_v7  ;;  %v4068_v58 = vpop.xlane.xlu1 %4067 }
 0x9a5   : > { %v4147_v46 = vsub.f32 %v13055_v50, %v4068_v58  ;;  %v4148_v22 = vsub.f32 %v13057_v52, %v4068_v58  ;;  %v4299_v57 = vsel %vm2823_vm15, %v13230_v54, 0.0 }
 0x9a6   : > { %v4300_v40 = vadd.f32 %v13228_v44, %v4299_v57 }
 0x9a7   : > { %v13239_v49 = vpop.eup %10216  ;;  %v4215_v61 = vmul.f32 1.442695, %v4147_v46  ;;  %v4217_v56 = vmul.f32 1.442695, %v4148_v22 }
 0x9a8   : > { %v13241_v9 = vpop.eup %10218  ;;  %4301 = vadd.xlane.f32.xlu0 %v4300_v40  ;;  %v4072_v8 = vpop.xlane.xlu0 %4071 }
 0x9a9   : > { %10224 = vpow2.f32 %v4215_v61  ;;  %v4149_v53 = vsub.f32 %v13062_v25, %v4072_v8  ;;  %v4150_v50 = vsub.f32 %v13064_v35, %v4072_v8  ;;  %v4303_v52 = vsel %vm2823_vm15, %v13241_v9, 0.0  ;;  %v15402_v35 = vld [vmem:[#allocation70_spill] sm:$0xff] }
 0x9aa   : > { %10226 = vpow2.f32 %v4217_v56  ;;  %v4304_v42 = vadd.f32 %v13239_v49, %v4303_v52 }
 0x9ab   : > { %v13248_v33 = vpop.eup %10220  ;;  %v4219_v30 = vmul.f32 1.442695, %v4149_v53  ;;  %v4221_v60 = vmul.f32 1.442695, %v4150_v50 }
 0x9ac   : > { %v13250_v23 = vpop.eup %10222  ;;  %4305 = vadd.xlane.f32.xlu0 %v4304_v42  ;;  %v4076_v7 = vpop.xlane.xlu1 %4075 }
 0x9ad   : > { %10228 = vpow2.f32 %v4219_v30  ;;  %v4151_v58 = vsub.f32 %v13069_v17, %v4076_v7  ;;  %v4152_v25 = vsub.f32 %v13071_v5, %v4076_v7  ;;  %4502 = vrot.lane.b32.xlu1 %v15402_v35, %s10532_s24  ;;  %v4307_v46 = vsel %vm2823_vm15, %v13250_v23, 0.0  ;;  %s7386_s24 = sshll.u32 %s277_s23, 4  ;;  %s14973_s24 = int_to_ptr.vmem [resolvable:$true] %s7386_s24 }
 0x9ae   : > { %10230 = vpow2.f32 %v4221_v60  ;;  %v4308_v22 = vadd.f32 %v13248_v33, %v4307_v46  ;;  %v4146_v7 = vsub.f32 %v13050_v28, %v13232_v41  ;;  %s10457_s28 = scalar_lea.vmem %s14973_s24, 16  ;;  %p10464_p6 = scmp.lt.s32.totalorder %s14973_s24, %s10462_s10 }
 0x9af   : > { %v4223_v57 = vmul.f32 1.442695, %v4151_v58  ;;  %v4225_v40 = vmul.f32 1.442695, %v4152_v25  ;;  %p10458_p3 = scmp.ne.s32.totalorder %s14973_s24, %s10457_s28  ;;  %p10465_p7 = scmp.lt.s32.totalorder %s10463_s12, %s10457_s28 }
 0x9b0   : > { %4309 = vadd.xlane.f32.xlu0 %v4308_v22  ;;  %v4080_v61 = vpop.xlane.xlu0 %4079 }
 0x9b1   : > { %10232 = vpow2.f32 %v4223_v57  ;;  %v4153_v56 = vsub.f32 %v13076_v12, %v4080_v61  ;;  %v4154_v17 = vsub.f32 %v13078_v63, %v4080_v61  ;;  %v4213_v61 = vmul.f32 1.442695, %v4146_v7  ;;  %p10459_p4 = pnand %p10458_p3, %p10616_p10  ;;  %p10466_p8 = por %p10465_p7, %p10464_p6 }
 0x9b2   : > { %10234 = vpow2.f32 %v4225_v40 }
 0x9b3   : > { %v13261_v5 = vpop.eup %10224  ;;  %v4227_v8 = vmul.f32 1.442695, %v4153_v56  ;;  %v4229_v53 = vmul.f32 1.442695, %v4154_v17  ;;  %p10460_p5 = pneg %p10459_p4 }
 0x9b4   : > { %v13263_v50 = vpop.eup %10226  ;;  %v4084_v52 = vpop.xlane.xlu1 %4083 }
 0x9b5   : > { %10236 = vpow2.f32 %v4227_v8  ;;  %v4155_v42 = vsub.f32 %v13083_v1, %v4084_v52  ;;  %v4156_v30 = vsub.f32 %v13085_v27, %v4084_v52  ;;  %v4315_v60 = vsel %vm2823_vm15, %v13263_v50, 0.0  ;;  %p10467_p9 = pnand %p10466_p8, %p10460_p5 }
 0x9b6   : > { %10238 = vpow2.f32 %v4229_v53  ;;  %v4316_v12 = vadd.f32 %v13261_v5, %v4315_v60  ;;  %v4145_v1 = vsub.f32 %v13048_v19, %v13232_v41 }
 0x9b7   : > { %v13270_v63 = vpop.eup %10228  ;;  %v4231_v58 = vmul.f32 1.442695, %v4155_v42  ;;  %v4233_v25 = vmul.f32 1.442695, %v4156_v30 }
 0x9b8   : > { %v13274_v35 = vpop.eup %10230  ;;  %4317 = vadd.xlane.f32.xlu0 %v4316_v12  ;;  %v4088_v27 = vpop.xlane.xlu0 %4087  ;;  %v4211_v19 = vmul.f32 1.442695, %v4145_v1 }
 0x9b9   : > { %10240 = vpow2.f32 %v4231_v58  ;;  %v4157_v46 = vsub.f32 %v13090_v51, %v4088_v27  ;;  %v4158_v22 = vsub.f32 %v13092_v10, %v4088_v27  ;;  %v4319_v57 = vsel %vm2823_vm15, %v13274_v35, 0.0 }
 0x9ba   : > { %10242 = vpow2.f32 %v4233_v25  ;;  %v4320_v28 = vadd.f32 %v13270_v63, %v4319_v57 }
 0x9bb   : > { %v13283_v40 = vpop.eup %10232  ;;  %v4235_v56 = vmul.f32 1.442695, %v4157_v46  ;;  %v4237_v17 = vmul.f32 1.442695, %v4158_v22 }
 0x9bc   : > { %v13285_v8 = vpop.eup %10234  ;;  %4321 = vadd.xlane.f32.xlu0 %v4320_v28  ;;  %v4092_v41 = vpop.xlane.xlu1 %4091 }
 0x9bd   : > { %10244 = vpow2.f32 %v4235_v56  ;;  %v4159_v51 = vsub.f32 %v13097_v15, %v4092_v41  ;;  %v4160_v10 = vsub.f32 %v13099_v26, %v4092_v41  ;;  %v4323_v53 = vsel %vm2823_vm15, %v13285_v8, 0.0 }
 0x9be   : > { %10246 = vpow2.f32 %v4237_v17  ;;  %v4324_v52 = vadd.f32 %v13283_v40, %v4323_v53 }
 0x9bf   : > { %v13292_v42 = vpop.eup %10236  ;;  %10248 = vpow2.f32 %v4213_v61  ;;  %v4239_v30 = vmul.f32 1.442695, %v4159_v51  ;;  %v4241_v60 = vmul.f32 1.442695, %v4160_v10 }
 0x9c0   : > { %v13294_v12 = vpop.eup %10238  ;;  %10250 = vpow2.f32 %v4211_v19  ;;  %4325 = vadd.xlane.f32.xlu0 %v4324_v52  ;;  %v4096_v7 = vpop.xlane.xlu0 %4095 }
 0x9c1   : > { %10252 = vpow2.f32 %v4239_v30  ;;  %v4161_v15 = vsub.f32 %v13104_v34, %v4096_v7  ;;  %v4162_v26 = vsub.f32 %v13106_v36, %v4096_v7  ;;  %v4327_v58 = vsel %vm2823_vm15, %v13294_v12, 0.0 }
 0x9c2   : > { %10254 = vpow2.f32 %v4241_v60  ;;  %v4328_v25 = vadd.f32 %v13292_v42, %v4327_v58 }
 0x9c3   : > { %v13301_v1 = vpop.eup %10240  ;;  %v4243_v27 = vmul.f32 1.442695, %v4161_v15  ;;  %v4245_v46 = vmul.f32 1.442695, %v4162_v26 }
 0x9c4   : > { %v13303_v22 = vpop.eup %10242  ;;  %4329 = vadd.xlane.f32.xlu0 %v4328_v25  ;;  %v4100_v57 = vpop.xlane.xlu0 %4099 }
 0x9c5   : > { %10256 = vpow2.f32 %v4243_v27  ;;  %v4163_v28 = vsub.f32 %v13111_v21, %v4100_v57  ;;  %v4164_v34 = vsub.f32 %v13113_v4, %v4100_v57  ;;  %v4331_v36 = vsel %vm2823_vm15, %v13303_v22, 0.0 }
 0x9c6   : > { %10258 = vpow2.f32 %v4245_v46  ;;  %v4332_v61 = vadd.f32 %v13301_v1, %v4331_v36 }
 0x9c7   : > { %v13310_v56 = vpop.eup %10244  ;;  %v4247_v17 = vmul.f32 1.442695, %v4163_v28  ;;  %v4249_v19 = vmul.f32 1.442695, %v4164_v34 }
 0x9c8   : > { %v13312_v41 = vpop.eup %10246  ;;  %4333 = vadd.xlane.f32.xlu0 %v4332_v61  ;;  %v4104_v51 = vpop.xlane.xlu1 %4103 }
 0x9c9   : > { %v13314_v10 = vpop.eup %10248  ;;  %10260 = vpow2.f32 %v4247_v17  ;;  %v4165_v21 = vsub.f32 %v13118_v29, %v4104_v51  ;;  %v4166_v4 = vsub.f32 %v13120_v45, %v4104_v51  ;;  %v4335_v53 = vsel %vm2823_vm15, %v13312_v41, 0.0 }
 0x9ca   : > { %v13320_v52 = vpop.eup %10250  ;;  %10262 = vpow2.f32 %v4249_v19  ;;  %v4336_v30 = vadd.f32 %v13310_v56, %v4335_v53  ;;  %v4311_v29 = vsel %vm2823_vm15, %v13314_v10, 0.0 }
 0x9cb   : > { %v13323_v60 = vpop.eup %10252  ;;  %v4251_v7 = vmul.f32 1.442695, %v4165_v21  ;;  %v4253_v15 = vmul.f32 1.442695, %v4166_v4  ;;  %v4312_v36 = vadd.f32 %v13320_v52, %v4311_v29 }
 0x9cc   : > { %v13325_v26 = vpop.eup %10254  ;;  %4337 = vadd.xlane.f32.xlu0 %v4336_v30  ;;  %v4108_v58 = vpop.xlane.xlu0 %4107 }
 0x9cd   : > { %10264 = vpow2.f32 %v4251_v7  ;;  %v4167_v45 = vsub.f32 %v13125_v18, %v4108_v58  ;;  %v4168_v25 = vsub.f32 %v13127_v6, %v4108_v58  ;;  %v4339_v27 = vsel %vm2823_vm15, %v13325_v26, 0.0 }
 0x9ce   : > { %10266 = vpow2.f32 %v4253_v15  ;;  %v4340_v46 = vadd.f32 %v13323_v60, %v4339_v27 }
 0x9cf   : > { %v13334_v57 = vpop.eup %10256  ;;  %v4255_v28 = vmul.f32 1.442695, %v4167_v45  ;;  %v4257_v34 = vmul.f32 1.442695, %v4168_v25 }
 0x9d0   : > { %v13337_v61 = vpop.eup %10258  ;;  %4341 = vadd.xlane.f32.xlu0 %v4340_v46  ;;  %v4112_v17 = vpop.xlane.xlu0 %4111 }
 0x9d1   : > { %10268 = vpow2.f32 %v4255_v28  ;;  %v4169_v18 = vsub.f32 %v13132_v24, %v4112_v17  ;;  %v4170_v6 = vsub.f32 %v13134_v31, %v4112_v17  ;;  %4313 = vadd.xlane.f32.xlu1 %v4312_v36  ;;  %v4343_v19 = vsel %vm2823_vm15, %v13337_v61, 0.0 }
 0x9d2   : > { %10270 = vpow2.f32 %v4257_v34  ;;  %v4344_v51 = vadd.f32 %v13334_v57, %v4343_v19 }
 0x9d3   : > { %v13344_v21 = vpop.eup %10260  ;;  %v4259_v4 = vmul.f32 1.442695, %v4169_v18  ;;  %v4261_v53 = vmul.f32 1.442695, %v4170_v6 }
 0x9d4   : > { %v13346_v30 = vpop.eup %10262  ;;  %4345 = vadd.xlane.f32.xlu0 %v4344_v51  ;;  %v10019_v7 = vpop.permute.xlu0 %10018 }
 0x9d5   : > { %v4116_v15 = vpop.xlane.xlu1 %4115  ;;  %10272 = vpow2.f32 %v4259_v4  ;;  %v10021_v24 = vunpack.i.h.bf16 %v10019_v7  ;;  %v10020_v58 = vunpack.i.l.bf16 %v10019_v7  ;;  %v4347_v45 = vsel %vm2823_vm15, %v13346_v30, 0.0 }
 0x9d6   : > { %v4171_v31 = vsub.f32 %v13139_v13, %v4116_v15  ;;  %10274 = vpow2.f32 %v4261_v53  ;;  %v4172_v29 = vsub.f32 %v13141_v3, %v4116_v15  ;;  %v4348_v28 = vadd.f32 %v13344_v21, %v4347_v45 }
 0x9d7   : > { %v13352_v25 = vpop.eup %10264  ;;  %v9404_v27 = vpack.c.bf16 %v10021_v24, %v10020_v58 }
 0x9d8   : > { %v4263_v46 = vmul.f32 1.442695, %v4171_v31  ;;  %v13355_v34 = vpop.eup %10266  ;;  %v4265_v36 = vmul.f32 1.442695, %v4172_v29  ;;  %4349 = vadd.xlane.f32.xlu0 %v4348_v28 }
 0x9d9   : > { %v10024_v17 = vpop.permute.xlu1 %10023  ;;  %9405 = vmatpush1.bf16.msra.mxu1 %v9404_v27  ;;  %v4351_v3 = vsel %vm2823_vm15, %v13355_v34, 0.0 }
 0x9da   : > { %10276 = vpow2.f32 %v4263_v46  ;;  %v10026_v18 = vunpack.i.h.bf16 %v10024_v17  ;;  %v10025_v13 = vunpack.i.l.bf16 %v10024_v17  ;;  %v4352_v6 = vadd.f32 %v13352_v25, %v4351_v3  ;;  %9406 = vmatprep.subr.bf16.mxu1 %v15326_v0 }
 0x9db   : > { %10278 = vpow2.f32 %v4265_v36  ;;  %v13361_v19 = vpop.eup %10268 }
 0x9dc   : > { %v9407_v51 = vpack.c.bf16 %v10026_v18, %v10025_v13  ;;  %v13363_v4 = vpop.eup %10270  ;;  %4353 = vadd.xlane.f32.xlu1 %v4352_v6 }
 0x9dd   : > { %v10029_v53 = vpop.permute.xlu1 %10028  ;;  %v4355_v24 = vsel %vm2823_vm15, %v13363_v4, 0.0 }
 0x9de   : > { %v10031_v7 = vunpack.i.h.bf16 %v10029_v53  ;;  %v10030_v15 = vunpack.i.l.bf16 %v10029_v53  ;;  %9408 = vmatpush1.bf16.msra.mxu1 %v9407_v51  ;;  %v4356_v58 = vadd.f32 %v13361_v19, %v4355_v24 }
 0x9df   : > { %9409 = vmatprep.subr.bf16.mxu1 %v15326_v0  ;;  %v13369_v31 = vpop.eup %10272 }
 0x9e0   : > { %v9410_v29 = vpack.c.bf16 %v10031_v7, %v10030_v15  ;;  %v13371_v45 = vpop.eup %10274  ;;  %4357 = vadd.xlane.f32.xlu0 %v4356_v58 }
 0x9e1   : > { %v10034_v27 = vpop.permute.xlu1 %10033  ;;  %v4359_v36 = vsel %vm2823_vm15, %v13371_v45, 0.0 }
 0x9e2   : > { %v10036_v46 = vunpack.i.h.bf16 %v10034_v27  ;;  %v10035_v28 = vunpack.i.l.bf16 %v10034_v27  ;;  %9411 = vmatpush1.bf16.msra.mxu1 %v9410_v29  ;;  %v4360_v17 = vadd.f32 %v13369_v31, %v4359_v36 }
 0x9e3   : > { %9412 = vmatprep.subr.bf16.mxu1 %v15326_v0 }
 0x9e4   : > { %v13377_v18 = vpop.eup %10276  ;;  %v9413_v13 = vpack.c.bf16 %v10036_v46, %v10035_v28  ;;  %4361 = vadd.xlane.f32.xlu1 %v4360_v17 }
 0x9e5   : > { %v13379_v3 = vpop.eup %10278  ;;  %v10039_v6 = vpop.permute.xlu1 %10038 }
 0x9e6   : > { %v10041_v51 = vunpack.i.h.bf16 %v10039_v6  ;;  %v10040_v53 = vunpack.i.l.bf16 %v10039_v6  ;;  %9414 = vmatpush1.bf16.msra.mxu1 %v9413_v13  ;;  %v4363_v7 = vsel %vm2823_vm15, %v13379_v3, 0.0 }
 0x9e7   : > { %v4364_v15 = vadd.f32 %v13377_v18, %v4363_v7  ;;  %9415 = vmatprep.subr.bf16.mxu1 %v15326_v0  ;;  %v15403_v7 = vld [vmem:[#allocation41_spill] sm:$0xff] }
 0x9e8   : > { %v9416_v24 = vpack.c.bf16 %v10041_v51, %v10040_v53 }
 0x9e9   : > { %4365 = vadd.xlane.f32.xlu0 %v4364_v15 }
 0x9ea   : > { %9417 = vmatpush1.bf16.msra.mxu1 %v9416_v24  ;;  %v15404_v24 = vld [vmem:[#allocation36_spill] sm:$0xff] }
 0x9eb   : > { %4652 = vmatprep.subr.mxu1 %v15368_v32 }
 0xa05   : > { %v4120_v58 = vpop.xlane.xlu0 %4119 }
 0xa06   : > { %v4173_v29 = vsub.f32 %v13146_v37, %v4120_v58  ;;  %v4174_v27 = vsub.f32 %v13148_v43, %v4120_v58 }
 0xa08   : > { %v4267_v46 = vmul.f32 1.442695, %v4173_v29  ;;  %v4269_v28 = vmul.f32 1.442695, %v4174_v27 }
 0xa09   : > { %v4124_v36 = vpop.xlane.xlu0 %4123 }
 0xa0a   : > { %10280 = vpow2.f32 %v4267_v46  ;;  %v4175_v17 = vsub.f32 %v13153_v48, %v4124_v36  ;;  %v4176_v13 = vsub.f32 %v13155_v55, %v4124_v36 }
 0xa0b   : > { %10282 = vpow2.f32 %v4269_v28 }
 0xa0c   : > { %v4271_v6 = vmul.f32 1.442695, %v4175_v17  ;;  %v4273_v51 = vmul.f32 1.442695, %v4176_v13 }
 0xa0d   : > { %v4128_v53 = vpop.xlane.xlu0 %4127 }
 0xa0e   : > { %10284 = vpow2.f32 %v4271_v6  ;;  %v4177_v15 = vsub.f32 %v15403_v7, %v4128_v53  ;;  %v4178_v32 = vsub.f32 %v15404_v24, %v4128_v53 }
 0xa0f   : > { %10286 = vpow2.f32 %v4273_v51 }
 0xa10   : > { %v4275_v37 = vmul.f32 1.442695, %v4177_v15  ;;  %v4277_v43 = vmul.f32 1.442695, %v4178_v32 }
 0xa12   : > { %10288 = vpow2.f32 %v4275_v37 }
 0xa13   : > { %10290 = vpow2.f32 %v4277_v43 }
 0xa14   : > { %v13392_v58 = vpop.eup %10280 }
 0xa15   : > { %v13394_v29 = vpop.eup %10282 }
 0xa16   : > { %v4367_v48 = vsel %vm2823_vm15, %v13394_v29, 0.0 }
 0xa17   : > { %v4368_v55 = vadd.f32 %v13392_v58, %v4367_v48 }
 0xa18   : > { %v13399_v27 = vpop.eup %10284 }
 0xa19   : > { %v13401_v46 = vpop.eup %10286  ;;  %4369 = vadd.xlane.f32.xlu1 %v4368_v55 }
 0xa1a   : > { %v4371_v28 = vsel %vm2823_vm15, %v13401_v46, 0.0 }
 0xa1b   : > { %v4372_v32 = vadd.f32 %v13399_v27, %v4371_v28 }
 0xa1c   : > { %v13406_v36 = vpop.eup %10288 }
 0xa1d   : > { %v13408_v17 = vpop.eup %10290  ;;  %4373 = vadd.xlane.f32.xlu0 %v4372_v32 }
 0xa1e   : > { %v4375_v13 = vsel %vm2823_vm15, %v13408_v17, 0.0 }
 0xa1f   : > { %v4376_v6 = vadd.f32 %v13406_v36, %v4375_v13 }
 0xa21   : > { %v4282_v51 = vpop.xlane.xlu1 %4281  ;;  %4377 = vadd.xlane.f32.xlu1 %v4376_v6 }
 0xa22   : > { %10292 = vrcp.f32 %v4282_v51 }
 0xa25   : > { %v4286_v53 = vpop.xlane.xlu1 %4285 }
 0xa26   : > { %10294 = vrcp.f32 %v4286_v53 }
 0xa29   : > { %v4290_v7 = vpop.xlane.xlu1 %4289 }
 0xa2a   : > { %10296 = vrcp.f32 %v4290_v7 }
 0xa2c   : > { %v10293_v15 = vpop.eup %10292 }
 0xa2d   : > { %v4503_v24 = vpop.permute.xlu1 %4502  ;;  %v4294_v37 = vpop.xlane.xlu0 %4293  ;;  %v4405_v43 = vmul.f32 %v10293_v15, %v13187_v11  ;;  %v4404_v48 = vmul.f32 %v10293_v15, %v13185_v20 }
 0xa2e   : > { %10298 = vrcp.f32 %v4294_v37  ;;  %4653 = vmatpush1.msra.mxu1 %v4503_v24  ;;  %v2406_v37 = vld [vmem:[%s15017_s4 + $0x110] sm:$0xff] }
 0xa2f   : > { %7714 = vmatprep.mubr.msk.f32.mxu1 %vm2823_vm15, %v4405_v43  ;;  %9418 = vmatprep.subr.bf16.mxu1 %v15326_v0 }
 0xa30   : > { %v10295_v55 = vpop.eup %10294  ;;  %4669 = vmatmul.mubr.f32.vlgmr.msra.gmra.mrb[186].mxu1 %v4404_v48 }
 0xa31   : > { %v4298_v28 = vpop.xlane.xlu0 %4297  ;;  %v4407_v32 = vmul.f32 %v10295_v55, %v13196_v59  ;;  %v4406_v13 = vmul.f32 %v10295_v55, %v13194_v14 }
 0xa32   : > { %10300 = vrcp.f32 %v4298_v28 }
 0xa33   : > { %7715 = vmatprep.mubr.msk.f32.mxu1 %vm2823_vm15, %v4407_v32 }
 0xa34   : > { %v10297_v6 = vpop.eup %10296  ;;  %4674 = vmatmul.mubr.f32.gmra.mrb[188].mxu1 %v4406_v13 }
 0xa35   : > { %v4302_v11 = vpop.xlane.xlu0 %4301  ;;  %v4409_v20 = vmul.f32 %v10297_v6, %v13205_v39  ;;  %v4408_v51 = vmul.f32 %v10297_v6, %v13203_v2 }
 0xa36   : > { %10302 = vrcp.f32 %v4302_v11 }
 0xa37   : > { %7716 = vmatprep.mubr.msk.f32.mxu1 %vm2823_vm15, %v4409_v20 }
 0xa38   : > { %v10299_v53 = vpop.eup %10298  ;;  %4679 = vmatmul.mubr.f32.gmra.mrb[190].mxu1 %v4408_v51 }
 0xa39   : > { %v4306_v7 = vpop.xlane.xlu0 %4305  ;;  %v4411_v59 = vmul.f32 %v10299_v53, %v13214_v38  ;;  %v4410_v14 = vmul.f32 %v10299_v53, %v13212_v62  ;;  %v2407_v38 = vld [vmem:[%s15017_s4 + $0x118] sm:$0xff] }
 0xa3a   : > { %10304 = vrcp.f32 %v4306_v7  ;;  %v9419_v62 = vpack.c.bf16 %v2407_v38, %v2406_v37 }
 0xa3b   : > { %7717 = vmatprep.mubr.msk.f32.mxu1 %vm2823_vm15, %v4411_v59 }
 0xa3c   : > { %v10301_v15 = vpop.eup %10300  ;;  %4684 = vmatmul.mubr.f32.gmra.mrb[192].mxu1 %v4410_v14 }
 0xa3d   : > { %v4310_v24 = vpop.xlane.xlu0 %4309  ;;  %v4413_v39 = vmul.f32 %v10301_v15, %v13223_v47  ;;  %v4412_v2 = vmul.f32 %v10301_v15, %v13221_v16  ;;  %9420 = vmatpush3.bf16.msra.mxu1 %v9419_v62 }
 0xa3e   : > { %10306 = vrcp.f32 %v4310_v24  ;;  %9421 = vmatprep.subr.bf16.mxu1 %v15326_v0 }
 0xa3f   : > { %7718 = vmatprep.mubr.msk.f32.mxu1 %vm2823_vm15, %v4413_v39 }
 0xa40   : > { %v10303_v43 = vpop.eup %10302  ;;  %4689 = vmatmul.mubr.f32.gmra.mrb[194].mxu1 %v4412_v2 }
 0xa41   : > { %v4415_v48 = vmul.f32 %v10303_v43, %v13230_v54  ;;  %v4414_v47 = vmul.f32 %v10303_v43, %v13228_v44 }
 0xa43   : > { %7719 = vmatprep.mubr.msk.f32.mxu1 %vm2823_vm15, %v4415_v48 }
 0xa44   : > { %v10305_v16 = vpop.eup %10304  ;;  %4694 = vmatmul.mubr.f32.gmra.mrb[196].mxu1 %v4414_v47 }
 0xa45   : > { %v4417_v55 = vmul.f32 %v10305_v16, %v13241_v9  ;;  %v4416_v28 = vmul.f32 %v10305_v16, %v13239_v49  ;;  %v4318_v44 = vpop.xlane.xlu0 %4317 }
 0xa46   : > { %10308 = vrcp.f32 %v4318_v44 }
 0xa47   : > { %7720 = vmatprep.mubr.msk.f32.mxu1 %vm2823_vm15, %v4417_v55 }
 0xa48   : > { %v10307_v32 = vpop.eup %10306  ;;  %4699 = vmatmul.mubr.f32.gmra.mrb[198].mxu1 %v4416_v28 }
 0xa49   : > { %v4419_v13 = vmul.f32 %v10307_v32, %v13250_v23  ;;  %v4418_v54 = vmul.f32 %v10307_v32, %v13248_v33  ;;  %v4322_v6 = vpop.xlane.xlu0 %4321 }
 0xa4b   : > { %7721 = vmatprep.mubr.msk.f32.mxu1 %vm2823_vm15, %v4419_v13 }
 0xa4c   : > { %4704 = vmatmul.mubr.f32.gmra.mrb[200].mxu1 %v4418_v54 }
 0xa4d   : > { %v4326_v11 = vpop.xlane.xlu0 %4325 }
 0xa50   : > { %v10309_v9 = vpop.eup %10308 }
 0xa51   : > { %v4330_v20 = vpop.xlane.xlu0 %4329  ;;  %v4423_v59 = vmul.f32 %v10309_v9, %v13263_v50  ;;  %v4422_v15 = vmul.f32 %v10309_v9, %v13261_v5 }
 0xa55   : > { %v4334_v49 = vpop.xlane.xlu0 %4333 }
 0xa59   : > { %v4338_v7 = vpop.xlane.xlu0 %4337 }
 0xa5d   : > { %v4342_v24 = vpop.xlane.xlu0 %4341 }
 0xa5e   : > { %v4314_v51 = vpop.xlane.xlu1 %4313 }
 0xa5f   : > { %10310 = vrcp.f32 %v4314_v51 }
 0xa60   : > { %10312 = vrcp.f32 %v4322_v6 }
 0xa61   : > { %10314 = vrcp.f32 %v4326_v11  ;;  %v4346_v37 = vpop.xlane.xlu0 %4345 }
 0xa62   : > { %10316 = vrcp.f32 %v4330_v20 }
 0xa63   : > { %10318 = vrcp.f32 %v4334_v49 }
 0xa64   : > { %10320 = vrcp.f32 %v4338_v7 }
 0xa65   : > { %10322 = vrcp.f32 %v4342_v24 }
 0xa66   : > { %10324 = vrcp.f32 %v4346_v37 }
 0xa69   : > { %v10311_v53 = vpop.eup %10310 }
 0xa6a   : > { %v4421_v23 = vmul.f32 %v10311_v53, %v13314_v10  ;;  %v4420_v33 = vmul.f32 %v10311_v53, %v13320_v52  ;;  %v10313_v14 = vpop.eup %10312 }
 0xa6b   : > { %v4425_v39 = vmul.f32 %v10313_v14, %v13274_v35  ;;  %v10315_v2 = vpop.eup %10314  ;;  %v4424_v10 = vmul.f32 %v10313_v14, %v13270_v63  ;;  %v4350_v63 = vpop.xlane.xlu0 %4349 }
 0xa6c   : > { %7722 = vmatprep.mubr.msk.f32.mxu1 %vm2823_vm15, %v4421_v23  ;;  %v4427_v52 = vmul.f32 %v10315_v2, %v13285_v8  ;;  %v10317_v50 = vpop.eup %10316  ;;  %v4426_v5 = vmul.f32 %v10315_v2, %v13283_v40  ;;  %10326 = vrcp.f32 %v4350_v63  ;;  %v4354_v40 = vpop.xlane.xlu1 %4353 }
 0xa6d   : > { %4709 = vmatmul.mubr.f32.gmra.mrb[202].mxu1 %v4420_v33  ;;  %v4429_v38 = vmul.f32 %v10317_v50, %v13294_v12  ;;  %v10319_v35 = vpop.eup %10318  ;;  %v4428_v62 = vmul.f32 %v10317_v50, %v13292_v42  ;;  %10328 = vrcp.f32 %v4354_v40 }
 0xa6e   : > { %7723 = vmatprep.mubr.msk.f32.mxu1 %vm2823_vm15, %v4423_v59  ;;  %v4431_v8 = vmul.f32 %v10319_v35, %v13303_v22  ;;  %v10321_v43 = vpop.eup %10320  ;;  %v4430_v48 = vmul.f32 %v10319_v35, %v13301_v1 }
 0xa6f   : > { %v4433_v12 = vmul.f32 %v10321_v43, %v13312_v41  ;;  %v10323_v47 = vpop.eup %10322  ;;  %v4432_v42 = vmul.f32 %v10321_v43, %v13310_v56  ;;  %v4358_v16 = vpop.xlane.xlu0 %4357 }
 0xa70   : > { %v4435_v22 = vmul.f32 %v10323_v47, %v13325_v26  ;;  %v10325_v55 = vpop.eup %10324  ;;  %10330 = vrcp.f32 %v4358_v16  ;;  %v4434_v1 = vmul.f32 %v10323_v47, %v13323_v60 }
 0xa71   : > { %4714 = vmatmul.mubr.f32.gmra.mrb[204].mxu1 %v4422_v15  ;;  %v4362_v28 = vpop.xlane.xlu1 %4361  ;;  %v4437_v41 = vmul.f32 %v10325_v55, %v13337_v61  ;;  %v4436_v56 = vmul.f32 %v10325_v55, %v13334_v57 }
 0xa72   : > { %7724 = vmatprep.mubr.msk.f32.mxu1 %vm2823_vm15, %v4425_v39  ;;  %10332 = vrcp.f32 %v4362_v28 }
 0xa75   : > { %4719 = vmatmul.mubr.f32.gmra.mrb[206].mxu1 %v4424_v10 }
 0xa76   : > { %7725 = vmatprep.mubr.msk.f32.mxu1 %vm2823_vm15, %v4427_v52  ;;  %v10327_v32 = vpop.eup %10326  ;;  %v4366_v13 = vpop.xlane.xlu0 %4365 }
 0xa77   : > { %v4439_v26 = vmul.f32 %v10327_v32, %v13346_v30  ;;  %v10329_v54 = vpop.eup %10328  ;;  %10334 = vrcp.f32 %v4366_v13  ;;  %v4438_v60 = vmul.f32 %v10327_v32, %v13344_v21 }
 0xa78   : > { %v4441_v44 = vmul.f32 %v10329_v54, %v13355_v34  ;;  %v4440_v6 = vmul.f32 %v10329_v54, %v13352_v25 }
 0xa79   : > { %4724 = vmatmul.mubr.f32.gmra.mrb[208].mxu1 %v4426_v5 }
 0xa7a   : > { %7726 = vmatprep.mubr.msk.f32.mxu1 %vm2823_vm15, %v4429_v38  ;;  %v10331_v61 = vpop.eup %10330 }
 0xa7b   : > { %v4443_v57 = vmul.f32 %v10331_v61, %v13363_v4  ;;  %v4442_v30 = vmul.f32 %v10331_v61, %v13361_v19 }
 0xa7c   : > { %v10333_v11 = vpop.eup %10332 }
 0xa7d   : > { %4729 = vmatmul.mubr.f32.gmra.mrb[210].mxu1 %v4428_v62  ;;  %v4445_v20 = vmul.f32 %v10333_v11, %v13371_v45  ;;  %v4444_v21 = vmul.f32 %v10333_v11, %v13369_v31 }
 0xa7e   : > { %7727 = vmatprep.mubr.msk.f32.mxu1 %vm2823_vm15, %v4431_v8 }
 0xa81   : > { %4734 = vmatmul.mubr.f32.gmra.mrb[212].mxu1 %v4430_v48  ;;  %v10335_v51 = vpop.eup %10334 }
 0xa82   : > { %7728 = vmatprep.mubr.msk.f32.mxu1 %vm2823_vm15, %v4433_v12  ;;  %v4447_v34 = vmul.f32 %v10335_v51, %v13379_v3  ;;  %v4446_v25 = vmul.f32 %v10335_v51, %v13377_v18 }
 0xa85   : > { %4739 = vmatmul.mubr.f32.gmra.mrb[214].mxu1 %v4432_v42 }
 0xa86   : > { %7729 = vmatprep.mubr.msk.f32.mxu1 %vm2823_vm15, %v4435_v22 }
 0xa89   : > { %4744 = vmatmul.mubr.f32.gmra.mrb[216].mxu1 %v4434_v1 }
 0xa8a   : > { %7730 = vmatprep.mubr.msk.f32.mxu1 %vm2823_vm15, %v4437_v41 }
 0xa8d   : > { %4749 = vmatmul.mubr.f32.gmra.mrb[218].mxu1 %v4436_v56 }
 0xa8e   : > { %7731 = vmatprep.mubr.msk.f32.mxu1 %vm2823_vm15, %v4439_v26 }
 0xa91   : > { %4754 = vmatmul.mubr.f32.gmra.mrb[220].mxu1 %v4438_v60 }
 0xa92   : > { %7732 = vmatprep.mubr.msk.f32.mxu1 %vm2823_vm15, %v4441_v44 }
 0xa95   : > { %4759 = vmatmul.mubr.f32.gmra.mrb[222].mxu1 %v4440_v6 }
 0xa96   : > { %7733 = vmatprep.mubr.msk.f32.mxu1 %vm2823_vm15, %v4443_v57 }
 0xa99   : > { %4764 = vmatmul.mubr.f32.gmra.mrb[224].mxu1 %v4442_v30 }
 0xa9a   : > { %7734 = vmatprep.mubr.msk.f32.mxu1 %vm2823_vm15, %v4445_v20 }
 0xa9d   : > { %4769 = vmatmul.mubr.f32.gmra.mrb[226].mxu1 %v4444_v21 }
 0xa9e   : > { %7735 = vmatprep.mubr.msk.f32.mxu1 %vm2823_vm15, %v4447_v34 }
 0xaa1   : > { %4774 = vmatmul.mubr.f32.gmra.mrb[228].mxu1 %v4446_v25 }
 0xaa6   : > { %v4370_v4 = vpop.xlane.xlu1 %4369 }
 0xaa7   : > { %10336 = vrcp.f32 %v4370_v4 }
 0xaaa   : > { %v4374_v49 = vpop.xlane.xlu0 %4373 }
 0xaab   : > { %10338 = vrcp.f32 %v4374_v49 }
 0xaae   : > { %v4378_v19 = vpop.xlane.xlu1 %4377 }
 0xaaf   : > { %10340 = vrcp.f32 %v4378_v19 }
 0xab1   : > { %v10337_v45 = vpop.eup %10336 }
 0xab2   : > { %v4449_v9 = vmul.f32 %v10337_v45, %v13394_v29  ;;  %v4448_v53 = vmul.f32 %v10337_v45, %v13392_v58  ;;  %v15405_v58 = vmov 0.0   ;;  %v2404_v29 = vld [vmem:[%s15017_s4 + $0x100] sm:$0xff]  ;;  %v15406_v45 = vld [vmem:[#allocation73_spill] sm:$0xff] }
 0xab4   : > { %7736 = vmatprep.mubr.msk.f32.mxu1 %vm2823_vm15, %v4449_v9  ;;  %v15407_v9 = vld [vmem:[#allocation78_spill] sm:$0xff] }
 0xab5   : > { %v10339_v31 = vpop.eup %10338  ;;  %4779 = vmatmul.mubr.f32.gmra.mrb[230].mxu1 %v4448_v53  ;;  %v15408_v53 = vld [vmem:[#allocation74_spill] sm:$0xff] }
 0xab6   : > { %v4451_v3 = vmul.f32 %v10339_v31, %v13401_v46  ;;  %v4450_v18 = vmul.f32 %v10339_v31, %v13399_v27  ;;  %v2405_v27 = vld [vmem:[%s15017_s4 + $0x108] sm:$0xff] }
 0xab7   : > { %v9422_v46 = vpack.c.bf16 %v2405_v27, %v2404_v29  ;;  %v15409_v31 = vld [vmem:[#allocation77_spill] sm:$0xff]  ;;  %v15415_v29 = vld [vmem:[#allocation39_spill] sm:$0xff]  ;;  %v15416_v27 = vld [vmem:[#allocation80_spill] sm:$0xff] }
 0xab8   : > { %7737 = vmatprep.mubr.msk.f32.mxu1 %vm2823_vm15, %v4451_v3  ;;  %v15410_v3 = vld [vmem:[#allocation76_spill] sm:$0xff] }
 0xab9   : > { %v10341_v7 = vpop.eup %10340  ;;  %4784 = vmatmul.mubr.f32.gmra.mrb[232].mxu1 %v4450_v18  ;;  %v15411_v18 = vld [vmem:[#allocation72_spill] sm:$0xff] }
 0xaba   : > { %v4453_v23 = vmul.f32 %v10341_v7, %v13408_v17  ;;  %v4452_v33 = vmul.f32 %v10341_v7, %v13406_v36  ;;  %v15412_v7 = vld [vmem:[#allocation71_spill] sm:$0xff] }
 0xabc   : > { %7738 = vmatprep.mubr.msk.f32.mxu1 %vm2823_vm15, %v4453_v23  ;;  %v15413_v23 = vld [vmem:[#allocation33_spill] sm:$0xff] }
 0xabd   : > { %4789 = vmatmul.mubr.f32.gmra.mrb[234].mxu1 %v4452_v33  ;;  %v15414_v33 = vld [vmem:[#allocation69_spill] sm:$0xff] }
 0xabe   : > { %8824 = vmatprep.mubr.msk.f32.mxu1 %vm10526_vm1, %v15405_v58 }
 0xb03   : > { %v4670_v59 = vpop.f32.mrb[186].mxu1 }
 0xb04   : > { %v4672_v14 = vpop.f32.mrb[187].mxu1  ;;  %8825 = vmatmul.mubr.msk.f32.vlgmr.msra.gmra.mrb[236].mxu1 %vm2138_vm14, %v4670_v59  ;;  %v15418_v59 = vld [vmem:[#allocation79_spill] sm:$0xff] }
 0xb05   : > { %8827 = vmatprep.mubr.msk.f32.mxu1 %vm10526_vm1, %v15405_v58  ;;  %9423 = vmatpush3.bf16.msra.mxu1 %v9422_v46  ;;  %v15417_v46 = vld [vmem:[#allocation42_spill] sm:$0xff]  ;;  %v15419_v14 = vld [vmem:[#allocation45_spill] sm:$0xff] }
 0xb06   : > { %9427 = vmatprep.subr.bf16.mxu1 %v15326_v0 }
 0xb07   : > { %v4675_v36 = vpop.f32.mrb[188].mxu1 }
 0xb08   : > { %v4677_v17 = vpop.f32.mrb[189].mxu1  ;;  %8828 = vmatmul.mubr.msk.f32.gmra.mrb[238].mxu1 %vm2138_vm14, %v4675_v36  ;;  %v15420_v36 = vld [vmem:[#allocation81_spill] sm:$0xff] }
 0xb09   : > { %8830 = vmatprep.mubr.msk.f32.mxu1 %vm10526_vm1, %v15405_v58  ;;  %v15421_v17 = vld [vmem:[#allocation48_spill] sm:$0xff] }
 0xb0b   : > { %v4680_v15 = vpop.f32.mrb[190].mxu1 }
 0xb0c   : > { %v4682_v24 = vpop.f32.mrb[191].mxu1  ;;  %8831 = vmatmul.mubr.msk.f32.gmra.mrb[240].mxu1 %vm2138_vm14, %v4680_v15  ;;  %v15422_v15 = vld [vmem:[#allocation51_spill] sm:$0xff] }
 0xb0d   : > { %8833 = vmatprep.mubr.msk.f32.mxu1 %vm10526_vm1, %v15405_v58 }
 0xb0f   : > { %v4685_v39 = vpop.f32.mrb[192].mxu1 }
 0xb10   : > { %v4687_v2 = vpop.f32.mrb[193].mxu1  ;;  %8834 = vmatmul.mubr.msk.f32.gmra.mrb[242].mxu1 %vm2138_vm14, %v4685_v39 }
 0xb11   : > { %8836 = vmatprep.mubr.msk.f32.mxu1 %vm10526_vm1, %v15405_v58  ;;  %v15423_v2 = vld [vmem:[#allocation82_spill] sm:$0xff] }
 0xb13   : > { %v4690_v10 = vpop.f32.mrb[194].mxu1 }
 0xb14   : > { %v4692_v52 = vpop.f32.mrb[195].mxu1  ;;  %8837 = vmatmul.mubr.msk.f32.gmra.mrb[244].mxu1 %vm2138_vm14, %v4690_v10 }
 0xb15   : > { %8839 = vmatprep.mubr.msk.f32.mxu1 %vm10526_vm1, %v15405_v58 }
 0xb17   : > { %v4695_v50 = vpop.f32.mrb[196].mxu1 }
 0xb18   : > { %v4697_v37 = vpop.f32.mrb[197].mxu1  ;;  %8840 = vmatmul.mubr.msk.f32.gmra.mrb[246].mxu1 %vm2138_vm14, %v4695_v50  ;;  %v15424_v50 = vld [vmem:[#allocation54_spill] sm:$0xff] }
 0xb19   : > { %8842 = vmatprep.mubr.msk.f32.mxu1 %vm10526_vm1, %v15405_v58 }
 0xb1b   : > { %v4700_v5 = vpop.f32.mrb[198].mxu1 }
 0xb1c   : > { %v4702_v38 = vpop.f32.mrb[199].mxu1  ;;  %8843 = vmatmul.mubr.msk.f32.gmra.mrb[248].mxu1 %vm2138_vm14, %v4700_v5 }
 0xb1d   : > { %8845 = vmatprep.mubr.msk.f32.mxu1 %vm10526_vm1, %v15405_v58  ;;  %v15425_v38 = vld [vmem:[#allocation57_spill] sm:$0xff] }
 0xb1f   : > { %v4705_v35 = vpop.f32.mrb[200].mxu1 }
 0xb20   : > { %v4707_v62 = vpop.f32.mrb[201].mxu1  ;;  %8846 = vmatmul.mubr.msk.f32.gmra.mrb[250].mxu1 %vm2138_vm14, %v4705_v35 }
 0xb21   : > { %8848 = vmatprep.mubr.msk.f32.mxu1 %vm10526_vm1, %v15405_v58 }
 0xb40   : > { %v4710_v63 = vpop.f32.mrb[202].mxu1 }
 0xb41   : > { %v4712_v8 = vpop.f32.mrb[203].mxu1  ;;  %8849 = vmatmul.mubr.msk.f32.gmra.mrb[252].mxu1 %vm2138_vm14, %v4710_v63  ;;  %v15426_v63 = vld [vmem:[#allocation60_spill] sm:$0xff] }
 0xb42   : > { %8851 = vmatprep.mubr.msk.f32.mxu1 %vm10526_vm1, %v15405_v58 }
 0xb44   : > { %v4715_v43 = vpop.f32.mrb[204].mxu1 }
 0xb45   : > { %v4717_v48 = vpop.f32.mrb[205].mxu1  ;;  %8852 = vmatmul.mubr.msk.f32.gmra.mrb[254].mxu1 %vm2138_vm14, %v4715_v43 }
 0xb46   : > { %8854 = vmatprep.mubr.msk.f32.mxu1 %vm10526_vm1, %v15405_v58  ;;  %v15427_v48 = vld [vmem:[#allocation63_spill] sm:$0xff] }
 0xb48   : > { %v4720_v40 = vpop.f32.mrb[206].mxu1 }
 0xb49   : > { %v4722_v12 = vpop.f32.mrb[207].mxu1  ;;  %8855 = vmatmul.mubr.msk.f32.gmra.mrb[0].mxu1 %vm2138_vm14, %v4720_v40 }
 0xb4a   : > { %8857 = vmatprep.mubr.msk.f32.mxu1 %vm10526_vm1, %v15405_v58 }
 0xb4c   : > { %v4725_v47 = vpop.f32.mrb[208].mxu1 }
 0xb4d   : > { %v4727_v42 = vpop.f32.mrb[209].mxu1  ;;  %8858 = vmatmul.mubr.msk.f32.gmra.mrb[2].mxu1 %vm2138_vm14, %v4725_v47  ;;  %v15428_v47 = vld [vmem:[#allocation66_spill] sm:$0xff] }
 0xb4e   : > { %8860 = vmatprep.mubr.msk.f32.mxu1 %vm10526_vm1, %v15405_v58 }
 0xb50   : > { %v4730_v16 = vpop.f32.mrb[210].mxu1 }
 0xb51   : > { %v4732_v22 = vpop.f32.mrb[211].mxu1  ;;  %8861 = vmatmul.mubr.msk.f32.gmra.mrb[4].mxu1 %vm2138_vm14, %v4730_v16 }
 0xb52   : > { %8863 = vmatprep.mubr.msk.f32.mxu1 %vm10526_vm1, %v15405_v58  ;;  %v15429_v22 = vld [vmem:[#allocation38_spill] sm:$0xff] }
 0xb54   : > { %v4735_v55 = vpop.f32.mrb[212].mxu1 }
 0xb55   : > { %v4737_v1 = vpop.f32.mrb[213].mxu1  ;;  %8864 = vmatmul.mubr.msk.f32.gmra.mrb[6].mxu1 %vm2138_vm14, %v4735_v55 }
 0xb56   : > { %8866 = vmatprep.mubr.msk.f32.mxu1 %vm10526_vm1, %v15405_v58 }
 0xb58   : > { %v4740_v28 = vpop.f32.mrb[214].mxu1 }
 0xb59   : > { %v4742_v41 = vpop.f32.mrb[215].mxu1  ;;  %8867 = vmatmul.mubr.msk.f32.gmra.mrb[8].mxu1 %vm2138_vm14, %v4740_v28  ;;  %v15430_v28 = vld [vmem:[#allocation34_spill] sm:$0xff] }
 0xb5a   : > { %8869 = vmatprep.mubr.msk.f32.mxu1 %vm10526_vm1, %v15405_v58 }
 0xb5c   : > { %v4745_v32 = vpop.f32.mrb[216].mxu1 }
 0xb5d   : > { %v4747_v56 = vpop.f32.mrb[217].mxu1  ;;  %8870 = vmatmul.mubr.msk.f32.gmra.mrb[10].mxu1 %vm2138_vm14, %v4745_v32 }
 0xb5e   : > { %8872 = vmatprep.mubr.msk.f32.mxu1 %vm10526_vm1, %v15405_v58 }
 0xb60   : > { %v4750_v13 = vpop.f32.mrb[218].mxu1 }
 0xb61   : > { %v4752_v26 = vpop.f32.mrb[219].mxu1  ;;  %8873 = vmatmul.mubr.msk.f32.gmra.mrb[12].mxu1 %vm2138_vm14, %v4750_v13 }
 0xb62   : > { %8875 = vmatprep.mubr.msk.f32.mxu1 %vm10526_vm1, %v15405_v58 }
 0xb64   : > { %v4755_v54 = vpop.f32.mrb[220].mxu1 }
 0xb65   : > { %v4757_v60 = vpop.f32.mrb[221].mxu1  ;;  %8876 = vmatmul.mubr.msk.f32.gmra.mrb[14].mxu1 %vm2138_vm14, %v4755_v54 }
 0xb66   : > { %8878 = vmatprep.mubr.msk.f32.mxu1 %vm10526_vm1, %v15405_v58 }
 0xb68   : > { %v4760_v44 = vpop.f32.mrb[222].mxu1 }
 0xb69   : > { %v4762_v61 = vpop.f32.mrb[223].mxu1  ;;  %8879 = vmatmul.mubr.msk.f32.gmra.mrb[16].mxu1 %vm2138_vm14, %v4760_v44 }
 0xb6a   : > { %8881 = vmatprep.mubr.msk.f32.mxu1 %vm10526_vm1, %v15405_v58 }
 0xb6c   : > { %v4765_v6 = vpop.f32.mrb[224].mxu1 }
 0xb6d   : > { %v4767_v57 = vpop.f32.mrb[225].mxu1  ;;  %8882 = vmatmul.mubr.msk.f32.gmra.mrb[18].mxu1 %vm2138_vm14, %v4765_v6 }
 0xb6e   : > { %8884 = vmatprep.mubr.msk.f32.mxu1 %vm10526_vm1, %v15405_v58 }
 0xb70   : > { %v4770_v11 = vpop.f32.mrb[226].mxu1 }
 0xb71   : > { %v4772_v30 = vpop.f32.mrb[227].mxu1  ;;  %8885 = vmatmul.mubr.msk.f32.gmra.mrb[20].mxu1 %vm2138_vm14, %v4770_v11 }
 0xb72   : > { %8887 = vmatprep.mubr.msk.f32.mxu1 %vm10526_vm1, %v15405_v58 }
 0xb74   : > { %v4775_v20 = vpop.f32.mrb[228].mxu1 }
 0xb75   : > { %v4777_v51 = vpop.f32.mrb[229].mxu1  ;;  %8888 = vmatmul.mubr.msk.f32.gmra.mrb[22].mxu1 %vm2138_vm14, %v4775_v20 }
 0xb76   : > { %8890 = vmatprep.mubr.msk.f32.mxu1 %vm10526_vm1, %v15405_v58 }
 0xb88   : > { %v4780_v21 = vpop.f32.mrb[230].mxu1 }
 0xb89   : > { %v4782_v34 = vpop.f32.mrb[231].mxu1  ;;  %8891 = vmatmul.mubr.msk.f32.gmra.mrb[24].mxu1 %vm2138_vm14, %v4780_v21 }
 0xb8a   : > { %8893 = vmatprep.mubr.msk.f32.mxu1 %vm10526_vm1, %v15405_v58 }
 0xb8c   : > { %v4785_v25 = vpop.f32.mrb[232].mxu1 }
 0xb8d   : > { %v4787_v4 = vpop.f32.mrb[233].mxu1  ;;  %8894 = vmatmul.mubr.msk.f32.gmra.mrb[26].mxu1 %vm2138_vm14, %v4785_v25 }
 0xb8e   : > { %8896 = vmatprep.mubr.msk.f32.mxu1 %vm10526_vm1, %v15405_v58 }
 0xb90   : > { %v4790_v49 = vpop.f32.mrb[234].mxu1 }
 0xb91   : > { %v4792_v19 = vpop.f32.mrb[235].mxu1  ;;  %8897 = vmatmul.mubr.msk.f32.gmra.mrb[28].mxu1 %vm2138_vm14, %v4790_v49 }
 0xb92   : > { %8903 = vmatprep.mubr.msk.f32.mxu1 %vm10526_vm1, %v15405_v58 }
 0xb95   : > { %8904 = vmatmul.mubr.msk.f32.vlgmr.msra.gmra.mrb[30].mxu1 %vm2138_vm14, %v15406_v45 }
 0xb96   : > { %8906 = vmatprep.mubr.msk.f32.mxu1 %vm10526_vm1, %v15405_v58 }
 0xb99   : > { %8907 = vmatmul.mubr.msk.f32.gmra.mrb[32].mxu1 %vm2138_vm14, %v15407_v9 }
 0xb9a   : > { %8909 = vmatprep.mubr.msk.f32.mxu1 %vm10526_vm1, %v15405_v58 }
 0xb9d   : > { %8910 = vmatmul.mubr.msk.f32.gmra.mrb[34].mxu1 %vm2138_vm14, %v15408_v53 }
 0xb9e   : > { %8912 = vmatprep.mubr.msk.f32.mxu1 %vm10526_vm1, %v15405_v58 }
 0xba1   : > { %8913 = vmatmul.mubr.msk.f32.gmra.mrb[36].mxu1 %vm2138_vm14, %v15409_v31 }
 0xba2   : > { %8915 = vmatprep.mubr.msk.f32.mxu1 %vm10526_vm1, %v15405_v58 }
 0xba5   : > { %8916 = vmatmul.mubr.msk.f32.gmra.mrb[38].mxu1 %vm2138_vm14, %v15410_v3 }
 0xba6   : > { %8918 = vmatprep.mubr.msk.f32.mxu1 %vm10526_vm1, %v15405_v58 }
 0xba9   : > { %8919 = vmatmul.mubr.msk.f32.gmra.mrb[40].mxu1 %vm2138_vm14, %v15411_v18 }
 0xbaa   : > { %8921 = vmatprep.mubr.msk.f32.mxu1 %vm10526_vm1, %v15405_v58 }
 0xbad   : > { %8922 = vmatmul.mubr.msk.f32.gmra.mrb[42].mxu1 %vm2138_vm14, %v15412_v7 }
 0xbae   : > { %8924 = vmatprep.mubr.msk.f32.mxu1 %vm10526_vm1, %v15405_v58 }
 0xbb1   : > { %8925 = vmatmul.mubr.msk.f32.gmra.mrb[44].mxu1 %vm2138_vm14, %v15413_v23 }
 0xbb2   : > { %8927 = vmatprep.mubr.msk.f32.mxu1 %vm10526_vm1, %v15405_v58 }
 0xbb5   : > { %8928 = vmatmul.mubr.msk.f32.gmra.mrb[46].mxu1 %vm2138_vm14, %v15414_v33 }
 0xbb6   : > { %8930 = vmatprep.mubr.msk.f32.mxu1 %vm10526_vm1, %v15405_v58 }
 0xbb9   : > { %8931 = vmatmul.mubr.msk.f32.gmra.mrb[48].mxu1 %vm2138_vm14, %v15415_v29  ;;  %v15431_v29 = vlaneseq }
 0xbba   : > { %8933 = vmatprep.mubr.msk.f32.mxu1 %vm10526_vm1, %v15405_v58 }
 0xbbd   : > { %8934 = vmatmul.mubr.msk.f32.gmra.mrb[50].mxu1 %vm2138_vm14, %v15416_v27  ;;  %v13727_v27 = vshrl.u32 %v15431_v29, 7 }
 0xbbe   : > { %8936 = vmatprep.mubr.msk.f32.mxu1 %vm10526_vm1, %v15405_v58 }
 0xbc1   : > { %8937 = vmatmul.mubr.msk.f32.gmra.mrb[52].mxu1 %vm2138_vm14, %v15417_v46 }
 0xbc2   : > { %8939 = vmatprep.mubr.msk.f32.mxu1 %vm10526_vm1, %v15405_v58 }
 0xbc5   : > { %8940 = vmatmul.mubr.msk.f32.gmra.mrb[54].mxu1 %vm2138_vm14, %v15418_v59 }
 0xbc6   : > { %8942 = vmatprep.mubr.msk.f32.mxu1 %vm10526_vm1, %v15405_v58 }
 0xbc9   : > { %8943 = vmatmul.mubr.msk.f32.gmra.mrb[56].mxu1 %vm2138_vm14, %v15419_v14  ;;  %v5327_v14 = vsub.s32 0, %v13727_v27 }
 0xbca   : > { %8945 = vmatprep.mubr.msk.f32.mxu1 %vm10526_vm1, %v15405_v58 }
 0xbcd   : > { %8946 = vmatmul.mubr.msk.f32.gmra.mrb[58].mxu1 %vm2138_vm14, %v15420_v36 }
 0xbce   : > { %8948 = vmatprep.mubr.msk.f32.mxu1 %vm10526_vm1, %v15405_v58 }
 0xbd1   : > { %8949 = vmatmul.mubr.msk.f32.gmra.mrb[60].mxu1 %vm2138_vm14, %v15421_v17  ;;  %v13737_v17 = vld [vmem:[%s15017_s4 + $0x160] sm:$0x7f] }
 0xbd2   : > { %8951 = vmatprep.mubr.msk.f32.mxu1 %vm10526_vm1, %v15405_v58 }
 0xbd5   : > { %8952 = vmatmul.mubr.msk.f32.gmra.mrb[62].mxu1 %vm2138_vm14, %v15422_v15 }
 0xbd6   : > { %8954 = vmatprep.mubr.msk.f32.mxu1 %vm10526_vm1, %v15405_v58 }
 0xbd7   : > { %v13648_v24 = vpop.f32.mrb[236].mxu1 }
 0xbd8   : > { %v8826_v39 = vpop.f32.mrb[237].mxu1 }
 0xbd9   : > { %8955 = vmatmul.mubr.msk.f32.gmra.mrb[64].mxu1 %vm2138_vm14, %v15423_v2  ;;  %v13742_v39 = vrot.slane %v13737_v17, %v5327_v14 }
 0xbda   : > { %8957 = vmatprep.mubr.msk.f32.mxu1 %vm10526_vm1, %v15405_v58 }
 0xbdb   : > { %v13654_v10 = vpop.f32.mrb[238].mxu1 }
 0xbdc   : > { %v8829_v52 = vpop.f32.mrb[239].mxu1 }
 0xbdd   : > { %8958 = vmatmul.mubr.msk.f32.gmra.mrb[66].mxu1 %vm2138_vm14, %v15424_v50 }
 0xbde   : > { %8960 = vmatprep.mubr.msk.f32.mxu1 %vm10526_vm1, %v15405_v58 }
 0xbdf   : > { %v13660_v37 = vpop.f32.mrb[240].mxu1 }
 0xbe0   : > { %v8832_v5 = vpop.f32.mrb[241].mxu1 }
 0xbe1   : > { %8961 = vmatmul.mubr.msk.f32.gmra.mrb[68].mxu1 %vm2138_vm14, %v15425_v38 }
 0xbe2   : > { %8963 = vmatprep.mubr.msk.f32.mxu1 %vm10526_vm1, %v15405_v58 }
 0xbe3   : > { %v13666_v35 = vpop.f32.mrb[242].mxu1 }
 0xbe4   : > { %v8835_v62 = vpop.f32.mrb[243].mxu1 }
 0xbe5   : > { %8964 = vmatmul.mubr.msk.f32.gmra.mrb[70].mxu1 %vm2138_vm14, %v15426_v63 }
 0xbe6   : > { %8966 = vmatprep.mubr.msk.f32.mxu1 %vm10526_vm1, %v15405_v58 }
 0xbe7   : > { %v13672_v8 = vpop.f32.mrb[244].mxu1 }
 0xbe8   : > { %v8838_v43 = vpop.f32.mrb[245].mxu1 }
 0xbe9   : > { %8967 = vmatmul.mubr.msk.f32.gmra.mrb[72].mxu1 %vm2138_vm14, %v15427_v48  ;;  %v15432_v43 = vld [vmem:[#allocation8_spill] sm:$0xff] }
 0xbea   : > { %8969 = vmatprep.mubr.msk.f32.mxu1 %vm10526_vm1, %v15405_v58 }
 0xbeb   : > { %v13678_v40 = vpop.f32.mrb[246].mxu1 }
 0xbec   : > { %v8841_v12 = vpop.f32.mrb[247].mxu1 }
 0xbed   : > { %8970 = vmatmul.mubr.msk.f32.gmra.mrb[74].mxu1 %vm2138_vm14, %v15428_v47 }
 0xbee   : > { %8972 = vmatprep.mubr.msk.f32.mxu1 %vm10526_vm1, %v15405_v58 }
 0xbef   : > { %v13684_v42 = vpop.f32.mrb[248].mxu1 }
 0xbf0   : > { %v8844_v16 = vpop.f32.mrb[249].mxu1 }
 0xbf1   : > { %8973 = vmatmul.mubr.msk.f32.gmra.mrb[76].mxu1 %vm2138_vm14, %v15429_v22 }
 0xbf2   : > { %8975 = vmatprep.mubr.msk.f32.mxu1 %vm10526_vm1, %v15405_v58 }
 0xbf3   : > { %v13690_v55 = vpop.f32.mrb[250].mxu1 }
 0xbf4   : > { %v8847_v1 = vpop.f32.mrb[251].mxu1 }
 0xbf5   : > { %8976 = vmatmul.mubr.msk.f32.gmra.mrb[78].mxu1 %vm2138_vm14, %v15430_v28  ;;  %v15433_v1 = vld [vmem:[#allocation9_spill] sm:$0xff] }
 0xbf6   : > { %9073 = vmatprep.mubr.msk.f32.mxu1 %vm10526_vm1, %v15405_v58 }
 0xc14   : > { %v13696_v41 = vpop.f32.mrb[252].mxu1 }
 0xc15   : > { %v8850_v32 = vpop.f32.mrb[253].mxu1 }
 0xc18   : > { %v13698_v56 = vpop.f32.mrb[254].mxu1 }
 0xc19   : > { %v8853_v13 = vpop.f32.mrb[255].mxu1 }
 0xc1c   : > { %v13700_v26 = vpop.f32.mrb[0].mxu1 }
 0xc1d   : > { %v8856_v54 = vpop.f32.mrb[1].mxu1 }
 0xc20   : > { %v13702_v60 = vpop.f32.mrb[2].mxu1 }
 0xc21   : > { %v8859_v44 = vpop.f32.mrb[3].mxu1 }
 0xc24   : > { %v13704_v61 = vpop.f32.mrb[4].mxu1 }
 0xc25   : > { %v8862_v6 = vpop.f32.mrb[5].mxu1 }
 0xc26   : > { %v15434_v6 = vld [vmem:[#allocation10_spill] sm:$0xff] }
 0xc28   : > { %v13706_v57 = vpop.f32.mrb[6].mxu1 }
 0xc29   : > { %v8865_v11 = vpop.f32.mrb[7].mxu1 }
 0xc2c   : > { %v13708_v30 = vpop.f32.mrb[8].mxu1 }
 0xc2d   : > { %v8868_v20 = vpop.f32.mrb[9].mxu1 }
 0xc30   : > { %v13710_v51 = vpop.f32.mrb[10].mxu1 }
 0xc31   : > { %v8871_v21 = vpop.f32.mrb[11].mxu1 }
 0xc34   : > { %v13712_v34 = vpop.f32.mrb[12].mxu1 }
 0xc35   : > { %v8874_v25 = vpop.f32.mrb[13].mxu1 }
 0xc38   : > { %v13714_v4 = vpop.f32.mrb[14].mxu1 }
 0xc39   : > { %v8877_v49 = vpop.f32.mrb[15].mxu1 }
 0xc3c   : > { %v13716_v19 = vpop.f32.mrb[16].mxu1 }
 0xc3d   : > { %v8880_v45 = vpop.f32.mrb[17].mxu1 }
 0xc3e   : > { %v15435_v45 = vld [vmem:[#allocation12_spill] sm:$0xff] }
 0xc40   : > { %v13718_v9 = vpop.f32.mrb[18].mxu1 }
 0xc41   : > { %v8883_v53 = vpop.f32.mrb[19].mxu1 }
 0xc44   : > { %v13720_v31 = vpop.f32.mrb[20].mxu1 }
 0xc45   : > { %v8886_v3 = vpop.f32.mrb[21].mxu1 }
 0xc48   : > { %v13722_v18 = vpop.f32.mrb[22].mxu1 }
 0xc49   : > { %v8889_v7 = vpop.f32.mrb[23].mxu1 }
 0xc5c   : > { %v13724_v23 = vpop.f32.mrb[24].mxu1 }
 0xc5d   : > { %v8892_v33 = vpop.f32.mrb[25].mxu1 }
 0xc60   : > { %v13729_v46 = vpop.f32.mrb[26].mxu1 }
 0xc61   : > { %v8895_v59 = vpop.f32.mrb[27].mxu1 }
 0xc62   : > { %v15436_v59 = vld [vmem:[#allocation14_spill] sm:$0xff] }
 0xc64   : > { %v13732_v36 = vpop.f32.mrb[28].mxu1 }
 0xc65   : > { %v8898_v15 = vpop.f32.mrb[29].mxu1 }
 0xc68   : > { %v5200_v2 = vpop.f32.mrb[30].mxu1 }
 0xc69   : > { %v5201_v52 = vadd.f32 %v5200_v2, %v13648_v24  ;;  %v8905_v50 = vpop.f32.mrb[31].mxu1 }
 0xc6b   : > { %v5329_v5 = vadd.f32 %v13742_v39, %v5201_v52 }
 0xc6c   : > { %v5205_v38 = vpop.f32.mrb[32].mxu1 }
 0xc6d   : > { %v5206_v62 = vadd.f32 %v5205_v38, %v13654_v10  ;;  %v8908_v63 = vpop.f32.mrb[33].mxu1  ;;  %v13748_v48 = vadd.f32 %v15432_v43, %v5329_v5  ;;  %v15437_v38 = vld [vmem:[#allocation16_spill] sm:$0xff] }
 0xc6f   : > { %v5330_v12 = vadd.f32 %v13742_v39, %v5206_v62  ;;  %v5379_v47 = vsel %vm2138_vm14, %v13748_v48, 0.0 }
 0xc70   : > { %5380 = vadd.xlane.f32.xlu0 %v5379_v47  ;;  %v5210_v16 = vpop.f32.mrb[34].mxu1 }
 0xc71   : > { %v5211_v22 = vadd.f32 %v5210_v16, %v13660_v37  ;;  %v8911_v24 = vpop.f32.mrb[35].mxu1  ;;  %v13755_v28 = vadd.f32 %v15433_v1, %v5330_v12  ;;  %v15438_v16 = vld [vmem:[#allocation19_spill] sm:$0xff] }
 0xc73   : > { %v5331_v32 = vadd.f32 %v13742_v39, %v5211_v22  ;;  %v5382_v10 = vsel %vm2138_vm14, %v13755_v28, 0.0 }
 0xc74   : > { %5383 = vadd.xlane.f32.xlu1 %v5382_v10  ;;  %v5215_v13 = vpop.f32.mrb[36].mxu1 }
 0xc75   : > { %v5216_v54 = vadd.f32 %v5215_v13, %v13666_v35  ;;  %v8914_v44 = vpop.f32.mrb[37].mxu1  ;;  %v13762_v11 = vadd.f32 %v15434_v6, %v5331_v32  ;;  %v15439_v13 = vld [vmem:[#allocation11_spill] sm:$0xff] }
 0xc77   : > { %v5332_v20 = vadd.f32 %v13742_v39, %v5216_v54  ;;  %v5385_v37 = vsel %vm2138_vm14, %v13762_v11, 0.0 }
 0xc78   : > { %5386 = vadd.xlane.f32.xlu0 %v5385_v37  ;;  %v5220_v21 = vpop.f32.mrb[38].mxu1 }
 0xc79   : > { %v5221_v25 = vadd.f32 %v5220_v21, %v13672_v8  ;;  %v8917_v49 = vpop.f32.mrb[39].mxu1  ;;  %v13769_v53 = vadd.f32 %v15435_v45, %v5332_v20  ;;  %v15440_v21 = vld [vmem:[#allocation13_spill] sm:$0xff] }
 0xc7b   : > { %v5333_v3 = vadd.f32 %v13742_v39, %v5221_v25  ;;  %v5388_v35 = vsel %vm2138_vm14, %v13769_v53, 0.0 }
 0xc7c   : > { %5389 = vadd.xlane.f32.xlu1 %v5388_v35  ;;  %v5225_v7 = vpop.f32.mrb[40].mxu1 }
 0xc7d   : > { %v5226_v33 = vadd.f32 %v5225_v7, %v13678_v40  ;;  %v8920_v29 = vpop.f32.mrb[41].mxu1  ;;  %v13776_v15 = vadd.f32 %v15436_v59, %v5333_v3  ;;  %v15441_v7 = vld [vmem:[#allocation15_spill] sm:$0xff] }
 0xc7f   : > { %v5334_v2 = vadd.f32 %v13742_v39, %v5226_v33  ;;  %v5391_v8 = vsel %vm2138_vm14, %v13776_v15, 0.0 }
 0xc80   : > { %5392 = vadd.xlane.f32.xlu0 %v5391_v8  ;;  %v5230_v52 = vpop.f32.mrb[42].mxu1 }
 0xc81   : > { %v5231_v50 = vadd.f32 %v5230_v52, %v13684_v42  ;;  %v8923_v5 = vpop.f32.mrb[43].mxu1  ;;  %v13783_v62 = vadd.f32 %v15437_v38, %v5334_v2  ;;  %v15442_v52 = vld [vmem:[#allocation17_spill] sm:$0xff] }
 0xc83   : > { %v5335_v63 = vadd.f32 %v13742_v39, %v5231_v50  ;;  %v5394_v40 = vsel %vm2138_vm14, %v13783_v62, 0.0 }
 0xc84   : > { %5395 = vadd.xlane.f32.xlu1 %v5394_v40  ;;  %v5235_v43 = vpop.f32.mrb[44].mxu1 }
 0xc85   : > { %v5236_v12 = vadd.f32 %v5235_v43, %v13690_v55  ;;  %v8926_v47 = vpop.f32.mrb[45].mxu1  ;;  %v13790_v22 = vadd.f32 %v15438_v16, %v5335_v63  ;;  %v15443_v43 = vld [vmem:[#allocation18_spill] sm:$0xff] }
 0xc87   : > { %v5336_v24 = vadd.f32 %v13742_v39, %v5236_v12  ;;  %v5397_v42 = vsel %vm2138_vm14, %v13790_v22, 0.0 }
 0xc88   : > { %5398 = vadd.xlane.f32.xlu0 %v5397_v42  ;;  %v5240_v1 = vpop.f32.mrb[46].mxu1 }
 0xc89   : > { %v5241_v32 = vadd.f32 %v5240_v1, %v13696_v41  ;;  %v8929_v10 = vpop.f32.mrb[47].mxu1  ;;  %v13797_v54 = vadd.f32 %v15439_v13, %v5336_v24  ;;  %v15444_v1 = vld [vmem:[#allocation20_spill] sm:$0xff] }
 0xc8b   : > { %v5337_v44 = vadd.f32 %v13742_v39, %v5241_v32  ;;  %v5400_v55 = vsel %vm2138_vm14, %v13797_v54, 0.0 }
 0xc8c   : > { %5401 = vadd.xlane.f32.xlu1 %v5400_v55  ;;  %v5245_v6 = vpop.f32.mrb[48].mxu1 }
 0xc8d   : > { %v5246_v20 = vadd.f32 %v5245_v6, %v13698_v56  ;;  %v8932_v37 = vpop.f32.mrb[49].mxu1  ;;  %v13804_v25 = vadd.f32 %v15440_v21, %v5337_v44  ;;  %v15445_v6 = vld [vmem:[#allocation21_spill] sm:$0xff] }
 0xc8f   : > { %v5338_v49 = vadd.f32 %v13742_v39, %v5246_v20  ;;  %v5403_v41 = vsel %vm2138_vm14, %v13804_v25, 0.0 }
 0xc90   : > { %5404 = vadd.xlane.f32.xlu0 %v5403_v41  ;;  %v5250_v45 = vpop.f32.mrb[50].mxu1 }
 0xc91   : > { %v5251_v3 = vadd.f32 %v5250_v45, %v13700_v26  ;;  %v8935_v35 = vpop.f32.mrb[51].mxu1  ;;  %v13811_v33 = vadd.f32 %v15441_v7, %v5338_v49  ;;  %v15446_v45 = vld [vmem:[#allocation22_spill] sm:$0xff] }
 0xc93   : > { %v5339_v29 = vadd.f32 %v13742_v39, %v5251_v3  ;;  %v5406_v56 = vsel %vm2138_vm14, %v13811_v33, 0.0 }
 0xc94   : > { %5407 = vadd.xlane.f32.xlu1 %v5406_v56  ;;  %v5255_v59 = vpop.f32.mrb[52].mxu1 }
 0xc95   : > { %v5256_v2 = vadd.f32 %v5255_v59, %v13702_v60  ;;  %v8938_v8 = vpop.f32.mrb[53].mxu1  ;;  %v13818_v50 = vadd.f32 %v15442_v52, %v5339_v29  ;;  %v15447_v59 = vld [vmem:[#allocation23_spill] sm:$0xff] }
 0xc97   : > { %v5340_v5 = vadd.f32 %v13742_v39, %v5256_v2  ;;  %v5409_v26 = vsel %vm2138_vm14, %v13818_v50, 0.0 }
 0xc98   : > { %5410 = vadd.xlane.f32.xlu0 %v5409_v26  ;;  %v5260_v38 = vpop.f32.mrb[54].mxu1 }
 0xc99   : > { %v5261_v63 = vadd.f32 %v5260_v38, %v13704_v61  ;;  %v8941_v40 = vpop.f32.mrb[55].mxu1  ;;  %v13825_v12 = vadd.f32 %v15443_v43, %v5340_v5  ;;  %v15448_v38 = vld [vmem:[#allocation24_spill] sm:$0xff] }
 0xc9b   : > { %v5341_v47 = vadd.f32 %v13742_v39, %v5261_v63  ;;  %v5412_v60 = vsel %vm2138_vm14, %v13825_v12, 0.0 }
 0xc9c   : > { %5413 = vadd.xlane.f32.xlu1 %v5412_v60  ;;  %v5265_v16 = vpop.f32.mrb[56].mxu1 }
 0xc9d   : > { %v5266_v24 = vadd.f32 %v5265_v16, %v13706_v57  ;;  %v8944_v42 = vpop.f32.mrb[57].mxu1  ;;  %v13832_v32 = vadd.f32 %v15444_v1, %v5341_v47  ;;  %v15449_v16 = vld [vmem:[#allocation25_spill] sm:$0xff] }
 0xc9f   : > { %v5342_v10 = vadd.f32 %v13742_v39, %v5266_v24  ;;  %v5415_v61 = vsel %vm2138_vm14, %v13832_v32, 0.0 }
 0xca0   : > { %5416 = vadd.xlane.f32.xlu0 %v5415_v61  ;;  %v5270_v13 = vpop.f32.mrb[58].mxu1 }
 0xca1   : > { %v5271_v44 = vadd.f32 %v5270_v13, %v13708_v30  ;;  %v8947_v55 = vpop.f32.mrb[59].mxu1  ;;  %v13839_v20 = vadd.f32 %v15445_v6, %v5342_v10  ;;  %v15450_v13 = vld [vmem:[#allocation26_spill] sm:$0xff] }
 0xca3   : > { %v5343_v37 = vadd.f32 %v13742_v39, %v5271_v44  ;;  %v5418_v57 = vsel %vm2138_vm14, %v13839_v20, 0.0 }
 0xca4   : > { %5419 = vadd.xlane.f32.xlu1 %v5418_v57  ;;  %v5275_v21 = vpop.f32.mrb[60].mxu1 }
 0xca5   : > { %v5276_v49 = vadd.f32 %v5275_v21, %v13710_v51  ;;  %v8950_v41 = vpop.f32.mrb[61].mxu1  ;;  %v13846_v3 = vadd.f32 %v15446_v45, %v5343_v37  ;;  %v15451_v21 = vld [vmem:[#allocation27_spill] sm:$0xff] }
 0xca7   : > { %v5344_v35 = vadd.f32 %v13742_v39, %v5276_v49  ;;  %v5421_v30 = vsel %vm2138_vm14, %v13846_v3, 0.0 }
 0xca8   : > { %5422 = vadd.xlane.f32.xlu0 %v5421_v30  ;;  %v5280_v7 = vpop.f32.mrb[62].mxu1 }
 0xca9   : > { %v5281_v29 = vadd.f32 %v5280_v7, %v13712_v34  ;;  %v8953_v56 = vpop.f32.mrb[63].mxu1  ;;  %v13853_v2 = vadd.f32 %v15447_v59, %v5344_v35  ;;  %v15452_v7 = vld [vmem:[#allocation28_spill] sm:$0xff] }
 0xcab   : > { %v5345_v8 = vadd.f32 %v13742_v39, %v5281_v29  ;;  %v5424_v51 = vsel %vm2138_vm14, %v13853_v2, 0.0 }
 0xcac   : > { %5425 = vadd.xlane.f32.xlu1 %v5424_v51  ;;  %v5285_v52 = vpop.f32.mrb[64].mxu1 }
 0xcad   : > { %v5286_v5 = vadd.f32 %v5285_v52, %v13714_v4  ;;  %v8956_v26 = vpop.f32.mrb[65].mxu1  ;;  %v13860_v63 = vadd.f32 %v15448_v38, %v5345_v8  ;;  %v15453_v52 = vld [vmem:[#allocation29_spill] sm:$0xff] }
 0xcaf   : > { %v5346_v40 = vadd.f32 %v13742_v39, %v5286_v5  ;;  %v5427_v34 = vsel %vm2138_vm14, %v13860_v63, 0.0 }
 0xcb0   : > { %5428 = vadd.xlane.f32.xlu0 %v5427_v34  ;;  %v5290_v43 = vpop.f32.mrb[66].mxu1 }
 0xcb1   : > { %v5291_v47 = vadd.f32 %v5290_v43, %v13716_v19  ;;  %v8959_v60 = vpop.f32.mrb[67].mxu1  ;;  %v13867_v24 = vadd.f32 %v15449_v16, %v5346_v40  ;;  %v15454_v43 = vld [vmem:[#allocation30_spill] sm:$0xff] }
 0xcb3   : > { %v5347_v42 = vadd.f32 %v13742_v39, %v5291_v47  ;;  %v5430_v4 = vsel %vm2138_vm14, %v13867_v24, 0.0 }
 0xcb4   : > { %5431 = vadd.xlane.f32.xlu1 %v5430_v4  ;;  %v5295_v1 = vpop.f32.mrb[68].mxu1 }
 0xcb5   : > { %v5296_v10 = vadd.f32 %v5295_v1, %v13718_v9  ;;  %v8962_v61 = vpop.f32.mrb[69].mxu1  ;;  %v13874_v44 = vadd.f32 %v15450_v13, %v5347_v42  ;;  %v15455_v1 = vld [vmem:[#allocation31_spill] sm:$0xff]  ;;  %v15456_v13 = vld [vmem:[#allocation32_spill] sm:$0xff] }
 0xcb7   : > { %v5348_v55 = vadd.f32 %v13742_v39, %v5296_v10  ;;  %v5433_v19 = vsel %vm2138_vm14, %v13874_v44, 0.0 }
 0xcb8   : > { %5434 = vadd.xlane.f32.xlu0 %v5433_v19  ;;  %v5300_v6 = vpop.f32.mrb[70].mxu1 }
 0xcb9   : > { %v5301_v37 = vadd.f32 %v5300_v6, %v13720_v31  ;;  %v8965_v57 = vpop.f32.mrb[71].mxu1  ;;  %v13881_v49 = vadd.f32 %v15451_v21, %v5348_v55  ;;  %v5764_v6 = vld [vmem:[%s15019_s6 + $0x8] sm:$0xff] }
 0xcbb   : > { %v5349_v41 = vadd.f32 %v13742_v39, %v5301_v37  ;;  %v5436_v9 = vsel %vm2138_vm14, %v13881_v49, 0.0 }
 0xcbc   : > { %5437 = vadd.xlane.f32.xlu1 %v5436_v9  ;;  %v5305_v45 = vpop.f32.mrb[72].mxu1 }
 0xcbd   : > { %v5306_v35 = vadd.f32 %v5305_v45, %v13722_v18  ;;  %v8968_v30 = vpop.f32.mrb[73].mxu1  ;;  %v13888_v29 = vadd.f32 %v15452_v7, %v5349_v41 }
 0xcbf   : > { %v5350_v56 = vadd.f32 %v13742_v39, %v5306_v35  ;;  %v5439_v31 = vsel %vm2138_vm14, %v13888_v29, 0.0 }
 0xcc0   : > { %5440 = vadd.xlane.f32.xlu1 %v5439_v31  ;;  %v5310_v59 = vpop.f32.mrb[74].mxu1 }
 0xcc1   : > { %v5311_v8 = vadd.f32 %v5310_v59, %v13724_v23  ;;  %v8971_v51 = vpop.f32.mrb[75].mxu1  ;;  %v13895_v5 = vadd.f32 %v15453_v52, %v5350_v56 }
 0xcc3   : > { %v5351_v26 = vadd.f32 %v13742_v39, %v5311_v8  ;;  %v5442_v18 = vsel %vm2138_vm14, %v13895_v5, 0.0 }
 0xcc4   : > { %5443 = vadd.xlane.f32.xlu1 %v5442_v18  ;;  %v5315_v38 = vpop.f32.mrb[76].mxu1 }
 0xcc5   : > { %v5316_v40 = vadd.f32 %v5315_v38, %v13729_v46  ;;  %v8974_v34 = vpop.f32.mrb[77].mxu1  ;;  %v13902_v47 = vadd.f32 %v15454_v43, %v5351_v26 }
 0xcc7   : > { %v5352_v60 = vadd.f32 %v13742_v39, %v5316_v40  ;;  %v5445_v23 = vsel %vm2138_vm14, %v13902_v47, 0.0 }
 0xcc8   : > { %5446 = vadd.xlane.f32.xlu1 %v5445_v23  ;;  %v5320_v16 = vpop.f32.mrb[78].mxu1 }
 0xcc9   : > { %v5321_v42 = vadd.f32 %v5320_v16, %v13732_v36  ;;  %v8977_v4 = vpop.f32.mrb[79].mxu1  ;;  %v13909_v10 = vadd.f32 %v15455_v1, %v5352_v60  ;;  %v5763_v36 = vld [vmem:[%s15019_s6] sm:$0xff] }
 0xccb   : > { %v5353_v61 = vadd.f32 %v13742_v39, %v5321_v42  ;;  %v5448_v46 = vsel %vm2138_vm14, %v13909_v10, 0.0  ;;  %v9425_v39 = vpack.c.bf16 %v5764_v6, %v5763_v36 }
 0xccc   : > { %5449 = vadd.xlane.f32.xlu1 %v5448_v46 }
 0xccd   : > { %v13915_v55 = vadd.f32 %v15456_v13, %v5353_v61  ;;  %9426 = vmatpush3.bf16.msra.mxu0 %v9425_v39 }
 0xcce   : > { %9439 = vmatprep.subr.bf16.mxu0 %v15326_v0 }
 0xccf   : > { %v5451_v19 = vsel %vm2138_vm14, %v13915_v55, 0.0 }
 0xcd0   : > { %5452 = vadd.xlane.f32.xlu1 %v5451_v19 }
 0xcfd   : > { %v5381_v37 = vpop.xlane.xlu0 %5380 }
 0xcfe   : > { %v5455_v57 = vmul.f32 0.0625, %v5381_v37 }
 0xd00   : > { %v13927_v21 = vsub.f32 %v13748_v48, %v5455_v57 }
 0xd01   : > { %v5384_v41 = vpop.xlane.xlu1 %5383 }
 0xd02   : > { %v5456_v9 = vmul.f32 0.0625, %v5384_v41  ;;  %v5505_v45 = vmul.f32 %v13927_v21, %v13927_v21 }
 0xd04   : > { %v13932_v35 = vsub.f32 %v13755_v28, %v5456_v9  ;;  %v5530_v30 = vsel %vm2138_vm14, %v5505_v45, 0.0 }
 0xd05   : > { %v5387_v7 = vpop.xlane.xlu0 %5386  ;;  %5531 = vadd.xlane.f32.xlu0 %v5530_v30 }
 0xd06   : > { %v5457_v56 = vmul.f32 0.0625, %v5387_v7  ;;  %v5506_v31 = vmul.f32 %v13932_v35, %v13932_v35 }
 0xd08   : > { %v13938_v59 = vsub.f32 %v13762_v11, %v5457_v56  ;;  %v5533_v48 = vsel %vm2138_vm14, %v5506_v31, 0.0 }
 0xd09   : > { %v5390_v8 = vpop.xlane.xlu1 %5389  ;;  %5534 = vadd.xlane.f32.xlu0 %v5533_v48 }
 0xd0a   : > { %v5458_v51 = vmul.f32 0.0625, %v5390_v8  ;;  %v5507_v28 = vmul.f32 %v13938_v59, %v13938_v59 }
 0xd0c   : > { %v13944_v52 = vsub.f32 %v13769_v53, %v5458_v51  ;;  %v5536_v26 = vsel %vm2138_vm14, %v5507_v28, 0.0 }
 0xd0d   : > { %v5393_v18 = vpop.xlane.xlu0 %5392  ;;  %5537 = vadd.xlane.f32.xlu0 %v5536_v26 }
 0xd0e   : > { %v5459_v38 = vmul.f32 0.0625, %v5393_v18  ;;  %v5508_v11 = vmul.f32 %v13944_v52, %v13944_v52 }
 0xd10   : > { %v13950_v40 = vsub.f32 %v13776_v15, %v5459_v38  ;;  %v5539_v34 = vsel %vm2138_vm14, %v5508_v11, 0.0 }
 0xd11   : > { %v5396_v43 = vpop.xlane.xlu1 %5395  ;;  %5540 = vadd.xlane.f32.xlu0 %v5539_v34 }
 0xd12   : > { %v5460_v60 = vmul.f32 0.0625, %v5396_v43  ;;  %v5509_v53 = vmul.f32 %v13950_v40, %v13950_v40 }
 0xd14   : > { %v13956_v23 = vsub.f32 %v13783_v62, %v5460_v60  ;;  %v5542_v16 = vsel %vm2138_vm14, %v5509_v53, 0.0 }
 0xd15   : > { %v5399_v42 = vpop.xlane.xlu0 %5398  ;;  %5543 = vadd.xlane.f32.xlu0 %v5542_v16 }
 0xd16   : > { %v5461_v4 = vmul.f32 0.0625, %v5399_v42  ;;  %v5510_v15 = vmul.f32 %v13956_v23, %v13956_v23 }
 0xd18   : > { %v13962_v1 = vsub.f32 %v13790_v22, %v5461_v4  ;;  %v5545_v61 = vsel %vm2138_vm14, %v5510_v15, 0.0 }
 0xd19   : > { %v5402_v46 = vpop.xlane.xlu1 %5401  ;;  %5546 = vadd.xlane.f32.xlu0 %v5545_v61 }
 0xd1a   : > { %v5462_v13 = vmul.f32 0.0625, %v5402_v46  ;;  %v5511_v62 = vmul.f32 %v13962_v1, %v13962_v1 }
 0xd1c   : > { %v13968_v19 = vsub.f32 %v13797_v54, %v5462_v13  ;;  %v5548_v36 = vsel %vm2138_vm14, %v5511_v62, 0.0 }
 0xd1d   : > { %v5405_v6 = vpop.xlane.xlu0 %5404  ;;  %5549 = vadd.xlane.f32.xlu1 %v5548_v36 }
 0xd1e   : > { %v5463_v39 = vmul.f32 0.0625, %v5405_v6  ;;  %v5512_v22 = vmul.f32 %v13968_v19, %v13968_v19 }
 0xd20   : > { %v13974_v37 = vsub.f32 %v13804_v25, %v5463_v39  ;;  %v5551_v57 = vsel %vm2138_vm14, %v5512_v22, 0.0 }
 0xd21   : > { %v5408_v41 = vpop.xlane.xlu1 %5407  ;;  %5552 = vadd.xlane.f32.xlu0 %v5551_v57 }
 0xd22   : > { %v5464_v9 = vmul.f32 0.0625, %v5408_v41  ;;  %v5513_v54 = vmul.f32 %v13974_v37, %v13974_v37 }
 0xd24   : > { %v13980_v45 = vsub.f32 %v13811_v33, %v5464_v9  ;;  %v5554_v30 = vsel %vm2138_vm14, %v5513_v54, 0.0 }
 0xd25   : > { %v5411_v7 = vpop.xlane.xlu0 %5410  ;;  %5555 = vadd.xlane.f32.xlu1 %v5554_v30 }
 0xd26   : > { %v5465_v56 = vmul.f32 0.0625, %v5411_v7  ;;  %v5514_v25 = vmul.f32 %v13980_v45, %v13980_v45 }
 0xd28   : > { %v13986_v31 = vsub.f32 %v13818_v50, %v5465_v56  ;;  %v5557_v48 = vsel %vm2138_vm14, %v5514_v25, 0.0 }
 0xd29   : > { %v5414_v8 = vpop.xlane.xlu1 %5413  ;;  %5558 = vadd.xlane.f32.xlu0 %v5557_v48 }
 0xd2a   : > { %v5466_v51 = vmul.f32 0.0625, %v5414_v8  ;;  %v5515_v33 = vmul.f32 %v13986_v31, %v13986_v31 }
 0xd2c   : > { %v13992_v28 = vsub.f32 %v13825_v12, %v5466_v51  ;;  %v5560_v26 = vsel %vm2138_vm14, %v5515_v33, 0.0 }
 0xd2d   : > { %v5417_v18 = vpop.xlane.xlu0 %5416  ;;  %5561 = vadd.xlane.f32.xlu1 %v5560_v26 }
 0xd2e   : > { %v5467_v38 = vmul.f32 0.0625, %v5417_v18  ;;  %v5516_v50 = vmul.f32 %v13992_v28, %v13992_v28 }
 0xd30   : > { %v13998_v11 = vsub.f32 %v13832_v32, %v5467_v38  ;;  %v5563_v34 = vsel %vm2138_vm14, %v5516_v50, 0.0 }
 0xd31   : > { %v5420_v43 = vpop.xlane.xlu1 %5419  ;;  %5564 = vadd.xlane.f32.xlu0 %v5563_v34 }
 0xd32   : > { %v5468_v60 = vmul.f32 0.0625, %v5420_v43  ;;  %v5517_v12 = vmul.f32 %v13998_v11, %v13998_v11 }
 0xd34   : > { %v14004_v53 = vsub.f32 %v13839_v20, %v5468_v60  ;;  %v5566_v16 = vsel %vm2138_vm14, %v5517_v12, 0.0 }
 0xd35   : > { %v5423_v42 = vpop.xlane.xlu0 %5422  ;;  %5567 = vadd.xlane.f32.xlu1 %v5566_v16 }
 0xd36   : > { %v5469_v4 = vmul.f32 0.0625, %v5423_v42  ;;  %v5518_v32 = vmul.f32 %v14004_v53, %v14004_v53 }
 0xd38   : > { %v14010_v15 = vsub.f32 %v13846_v3, %v5469_v4  ;;  %v5569_v61 = vsel %vm2138_vm14, %v5518_v32, 0.0 }
 0xd39   : > { %v5426_v46 = vpop.xlane.xlu1 %5425  ;;  %5570 = vadd.xlane.f32.xlu0 %v5569_v61 }
 0xd3a   : > { %v5470_v13 = vmul.f32 0.0625, %v5426_v46  ;;  %v5519_v20 = vmul.f32 %v14010_v15, %v14010_v15 }
 0xd3c   : > { %v14016_v62 = vsub.f32 %v13853_v2, %v5470_v13  ;;  %v5572_v36 = vsel %vm2138_vm14, %v5519_v20, 0.0 }
 0xd3d   : > { %v5429_v6 = vpop.xlane.xlu0 %5428  ;;  %5573 = vadd.xlane.f32.xlu1 %v5572_v36 }
 0xd3e   : > { %v5471_v39 = vmul.f32 0.0625, %v5429_v6  ;;  %v5520_v3 = vmul.f32 %v14016_v62, %v14016_v62 }
 0xd40   : > { %v14022_v22 = vsub.f32 %v13860_v63, %v5471_v39  ;;  %v5575_v57 = vsel %vm2138_vm14, %v5520_v3, 0.0 }
 0xd41   : > { %v5432_v41 = vpop.xlane.xlu1 %5431  ;;  %5576 = vadd.xlane.f32.xlu0 %v5575_v57 }
 0xd42   : > { %v5472_v9 = vmul.f32 0.0625, %v5432_v41  ;;  %v5521_v2 = vmul.f32 %v14022_v22, %v14022_v22 }
 0xd44   : > { %v14028_v54 = vsub.f32 %v13867_v24, %v5472_v9  ;;  %v5578_v30 = vsel %vm2138_vm14, %v5521_v2, 0.0  ;;  %v6060_v9 = vld [vmem:[%s15017_s4 + $0x120] sm:$0xff]  ;;  %v6061_v2 = vld [vmem:[%s15017_s4 + $0x128] sm:$0xff] }
 0xd45   : > { %v5435_v7 = vpop.xlane.xlu0 %5434  ;;  %5579 = vadd.xlane.f32.xlu1 %v5578_v30  ;;  %v9428_v30 = vpack.c.bf16 %v6061_v2, %v6060_v9 }
 0xd46   : > { %v5473_v56 = vmul.f32 0.0625, %v5435_v7  ;;  %v5522_v63 = vmul.f32 %v14028_v54, %v14028_v54  ;;  %v6063_v7 = vld [vmem:[%s15017_s4 + $0x138] sm:$0xff] }
 0xd47   : > { %9429 = vmatpush3.bf16.msra.mxu1 %v9428_v30 }
 0xd48   : > { %v14034_v25 = vsub.f32 %v13874_v44, %v5473_v56  ;;  %v5581_v48 = vsel %vm2138_vm14, %v5522_v63, 0.0  ;;  %9430 = vmatprep.subr.bf16.mxu1 %v15326_v0  ;;  %v6064_v63 = vld [vmem:[%s15017_s4 + $0x140] sm:$0xff] }
 0xd49   : > { %5582 = vadd.xlane.f32.xlu0 %v5581_v48  ;;  %v5438_v8 = vpop.xlane.xlu1 %5437  ;;  %v6065_v48 = vld [vmem:[%s15017_s4 + $0x148] sm:$0xff] }
 0xd4a   : > { %v5474_v51 = vmul.f32 0.0625, %v5438_v8  ;;  %v5523_v24 = vmul.f32 %v14034_v25, %v14034_v25  ;;  %v9434_v8 = vpack.c.bf16 %v6065_v48, %v6064_v63 }
 0xd4c   : > { %v14040_v33 = vsub.f32 %v13881_v49, %v5474_v51  ;;  %v5584_v26 = vsel %vm2138_vm14, %v5523_v24, 0.0  ;;  %v6066_v51 = vld [vmem:[%s15017_s4 + $0x150] sm:$0xff]  ;;  %v6067_v24 = vld [vmem:[%s15017_s4 + $0x158] sm:$0xff] }
 0xd4d   : > { %v5441_v18 = vpop.xlane.xlu1 %5440  ;;  %5585 = vadd.xlane.f32.xlu1 %v5584_v26 }
 0xd4e   : > { %v5475_v38 = vmul.f32 0.0625, %v5441_v18  ;;  %v5524_v44 = vmul.f32 %v14040_v33, %v14040_v33 }
 0xd50   : > { %v14046_v50 = vsub.f32 %v13888_v29, %v5475_v38  ;;  %v5587_v34 = vsel %vm2138_vm14, %v5524_v44, 0.0  ;;  %v9437_v38 = vpack.c.bf16 %v6067_v24, %v6066_v51 }
 0xd51   : > { %5588 = vadd.xlane.f32.xlu0 %v5587_v34  ;;  %v5444_v43 = vpop.xlane.xlu1 %5443 }
 0xd52   : > { %v5476_v60 = vmul.f32 0.0625, %v5444_v43  ;;  %v5525_v49 = vmul.f32 %v14046_v50, %v14046_v50 }
 0xd54   : > { %v14052_v12 = vsub.f32 %v13895_v5, %v5476_v60  ;;  %v5590_v16 = vsel %vm2138_vm14, %v5525_v49, 0.0 }
 0xd55   : > { %v5447_v42 = vpop.xlane.xlu1 %5446  ;;  %5591 = vadd.xlane.f32.xlu1 %v5590_v16 }
 0xd56   : > { %v5477_v4 = vmul.f32 0.0625, %v5447_v42  ;;  %v5526_v29 = vmul.f32 %v14052_v12, %v14052_v12  ;;  %v5707_v42 = vsub.s32 1, %v13727_v27 }
 0xd58   : > { %v14058_v32 = vsub.f32 %v13902_v47, %v5477_v4  ;;  %v5593_v61 = vsel %vm2138_vm14, %v5526_v29, 0.0  ;;  %v5736_v29 = vsub.s32 2, %v13727_v27 }
 0xd59   : > { %5594 = vadd.xlane.f32.xlu0 %v5593_v61  ;;  %v5450_v46 = vpop.xlane.xlu1 %5449 }
 0xd5a   : > { %v5478_v13 = vmul.f32 0.0625, %v5450_v46  ;;  %v5527_v5 = vmul.f32 %v14058_v32, %v14058_v32 }
 0xd5c   : > { %v14064_v20 = vsub.f32 %v13909_v10, %v5478_v13  ;;  %v5596_v36 = vsel %vm2138_vm14, %v5527_v5, 0.0  ;;  %v14106_v13 = vrot.slane %v13737_v17, %v5707_v42 }
 0xd5d   : > { %5597 = vadd.xlane.f32.xlu1 %v5596_v36  ;;  %v5453_v6 = vpop.xlane.xlu1 %5452 }
 0xd5e   : > { %v5479_v39 = vmul.f32 0.0625, %v5453_v6  ;;  %v5528_v47 = vmul.f32 %v14064_v20, %v14064_v20  ;;  %v14109_v6 = vrot.slane %v13737_v17, %v5736_v29 }
 0xd60   : > { %v14070_v3 = vsub.f32 %v13915_v55, %v5479_v39  ;;  %v5599_v57 = vsel %vm2138_vm14, %v5528_v47, 0.0  ;;  %v6062_v55 = vld [vmem:[%s15017_s4 + $0x130] sm:$0xff] }
 0xd61   : > { %5600 = vadd.xlane.f32.xlu0 %v5599_v57  ;;  %v9431_v56 = vpack.c.bf16 %v6063_v7, %v6062_v55 }
 0xd62   : > { %v5529_v41 = vmul.f32 %v14070_v3, %v14070_v3 }
 0xd63   : > { %9432 = vmatpush3.bf16.msra.mxu1 %v9431_v56 }
 0xd64   : > { %v5602_v10 = vsel %vm2138_vm14, %v5529_v41, 0.0  ;;  %9433 = vmatprep.subr.bf16.mxu1 %v15326_v0 }
 0xd65   : > { %5603 = vadd.xlane.f32.xlu1 %v5602_v10 }
 0xd67   : > { %9435 = vmatpush3.bf16.msra.mxu1 %v9434_v8 }
 0xd68   : > { %9436 = vmatprep.subr.bf16.mxu1 %v15326_v0 }
 0xd6b   : > { %9438 = vmatpush3.bf16.msra.mxu1 %v9437_v38 }
 0xd92   : > { %v5532_v26 = vpop.xlane.xlu0 %5531 }
 0xd93   : > { %v5605_v18 = vmul.f32 0.0625, %v5532_v26 }
 0xd95   : > { %v5630_v44 = vadd.f32 1e-05, %v5605_v18 }
 0xd96   : > { %v5535_v34 = vpop.xlane.xlu0 %5534 }
 0xd97   : > { %10342 = vrsqrt.f32 %v5630_v44  ;;  %v5606_v43 = vmul.f32 0.0625, %v5535_v34 }
 0xd99   : > { %v5631_v60 = vadd.f32 1e-05, %v5606_v43 }
 0xd9a   : > { %v5538_v49 = vpop.xlane.xlu0 %5537 }
 0xd9b   : > { %10344 = vrsqrt.f32 %v5631_v60  ;;  %v5607_v16 = vmul.f32 0.0625, %v5538_v49 }
 0xd9d   : > { %v5632_v4 = vadd.f32 1e-05, %v5607_v16 }
 0xd9e   : > { %v5541_v61 = vpop.xlane.xlu0 %5540 }
 0xd9f   : > { %10346 = vrsqrt.f32 %v5632_v4  ;;  %v5608_v46 = vmul.f32 0.0625, %v5541_v61 }
 0xda1   : > { %v10343_v5 = vpop.eup %10342  ;;  %v5633_v36 = vadd.f32 1e-05, %v5608_v46 }
 0xda2   : > { %v5680_v39 = vmul.f32 %v10343_v5, %v13927_v21  ;;  %v5544_v47 = vpop.xlane.xlu0 %5543 }
 0xda3   : > { %10348 = vrsqrt.f32 %v5633_v36  ;;  %v5609_v57 = vmul.f32 0.0625, %v5544_v47 }
 0xda4   : > { %v5709_v41 = vmul.f32 %v14106_v13, %v5680_v39 }
 0xda5   : > { %v10345_v10 = vpop.eup %10344  ;;  %v5634_v9 = vadd.f32 1e-05, %v5609_v57 }
 0xda6   : > { %v14114_v2 = vadd.f32 %v14109_v6, %v5709_v41  ;;  %v5547_v55 = vpop.xlane.xlu0 %5546  ;;  %v5681_v30 = vmul.f32 %v10345_v10, %v13932_v35 }
 0xda7   : > { %10350 = vrsqrt.f32 %v5634_v9  ;;  %v5610_v7 = vmul.f32 0.0625, %v5547_v55 }
 0xda8   : > { %8983 = vmatmul.mubr.msk.f32.vlgmr.msra.gmra.mrb[64].mxu0 %vm2138_vm14, %v14114_v2  ;;  %v5710_v17 = vmul.f32 %v14106_v13, %v5681_v30 }
 0xda9   : > { %v10347_v21 = vpop.eup %10346  ;;  %v5635_v56 = vadd.f32 1e-05, %v5610_v7  ;;  %8985 = vmatprep.mubr.msk.f32.mxu0 %vm10526_vm1, %v15405_v58 }
 0xdaa   : > { %v5550_v63 = vpop.xlane.xlu1 %5549  ;;  %v14123_v48 = vadd.f32 %v14109_v6, %v5710_v17  ;;  %v5682_v8 = vmul.f32 %v10347_v21, %v13938_v59 }
 0xdab   : > { %10352 = vrsqrt.f32 %v5635_v56  ;;  %v5611_v35 = vmul.f32 0.0625, %v5550_v63 }
 0xdac   : > { %8986 = vmatmul.mubr.msk.f32.gmra.mrb[66].mxu0 %vm2138_vm14, %v14123_v48  ;;  %v5711_v51 = vmul.f32 %v14106_v13, %v5682_v8 }
 0xdad   : > { %v10349_v24 = vpop.eup %10348  ;;  %v5636_v26 = vadd.f32 1e-05, %v5611_v35  ;;  %8988 = vmatprep.mubr.msk.f32.mxu0 %vm10526_vm1, %v15405_v58 }
 0xdae   : > { %v5553_v18 = vpop.xlane.xlu0 %5552  ;;  %v14132_v38 = vadd.f32 %v14109_v6, %v5711_v51  ;;  %v5683_v44 = vmul.f32 %v10349_v24, %v13944_v52 }
 0xdaf   : > { %10354 = vrsqrt.f32 %v5636_v26  ;;  %v5612_v59 = vmul.f32 0.0625, %v5553_v18 }
 0xdb0   : > { %8989 = vmatmul.mubr.msk.f32.gmra.mrb[68].mxu0 %vm2138_vm14, %v14132_v38  ;;  %v5712_v34 = vmul.f32 %v14106_v13, %v5683_v44 }
 0xdb1   : > { %v10351_v43 = vpop.eup %10350  ;;  %v5637_v60 = vadd.f32 1e-05, %v5612_v59  ;;  %8991 = vmatprep.mubr.msk.f32.mxu0 %vm10526_vm1, %v15405_v58 }
 0xdb2   : > { %v5556_v49 = vpop.xlane.xlu1 %5555  ;;  %v14141_v16 = vadd.f32 %v14109_v6, %v5712_v34  ;;  %v5684_v42 = vmul.f32 %v10351_v43, %v13950_v40 }
 0xdb3   : > { %10356 = vrsqrt.f32 %v5637_v60  ;;  %v5613_v52 = vmul.f32 0.0625, %v5556_v49 }
 0xdb4   : > { %8992 = vmatmul.mubr.msk.f32.gmra.mrb[70].mxu0 %vm2138_vm14, %v14141_v16  ;;  %v5713_v4 = vmul.f32 %v14106_v13, %v5684_v42 }
 0xdb5   : > { %v10353_v29 = vpop.eup %10352  ;;  %v5638_v61 = vadd.f32 1e-05, %v5613_v52  ;;  %8994 = vmatprep.mubr.msk.f32.mxu0 %vm10526_vm1, %v15405_v58 }
 0xdb6   : > { %v5559_v46 = vpop.xlane.xlu0 %5558  ;;  %v14150_v5 = vadd.f32 %v14109_v6, %v5713_v4  ;;  %v5685_v36 = vmul.f32 %v10353_v29, %v13956_v23 }
 0xdb7   : > { %10358 = vrsqrt.f32 %v5638_v61  ;;  %v5614_v40 = vmul.f32 0.0625, %v5559_v46 }
 0xdb8   : > { %8995 = vmatmul.mubr.msk.f32.gmra.mrb[72].mxu0 %vm2138_vm14, %v14150_v5  ;;  %v5714_v39 = vmul.f32 %v14106_v13, %v5685_v36 }
 0xdb9   : > { %v10355_v47 = vpop.eup %10354  ;;  %v5639_v57 = vadd.f32 1e-05, %v5614_v40  ;;  %8997 = vmatprep.mubr.msk.f32.mxu0 %vm10526_vm1, %v15405_v58 }
 0xdba   : > { %v5562_v41 = vpop.xlane.xlu1 %5561  ;;  %v14159_v10 = vadd.f32 %v14109_v6, %v5714_v39  ;;  %v5686_v9 = vmul.f32 %v10355_v47, %v13962_v1 }
 0xdbb   : > { %10360 = vrsqrt.f32 %v5639_v57  ;;  %v5615_v23 = vmul.f32 0.0625, %v5562_v41 }
 0xdbc   : > { %8998 = vmatmul.mubr.msk.f32.gmra.mrb[74].mxu0 %vm2138_vm14, %v14159_v10  ;;  %v5715_v55 = vmul.f32 %v14106_v13, %v5686_v9 }
 0xdbd   : > { %v10357_v30 = vpop.eup %10356  ;;  %v5640_v7 = vadd.f32 1e-05, %v5615_v23  ;;  %9000 = vmatprep.mubr.msk.f32.mxu0 %vm10526_vm1, %v15405_v58 }
 0xdbe   : > { %v5565_v17 = vpop.xlane.xlu0 %5564  ;;  %v14168_v21 = vadd.f32 %v14109_v6, %v5715_v55  ;;  %v5687_v56 = vmul.f32 %v10357_v30, %v13968_v19 }
 0xdbf   : > { %10362 = vrsqrt.f32 %v5640_v7  ;;  %v5616_v1 = vmul.f32 0.0625, %v5565_v17 }
 0xdc0   : > { %9001 = vmatmul.mubr.msk.f32.gmra.mrb[76].mxu0 %vm2138_vm14, %v14168_v21  ;;  %v5716_v63 = vmul.f32 %v14106_v13, %v5687_v56 }
 0xdc1   : > { %v10359_v8 = vpop.eup %10358  ;;  %v5641_v35 = vadd.f32 1e-05, %v5616_v1  ;;  %9003 = vmatprep.mubr.msk.f32.mxu0 %vm10526_vm1, %v15405_v58 }
 0xdc2   : > { %v5568_v51 = vpop.xlane.xlu1 %5567  ;;  %v14177_v24 = vadd.f32 %v14109_v6, %v5716_v63  ;;  %v5688_v26 = vmul.f32 %v10359_v8, %v13974_v37 }
 0xdc3   : > { %10364 = vrsqrt.f32 %v5641_v35  ;;  %v5617_v19 = vmul.f32 0.0625, %v5568_v51 }
 0xdc4   : > { %9004 = vmatmul.mubr.msk.f32.gmra.mrb[78].mxu0 %vm2138_vm14, %v14177_v24  ;;  %v5717_v18 = vmul.f32 %v14106_v13, %v5688_v26 }
 0xdc5   : > { %v10361_v44 = vpop.eup %10360  ;;  %v5642_v59 = vadd.f32 1e-05, %v5617_v19  ;;  %9006 = vmatprep.mubr.msk.f32.mxu0 %vm10526_vm1, %v15405_v58 }
 0xdc6   : > { %v5571_v34 = vpop.xlane.xlu0 %5570  ;;  %v14186_v43 = vadd.f32 %v14109_v6, %v5717_v18  ;;  %v5689_v60 = vmul.f32 %v10361_v44, %v13980_v45 }
 0xdc7   : > { %10366 = vrsqrt.f32 %v5642_v59  ;;  %v5618_v37 = vmul.f32 0.0625, %v5571_v34 }
 0xdc8   : > { %9007 = vmatmul.mubr.msk.f32.gmra.mrb[80].mxu0 %vm2138_vm14, %v14186_v43  ;;  %v5718_v49 = vmul.f32 %v14106_v13, %v5689_v60 }
 0xdc9   : > { %v10363_v42 = vpop.eup %10362  ;;  %v5643_v52 = vadd.f32 1e-05, %v5618_v37  ;;  %9009 = vmatprep.mubr.msk.f32.mxu0 %vm10526_vm1, %v15405_v58 }
 0xdca   : > { %v5574_v4 = vpop.xlane.xlu1 %5573  ;;  %v14195_v29 = vadd.f32 %v14109_v6, %v5718_v49  ;;  %v5690_v61 = vmul.f32 %v10363_v42, %v13986_v31 }
 0xdcb   : > { %10368 = vrsqrt.f32 %v5643_v52  ;;  %v5619_v45 = vmul.f32 0.0625, %v5574_v4 }
 0xdcc   : > { %9010 = vmatmul.mubr.msk.f32.gmra.mrb[82].mxu0 %vm2138_vm14, %v14195_v29  ;;  %v5719_v46 = vmul.f32 %v14106_v13, %v5690_v61 }
 0xdcd   : > { %v10365_v36 = vpop.eup %10364  ;;  %v5644_v40 = vadd.f32 1e-05, %v5619_v45  ;;  %9012 = vmatprep.mubr.msk.f32.mxu0 %vm10526_vm1, %v15405_v58 }
 0xdce   : > { %v5577_v39 = vpop.xlane.xlu0 %5576  ;;  %v14204_v47 = vadd.f32 %v14109_v6, %v5719_v46  ;;  %v5691_v57 = vmul.f32 %v10365_v36, %v13992_v28 }
 0xdcf   : > { %10370 = vrsqrt.f32 %v5644_v40  ;;  %v5620_v31 = vmul.f32 0.0625, %v5577_v39 }
 0xdd0   : > { %9013 = vmatmul.mubr.msk.f32.gmra.mrb[84].mxu0 %vm2138_vm14, %v14204_v47  ;;  %v5720_v41 = vmul.f32 %v14106_v13, %v5691_v57 }
 0xdd1   : > { %v10367_v9 = vpop.eup %10366  ;;  %v5645_v23 = vadd.f32 1e-05, %v5620_v31  ;;  %9015 = vmatprep.mubr.msk.f32.mxu0 %vm10526_vm1, %v15405_v58 }
 0xdd2   : > { %v5580_v55 = vpop.xlane.xlu1 %5579  ;;  %v14213_v30 = vadd.f32 %v14109_v6, %v5720_v41  ;;  %v5692_v7 = vmul.f32 %v10367_v9, %v13998_v11 }
 0xdd3   : > { %10372 = vrsqrt.f32 %v5645_v23  ;;  %v5621_v28 = vmul.f32 0.0625, %v5580_v55 }
 0xdd4   : > { %9016 = vmatmul.mubr.msk.f32.gmra.mrb[86].mxu0 %vm2138_vm14, %v14213_v30  ;;  %v5721_v17 = vmul.f32 %v14106_v13, %v5692_v7 }
 0xdd5   : > { %v10369_v56 = vpop.eup %10368  ;;  %v5646_v1 = vadd.f32 1e-05, %v5621_v28  ;;  %9018 = vmatprep.mubr.msk.f32.mxu0 %vm10526_vm1, %v15405_v58 }
 0xdd6   : > { %v5583_v63 = vpop.xlane.xlu0 %5582  ;;  %v14222_v8 = vadd.f32 %v14109_v6, %v5721_v17  ;;  %v5693_v35 = vmul.f32 %v10369_v56, %v14004_v53 }
 0xdd7   : > { %10374 = vrsqrt.f32 %v5646_v1  ;;  %v5622_v11 = vmul.f32 0.0625, %v5583_v63 }
 0xdd8   : > { %9019 = vmatmul.mubr.msk.f32.gmra.mrb[88].mxu0 %vm2138_vm14, %v14222_v8  ;;  %v5722_v51 = vmul.f32 %v14106_v13, %v5693_v35 }
 0xdd9   : > { %v10371_v26 = vpop.eup %10370  ;;  %v5647_v19 = vadd.f32 1e-05, %v5622_v11  ;;  %9021 = vmatprep.mubr.msk.f32.mxu0 %vm10526_vm1, %v15405_v58 }
 0xdda   : > { %v5586_v18 = vpop.xlane.xlu1 %5585  ;;  %v14231_v44 = vadd.f32 %v14109_v6, %v5722_v51  ;;  %v5694_v59 = vmul.f32 %v10371_v26, %v14010_v15 }
 0xddb   : > { %10376 = vrsqrt.f32 %v5647_v19  ;;  %v5623_v53 = vmul.f32 0.0625, %v5586_v18 }
 0xddc   : > { %9022 = vmatmul.mubr.msk.f32.gmra.mrb[90].mxu0 %vm2138_vm14, %v14231_v44  ;;  %v5723_v34 = vmul.f32 %v14106_v13, %v5694_v59 }
 0xddd   : > { %v10373_v60 = vpop.eup %10372  ;;  %v5648_v37 = vadd.f32 1e-05, %v5623_v53  ;;  %9024 = vmatprep.mubr.msk.f32.mxu0 %vm10526_vm1, %v15405_v58 }
 0xdde   : > { %v5589_v49 = vpop.xlane.xlu0 %5588  ;;  %v14240_v42 = vadd.f32 %v14109_v6, %v5723_v34  ;;  %v5695_v52 = vmul.f32 %v10373_v60, %v14016_v62 }
 0xddf   : > { %10378 = vrsqrt.f32 %v5648_v37  ;;  %v5624_v15 = vmul.f32 0.0625, %v5589_v49 }
 0xde0   : > { %9025 = vmatmul.mubr.msk.f32.gmra.mrb[92].mxu0 %vm2138_vm14, %v14240_v42  ;;  %v5724_v4 = vmul.f32 %v14106_v13, %v5695_v52 }
 0xde1   : > { %v10375_v61 = vpop.eup %10374  ;;  %v5649_v45 = vadd.f32 1e-05, %v5624_v15  ;;  %9027 = vmatprep.mubr.msk.f32.mxu0 %vm10526_vm1, %v15405_v58 }
 0xde2   : > { %v5592_v46 = vpop.xlane.xlu1 %5591  ;;  %v14249_v36 = vadd.f32 %v14109_v6, %v5724_v4  ;;  %v5696_v40 = vmul.f32 %v10375_v61, %v14022_v22 }
 0xde3   : > { %10380 = vrsqrt.f32 %v5649_v45  ;;  %v5625_v62 = vmul.f32 0.0625, %v5592_v46 }
 0xde4   : > { %9028 = vmatmul.mubr.msk.f32.gmra.mrb[94].mxu0 %vm2138_vm14, %v14249_v36  ;;  %v5725_v39 = vmul.f32 %v14106_v13, %v5696_v40 }
 0xde5   : > { %v10377_v57 = vpop.eup %10376  ;;  %v5650_v31 = vadd.f32 1e-05, %v5625_v62  ;;  %9030 = vmatprep.mubr.msk.f32.mxu0 %vm10526_vm1, %v15405_v58 }
 0xde6   : > { %v5595_v41 = vpop.xlane.xlu0 %5594  ;;  %v14258_v9 = vadd.f32 %v14109_v6, %v5725_v39  ;;  %v5697_v23 = vmul.f32 %v10377_v57, %v14028_v54 }
 0xde7   : > { %10382 = vrsqrt.f32 %v5650_v31  ;;  %v5626_v22 = vmul.f32 0.0625, %v5595_v41 }
 0xde8   : > { %9031 = vmatmul.mubr.msk.f32.gmra.mrb[96].mxu0 %vm2138_vm14, %v14258_v9  ;;  %v5726_v55 = vmul.f32 %v14106_v13, %v5697_v23 }
 0xde9   : > { %v10379_v7 = vpop.eup %10378  ;;  %v5651_v28 = vadd.f32 1e-05, %v5626_v22  ;;  %9033 = vmatprep.mubr.msk.f32.mxu0 %vm10526_vm1, %v15405_v58 }
 0xdea   : > { %v5598_v17 = vpop.xlane.xlu1 %5597  ;;  %v14267_v56 = vadd.f32 %v14109_v6, %v5726_v55  ;;  %v5698_v1 = vmul.f32 %v10379_v7, %v14034_v25  ;;  %v6806_v55 = vld [vmem:[%s15017_s4 + $0x198] sm:$0xff]  ;;  %v6807_v7 = vld [vmem:[%s15017_s4 + $0x1a0] sm:$0xff] }
 0xdeb   : > { %10384 = vrsqrt.f32 %v5651_v28  ;;  %v5627_v54 = vmul.f32 0.0625, %v5598_v17  ;;  %v6801_v28 = vld [vmem:[%s285_s20] sm:$0x1] }
 0xdec   : > { %9034 = vmatmul.mubr.msk.f32.gmra.mrb[98].mxu0 %vm2138_vm14, %v14267_v56  ;;  %v5727_v63 = vmul.f32 %v14106_v13, %v5698_v1  ;;  %v7049_v17 = vrot.slane %v6801_v28, %v5327_v14  ;;  %v9443_v1 = vpack.c.bf16 %v6807_v7, %v6806_v55  ;;  %v6803_v14 = vld [vmem:[%s15017_s4 + $0x180] sm:$0xff] }
 0xded   : > { %v10381_v35 = vpop.eup %10380  ;;  %v5652_v11 = vadd.f32 1e-05, %v5627_v54  ;;  %9036 = vmatprep.mubr.msk.f32.mxu0 %vm10526_vm1, %v15405_v58  ;;  %v6808_v54 = vld [vmem:[%s15017_s4 + $0x1a8] sm:$0x1] }
 0xdee   : > { %v5601_v51 = vpop.xlane.xlu0 %5600  ;;  %v14276_v26 = vadd.f32 %v14109_v6, %v5727_v63  ;;  %v5699_v19 = vmul.f32 %v10381_v35, %v14040_v33  ;;  %7050 = vrot.lane.b32.xlu0 %v7049_v17, %s10533_s25  ;;  %v6802_v63 = vld [vmem:[%s289_s13] sm:$0x1]  ;;  %v14375_v35 = vld [vmem:[%s15019_s6 + $0x10] ss:$0 sm:$0xff] }
 0xdef   : > { %10386 = vrsqrt.f32 %v5652_v11  ;;  %v5628_v25 = vmul.f32 0.0625, %v5601_v51 }
 0xdf0   : > { %9037 = vmatmul.mubr.msk.f32.gmra.mrb[100].mxu0 %vm2138_vm14, %v14276_v26  ;;  %v5728_v18 = vmul.f32 %v14106_v13, %v5699_v19 }
 0xdf1   : > { %v10383_v59 = vpop.eup %10382  ;;  %v5653_v53 = vadd.f32 1e-05, %v5628_v25  ;;  %9039 = vmatprep.mubr.msk.f32.mxu0 %vm10526_vm1, %v15405_v58 }
 0xdf2   : > { %v5604_v34 = vpop.xlane.xlu1 %5603  ;;  %v14285_v60 = vadd.f32 %v14109_v6, %v5728_v18  ;;  %v5700_v37 = vmul.f32 %v10383_v59, %v14046_v50 }
 0xdf3   : > { %10388 = vrsqrt.f32 %v5653_v53  ;;  %v5629_v33 = vmul.f32 0.0625, %v5604_v34 }
 0xdf4   : > { %9040 = vmatmul.mubr.msk.f32.gmra.mrb[102].mxu0 %vm2138_vm14, %v14285_v60  ;;  %v5729_v49 = vmul.f32 %v14106_v13, %v5700_v37 }
 0xdf5   : > { %v10385_v52 = vpop.eup %10384  ;;  %v5654_v15 = vadd.f32 1e-05, %v5629_v33  ;;  %9042 = vmatprep.mubr.msk.f32.mxu0 %vm10526_vm1, %v15405_v58 }
 0xdf6   : > { %v14294_v4 = vadd.f32 %v14109_v6, %v5729_v49  ;;  %v5701_v61 = vmul.f32 %v10385_v52, %v14052_v12 }
 0xdf7   : > { %10390 = vrsqrt.f32 %v5654_v15 }
 0xdf8   : > { %9043 = vmatmul.mubr.msk.f32.gmra.mrb[104].mxu0 %vm2138_vm14, %v14294_v4  ;;  %v5730_v50 = vmul.f32 %v14106_v13, %v5701_v61 }
 0xdf9   : > { %v10387_v45 = vpop.eup %10386  ;;  %9045 = vmatprep.mubr.msk.f32.mxu0 %vm10526_vm1, %v15405_v58 }
 0xdfa   : > { %v14303_v46 = vadd.f32 %v14109_v6, %v5730_v50  ;;  %v5702_v40 = vmul.f32 %v10387_v45, %v14058_v32 }
 0xdfc   : > { %9046 = vmatmul.mubr.msk.f32.gmra.mrb[106].mxu0 %vm2138_vm14, %v14303_v46  ;;  %v5731_v12 = vmul.f32 %v14106_v13, %v5702_v40 }
 0xdfd   : > { %v10389_v62 = vpop.eup %10388  ;;  %9048 = vmatprep.mubr.msk.f32.mxu0 %vm10526_vm1, %v15405_v58 }
 0xdfe   : > { %v14312_v39 = vadd.f32 %v14109_v6, %v5731_v12  ;;  %v5703_v57 = vmul.f32 %v10389_v62, %v14064_v20 }
 0xe00   : > { %9049 = vmatmul.mubr.msk.f32.gmra.mrb[108].mxu0 %vm2138_vm14, %v14312_v39  ;;  %v5732_v32 = vmul.f32 %v14106_v13, %v5703_v57 }
 0xe01   : > { %v10391_v31 = vpop.eup %10390  ;;  %9051 = vmatprep.mubr.msk.f32.mxu0 %vm10526_vm1, %v15405_v58 }
 0xe02   : > { %v14321_v41 = vadd.f32 %v14109_v6, %v5732_v32  ;;  %v5704_v23 = vmul.f32 %v10391_v31, %v14070_v3  ;;  %v6804_v3 = vld [vmem:[%s15017_s4 + $0x188] sm:$0xff] }
 0xe04   : > { %9052 = vmatmul.mubr.msk.f32.gmra.mrb[110].mxu0 %vm2138_vm14, %v14321_v41  ;;  %v5733_v20 = vmul.f32 %v14106_v13, %v5704_v23  ;;  %v6805_v13 = vld [vmem:[%s15017_s4 + $0x190] sm:$0xff] }
 0xe05   : > { %9054 = vmatprep.mubr.msk.f32.mxu0 %vm10526_vm1, %v15405_v58 }
 0xe06   : > { %v14330_v22 = vadd.f32 %v14109_v6, %v5733_v20  ;;  %v9440_v6 = vpack.c.bf16 %v6805_v13, %v6804_v3 }
 0xe08   : > { %9055 = vmatmul.mubr.msk.f32.gmra.mrb[112].mxu0 %vm2138_vm14, %v14330_v22 }
 0xe09   : > { %9158 = vmatprep.mubr.msk.f32.mxu0 %vm10526_vm1, %v15405_v58  ;;  %9441 = vmatpush3.bf16.msra.mxu0 %v9440_v6 }
 0xe0a   : > { %9442 = vmatprep.subr.bf16.mxu0 %v15326_v0 }
 0xe0d   : > { %9444 = vmatpush3.bf16.msra.mxu0 %v9443_v1 }
 0xe0e   : > { %9156 = vmatprep.subr.mxu0 %v15405_v58 }
 0xe11   : > { %9157 = vmatpush3.msk.msra.mxu0 %vm6815_vm0, %v6808_v54 }
 0xe12   : > { %9159 = vmatmul.mubr.msk.f32.vlgmr.msra.gmra.mrb[114].mxu0 %vm6811_vm3, %v6801_v28  ;;  %9161 = vmatprep.subr.mxu0 %v15405_v58 }
 0xe13   : > { %9162 = vmatpush3.msra.mxu0 %v6803_v14  ;;  %9163 = vmatprep.mubr.msk.f32.mxu0 %vm10526_vm1, %v15405_v58 }
 0xe14   : > { %9166 = vmatprep.subr.mxu0 %v15405_v58 }
 0xe16   : > { %9164 = vmatmul.mubr.msk.f32.vlgmr.msra.gmra.mrb[116].mxu0 %vm6889_vm4, %v6802_v63 }
 0xe17   : > { %9168 = vmatprep.mubr.msk.f32.mxu0 %vm10526_vm1, %v15405_v58 }
 0xe7b   : > { %v5911_v11 = vpop.f32.mrb[64].mxu0 }
 0xe7c   : > { %v5912_v51 = vadd.f32 %v14375_v35, %v5911_v11  ;;  %v8984_v19 = vpop.f32.mrb[65].mxu0 }
 0xe7e   : > { %v6035_v25 = vmax.f32 %v5912_v51, 0.0 }
 0xe7f   : > { %v5916_v18 = vpop.f32.mrb[66].mxu0 }
 0xe80   : > { %v5917_v59 = vadd.f32 %v14375_v35, %v5916_v18  ;;  %v8987_v53 = vpop.f32.mrb[67].mxu0  ;;  %9074 = vmatmul.mubr.msk.f32.vlgmr.msra.gmra.mrb[80].mxu1 %vm6072_vm5, %v6035_v25 }
 0xe81   : > { %9076 = vmatprep.mubr.msk.f32.mxu1 %vm10526_vm1, %v15405_v58 }
 0xe82   : > { %v6036_v34 = vmax.f32 %v5917_v59, 0.0 }
 0xe83   : > { %v5921_v37 = vpop.f32.mrb[68].mxu0 }
 0xe84   : > { %v5922_v33 = vadd.f32 %v14375_v35, %v5921_v37  ;;  %v8990_v49 = vpop.f32.mrb[69].mxu0  ;;  %9077 = vmatmul.mubr.msk.f32.gmra.mrb[82].mxu1 %vm6072_vm5, %v6036_v34 }
 0xe85   : > { %9079 = vmatprep.mubr.msk.f32.mxu1 %vm10526_vm1, %v15405_v58 }
 0xe86   : > { %v6037_v52 = vmax.f32 %v5922_v33, 0.0 }
 0xe87   : > { %v5926_v15 = vpop.f32.mrb[70].mxu0 }
 0xe88   : > { %v5927_v61 = vadd.f32 %v14375_v35, %v5926_v15  ;;  %v8993_v50 = vpop.f32.mrb[71].mxu0  ;;  %9080 = vmatmul.mubr.msk.f32.gmra.mrb[84].mxu1 %vm6072_vm5, %v6037_v52 }
 0xe89   : > { %9082 = vmatprep.mubr.msk.f32.mxu1 %vm10526_vm1, %v15405_v58 }
 0xe8a   : > { %v6038_v45 = vmax.f32 %v5927_v61, 0.0 }
 0xe8b   : > { %v5931_v40 = vpop.f32.mrb[72].mxu0 }
 0xe8c   : > { %v5932_v12 = vadd.f32 %v14375_v35, %v5931_v40  ;;  %v8996_v62 = vpop.f32.mrb[73].mxu0  ;;  %9083 = vmatmul.mubr.msk.f32.gmra.mrb[86].mxu1 %vm6072_vm5, %v6038_v45 }
 0xe8d   : > { %9085 = vmatprep.mubr.msk.f32.mxu1 %vm10526_vm1, %v15405_v58 }
 0xe8e   : > { %v6039_v57 = vmax.f32 %v5932_v12, 0.0 }
 0xe8f   : > { %v5936_v32 = vpop.f32.mrb[74].mxu0 }
 0xe90   : > { %v5937_v31 = vadd.f32 %v14375_v35, %v5936_v32  ;;  %v8999_v23 = vpop.f32.mrb[75].mxu0  ;;  %9086 = vmatmul.mubr.msk.f32.gmra.mrb[88].mxu1 %vm6072_vm5, %v6039_v57 }
 0xe91   : > { %9088 = vmatprep.mubr.msk.f32.mxu1 %vm10526_vm1, %v15405_v58 }
 0xe92   : > { %v6040_v20 = vmax.f32 %v5937_v31, 0.0 }
 0xe93   : > { %v5941_v3 = vpop.f32.mrb[76].mxu0 }
 0xe94   : > { %v5942_v13 = vadd.f32 %v14375_v35, %v5941_v3  ;;  %v9002_v55 = vpop.f32.mrb[77].mxu0  ;;  %9089 = vmatmul.mubr.msk.f32.gmra.mrb[90].mxu1 %vm6072_vm5, %v6040_v20 }
 0xe95   : > { %9091 = vmatprep.mubr.msk.f32.mxu1 %vm10526_vm1, %v15405_v58 }
 0xe96   : > { %v6041_v6 = vmax.f32 %v5942_v13, 0.0 }
 0xe97   : > { %v5946_v7 = vpop.f32.mrb[78].mxu0 }
 0xe98   : > { %v5947_v28 = vadd.f32 %v14375_v35, %v5946_v7  ;;  %v9005_v17 = vpop.f32.mrb[79].mxu0  ;;  %9092 = vmatmul.mubr.msk.f32.gmra.mrb[92].mxu1 %vm6072_vm5, %v6041_v6 }
 0xe99   : > { %9094 = vmatprep.mubr.msk.f32.mxu1 %vm10526_vm1, %v15405_v58 }
 0xe9a   : > { %v6042_v1 = vmax.f32 %v5947_v28, 0.0 }
 0xe9b   : > { %v5951_v54 = vpop.f32.mrb[80].mxu0 }
 0xe9c   : > { %v5952_v14 = vadd.f32 %v14375_v35, %v5951_v54  ;;  %v9008_v63 = vpop.f32.mrb[81].mxu0  ;;  %9095 = vmatmul.mubr.msk.f32.gmra.mrb[94].mxu1 %vm6072_vm5, %v6042_v1 }
 0xe9d   : > { %9097 = vmatprep.mubr.msk.f32.mxu1 %vm10526_vm1, %v15405_v58 }
 0xe9e   : > { %v6043_v11 = vmax.f32 %v5952_v14, 0.0 }
 0xe9f   : > { %v5956_v51 = vpop.f32.mrb[82].mxu0 }
 0xea0   : > { %v5957_v19 = vadd.f32 %v14375_v35, %v5956_v51  ;;  %v9011_v25 = vpop.f32.mrb[83].mxu0  ;;  %9098 = vmatmul.mubr.msk.f32.gmra.mrb[96].mxu1 %vm6072_vm5, %v6043_v11 }
 0xea1   : > { %9100 = vmatprep.mubr.msk.f32.mxu1 %vm10526_vm1, %v15405_v58 }
 0xea2   : > { %v6044_v18 = vmax.f32 %v5957_v19, 0.0 }
 0xea3   : > { %v5961_v59 = vpop.f32.mrb[84].mxu0 }
 0xea4   : > { %v5962_v53 = vadd.f32 %v14375_v35, %v5961_v59  ;;  %v9014_v34 = vpop.f32.mrb[85].mxu0  ;;  %9101 = vmatmul.mubr.msk.f32.gmra.mrb[98].mxu1 %vm6072_vm5, %v6044_v18 }
 0xea5   : > { %9103 = vmatprep.mubr.msk.f32.mxu1 %vm10526_vm1, %v15405_v58 }
 0xea6   : > { %v6045_v37 = vmax.f32 %v5962_v53, 0.0 }
 0xea7   : > { %v5966_v33 = vpop.f32.mrb[86].mxu0 }
 0xea8   : > { %v5967_v49 = vadd.f32 %v14375_v35, %v5966_v33  ;;  %v9017_v52 = vpop.f32.mrb[87].mxu0  ;;  %9104 = vmatmul.mubr.msk.f32.gmra.mrb[100].mxu1 %vm6072_vm5, %v6045_v37 }
 0xea9   : > { %9106 = vmatprep.mubr.msk.f32.mxu1 %vm10526_vm1, %v15405_v58 }
 0xeaa   : > { %v6046_v15 = vmax.f32 %v5967_v49, 0.0 }
 0xeab   : > { %v5971_v61 = vpop.f32.mrb[88].mxu0 }
 0xeac   : > { %v5972_v50 = vadd.f32 %v14375_v35, %v5971_v61  ;;  %v9020_v45 = vpop.f32.mrb[89].mxu0  ;;  %9107 = vmatmul.mubr.msk.f32.gmra.mrb[102].mxu1 %vm6072_vm5, %v6046_v15 }
 0xead   : > { %9109 = vmatprep.mubr.msk.f32.mxu1 %vm10526_vm1, %v15405_v58 }
 0xeae   : > { %v6047_v40 = vmax.f32 %v5972_v50, 0.0 }
 0xeaf   : > { %v5976_v12 = vpop.f32.mrb[90].mxu0 }
 0xeb0   : > { %v5977_v62 = vadd.f32 %v14375_v35, %v5976_v12  ;;  %v9023_v57 = vpop.f32.mrb[91].mxu0  ;;  %9110 = vmatmul.mubr.msk.f32.gmra.mrb[104].mxu1 %vm6072_vm5, %v6047_v40 }
 0xeb1   : > { %9112 = vmatprep.mubr.msk.f32.mxu1 %vm10526_vm1, %v15405_v58 }
 0xeb2   : > { %v6048_v32 = vmax.f32 %v5977_v62, 0.0 }
 0xeb3   : > { %v5981_v31 = vpop.f32.mrb[92].mxu0 }
 0xeb4   : > { %v5982_v23 = vadd.f32 %v14375_v35, %v5981_v31  ;;  %v9026_v20 = vpop.f32.mrb[93].mxu0  ;;  %9113 = vmatmul.mubr.msk.f32.gmra.mrb[106].mxu1 %vm6072_vm5, %v6048_v32 }
 0xeb5   : > { %9115 = vmatprep.mubr.msk.f32.mxu1 %vm10526_vm1, %v15405_v58 }
 0xeb6   : > { %v6049_v3 = vmax.f32 %v5982_v23, 0.0 }
 0xeb7   : > { %v5986_v13 = vpop.f32.mrb[94].mxu0 }
 0xeb8   : > { %v5987_v55 = vadd.f32 %v14375_v35, %v5986_v13  ;;  %v9029_v6 = vpop.f32.mrb[95].mxu0  ;;  %9116 = vmatmul.mubr.msk.f32.gmra.mrb[108].mxu1 %vm6072_vm5, %v6049_v3 }
 0xeb9   : > { %9118 = vmatprep.mubr.msk.f32.mxu1 %vm10526_vm1, %v15405_v58 }
 0xeba   : > { %v6050_v7 = vmax.f32 %v5987_v55, 0.0 }
 0xebb   : > { %v5991_v28 = vpop.f32.mrb[96].mxu0 }
 0xebc   : > { %v5992_v17 = vadd.f32 %v14375_v35, %v5991_v28  ;;  %v9032_v1 = vpop.f32.mrb[97].mxu0  ;;  %9119 = vmatmul.mubr.msk.f32.gmra.mrb[110].mxu1 %vm6072_vm5, %v6050_v7 }
 0xebd   : > { %9121 = vmatprep.mubr.msk.f32.mxu1 %vm10526_vm1, %v15405_v58 }
 0xebe   : > { %v6051_v54 = vmax.f32 %v5992_v17, 0.0 }
 0xebf   : > { %v5996_v14 = vpop.f32.mrb[98].mxu0 }
 0xec0   : > { %v5997_v63 = vadd.f32 %v14375_v35, %v5996_v14  ;;  %v9035_v11 = vpop.f32.mrb[99].mxu0  ;;  %9122 = vmatmul.mubr.msk.f32.gmra.mrb[112].mxu1 %vm6072_vm5, %v6051_v54 }
 0xec1   : > { %9124 = vmatprep.mubr.msk.f32.mxu1 %vm10526_vm1, %v15405_v58  ;;  %v6070_v11 = vsub.s32 3, %v13727_v27 }
 0xec2   : > { %v6052_v51 = vmax.f32 %v5997_v63, 0.0 }
 0xec3   : > { %v6001_v19 = vpop.f32.mrb[100].mxu0 }
 0xec4   : > { %v6002_v25 = vadd.f32 %v14375_v35, %v6001_v19  ;;  %v9038_v18 = vpop.f32.mrb[101].mxu0  ;;  %9125 = vmatmul.mubr.msk.f32.gmra.mrb[114].mxu1 %vm6072_vm5, %v6052_v51 }
 0xec5   : > { %9127 = vmatprep.mubr.msk.f32.mxu1 %vm10526_vm1, %v15405_v58 }
 0xec6   : > { %v6053_v59 = vmax.f32 %v6002_v25, 0.0 }
 0xec7   : > { %v6006_v53 = vpop.f32.mrb[102].mxu0 }
 0xec8   : > { %v6007_v34 = vadd.f32 %v14375_v35, %v6006_v53  ;;  %v9041_v37 = vpop.f32.mrb[103].mxu0  ;;  %9128 = vmatmul.mubr.msk.f32.gmra.mrb[116].mxu1 %vm6072_vm5, %v6053_v59 }
 0xec9   : > { %9130 = vmatprep.mubr.msk.f32.mxu1 %vm10526_vm1, %v15405_v58 }
 0xeca   : > { %v6054_v33 = vmax.f32 %v6007_v34, 0.0 }
 0xecb   : > { %v6011_v49 = vpop.f32.mrb[104].mxu0 }
 0xecc   : > { %v6012_v52 = vadd.f32 %v14375_v35, %v6011_v49  ;;  %v9044_v15 = vpop.f32.mrb[105].mxu0  ;;  %9131 = vmatmul.mubr.msk.f32.gmra.mrb[118].mxu1 %vm6072_vm5, %v6054_v33 }
 0xecd   : > { %9133 = vmatprep.mubr.msk.f32.mxu1 %vm10526_vm1, %v15405_v58 }
 0xece   : > { %v6055_v61 = vmax.f32 %v6012_v52, 0.0  ;;  %v6810_v52 = vld [vmem:[%s15017_s4 + $0x1ad] sm:$0x7] }
 0xecf   : > { %v6016_v50 = vpop.f32.mrb[106].mxu0 }
 0xed0   : > { %v6017_v45 = vadd.f32 %v14375_v35, %v6016_v50  ;;  %v9047_v40 = vpop.f32.mrb[107].mxu0  ;;  %9134 = vmatmul.mubr.msk.f32.gmra.mrb[120].mxu1 %vm6072_vm5, %v6055_v61 }
 0xed1   : > { %9136 = vmatprep.mubr.msk.f32.mxu1 %vm10526_vm1, %v15405_v58 }
 0xed2   : > { %v6056_v12 = vmax.f32 %v6017_v45, 0.0 }
 0xed3   : > { %v6021_v62 = vpop.f32.mrb[108].mxu0 }
 0xed4   : > { %v6022_v57 = vadd.f32 %v14375_v35, %v6021_v62  ;;  %v9050_v32 = vpop.f32.mrb[109].mxu0  ;;  %9137 = vmatmul.mubr.msk.f32.gmra.mrb[122].mxu1 %vm6072_vm5, %v6056_v12 }
 0xed5   : > { %9139 = vmatprep.mubr.msk.f32.mxu1 %vm10526_vm1, %v15405_v58 }
 0xed6   : > { %v6057_v31 = vmax.f32 %v6022_v57, 0.0 }
 0xed7   : > { %v6026_v23 = vpop.f32.mrb[110].mxu0 }
 0xed8   : > { %v6027_v20 = vadd.f32 %v14375_v35, %v6026_v23  ;;  %v9053_v3 = vpop.f32.mrb[111].mxu0  ;;  %9140 = vmatmul.mubr.msk.f32.gmra.mrb[124].mxu1 %vm6072_vm5, %v6057_v31 }
 0xed9   : > { %9142 = vmatprep.mubr.msk.f32.mxu1 %vm10526_vm1, %v15405_v58 }
 0xeda   : > { %v6058_v13 = vmax.f32 %v6027_v20, 0.0  ;;  %v6809_v20 = vld [vmem:[%s15017_s4 + $0x1a9] sm:$0xf] }
 0xedb   : > { %v6031_v55 = vpop.f32.mrb[112].mxu0  ;;  %9167 = vmatpush3.msk.msra.mxu0 %vm6972_vm6, %v6809_v20 }
 0xedc   : > { %v6032_v6 = vadd.f32 %v14375_v35, %v6031_v55  ;;  %v9056_v7 = vpop.f32.mrb[113].mxu0  ;;  %9143 = vmatmul.mubr.msk.f32.gmra.mrb[126].mxu1 %vm6072_vm5, %v6058_v13  ;;  %v14479_v35 = vld [vmem:[%s15017_s4 + $0x160] sm:$0x7f]  ;;  %v7052_v55 = vrot.slane %v6809_v20, 2  ;;  %9171 = vmatprep.subr.mxu0 %v15405_v58 }
 0xedd   : > { %9145 = vmatprep.mubr.msk.f32.mxu1 %vm10526_vm1, %v15405_v58  ;;  %v14482_v51 = vrot.slane %v14479_v35, %v6070_v11 }
 0xede   : > { %v6059_v28 = vmax.f32 %v6032_v6, 0.0 }
 0xee0   : > { %9146 = vmatmul.mubr.msk.f32.gmra.mrb[128].mxu1 %vm6072_vm5, %v6059_v28 }
 0xee5   : > { %v6885_v17 = vpop.f32.mrb[114].mxu0 }
 0xee6   : > { %v9160_v1 = vpop.f32.mrb[115].mxu0 }
 0xee7   : > { %v7051_v1 = vpop.permute.xlu0 %7050 }
 0xee9   : > { %v6959_v54 = vpop.f32.mrb[116].mxu0 }
 0xeea   : > { %v6960_v14 = vadd.f32 %v6959_v54, %v6885_v17  ;;  %v9165_v63 = vpop.f32.mrb[117].mxu0 }
 0xeec   : > { %v6963_v45 = vadd.f32 %v6960_v14, %v6810_v52 }
 0xeee   : > { %v6964_v32 = vmax.f32 %v6963_v45, 0.0 }
 0xef0   : > { %9169 = vmatmul.mubr.msk.f32.vlgmr.msra.gmra.mrb[118].mxu0 %vm6968_vm7, %v6964_v32 }
 0xef1   : > { %9173 = vmatprep.mubr.msk.f32.mxu0 %vm10526_vm1, %v15405_v58  ;;  %9172 = vmatpush3.msk.msra.mxu0 %vm6972_vm6, %v7052_v55 }
 0xef2   : > { %9445 = vmatprep.subr.bf16.mxu0 %v15326_v0 }
 0xef4   : > { %9174 = vmatmul.mubr.msk.f32.vlgmr.msra.gmra.mrb[120].mxu0 %vm6968_vm7, %v7051_v1 }
 0xef5   : > { %9180 = vmatprep.mubr.msk.f32.mxu0 %vm10526_vm1, %v15405_v58 }
 0xf53   : > { %v6214_v19 = vpop.f32.mrb[80].mxu1 }
 0xf54   : > { %v6215_v25 = vadd.f32 %v6214_v19, %v14482_v51  ;;  %v9075_v18 = vpop.f32.mrb[81].mxu1 }
 0xf56   : > { %v14486_v59 = vadd.f32 %v6215_v25, %v14114_v2 }
 0xf57   : > { %v6219_v53 = vpop.f32.mrb[82].mxu1 }
 0xf58   : > { %v6220_v34 = vadd.f32 %v6219_v53, %v14482_v51  ;;  %v9078_v37 = vpop.f32.mrb[83].mxu1  ;;  %v6363_v33 = vsel %vm2138_vm14, %v14486_v59, 0.0 }
 0xf59   : > { %6364 = vadd.xlane.f32.xlu1 %v6363_v33 }
 0xf5a   : > { %v14492_v49 = vadd.f32 %v6220_v34, %v14123_v48 }
 0xf5b   : > { %v6224_v15 = vpop.f32.mrb[84].mxu1 }
 0xf5c   : > { %v6225_v61 = vadd.f32 %v6224_v15, %v14482_v51  ;;  %v9081_v2 = vpop.f32.mrb[85].mxu1  ;;  %v6366_v50 = vsel %vm2138_vm14, %v14492_v49, 0.0 }
 0xf5d   : > { %6367 = vadd.xlane.f32.xlu1 %v6366_v50 }
 0xf5e   : > { %v14501_v40 = vadd.f32 %v6225_v61, %v14132_v38 }
 0xf5f   : > { %v6229_v12 = vpop.f32.mrb[86].mxu1 }
 0xf60   : > { %v6230_v48 = vadd.f32 %v6229_v12, %v14482_v51  ;;  %v9084_v62 = vpop.f32.mrb[87].mxu1  ;;  %v6369_v57 = vsel %vm2138_vm14, %v14501_v40, 0.0 }
 0xf61   : > { %6370 = vadd.xlane.f32.xlu1 %v6369_v57 }
 0xf62   : > { %v14507_v31 = vadd.f32 %v6230_v48, %v14141_v16 }
 0xf63   : > { %v6234_v23 = vpop.f32.mrb[88].mxu1 }
 0xf64   : > { %v6235_v38 = vadd.f32 %v6234_v23, %v14482_v51  ;;  %v9087_v3 = vpop.f32.mrb[89].mxu1  ;;  %v6372_v13 = vsel %vm2138_vm14, %v14507_v31, 0.0 }
 0xf65   : > { %6373 = vadd.xlane.f32.xlu1 %v6372_v13 }
 0xf66   : > { %v14518_v16 = vadd.f32 %v6235_v38, %v14150_v5 }
 0xf67   : > { %v6239_v6 = vpop.f32.mrb[90].mxu1 }
 0xf68   : > { %v6240_v7 = vadd.f32 %v6239_v6, %v14482_v51  ;;  %v9090_v28 = vpop.f32.mrb[91].mxu1  ;;  %v6375_v17 = vsel %vm2138_vm14, %v14518_v16, 0.0 }
 0xf69   : > { %6376 = vadd.xlane.f32.xlu1 %v6375_v17 }
 0xf6a   : > { %v14529_v5 = vadd.f32 %v6240_v7, %v14159_v10 }
 0xf6b   : > { %v6244_v54 = vpop.f32.mrb[92].mxu1 }
 0xf6c   : > { %v6245_v14 = vadd.f32 %v6244_v54, %v14482_v51  ;;  %v9093_v63 = vpop.f32.mrb[93].mxu1  ;;  %v6378_v11 = vsel %vm2138_vm14, %v14529_v5, 0.0 }
 0xf6d   : > { %6379 = vadd.xlane.f32.xlu0 %v6378_v11 }
 0xf6e   : > { %v14538_v19 = vadd.f32 %v6245_v14, %v14168_v21 }
 0xf6f   : > { %v6249_v25 = vpop.f32.mrb[94].mxu1 }
 0xf70   : > { %v6250_v10 = vadd.f32 %v6249_v25, %v14482_v51  ;;  %v9096_v18 = vpop.f32.mrb[95].mxu1  ;;  %v6381_v0 = vsel %vm2138_vm14, %v14538_v19, 0.0 }
 0xf71   : > { %6382 = vadd.xlane.f32.xlu1 %v6381_v0 }
 0xf72   : > { %v14544_v53 = vadd.f32 %v6250_v10, %v14177_v24 }
 0xf73   : > { %v6254_v34 = vpop.f32.mrb[96].mxu1 }
 0xf74   : > { %v6255_v37 = vadd.f32 %v6254_v34, %v14482_v51  ;;  %v9099_v33 = vpop.f32.mrb[97].mxu1  ;;  %v6384_v52 = vsel %vm2138_vm14, %v14544_v53, 0.0 }
 0xf75   : > { %6385 = vadd.xlane.f32.xlu1 %v6384_v52 }
 0xf76   : > { %v14550_v21 = vadd.f32 %v6255_v37, %v14186_v43 }
 0xf77   : > { %v6259_v15 = vpop.f32.mrb[98].mxu1 }
 0xf78   : > { %v6260_v61 = vadd.f32 %v6259_v15, %v14482_v51  ;;  %v9102_v2 = vpop.f32.mrb[99].mxu1  ;;  %v6387_v50 = vsel %vm2138_vm14, %v14550_v21, 0.0 }
 0xf79   : > { %6388 = vadd.xlane.f32.xlu1 %v6387_v50 }
 0xf7a   : > { %v14556_v24 = vadd.f32 %v6260_v61, %v14195_v29 }
 0xf7b   : > { %v6264_v45 = vpop.f32.mrb[100].mxu1 }
 0xf7c   : > { %v6265_v12 = vadd.f32 %v6264_v45, %v14482_v51  ;;  %v9105_v48 = vpop.f32.mrb[101].mxu1  ;;  %v6390_v62 = vsel %vm2138_vm14, %v14556_v24, 0.0 }
 0xf7d   : > { %6391 = vadd.xlane.f32.xlu1 %v6390_v62 }
 0xf7e   : > { %v14562_v43 = vadd.f32 %v6265_v12, %v14204_v47 }
 0xf7f   : > { %v6269_v57 = vpop.f32.mrb[102].mxu1 }
 0xf80   : > { %v6270_v32 = vadd.f32 %v6269_v57, %v14482_v51  ;;  %v9108_v23 = vpop.f32.mrb[103].mxu1  ;;  %v6393_v20 = vsel %vm2138_vm14, %v14562_v43, 0.0 }
 0xf81   : > { %6394 = vadd.xlane.f32.xlu1 %v6393_v20 }
 0xf82   : > { %v14568_v29 = vadd.f32 %v6270_v32, %v14213_v30 }
 0xf83   : > { %v6274_v38 = vpop.f32.mrb[104].mxu1 }
 0xf84   : > { %v6275_v3 = vadd.f32 %v6274_v38, %v14482_v51  ;;  %v9111_v13 = vpop.f32.mrb[105].mxu1  ;;  %v6396_v55 = vsel %vm2138_vm14, %v14568_v29, 0.0 }
 0xf85   : > { %6397 = vadd.xlane.f32.xlu1 %v6396_v55 }
 0xf86   : > { %v14574_v47 = vadd.f32 %v6275_v3, %v14222_v8 }
 0xf87   : > { %v6279_v6 = vpop.f32.mrb[106].mxu1 }
 0xf88   : > { %v6280_v7 = vadd.f32 %v6279_v6, %v14482_v51  ;;  %v9114_v28 = vpop.f32.mrb[107].mxu1  ;;  %v6399_v17 = vsel %vm2138_vm14, %v14574_v47, 0.0 }
 0xf89   : > { %6400 = vadd.xlane.f32.xlu1 %v6399_v17 }
 0xf8a   : > { %v14580_v30 = vadd.f32 %v6280_v7, %v14231_v44 }
 0xf8b   : > { %v6284_v1 = vpop.f32.mrb[108].mxu1 }
 0xf8c   : > { %v6285_v54 = vadd.f32 %v6284_v1, %v14482_v51  ;;  %v9117_v14 = vpop.f32.mrb[109].mxu1  ;;  %v6402_v63 = vsel %vm2138_vm14, %v14580_v30, 0.0 }
 0xf8d   : > { %6403 = vadd.xlane.f32.xlu1 %v6402_v63 }
 0xf8e   : > { %v14586_v8 = vadd.f32 %v6285_v54, %v14240_v42 }
 0xf8f   : > { %v6289_v11 = vpop.f32.mrb[110].mxu1 }
 0xf90   : > { %v6290_v25 = vadd.f32 %v6289_v11, %v14482_v51  ;;  %v9120_v10 = vpop.f32.mrb[111].mxu1  ;;  %v6405_v18 = vsel %vm2138_vm14, %v14586_v8, 0.0 }
 0xf91   : > { %6406 = vadd.xlane.f32.xlu0 %v6405_v18 }
 0xf92   : > { %v14592_v44 = vadd.f32 %v6290_v25, %v14249_v36 }
 0xf93   : > { %v6294_v0 = vpop.f32.mrb[112].mxu1 }
 0xf94   : > { %v6295_v34 = vadd.f32 %v6294_v0, %v14482_v51  ;;  %v9123_v37 = vpop.f32.mrb[113].mxu1  ;;  %v6408_v33 = vsel %vm2138_vm14, %v14592_v44, 0.0 }
 0xf95   : > { %6409 = vadd.xlane.f32.xlu1 %v6408_v33 }
 0xf96   : > { %v14598_v42 = vadd.f32 %v6295_v34, %v14258_v9 }
 0xf97   : > { %v6299_v52 = vpop.f32.mrb[114].mxu1 }
 0xf98   : > { %v6300_v15 = vadd.f32 %v6299_v52, %v14482_v51  ;;  %v9126_v61 = vpop.f32.mrb[115].mxu1  ;;  %v6411_v2 = vsel %vm2138_vm14, %v14598_v42, 0.0 }
 0xf99   : > { %6412 = vadd.xlane.f32.xlu0 %v6411_v2 }
 0xf9a   : > { %v14604_v36 = vadd.f32 %v6300_v15, %v14267_v56 }
 0xf9b   : > { %v6304_v50 = vpop.f32.mrb[116].mxu1 }
 0xf9c   : > { %v6305_v45 = vadd.f32 %v6304_v50, %v14482_v51  ;;  %v9129_v12 = vpop.f32.mrb[117].mxu1  ;;  %v6414_v48 = vsel %vm2138_vm14, %v14604_v36, 0.0 }
 0xf9d   : > { %6415 = vadd.xlane.f32.xlu1 %v6414_v48 }
 0xf9e   : > { %v14610_v9 = vadd.f32 %v6305_v45, %v14276_v26 }
 0xf9f   : > { %v6309_v62 = vpop.f32.mrb[118].mxu1 }
 0xfa0   : > { %v6310_v57 = vadd.f32 %v6309_v62, %v14482_v51  ;;  %v9132_v32 = vpop.f32.mrb[119].mxu1  ;;  %v6417_v23 = vsel %vm2138_vm14, %v14610_v9, 0.0 }
 0xfa1   : > { %6418 = vadd.xlane.f32.xlu0 %v6417_v23 }
 0xfa2   : > { %v14616_v56 = vadd.f32 %v6310_v57, %v14285_v60 }
 0xfa3   : > { %v6314_v20 = vpop.f32.mrb[120].mxu1 }
 0xfa4   : > { %v6315_v38 = vadd.f32 %v6314_v20, %v14482_v51  ;;  %v9135_v3 = vpop.f32.mrb[121].mxu1  ;;  %v6420_v13 = vsel %vm2138_vm14, %v14616_v56, 0.0 }
 0xfa5   : > { %6421 = vadd.xlane.f32.xlu1 %v6420_v13 }
 0xfa6   : > { %v14622_v26 = vadd.f32 %v6315_v38, %v14294_v4 }
 0xfa7   : > { %v6319_v55 = vpop.f32.mrb[122].mxu1 }
 0xfa8   : > { %v6320_v6 = vadd.f32 %v6319_v55, %v14482_v51  ;;  %v9138_v7 = vpop.f32.mrb[123].mxu1  ;;  %v6423_v28 = vsel %vm2138_vm14, %v14622_v26, 0.0 }
 0xfa9   : > { %6424 = vadd.xlane.f32.xlu0 %v6423_v28 }
 0xfaa   : > { %v14628_v60 = vadd.f32 %v6320_v6, %v14303_v46 }
 0xfab   : > { %v6324_v17 = vpop.f32.mrb[124].mxu1 }
 0xfac   : > { %v6325_v1 = vadd.f32 %v6324_v17, %v14482_v51  ;;  %v9141_v54 = vpop.f32.mrb[125].mxu1  ;;  %v6426_v14 = vsel %vm2138_vm14, %v14628_v60, 0.0 }
 0xfad   : > { %6427 = vadd.xlane.f32.xlu1 %v6426_v14 }
 0xfae   : > { %v14634_v4 = vadd.f32 %v6325_v1, %v14312_v39 }
 0xfaf   : > { %v6329_v63 = vpop.f32.mrb[126].mxu1 }
 0xfb0   : > { %v6330_v11 = vadd.f32 %v6329_v63, %v14482_v51  ;;  %v9144_v25 = vpop.f32.mrb[127].mxu1  ;;  %v6429_v10 = vsel %vm2138_vm14, %v14634_v4, 0.0 }
 0xfb1   : > { %6430 = vadd.xlane.f32.xlu0 %v6429_v10 }
 0xfb2   : > { %v14640_v46 = vadd.f32 %v6330_v11, %v14321_v41 }
 0xfb3   : > { %v6334_v18 = vpop.f32.mrb[128].mxu1 }
 0xfb4   : > { %v6335_v0 = vadd.f32 %v6334_v18, %v14482_v51  ;;  %v9147_v34 = vpop.f32.mrb[129].mxu1  ;;  %v6432_v37 = vsel %vm2138_vm14, %v14640_v46, 0.0 }
 0xfb5   : > { %6433 = vadd.xlane.f32.xlu1 %v6432_v37 }
 0xfb6   : > { %v14646_v39 = vadd.f32 %v6335_v0, %v14330_v22 }
 0xfb8   : > { %v6435_v33 = vsel %vm2138_vm14, %v14646_v39, 0.0 }
 0xfb9   : > { %6436 = vadd.xlane.f32.xlu0 %v6435_v33 }
 0xfe6   : > { %v6365_v52 = vpop.xlane.xlu1 %6364 }
 0xfe7   : > { %v6438_v15 = vmul.f32 0.0625, %v6365_v52 }
 0xfe9   : > { %v14651_v41 = vsub.f32 %v14486_v59, %v6438_v15 }
 0xfea   : > { %v6368_v61 = vpop.xlane.xlu1 %6367 }
 0xfeb   : > { %v6439_v2 = vmul.f32 0.0625, %v6368_v61  ;;  %v6488_v51 = vmul.f32 %v14651_v41, %v14651_v41 }
 0xfed   : > { %v14656_v50 = vsub.f32 %v14492_v49, %v6439_v2  ;;  %v6513_v22 = vsel %vm2138_vm14, %v6488_v51, 0.0 }
 0xfee   : > { %v6371_v45 = vpop.xlane.xlu1 %6370  ;;  %6514 = vadd.xlane.f32.xlu1 %v6513_v22 }
 0xfef   : > { %v6440_v12 = vmul.f32 0.0625, %v6371_v45  ;;  %v6489_v48 = vmul.f32 %v14656_v50, %v14656_v50 }
 0xff1   : > { %v14662_v62 = vsub.f32 %v14501_v40, %v6440_v12  ;;  %v6516_v59 = vsel %vm2138_vm14, %v6489_v48, 0.0 }
 0xff2   : > { %v6374_v57 = vpop.xlane.xlu1 %6373  ;;  %6517 = vadd.xlane.f32.xlu1 %v6516_v59 }
 0xff3   : > { %v6441_v32 = vmul.f32 0.0625, %v6374_v57  ;;  %v6490_v49 = vmul.f32 %v14662_v62, %v14662_v62 }
 0xff5   : > { %v14668_v23 = vsub.f32 %v14507_v31, %v6441_v32  ;;  %v6519_v20 = vsel %vm2138_vm14, %v6490_v49, 0.0 }
 0xff6   : > { %v6377_v38 = vpop.xlane.xlu1 %6376  ;;  %6520 = vadd.xlane.f32.xlu0 %v6519_v20 }
 0xff7   : > { %v6442_v3 = vmul.f32 0.0625, %v6377_v38  ;;  %v6491_v40 = vmul.f32 %v14668_v23, %v14668_v23 }
 0xff9   : > { %v14674_v13 = vsub.f32 %v14518_v16, %v6442_v3  ;;  %v6522_v55 = vsel %vm2138_vm14, %v6491_v40, 0.0 }
 0xffa   : > { %v6380_v6 = vpop.xlane.xlu0 %6379  ;;  %6523 = vadd.xlane.f32.xlu1 %v6522_v55 }
 0xffb   : > { %v6443_v7 = vmul.f32 0.0625, %v6380_v6  ;;  %v6492_v31 = vmul.f32 %v14674_v13, %v14674_v13 }
 0xffd   : > { %v14680_v28 = vsub.f32 %v14529_v5, %v6443_v7  ;;  %v6525_v17 = vsel %vm2138_vm14, %v6492_v31, 0.0 }
 0xffe   : > { %v6383_v1 = vpop.xlane.xlu1 %6382  ;;  %6526 = vadd.xlane.f32.xlu0 %v6525_v17 }
 0xfff   : > { %v6444_v54 = vmul.f32 0.0625, %v6383_v1  ;;  %v6493_v16 = vmul.f32 %v14680_v28, %v14680_v28 }
0x1001   : > { %v14686_v14 = vsub.f32 %v14538_v19, %v6444_v54  ;;  %v6528_v63 = vsel %vm2138_vm14, %v6493_v16, 0.0 }
0x1002   : > { %v6386_v11 = vpop.xlane.xlu1 %6385  ;;  %6529 = vadd.xlane.f32.xlu0 %v6528_v63 }
0x1003   : > { %v6445_v25 = vmul.f32 0.0625, %v6386_v11  ;;  %v6494_v5 = vmul.f32 %v14686_v14, %v14686_v14 }
0x1005   : > { %v14692_v10 = vsub.f32 %v14544_v53, %v6445_v25  ;;  %v6531_v18 = vsel %vm2138_vm14, %v6494_v5, 0.0 }
0x1006   : > { %v6389_v0 = vpop.xlane.xlu1 %6388  ;;  %6532 = vadd.xlane.f32.xlu1 %v6531_v18 }
0x1007   : > { %v6446_v34 = vmul.f32 0.0625, %v6389_v0  ;;  %v6495_v19 = vmul.f32 %v14692_v10, %v14692_v10 }
0x1009   : > { %v14698_v37 = vsub.f32 %v14550_v21, %v6446_v34  ;;  %v6534_v33 = vsel %vm2138_vm14, %v6495_v19, 0.0 }
0x100a   : > { %v6392_v52 = vpop.xlane.xlu1 %6391  ;;  %6535 = vadd.xlane.f32.xlu0 %v6534_v33 }
0x100b   : > { %v6447_v15 = vmul.f32 0.0625, %v6392_v52  ;;  %v6496_v53 = vmul.f32 %v14698_v37, %v14698_v37 }
0x100d   : > { %v14704_v61 = vsub.f32 %v14556_v24, %v6447_v15  ;;  %v6537_v2 = vsel %vm2138_vm14, %v6496_v53, 0.0 }
0x100e   : > { %v6395_v51 = vpop.xlane.xlu1 %6394  ;;  %6538 = vadd.xlane.f32.xlu1 %v6537_v2 }
0x100f   : > { %v6448_v22 = vmul.f32 0.0625, %v6395_v51  ;;  %v6497_v21 = vmul.f32 %v14704_v61, %v14704_v61 }
0x1011   : > { %v14710_v45 = vsub.f32 %v14562_v43, %v6448_v22  ;;  %v6540_v12 = vsel %vm2138_vm14, %v6497_v21, 0.0 }
0x1012   : > { %v6398_v48 = vpop.xlane.xlu1 %6397  ;;  %6541 = vadd.xlane.f32.xlu0 %v6540_v12 }
0x1013   : > { %v6449_v59 = vmul.f32 0.0625, %v6398_v48  ;;  %v6498_v24 = vmul.f32 %v14710_v45, %v14710_v45 }
0x1015   : > { %v14716_v57 = vsub.f32 %v14568_v29, %v6449_v59  ;;  %v6543_v32 = vsel %vm2138_vm14, %v6498_v24, 0.0 }
0x1016   : > { %v6401_v49 = vpop.xlane.xlu1 %6400  ;;  %6544 = vadd.xlane.f32.xlu1 %v6543_v32 }
0x1017   : > { %v6450_v20 = vmul.f32 0.0625, %v6401_v49  ;;  %v6499_v43 = vmul.f32 %v14716_v57, %v14716_v57 }
0x1019   : > { %v14722_v38 = vsub.f32 %v14574_v47, %v6450_v20  ;;  %v6546_v3 = vsel %vm2138_vm14, %v6499_v43, 0.0 }
0x101a   : > { %v6404_v40 = vpop.xlane.xlu1 %6403  ;;  %6547 = vadd.xlane.f32.xlu0 %v6546_v3  ;;  %v14773_v3 = vpop.f32.mrb[118].mxu0 }
0x101b   : > { %v6451_v55 = vmul.f32 0.0625, %v6404_v40  ;;  %v6500_v29 = vmul.f32 %v14722_v38, %v14722_v38 }
0x101d   : > { %v14728_v6 = vsub.f32 %v14580_v30, %v6451_v55  ;;  %v6549_v7 = vsel %vm2138_vm14, %v6500_v29, 0.0  ;;  %v9170_v55 = vpop.f32.mrb[119].mxu0 }
0x101e   : > { %v6407_v31 = vpop.xlane.xlu0 %6406  ;;  %6550 = vadd.xlane.f32.xlu1 %v6549_v7  ;;  %v14777_v29 = vpop.f32.mrb[120].mxu0 }
0x101f   : > { %v6452_v17 = vmul.f32 0.0625, %v6407_v31  ;;  %v6501_v47 = vmul.f32 %v14728_v6, %v14728_v6 }
0x1021   : > { %v14734_v1 = vsub.f32 %v14586_v8, %v6452_v17  ;;  %v6552_v54 = vsel %vm2138_vm14, %v6501_v47, 0.0 }
0x1022   : > { %v6410_v16 = vpop.xlane.xlu1 %6409  ;;  %6553 = vadd.xlane.f32.xlu0 %v6552_v54 }
0x1023   : > { %v6453_v63 = vmul.f32 0.0625, %v6410_v16  ;;  %v6502_v30 = vmul.f32 %v14734_v1, %v14734_v1 }
0x1025   : > { %v14740_v11 = vsub.f32 %v14592_v44, %v6453_v63  ;;  %v6555_v25 = vsel %vm2138_vm14, %v6502_v30, 0.0 }
0x1026   : > { %v6413_v5 = vpop.xlane.xlu0 %6412  ;;  %6556 = vadd.xlane.f32.xlu1 %v6555_v25 }
0x1027   : > { %v6454_v18 = vmul.f32 0.0625, %v6413_v5  ;;  %v6503_v8 = vmul.f32 %v14740_v11, %v14740_v11 }
0x1029   : > { %v14746_v0 = vsub.f32 %v14598_v42, %v6454_v18  ;;  %v6558_v34 = vsel %vm2138_vm14, %v6503_v8, 0.0 }
0x102a   : > { %v6416_v19 = vpop.xlane.xlu1 %6415  ;;  %6559 = vadd.xlane.f32.xlu0 %v6558_v34 }
0x102b   : > { %v6455_v33 = vmul.f32 0.0625, %v6416_v19  ;;  %v6504_v44 = vmul.f32 %v14746_v0, %v14746_v0 }
0x102d   : > { %v14752_v52 = vsub.f32 %v14604_v36, %v6455_v33  ;;  %v6561_v15 = vsel %vm2138_vm14, %v6504_v44, 0.0 }
0x102e   : > { %v6419_v53 = vpop.xlane.xlu0 %6418  ;;  %6562 = vadd.xlane.f32.xlu1 %v6561_v15  ;;  %v14807_v15 = vld [vmem:[%s15017_s4 + $0x168] sm:$0xff] }
0x102f   : > { %v6456_v2 = vmul.f32 0.0625, %v6419_v53  ;;  %v6505_v42 = vmul.f32 %v14752_v52, %v14752_v52  ;;  %v7130_v53 = vld [vmem:[%s15017_s4 + $0x170] sm:$0xff] }
0x1031   : > { %v14758_v51 = vsub.f32 %v14610_v9, %v6456_v2  ;;  %v6564_v22 = vsel %vm2138_vm14, %v6505_v42, 0.0  ;;  %v7136_v2 = vrot.slane %v14807_v15, 2  ;;  %v7137_v42 = vrot.slane %v7130_v53, 2 }
0x1032   : > { %v6422_v21 = vpop.xlane.xlu1 %6421  ;;  %6565 = vadd.xlane.f32.xlu0 %v6564_v22 }
0x1033   : > { %v6457_v12 = vmul.f32 0.0625, %v6422_v21  ;;  %v6506_v36 = vmul.f32 %v14758_v51, %v14758_v51  ;;  %v7138_v21 = vsel %vm7135_vm8, %v7136_v2, %v7137_v42 }
0x1035   : > { %v14764_v48 = vsub.f32 %v14616_v56, %v6457_v12  ;;  %v6567_v59 = vsel %vm2138_vm14, %v6506_v36, 0.0 }
0x1036   : > { %v6425_v24 = vpop.xlane.xlu0 %6424  ;;  %6568 = vadd.xlane.f32.xlu1 %v6567_v59 }
0x1037   : > { %v6458_v32 = vmul.f32 0.0625, %v6425_v24  ;;  %v6507_v9 = vmul.f32 %v14764_v48, %v14764_v48 }
0x1039   : > { %v14770_v49 = vsub.f32 %v14622_v26, %v6458_v32  ;;  %v6570_v20 = vsel %vm2138_vm14, %v6507_v9, 0.0  ;;  %v9175_v26 = vpop.f32.mrb[121].mxu0 }
0x103a   : > { %v6428_v43 = vpop.xlane.xlu1 %6427  ;;  %6571 = vadd.xlane.f32.xlu0 %v6570_v20 }
0x103b   : > { %v6459_v40 = vmul.f32 0.0625, %v6428_v43  ;;  %v6508_v56 = vmul.f32 %v14770_v49, %v14770_v49 }
0x103d   : > { %v14780_v7 = vsub.f32 %v14628_v60, %v6459_v40  ;;  %v6573_v31 = vsel %vm2138_vm14, %v6508_v56, 0.0 }
0x103e   : > { %v6431_v17 = vpop.xlane.xlu0 %6430  ;;  %6574 = vadd.xlane.f32.xlu1 %v6573_v31 }
0x103f   : > { %v6460_v47 = vmul.f32 0.0625, %v6431_v17  ;;  %v6509_v54 = vmul.f32 %v14780_v7, %v14780_v7 }
0x1041   : > { %v14786_v16 = vsub.f32 %v14634_v4, %v6460_v47  ;;  %v6576_v63 = vsel %vm2138_vm14, %v6509_v54, 0.0 }
0x1042   : > { %v6434_v30 = vpop.xlane.xlu1 %6433  ;;  %6577 = vadd.xlane.f32.xlu0 %v6576_v63 }
0x1043   : > { %v6461_v25 = vmul.f32 0.0625, %v6434_v30  ;;  %v6510_v60 = vmul.f32 %v14786_v16, %v14786_v16 }
0x1045   : > { %v14792_v5 = vsub.f32 %v14640_v46, %v6461_v25  ;;  %v6579_v18 = vsel %vm2138_vm14, %v6510_v60, 0.0 }
0x1046   : > { %6580 = vadd.xlane.f32.xlu1 %v6579_v18  ;;  %v6437_v8 = vpop.xlane.xlu0 %6436 }
0x1047   : > { %v6462_v34 = vmul.f32 0.0625, %v6437_v8  ;;  %v6511_v4 = vmul.f32 %v14792_v5, %v14792_v5 }
0x1049   : > { %v14798_v19 = vsub.f32 %v14646_v39, %v6462_v34  ;;  %v6582_v33 = vsel %vm2138_vm14, %v6511_v4, 0.0  ;;  %v14815_v39 = vld [vmem:[%s15017_s4 + $0x178] sm:$0xf] }
0x104a   : > { %6583 = vadd.xlane.f32.xlu0 %v6582_v33  ;;  %v7139_v22 = vrot.slane %v14815_v39, 2 }
0x104b   : > { %v6512_v44 = vmul.f32 %v14798_v19, %v14798_v19 }
0x104c   : > { %v7140_v12 = vsel %vm7135_vm8, %v7137_v42, %v7139_v22 }
0x104d   : > { %v6585_v46 = vsel %vm2138_vm14, %v6512_v44, 0.0  ;;  %v9446_v36 = vpack.c.bf16 %v7140_v12, %v7138_v21 }
0x104e   : > { %6586 = vadd.xlane.f32.xlu1 %v6585_v46 }
0x104f   : > { %9447 = vmatpush3.bf16.msra.mxu0 %v9446_v36 }
0x1050   : > { %9183 = vmatprep.subr.mxu0 %v15405_v58 }
0x107b   : > { %v6515_v59 = vpop.xlane.xlu1 %6514 }
0x107c   : > { %v6588_v26 = vmul.f32 0.0625, %v6515_v59 }
0x107e   : > { %v6613_v25 = vadd.f32 1e-05, %v6588_v26 }
0x107f   : > { %v6518_v9 = vpop.xlane.xlu1 %6517 }
0x1080   : > { %v6589_v47 = vmul.f32 0.0625, %v6518_v9  ;;  %10392 = vrsqrt.f32 %v6613_v25 }
0x1082   : > { %v6614_v34 = vadd.f32 1e-05, %v6589_v47  ;;  %v6690_v47 = vsub.s32 4, %v13727_v27 }
0x1083   : > { %v6521_v24 = vpop.xlane.xlu0 %6520 }
0x1084   : > { %v6590_v54 = vmul.f32 0.0625, %v6521_v24 }
0x1086   : > { %v6615_v33 = vadd.f32 1e-05, %v6590_v54 }
0x1087   : > { %v6524_v20 = vpop.xlane.xlu1 %6523 }
0x1088   : > { %v6591_v60 = vmul.f32 0.0625, %v6524_v20 }
0x108a   : > { %v6616_v53 = vadd.f32 1e-05, %v6591_v60 }
0x108b   : > { %v6527_v32 = vpop.xlane.xlu0 %6526 }
0x108c   : > { %v6592_v17 = vmul.f32 0.0625, %v6527_v32 }
0x108e   : > { %v6617_v18 = vadd.f32 1e-05, %v6592_v17 }
0x108f   : > { %v6530_v43 = vpop.xlane.xlu0 %6529 }
0x1090   : > { %v6593_v8 = vmul.f32 0.0625, %v6530_v43  ;;  %10394 = vrsqrt.f32 %v6617_v18 }
0x1091   : > { %10396 = vrsqrt.f32 %v6614_v34 }
0x1092   : > { %v6618_v2 = vadd.f32 1e-05, %v6593_v8  ;;  %10398 = vrsqrt.f32 %v6615_v33 }
0x1093   : > { %v6533_v40 = vpop.xlane.xlu1 %6532  ;;  %10400 = vrsqrt.f32 %v6616_v53 }
0x1094   : > { %v6594_v4 = vmul.f32 0.0625, %v6533_v40  ;;  %10402 = vrsqrt.f32 %v6618_v2  ;;  %v14825_v2 = vrot.slane %v14479_v35, %v6690_v47 }
0x1096   : > { %v6619_v21 = vadd.f32 1e-05, %v6594_v4 }
0x1097   : > { %v6536_v56 = vpop.xlane.xlu0 %6535 }
0x1098   : > { %v6595_v42 = vmul.f32 0.0625, %v6536_v56  ;;  %10404 = vrsqrt.f32 %v6619_v21 }
0x109a   : > { %v6620_v24 = vadd.f32 1e-05, %v6595_v42 }
0x109b   : > { %v6539_v55 = vpop.xlane.xlu1 %6538 }
0x109c   : > { %v6596_v12 = vmul.f32 0.0625, %v6539_v55  ;;  %10406 = vrsqrt.f32 %v6620_v24  ;;  %v10393_v55 = vpop.eup %10392 }
0x109d   : > { %v10395_v18 = vpop.eup %10394 }
0x109e   : > { %v6621_v9 = vadd.f32 1e-05, %v6596_v12  ;;  %v10397_v33 = vpop.eup %10396  ;;  %v6667_v12 = vmul.f32 %v10395_v18, %v14674_v13 }
0x109f   : > { %v6542_v31 = vpop.xlane.xlu0 %6541 }
0x10a0   : > { %v6597_v32 = vmul.f32 0.0625, %v6542_v31  ;;  %10408 = vrsqrt.f32 %v6621_v9 }
0x10a2   : > { %v6622_v56 = vadd.f32 1e-05, %v6597_v32  ;;  %v6663_v32 = vmul.f32 %v10393_v55, %v14651_v41 }
0x10a3   : > { %v6545_v63 = vpop.xlane.xlu1 %6544 }
0x10a4   : > { %v6598_v20 = vmul.f32 0.0625, %v6545_v63  ;;  %v6719_v63 = vsub.s32 5, %v13727_v27  ;;  %10410 = vrsqrt.f32 %v6622_v56 }
0x10a6   : > { %v6623_v25 = vadd.f32 1e-05, %v6598_v20 }
0x10a7   : > { %v6548_v30 = vpop.xlane.xlu0 %6547 }
0x10a8   : > { %v6599_v43 = vmul.f32 0.0625, %v6548_v30  ;;  %10412 = vrsqrt.f32 %v6623_v25 }
0x10aa   : > { %v6624_v8 = vadd.f32 1e-05, %v6599_v43 }
0x10ab   : > { %v6551_v44 = vpop.xlane.xlu1 %6550 }
0x10ac   : > { %v6600_v17 = vmul.f32 0.0625, %v6551_v44  ;;  %v10399_v44 = vpop.eup %10398  ;;  %10414 = vrsqrt.f32 %v6624_v8 }
0x10ad   : > { %v10401_v21 = vpop.eup %10400  ;;  %v6665_v56 = vmul.f32 %v10399_v44, %v14662_v62 }
0x10ae   : > { %v6625_v30 = vadd.f32 1e-05, %v6600_v17  ;;  %v10403_v24 = vpop.eup %10402  ;;  %v6666_v13 = vmul.f32 %v10401_v21, %v14668_v23  ;;  %v6692_v23 = vmul.f32 %v14825_v2, %v6663_v32 }
0x10af   : > { %v6554_v46 = vpop.xlane.xlu0 %6553  ;;  %v10405_v43 = vpop.eup %10404  ;;  %v6668_v41 = vmul.f32 %v10403_v24, %v14680_v28  ;;  %v6694_v28 = vmul.f32 %v14825_v2, %v6665_v56 }
0x10b0   : > { %v6601_v54 = vmul.f32 0.0625, %v6554_v46  ;;  %10416 = vrsqrt.f32 %v6625_v30  ;;  %v10407_v25 = vpop.eup %10406 }
0x10b1   : > { %v10409_v62 = vpop.eup %10408  ;;  %v6670_v44 = vmul.f32 %v10407_v25, %v14692_v10 }
0x10b2   : > { %v6626_v46 = vadd.f32 1e-05, %v6601_v54  ;;  %v10411_v30 = vpop.eup %10410 }
0x10b3   : > { %v6557_v36 = vpop.xlane.xlu1 %6556  ;;  %v10413_v21 = vpop.eup %10412  ;;  %v6672_v56 = vmul.f32 %v10411_v30, %v14704_v61 }
0x10b4   : > { %v6602_v60 = vmul.f32 0.0625, %v6557_v36  ;;  %10418 = vrsqrt.f32 %v6626_v46  ;;  %v6671_v46 = vmul.f32 %v10409_v62, %v14698_v37 }
0x10b6   : > { %v6627_v36 = vadd.f32 1e-05, %v6602_v60  ;;  %v14835_v60 = vrot.slane %v14479_v35, %v6719_v63 }
0x10b7   : > { %v6560_v59 = vpop.xlane.xlu0 %6559 }
0x10b8   : > { %v6603_v34 = vmul.f32 0.0625, %v6560_v59  ;;  %10420 = vrsqrt.f32 %v6627_v36  ;;  %v10415_v36 = vpop.eup %10414  ;;  %v6723_v32 = vadd.f32 %v14835_v60, %v6694_v28 }
0x10ba   : > { %v6628_v27 = vadd.f32 1e-05, %v6603_v34 }
0x10bb   : > { %v6563_v40 = vpop.xlane.xlu1 %6562 }
0x10bc   : > { %v6604_v53 = vmul.f32 0.0625, %v6563_v40  ;;  %v6664_v40 = vmul.f32 %v10397_v33, %v14656_v50  ;;  %v6669_v50 = vmul.f32 %v10405_v43, %v14686_v14  ;;  %10422 = vrsqrt.f32 %v6628_v27 }
0x10bd   : > { %v6695_v33 = vmul.f32 %v14825_v2, %v6666_v13  ;;  %v6697_v14 = vmul.f32 %v14825_v2, %v6668_v41 }
0x10be   : > { %v6629_v17 = vadd.f32 1e-05, %v6604_v53  ;;  %v6698_v53 = vmul.f32 %v14825_v2, %v6669_v50  ;;  %v14864_v50 = vsel %vm2138_vm14, %v6723_v32, -inf }
0x10bf   : > { %v6566_v26 = vpop.xlane.xlu0 %6565  ;;  %v6724_v27 = vadd.f32 %v14835_v60, %v6695_v33  ;;  %v6726_v10 = vadd.f32 %v14835_v60, %v6697_v14 }
0x10c0   : > { %v6605_v59 = vmul.f32 0.0625, %v6566_v26  ;;  %v6696_v26 = vmul.f32 %v14825_v2, %v6667_v12  ;;  %10424 = vrsqrt.f32 %v6629_v17  ;;  %v6699_v17 = vmul.f32 %v14825_v2, %v6670_v44 }
0x10c1   : > { %v14868_v62 = vsel %vm2138_vm14, %v6724_v27, -inf }
0x10c2   : > { %v6630_v55 = vadd.f32 1e-05, %v6605_v59  ;;  %v6725_v35 = vadd.f32 %v14835_v60, %v6696_v26  ;;  %v6721_v59 = vadd.f32 %v14835_v60, %v6692_v23  ;;  %v6752_v23 = vsel %vm2138_vm14, %v6726_v10, -inf }
0x10c3   : > { %v6569_v31 = vpop.xlane.xlu1 %6568  ;;  %v6728_v28 = vadd.f32 %v14835_v60, %v6699_v17 }
0x10c4   : > { %v6606_v9 = vmul.f32 0.0625, %v6569_v31 }
0x10c5   : > { %v6756_v27 = vsel %vm2138_vm14, %v6728_v28, -inf }
0x10c6   : > { %v6631_v18 = vadd.f32 1e-05, %v6606_v9  ;;  %v10417_v9 = vpop.eup %10416 }
0x10c7   : > { %v6572_v4 = vpop.xlane.xlu0 %6571  ;;  %v10419_v43 = vpop.eup %10418  ;;  %v6675_v30 = vmul.f32 %v10417_v9, %v14722_v38 }
0x10c8   : > { %v6607_v42 = vmul.f32 0.0625, %v6572_v4  ;;  %v6693_v4 = vmul.f32 %v14825_v2, %v6664_v40  ;;  %v6727_v40 = vadd.f32 %v14835_v60, %v6698_v53 }
0x10c9   : > { %v6704_v10 = vmul.f32 %v14825_v2, %v6675_v30 }
0x10ca   : > { %v6632_v54 = vadd.f32 1e-05, %v6607_v42  ;;  %v6722_v24 = vadd.f32 %v14835_v60, %v6693_v4  ;;  %v14873_v4 = vsel %vm2138_vm14, %v6727_v40, -inf }
0x10cb   : > { %v6575_v20 = vpop.xlane.xlu1 %6574  ;;  %v6755_v38 = vmax.f32 %v14864_v50, %v14873_v4 }
0x10cc   : > { %v6608_v47 = vmul.f32 0.0625, %v6575_v20  ;;  %10426 = vrsqrt.f32 %v6632_v54  ;;  %v14852_v20 = vsel %vm2138_vm14, %v6725_v35, -inf  ;;  %v10421_v54 = vpop.eup %10420  ;;  %v14861_v25 = vsel %vm2138_vm14, %v6722_v24, -inf }
0x10cd   : > { %10428 = vrsqrt.f32 %v6630_v55  ;;  %v10423_v41 = vpop.eup %10422  ;;  %v6746_v55 = vsel %vm2138_vm14, %v6721_v59, -inf  ;;  %v6701_v35 = vmul.f32 %v14825_v2, %v6672_v56  ;;  %v6677_v24 = vmul.f32 %v10421_v54, %v14734_v1 }
0x10ce   : > { %v6633_v34 = vadd.f32 1e-05, %v6608_v47  ;;  %10430 = vrsqrt.f32 %v6631_v18  ;;  %v6700_v47 = vmul.f32 %v14825_v2, %v6671_v46  ;;  %v6674_v18 = vmul.f32 %v10415_v36, %v14716_v57 }
0x10cf   : > { %v6578_v8 = vpop.xlane.xlu0 %6577  ;;  %v6751_v61 = vmax.f32 %v6746_v55, %v14852_v20  ;;  %v6753_v46 = vmax.f32 %v14861_v25, %v6752_v23  ;;  %v6678_v36 = vmul.f32 %v10423_v41, %v14740_v11  ;;  %v6730_v20 = vadd.f32 %v14835_v60, %v6701_v35 }
0x10d0   : > { %v6609_v31 = vmul.f32 0.0625, %v6578_v8  ;;  %10432 = vrsqrt.f32 %v6633_v34  ;;  %v10425_v8 = vpop.eup %10424  ;;  %v6729_v33 = vadd.f32 %v14835_v60, %v6700_v47  ;;  %v6706_v47 = vmul.f32 %v14825_v2, %v6677_v24 }
0x10d1   : > { %v6679_v32 = vmul.f32 %v10425_v8, %v14746_v0  ;;  %v6733_v55 = vadd.f32 %v14835_v60, %v6704_v10 }
0x10d2   : > { %v6634_v63 = vadd.f32 1e-05, %v6609_v31  ;;  %v6758_v9 = vsel %vm2138_vm14, %v6729_v33, -inf }
0x10d3   : > { %v6581_v42 = vpop.xlane.xlu1 %6580  ;;  %v6708_v56 = vmul.f32 %v14825_v2, %v6679_v32  ;;  %v6759_v54 = vmax.f32 %v6751_v61, %v6758_v9 }
0x10d4   : > { %v6610_v12 = vmul.f32 0.0625, %v6581_v42  ;;  %10434 = vrsqrt.f32 %v6634_v63  ;;  %v6673_v63 = vmul.f32 %v10413_v21, %v14710_v45  ;;  %v6703_v42 = vmul.f32 %v14825_v2, %v6674_v18 }
0x10d5   : > { %v6737_v23 = vadd.f32 %v14835_v60, %v6708_v56 }
0x10d6   : > { %v6635_v37 = vadd.f32 1e-05, %v6610_v12  ;;  %v10427_v31 = vpop.eup %10426  ;;  %v6676_v12 = vmul.f32 %v10419_v43, %v14728_v6  ;;  %v6702_v11 = vmul.f32 %v14825_v2, %v6673_v63  ;;  %v6732_v0 = vadd.f32 %v14835_v60, %v6703_v42 }
0x10d7   : > { %v6584_v13 = vpop.xlane.xlu0 %6583  ;;  %v10429_v14 = vpop.eup %10428  ;;  %v6682_v45 = vmul.f32 %v10427_v31, %v14764_v48  ;;  %v6707_v48 = vmul.f32 %v14825_v2, %v6678_v36  ;;  %v6774_v36 = vsel %vm2138_vm14, %v6737_v23, -inf }
0x10d8   : > { %10436 = vrsqrt.f32 %v6635_v37  ;;  %v6611_v26 = vmul.f32 0.0625, %v6584_v13  ;;  %v10431_v44 = vpop.eup %10430  ;;  %v6680_v1 = vmul.f32 %v10429_v14, %v14752_v52  ;;  %v6705_v17 = vmul.f32 %v14825_v2, %v6676_v12 }
0x10d9   : > { %v6681_v37 = vmul.f32 %v10431_v44, %v14758_v51  ;;  %v6711_v13 = vmul.f32 %v14825_v2, %v6682_v45  ;;  %v6757_v52 = vmax.f32 %v14868_v62, %v6756_v27  ;;  %v6760_v51 = vsel %vm2138_vm14, %v6730_v20, -inf }
0x10da   : > { %v6636_v34 = vadd.f32 1e-05, %v6611_v26  ;;  %v10433_v59 = vpop.eup %10432  ;;  %v6709_v25 = vmul.f32 %v14825_v2, %v6680_v1  ;;  %v6764_v50 = vsel %vm2138_vm14, %v6732_v0, -inf  ;;  %v6736_v18 = vadd.f32 %v14835_v60, %v6707_v48 }
0x10db   : > { %v6587_v57 = vpop.xlane.xlu1 %6586  ;;  %v6683_v43 = vmul.f32 %v10433_v59, %v14770_v49  ;;  %v6731_v49 = vadd.f32 %v14835_v60, %v6702_v11  ;;  %v6710_v8 = vmul.f32 %v14825_v2, %v6681_v37  ;;  %v6761_v31 = vmax.f32 %v6753_v46, %v6760_v51 }
0x10dc   : > { %10438 = vrsqrt.f32 %v6636_v34  ;;  %v6612_v53 = vmul.f32 0.0625, %v6587_v57  ;;  %v6740_v34 = vadd.f32 %v14835_v60, %v6711_v13  ;;  %v6765_v57 = vmax.f32 %v6757_v52, %v6764_v50 }
0x10dd   : > { %v6712_v62 = vmul.f32 %v14825_v2, %v6683_v43  ;;  %v6762_v35 = vsel %vm2138_vm14, %v6731_v49, -inf  ;;  %v6766_v14 = vsel %vm2138_vm14, %v6733_v55, -inf  ;;  %v6738_v63 = vadd.f32 %v14835_v60, %v6709_v25 }
0x10de   : > { %v6637_v21 = vadd.f32 1e-05, %v6612_v53  ;;  %v10435_v6 = vpop.eup %10434  ;;  %v6772_v30 = vsel %vm2138_vm14, %v6736_v18, -inf  ;;  %v6739_v53 = vadd.f32 %v14835_v60, %v6710_v8  ;;  %v6780_v59 = vsel %vm2138_vm14, %v6740_v34, -inf }
0x10df   : > { %v6684_v26 = vmul.f32 %v10435_v6, %v14780_v7  ;;  %v6734_v7 = vadd.f32 %v14835_v60, %v6705_v17  ;;  %v6741_v44 = vadd.f32 %v14835_v60, %v6712_v62  ;;  %v6763_v27 = vmax.f32 %v6755_v38, %v6762_v35 }
0x10e0   : > { %10440 = vrsqrt.f32 %v6637_v21  ;;  %v6767_v9 = vmax.f32 %v6759_v54, %v6766_v14  ;;  %v6773_v20 = vmax.f32 %v6765_v57, %v6772_v30  ;;  %v6776_v6 = vsel %vm2138_vm14, %v6738_v63, -inf }
0x10e1   : > { %v6713_v4 = vmul.f32 %v14825_v2, %v6684_v26  ;;  %v6768_v12 = vsel %vm2138_vm14, %v6734_v7, -inf  ;;  %v6778_v11 = vsel %vm2138_vm14, %v6739_v53, -inf  ;;  %v6782_v10 = vsel %vm2138_vm14, %v6741_v44, -inf }
0x10e2   : > { %v10437_v40 = vpop.eup %10436  ;;  %v6769_v48 = vmax.f32 %v6761_v31, %v6768_v12  ;;  %v6775_v43 = vmax.f32 %v6767_v9, %v6774_v36 }
0x10e3   : > { %v6685_v41 = vmul.f32 %v10437_v40, %v14786_v16  ;;  %v6735_v16 = vadd.f32 %v14835_v60, %v6706_v47  ;;  %v6742_v24 = vadd.f32 %v14835_v60, %v6713_v4  ;;  %v6781_v40 = vmax.f32 %v6773_v20, %v6780_v59 }
0x10e4   : > { %v6777_v47 = vmax.f32 %v6769_v48, %v6776_v6  ;;  %v6783_v13 = vmax.f32 %v6775_v43, %v6782_v10 }
0x10e5   : > { %v6714_v28 = vmul.f32 %v14825_v2, %v6685_v41  ;;  %v6784_v17 = vsel %vm2138_vm14, %v6742_v24, -inf }
0x10e6   : > { %v10439_v61 = vpop.eup %10438  ;;  %v6785_v26 = vmax.f32 %v6777_v47, %v6784_v17 }
0x10e7   : > { %v6686_v33 = vmul.f32 %v10439_v61, %v14792_v5  ;;  %v6770_v5 = vsel %vm2138_vm14, %v6735_v16, -inf  ;;  %v6743_v32 = vadd.f32 %v14835_v60, %v6714_v28 }
0x10e8   : > { %v6771_v37 = vmax.f32 %v6763_v27, %v6770_v5 }
0x10e9   : > { %v6715_v46 = vmul.f32 %v14825_v2, %v6686_v33  ;;  %v10444_v33 = vld [vmem:[%s15017_s4 + $0x160] sm:$0x7f] }
0x10ea   : > { %v10441_v42 = vpop.eup %10440  ;;  %v6779_v56 = vmax.f32 %v6771_v37, %v6778_v11  ;;  %v7368_v39 = vrot.slane %v10444_v33, 6 }
0x10eb   : > { %v6744_v45 = vadd.f32 %v14835_v60, %v6715_v46  ;;  %v6687_v21 = vmul.f32 %v10441_v42, %v14798_v19  ;;  %v6786_v19 = vsel %vm2138_vm14, %v6743_v32, -inf }
0x10ec   : > { %v6787_v41 = vmax.f32 %v6779_v56, %v6786_v19 }
0x10ed   : > { %v6788_v1 = vsel %vm2138_vm14, %v6744_v45, -inf  ;;  %v6716_v0 = vmul.f32 %v14825_v2, %v6687_v21 }
0x10ee   : > { %v6789_v52 = vmax.f32 %v6781_v40, %v6788_v1 }
0x10ef   : > { %v6745_v38 = vadd.f32 %v14835_v60, %v6716_v0  ;;  %v10443_v60 = vld [vmem:[%s15017_s4 + $0x1ad] sm:$0x7] }
0x10f0   : > { %v6793_v49 = vmax.f32 %v6787_v41, %v6789_v52  ;;  %v6966_v61 = vrot.slane %v10443_v60, 1  ;;  %v7053_v23 = vrot.slane %v10443_v60, 2 }
0x10f1   : > { %v6790_v54 = vsel %vm2138_vm14, %v6745_v38, -inf }
0x10f2   : > { %v6791_v51 = vmax.f32 %v6783_v13, %v6790_v54  ;;  %v7043_v16 = vadd.f32 %v14773_v3, %v6966_v61 }
0x10f4   : > { %v6792_v2 = vmax.f32 %v6791_v51, %v6785_v26 }
0x10f6   : > { %v6794_v55 = vmax.f32 %v6792_v2, %v6793_v49 }
0x10f8   : > { %v6795_v25 = vrot.slane %v6794_v55, 4 }
0x10fa   : > { %v6796_v50 = vmax.f32 %v6794_v55, %v6795_v25 }
0x10fc   : > { %v6797_v18 = vrot.slane %v6796_v50, 2 }
0x10fe   : > { %v6798_v8 = vmax.f32 %v6796_v50, %v6797_v18 }
0x1100   : > { %v6799_v62 = vrot.slane %v6798_v8, 1 }
0x1102   : > { %v6800_v7 = vmax.f32 %v6798_v8, %v6799_v62 }
0x1104   : > { %9181 = vmatmul.mubr.msk.f32.vlgmr.msra.gmra.mrb[122].mxu0 %vm2138_vm14, %v6800_v7 }
0x1105   : > { %9184 = vmatpush3.msk.msra.mxu0 %vm6972_vm6, %v14807_v15  ;;  %9185 = vmatprep.mubr.msk.f32.mxu0 %vm10526_vm1, %v15405_v58  ;;  %v7126_v15 = vadd.f32 %v14777_v29, %v7053_v23 }
0x1106   : > { %9188 = vmatprep.subr.mxu0 %v15405_v58 }
0x1108   : > { %9186 = vmatmul.mubr.msk.f32.vlgmr.msra.gmra.mrb[124].mxu0 %vm6968_vm7, %v7043_v16 }
0x1109   : > { %9189 = vmatpush3.msk.msra.mxu0 %vm6972_vm6, %v7139_v22  ;;  %9190 = vmatprep.mubr.msk.f32.mxu0 %vm10526_vm1, %v15405_v58  ;;  %vm7371_vm1 = vcmask 122880  }
0x110c   : > { %9191 = vmatmul.mubr.msk.f32.vlgmr.msra.gmra.mrb[126].mxu0 %vm6968_vm7, %v7126_v15 }
0x11d7   : > { %v7212_v34 = vpop.f32.mrb[122].mxu0 }
0x11d8   : > { %v9182_v31 = vpop.f32.mrb[123].mxu0 }
0x11db   : > { %v7287_v3 = vpop.f32.mrb[124].mxu0 }
0x11dc   : > { %v7288_v4 = vadd.f32 %v7287_v3, %v7212_v34  ;;  %v9187_v28 = vpop.f32.mrb[125].mxu0 }
0x11df   : > { %v7362_v22 = vpop.f32.mrb[126].mxu0 }
0x11e0   : > { %v7366_v58 = vadd.f32 %v7362_v22, %v7288_v4  ;;  %v9192_v29 = vpop.f32.mrb[127].mxu0 }
0x11e2   : > { %v7370_v35 = vadd.f32 %v7368_v39, %v7366_v58 }
0x11e4   : > { %7372 = vst.msk [vmem:[%s277_s23] sm:$0x1] %vm7371_vm1, %v7370_v35 }
0x11e5   : > { %10470 = shalt.err (!%p10467_p9)
}
0x11e6   : > { %s10471_s13 = scalar_lea.hbm %s14971_s26, 16  ;;  %s10475_s19 = scalar_lea.hbm %s15020_s7, 32 }
0x11e7   : > { %p10472_p12 = scmp.ne.s32.totalorder %s14971_s26, %s10471_s13  ;;  %p10476_p1 = scmp.lt.u32.totalorder %s14971_s26, %s15020_s7 }
0x11e8   : > { %p10477_p2 = scmp.lt.u32.totalorder %s10475_s19, %s10471_s13  ;;  %p10479_p4 = scmp.lt.u32.totalorder %s10471_s13, %s14971_s26 }
0x11e9   : > { %p10473_p13 = pnand %p10472_p12, %p10616_p10 }
0x11ea   : > { %p10478_p3 = por %p10477_p2, %p10476_p1 }
0x11eb   : > { %p10474_p0 = pneg %p10473_p13 }
0x11ec   : > { %p10480_p5 = por %p10479_p4, %p10478_p3 }
0x11ee   : > { %p10481_p6 = pnand %p10480_p5, %p10474_p0 }
0x11f0   : > { %10484 = shalt.err (!%p10481_p6)
}
0x11f1   : > { %9750 = dma.vmem_to_hbm [thread:$0]  (%p10616_p10), %s14973_s24, 16, %s14971_s26, %s7374_s27  }
0x11f2 PF: > { %p9756_p7 = scmp.ge.s32.totalorder %s10521_s8, 2  ;;  %s7398_s23 = sand.u32 1, %s10509_s29  }
0x11f3   : > { %s7399_s25 = scalar_lea.sflag [#allocation5], %s7398_s23 }
0x11f4   : > { %p9753_p8 = pnand %p9756_p7, %p10620_p11 }
0x11f6   : > { %10504 = dma.done.wait (!%p9753_p8), %s7399_s25, 16  }
0x11f7   : > { %10506 = vsyncadd (!%p9753_p8), %s7399_s25, 4294967280  ;;  %p23_p9 = scmp.ge.s32.totalorder %s10603_s11, 4   ;;  %s15457_s29 = smov %s10513_s30 }
0x11f8   : > { %s15458_s30 = smov %s10517_s0  ;;  %s15459_s0 = smov %s10614_s14 }
0x11f9   : > { %s15460_s8 = smov %s10603_s11  ;;  %25 = sbr.rel (!%p23_p9) target bundleno = 18 (0x12), region = 85 }
0x1200   :  { %7403 = vsyncpa [#allocation5], 1 }
0x1201   :  { %7405 = vsyncpa [#allocation5 + $0x1], 1 }

</bundles_post_ra>
